<compile_context>
chip_gen: v7x
topology: tpu7x:2x2x1
jax: 0.10.0
libtpu: 0.0.40
codegen_flags: <defaults>
</compile_context>

<pallas_src>
import functools

import jax
import jax.numpy as jnp
from jax.experimental import pallas as pl
from jax.experimental.pallas import tpu as pltpu


# ---------------- config (scaled-down ResNet-50) ----------------
BLOCKS = (3, 4, 6, 3)            # true ResNet-50 stage depths
BASE = 8                         # 64 in the real network
EXPANSION = 4
IMG = 64                         # 300 in the real module
POOL_K = IMG // 32               # final feature map is IMG/32 -> AvgPool2d(POOL_K, 1)
FEAT_DIM = 8 * BASE * EXPANSION  # analogue of 2048
BN_EPS = 1e-5

LANE = 128                       # TPU lane width (channel padding quantum)


def _round_up(x, m):
    return (x + m - 1) // m * m


def _pick(dim, candidates):
    """Largest candidate tile that evenly divides dim."""
    for c in candidates:
        if dim % c == 0:
            return c
    return dim


def _pick_tk(k_dim, tm, tn, budget_bytes=8 * 1024 * 1024):
    """Largest K tile dividing K whose double-buffered bf16 A/B tiles plus the
    f32 accumulator fit a conservative VMEM budget (safe for v5e's 16 MiB
    default scoped VMEM and v7x's smaller 64 MiB physical VMEM)."""
    def fits(tk):
        return 2 * 2 * tk * (tm + tn) + 4 * tm * tn <= budget_bytes

    if k_dim <= 512 and fits(k_dim):
        return k_dim
    for c in (1024, 512, 384, 256, 128):
        if k_dim % c == 0 and fits(c):
            return c
    return k_dim


# ---------------- Pallas kernels ----------------

def _mm_bias_kernel(a_ref, b_ref, t_ref, o_ref, acc_ref, *, relu):
    """o = act(A @ B + shift); accumulated over the K grid axis in f32."""
    @pl.when(pl.program_id(2) == 0)
    def _():
        acc_ref[...] = jnp.zeros_like(acc_ref)

    acc_ref[...] += jnp.dot(a_ref[...], b_ref[...],
                            preferred_element_type=jnp.float32)

    @pl.when(pl.program_id(2) == pl.num_programs(2) - 1)
    def _():
        y = acc_ref[...] + t_ref[...]
        if relu:
            y = jnp.maximum(y, 0.0)
        o_ref[...] = y.astype(o_ref.dtype)


def _mm_bias_res_kernel(a_ref, b_ref, t_ref, r_ref, o_ref, acc_ref):
    """o = relu(A @ B + shift + residual): Bottleneck conv3 + skip-add fused."""
    @pl.when(pl.program_id(2) == 0)
    def _():
        acc_ref[...] = jnp.zeros_like(acc_ref)

    acc_ref[...] += jnp.dot(a_ref[...], b_ref[...],
                            preferred_element_type=jnp.float32)

    @pl.when(pl.program_id(2) == pl.num_programs(2) - 1)
    def _():
        y = acc_ref[...] + t_ref[...] + r_ref[...].astype(jnp.float32)
        o_ref[...] = jnp.maximum(y, 0.0).astype(o_ref.dtype)


def _max9_kernel(x_ref, o_ref):
    """9-tap max (3x3 maxpool) reduced over the leading tap axis."""
    o_ref[...] = jnp.max(x_ref[...].astype(jnp.float32),
                         axis=0).astype(o_ref.dtype)


def _avgpool_kernel(x_ref, o_ref, *, inv):
    """Global average pool: f32 sum over the H*W axis, scaled."""
    o_ref[...] = jnp.sum(x_ref[...].astype(jnp.float32),
                         axis=1, keepdims=True) * inv


# ---------------- Pallas wrappers ----------------

def matmul_bias_act(a, b, shift, relu, residual=None):
    """act((a @ b) + shift [+ residual]) on the MXU.

    a:(M,K) bf16, b:(K,Np) bf16 (BN scale pre-folded), shift:(1,Np) f32,
    residual:(M,Np) bf16 or None.  Grid (M/tm, Np/tn, K/tk), f32 accumulator.
    """
    M, K = a.shape
    Kb, Np = b.shape
    assert K == Kb and M % 8 == 0 and Np % LANE == 0

    tm = _pick(M, (256, 128, 64, 32, 16, 8))
    if M // tm == 1 and M >= 32 and (M // 2) % 8 == 0:
        tm = M // 2          # >=2 parallel M steps so v7x's second TC has work
    tn = _pick(Np, (256, 128))
    tk = _pick_tk(K, tm, tn)
    grid = (M // tm, Np // tn, K // tk)

    in_specs = [
        pl.BlockSpec((tm, tk), lambda i, j, k: (i, k)),
        pl.BlockSpec((tk, tn), lambda i, j, k: (k, j)),
        pl.BlockSpec((1, tn), lambda i, j, k: (0, j)),
    ]
    args = [a, b, shift]
    if residual is None:
        kernel = functools.partial(_mm_bias_kernel, relu=relu)
    else:
        kernel = _mm_bias_res_kernel
        in_specs.append(pl.BlockSpec((tm, tn), lambda i, j, k: (i, j)))
        args.append(residual)

    return pl.pallas_call(
        kernel,
        out_shape=jax.ShapeDtypeStruct((M, Np), jnp.bfloat16),
        grid=grid,
        in_specs=in_specs,
        out_specs=pl.BlockSpec((tm, tn), lambda i, j, k: (i, j)),
        scratch_shapes=[pltpu.VMEM((tm, tn), jnp.float32)],
        compiler_params=pltpu.CompilerParams(
            dimension_semantics=("parallel", "parallel", "arbitrary")),
    )(*args)


def conv_fused(x, wm, shift, stride, pad, kh, kw, relu=True, residual=None):
    """Convolution as im2col + fused [matmul + shift (+residual) (+relu)].

    x:(N,H,W,Cp) bf16 NHWC channel-padded; wm:(Kp,Np) bf16 with BN scale folded
    in; shift:(1,Np) f32; residual (optional) (N,Ho,Wo,Np) bf16.
    """
    N, H, W, Cp = x.shape
    Ho = (H + 2 * pad - kh) // stride + 1
    Wo = (W + 2 * pad - kw) // stride + 1
    if kh == 1 and kw == 1 and pad == 0:
        xs = x if stride == 1 else x[:, ::stride, ::stride, :]
        cols = xs.reshape(N * Ho * Wo, Cp)
    else:
        # TODO(synk): im2col still materializes kh*kw shifted copies host-side;
        # per-tap in-kernel accumulation (windowed BlockSpecs / manual DMA)
        # would cut this HBM traffic ~9x at full ResNet-50 scale.
        xp = jnp.pad(x, ((0, 0), (pad, pad), (pad, pad), (0, 0)))
        taps = [xp[:, i:i + stride * Ho:stride, j:j + stride * Wo:stride, :]
                for i in range(kh) for j in range(kw)]
        cols = jnp.concatenate(taps, axis=-1).reshape(N * Ho * Wo, kh * kw * Cp)
    Kp = wm.shape[0]
    if cols.shape[1] != Kp:          # stem only: K = 7*7*3 = 147 -> 256
        cols = jnp.pad(cols, ((0, 0), (0, Kp - cols.shape[1])))
    res2d = None if residual is None else residual.reshape(N * Ho * Wo, -1)
    out = matmul_bias_act(cols, wm, shift, relu, res2d)
    return out.reshape(N, Ho, Wo, wm.shape[1])


def maxpool_3x3_s2_p1(x):
    """nn.MaxPool2d(3, stride=2, padding=1) on NHWC (channel-padded) input."""
    N, H, W, Cp = x.shape
    Ho = (H + 2 - 3) // 2 + 1
    Wo = (W + 2 - 3) // 2 + 1
    # TODO(synk): taps are still gathered host-side (9x stem activation in HBM);
    # in-kernel strided tap reads would remove that traffic at full scale.
    xp = jnp.pad(x, ((0, 0), (1, 1), (1, 1), (0, 0)),
                 constant_values=-jnp.inf)
    taps = [xp[:, i:i + 2 * Ho:2, j:j + 2 * Wo:2, :]
            for i in range(3) for j in range(3)]
    p = jnp.stack(taps, axis=0).reshape(9, N * Ho * Wo, Cp)
    M = N * Ho * Wo
    tm = _pick(M, (256, 128, 64, 32, 16, 8))
    out = pl.pallas_call(
        _max9_kernel,
        out_shape=jax.ShapeDtypeStruct((M, Cp), x.dtype),
        grid=(M // tm,),
        in_specs=[pl.BlockSpec((9, tm, Cp), lambda i: (0, i, 0))],
        out_specs=pl.BlockSpec((tm, Cp), lambda i: (i, 0)),
        compiler_params=pltpu.CompilerParams(
            dimension_semantics=("parallel",)),
    )(p)
    return out.reshape(N, Ho, Wo, Cp)


def global_avgpool(x, k):
    """nn.AvgPool2d(k, 1) where the feature map is exactly k x k -> (N, C) f32."""
    N, H, W, Cp = x.shape
    assert H == k and W == k
    xr = x.reshape(N, H * W, Cp)
    out = pl.pallas_call(
        functools.partial(_avgpool_kernel, inv=1.0 / (k * k)),
        out_shape=jax.ShapeDtypeStruct((N, 1, Cp), jnp.float32),
        grid=(N,),
        in_specs=[pl.BlockSpec((1, H * W, Cp), lambda i: (i, 0, 0))],
        out_specs=pl.BlockSpec((1, 1, Cp), lambda i: (i, 0, 0)),
        compiler_params=pltpu.CompilerParams(
            dimension_semantics=("parallel",)),
    )(xr)
    return out[:, 0, :FEAT_DIM]


# ---------------- parameters (deterministic) ----------------

def _winit(key, shape, fan_in):
    return jax.random.normal(key, shape, jnp.float32) * jnp.sqrt(2.0 / fan_in)


def _bninit(key, c):
    k1, k2, k3, k4 = jax.random.split(key, 4)
    gamma = jax.random.uniform(k1, (c,), jnp.float32, 0.5, 1.5)
    beta = jax.random.normal(k2, (c,), jnp.float32) * 0.1
    mean = jax.random.normal(k3, (c,), jnp.float32) * 0.1
    var = jax.random.uniform(k4, (c,), jnp.float32, 0.5, 1.5)
    return (gamma, beta, mean, var)


def init_params(key):
    k = key

    def nk():
        nonlocal k
        k, sub = jax.random.split(k)
        return sub

    params = {
        "conv1_w": _winit(nk(), (BASE, 3, 7, 7), 3 * 49),
        "bn1": _bninit(nk(), BASE),
        "layers": [],
    }
    inplanes = BASE
    stage_planes = (BASE, 2 * BASE, 4 * BASE, 8 * BASE)
    stage_strides = (1, 2, 2, 2)
    for nblocks, planes, stride in zip(BLOCKS, stage_planes, stage_strides):
        blocks = []
        for b in range(nblocks):
            s = stride if b == 0 else 1
            blk = {
                "stride": s,
                "conv1_w": _winit(nk(), (planes, inplanes, 1, 1), inplanes),
                "bn1": _bninit(nk(), planes),
                "conv2_w": _winit(nk(), (planes, planes, 3, 3), planes * 9),
                "bn2": _bninit(nk(), planes),
                "conv3_w": _winit(nk(), (planes * EXPANSION, planes, 1, 1), planes),
                "bn3": _bninit(nk(), planes * EXPANSION),
            }
            if s != 1 or inplanes != planes * EXPANSION:
                blk["ds_w"] = _winit(nk(), (planes * EXPANSION, inplanes, 1, 1),
                                     inplanes)
                blk["ds_bn"] = _bninit(nk(), planes * EXPANSION)
            blocks.append(blk)
            inplanes = planes * EXPANSION
        params["layers"].append(blocks)
    return params


def _prep_conv(w, bn, cin_pad):
    """One-time: fold BN scale into the weights, pad to lane multiples, bf16.

    Returns (wm, shift): wm:(Kp,Np) bf16 im2col-layout weight (kh-major, kw,
    padded cin), shift:(1,Np) f32 = beta - mean*scale."""
    gamma, beta, mean, var = bn
    scale = gamma / jnp.sqrt(var + BN_EPS)
    shift = beta - mean * scale
    cout, cin, kh, kw = w.shape
    np_ = _round_up(cout, LANE)
    wt = jnp.transpose(w, (2, 3, 1, 0)) * scale                 # (kh,kw,cin,cout)
    wt = jnp.pad(wt, ((0, 0), (0, 0), (0, cin_pad - cin), (0, np_ - cout)))
    wm = wt.reshape(kh * kw * cin_pad, np_)
    kp = _round_up(wm.shape[0], LANE)
    wm = jnp.pad(wm, ((0, kp - wm.shape[0]), (0, 0))).astype(jnp.bfloat16)
    sh = jnp.pad(shift, (0, np_ - cout)).reshape(1, np_).astype(jnp.float32)
    return wm, sh


def prepare_params(params):
    """Fold BN + pad + transpose + bf16-cast all conv weights once."""
    prepped = {"conv1": _prep_conv(params["conv1_w"], params["bn1"], cin_pad=3),
               "layers": []}
    for blocks in params["layers"]:
        pblocks = []
        for blk in blocks:
            pb = {
                "stride": blk["stride"],
                "conv1": _prep_conv(blk["conv1_w"], blk["bn1"],
                                    _round_up(blk["conv1_w"].shape[1], LANE)),
                "conv2": _prep_conv(blk["conv2_w"], blk["bn2"],
                                    _round_up(blk["conv2_w"].shape[1], LANE)),
                "conv3": _prep_conv(blk["conv3_w"], blk["bn3"],
                                    _round_up(blk["conv3_w"].shape[1], LANE)),
            }
            if "ds_w" in blk:
                pb["ds"] = _prep_conv(blk["ds_w"], blk["ds_bn"],
                                      _round_up(blk["ds_w"].shape[1], LANE))
            pblocks.append(pb)
        prepped["layers"].append(pblocks)
    return prepped


# ---------------- forward (mirrors ResNet50Bottom.forward) ----------------

def bottleneck(x, blk):
    """ResNet Bottleneck; the skip add + relu is fused into conv3's epilogue."""
    s = blk["stride"]
    if "ds" in blk:
        wm, sh = blk["ds"]
        identity = conv_fused(x, wm, sh, s, 0, 1, 1, relu=False)
    else:
        identity = x
    wm, sh = blk["conv1"]
    out = conv_fused(x, wm, sh, 1, 0, 1, 1, relu=True)
    wm, sh = blk["conv2"]
    out = conv_fused(out, wm, sh, s, 1, 3, 3, relu=True)
    wm, sh = blk["conv3"]
    return conv_fused(out, wm, sh, 1, 0, 1, 1, residual=identity)


def resnet50_bottom_forward(prepped, x):
    # x.view(-1, 3, 300, 300)   (scaled: 3 x IMG x IMG)
    x = x.reshape(-1, 3, IMG, IMG)
    x = jnp.transpose(x, (0, 2, 3, 1)).astype(jnp.bfloat16)     # NCHW -> NHWC
    # self.features = conv1 / bn1 / relu / maxpool / layer1..4
    wm, sh = prepped["conv1"]
    x = conv_fused(x, wm, sh, 2, 3, 7, 7, relu=True)
    x = maxpool_3x3_s2_p1(x)
    for blocks in prepped["layers"]:
        for blk in blocks:
            x = bottleneck(x, blk)
    # self.avg_pool = nn.AvgPool2d(10, 1)   (scaled: AvgPool2d(POOL_K, 1))
    feat = global_avgpool(x, POOL_K)
    # x.view(-1, 2048)   (scaled: FEAT_DIM)
    return feat.reshape(-1, FEAT_DIM)


if __name__ == "__main__":
    key = jax.random.PRNGKey(0)
    pkey, xkey = jax.random.split(key)
    params = init_params(pkey)
    prepped = prepare_params(params)

    batch = 2
    x = jax.random.normal(xkey, (batch, 3, IMG, IMG), jnp.float32)  # NCHW

    fwd = jax.jit(functools.partial(resnet50_bottom_forward, prepped))
    out = jax.block_until_ready(fwd(x))

    assert out.shape == (batch, FEAT_DIM), out.shape
    assert bool(jnp.all(jnp.isfinite(out)))
    print("KERNEL_OK")
</pallas_src>

<mosaic_0001>
module attributes {stable_mosaic.version = 11 : i64} {
  func.func @_mm_bias_kernel(%arg0: i32, %arg1: i32, %arg2: i32, %arg3: memref<256x256xbf16, #tpu.memory_space<vmem>>, %arg4: memref<256x128xbf16, #tpu.memory_space<vmem>>, %arg5: memref<1x128xf32, #tpu.memory_space<vmem>>, %arg6: memref<256x128xbf16, #tpu.memory_space<vmem>>, %arg7: memref<256x128xf32, #tpu.memory_space<vmem>>) attributes {dimension_semantics = [#tpu.dimension_semantics<parallel>, #tpu.dimension_semantics<parallel>, #tpu.dimension_semantics<arbitrary>], iteration_bounds = array<i64: 8, 1, 1>, scalar_prefetch = 0 : i64, scratch_operands = 1 : i64, tpu.core_type = #tpu.core_type<tc>, window_params = [{transform_indices = @transform_0, window_bounds = array<i64: 256, 256>}, {transform_indices = @transform_1, window_bounds = array<i64: 256, 128>}, {transform_indices = @transform_2, window_bounds = array<i64: 1, 128>}, {transform_indices = @transform_3, window_bounds = array<i64: 256, 128>}]} {
    %c0_i32 = arith.constant 0 : i32
    %0 = arith.cmpi eq, %arg2, %c0_i32 : i32
    %1 = arith.extui %0 : i1 to i32
    %c0_i32_0 = arith.constant 0 : i32
    %2 = arith.cmpi ne, %1, %c0_i32_0 : i32
    scf.if %2 {
      %cst_10 = arith.constant 0.000000e+00 : f32
      %12 = vector.broadcast %cst_10 : f32 to vector<256x128xf32>
      %c0_11 = arith.constant 0 : index
      %c0_12 = arith.constant 0 : index
      %13 = vector.load %arg7[%c0_11, %c0_12] : memref<256x128xf32, #tpu.memory_space<vmem>>, vector<256x128xf32>
      tpu.vector_store %arg7[%c0_11, %c0_12], %12 {strides = array<i32>} : memref<256x128xf32, #tpu.memory_space<vmem>>, vector<256x128xf32>,
    } else {
    }
    %c0 = arith.constant 0 : index
    %c0_1 = arith.constant 0 : index
    %3 = vector.load %arg7[%c0, %c0_1] : memref<256x128xf32, #tpu.memory_space<vmem>>, vector<256x128xf32>
    %c0_2 = arith.constant 0 : index
    %c0_3 = arith.constant 0 : index
    %4 = vector.load %arg3[%c0_2, %c0_3] : memref<256x256xbf16, #tpu.memory_space<vmem>>, vector<256x256xbf16>
    %c0_4 = arith.constant 0 : index
    %c0_5 = arith.constant 0 : index
    %5 = vector.load %arg4[%c0_4, %c0_5] : memref<256x128xbf16, #tpu.memory_space<vmem>>, vector<256x128xbf16>
    %cst = arith.constant dense<0.000000e+00> : vector<256x128xf32>
    %6 = tpu.matmul %4, %5, %cst {dimension_numbers = #tpu.dot_dimension_numbers<[1], [0], [0], [1], [0, 0, 1, 1], [], []>} : vector<256x256xbf16>, vector<256x128xbf16>, vector<256x128xf32> -> vector<256x128xf32>
    %7 = arith.addf %3, %6 : vector<256x128xf32>
    %c0_6 = arith.constant 0 : index
    %c0_7 = arith.constant 0 : index
    %8 = vector.load %arg7[%c0_6, %c0_7] : memref<256x128xf32, #tpu.memory_space<vmem>>, vector<256x128xf32>
    tpu.vector_store %arg7[%c0_6, %c0_7], %7 {strides = array<i32>} : memref<256x128xf32, #tpu.memory_space<vmem>>, vector<256x128xf32>,
    %c0_i32_8 = arith.constant 0 : i32
    %9 = arith.cmpi eq, %arg2, %c0_i32_8 : i32
    %10 = arith.extui %9 : i1 to i32
    %c0_i32_9 = arith.constant 0 : i32
    %11 = arith.cmpi ne, %10, %c0_i32_9 : i32
    scf.if %11 {
      %c0_10 = arith.constant 0 : index
      %c0_11 = arith.constant 0 : index
      %12 = vector.load %arg7[%c0_10, %c0_11] : memref<256x128xf32, #tpu.memory_space<vmem>>, vector<256x128xf32>
      %c0_12 = arith.constant 0 : index
      %c0_13 = arith.constant 0 : index
      %13 = vector.load %arg5[%c0_12, %c0_13] : memref<1x128xf32, #tpu.memory_space<vmem>>, vector<1x128xf32>
      %14 = vector.broadcast %13 : vector<1x128xf32> to vector<256x128xf32>
      %15 = arith.addf %12, %14 : vector<256x128xf32>
      %cst_14 = arith.constant 0.000000e+00 : f32
      %16 = vector.broadcast %cst_14 : f32 to vector<256x128xf32>
      %17 = arith.maximumf %15, %16 : vector<256x128xf32>
      %18 = arith.truncf %17 : vector<256x128xf32> to vector<256x128xbf16>
      %c0_15 = arith.constant 0 : index
      %c0_16 = arith.constant 0 : index
      %19 = vector.load %arg6[%c0_15, %c0_16] : memref<256x128xbf16, #tpu.memory_space<vmem>>, vector<256x128xbf16>
      tpu.vector_store %arg6[%c0_15, %c0_16], %18 {strides = array<i32>} : memref<256x128xbf16, #tpu.memory_space<vmem>>, vector<256x128xbf16>,
    } else {
    }
    return
  }
  func.func @transform_0(%arg0: i32, %arg1: i32, %arg2: i32) -> (i32, i32) {
    %c0_i32 = arith.constant 0 : i32
    return %arg0, %arg2 : i32, i32
  }
  func.func @transform_1(%arg0: i32, %arg1: i32, %arg2: i32) -> (i32, i32) {
    %c0_i32 = arith.constant 0 : i32
    return %arg2, %arg1 : i32, i32
  }
  func.func @transform_2(%arg0: i32, %arg1: i32, %arg2: i32) -> (i32, i32) {
    %c0_i32 = arith.constant 0 : i32
    %c0_i32_0 = arith.constant 0 : i32
    return %c0_i32, %arg1 : i32, i32
  }
  func.func @transform_3(%arg0: i32, %arg1: i32, %arg2: i32) -> (i32, i32) {
    %c0_i32 = arith.constant 0 : i32
    return %arg0, %arg1 : i32, i32
  }
}

module attributes {stable_mosaic.version = 11 : i64} {
  func.func @_mm_bias_kernel(%arg0: i32, %arg1: i32, %arg2: i32, %arg3: memref<256x128xbf16, #tpu.memory_space<vmem>>, %arg4: memref<128x128xbf16, #tpu.memory_space<vmem>>, %arg5: memref<1x128xf32, #tpu.memory_space<vmem>>, %arg6: memref<256x128xbf16, #tpu.memory_space<vmem>>, %arg7: memref<256x128xf32, #tpu.memory_space<vmem>>) attributes {dimension_semantics = [#tpu.dimension_semantics<parallel>, #tpu.dimension_semantics<parallel>, #tpu.dimension_semantics<arbitrary>], iteration_bounds = array<i64: 2, 1, 1>, scalar_prefetch = 0 : i64, scratch_operands = 1 : i64, tpu.core_type = #tpu.core_type<tc>, window_params = [{transform_indices = @transform_0, window_bounds = array<i64: 256, 128>}, {transform_indices = @transform_1, window_bounds = array<i64: 128, 128>}, {transform_indices = @transform_2, window_bounds = array<i64: 1, 128>}, {transform_indices = @transform_3, window_bounds = array<i64: 256, 128>}]} {
    %c0_i32 = arith.constant 0 : i32
    %0 = arith.cmpi eq, %arg2, %c0_i32 : i32
    %1 = arith.extui %0 : i1 to i32
    %c0_i32_0 = arith.constant 0 : i32
    %2 = arith.cmpi ne, %1, %c0_i32_0 : i32
    scf.if %2 {
      %cst_10 = arith.constant 0.000000e+00 : f32
      %12 = vector.broadcast %cst_10 : f32 to vector<256x128xf32>
      %c0_11 = arith.constant 0 : index
      %c0_12 = arith.constant 0 : index
      %13 = vector.load %arg7[%c0_11, %c0_12] : memref<256x128xf32, #tpu.memory_space<vmem>>, vector<256x128xf32>
      tpu.vector_store %arg7[%c0_11, %c0_12], %12 {strides = array<i32>} : memref<256x128xf32, #tpu.memory_space<vmem>>, vector<256x128xf32>,
    } else {
    }
    %c0 = arith.constant 0 : index
    %c0_1 = arith.constant 0 : index
    %3 = vector.load %arg7[%c0, %c0_1] : memref<256x128xf32, #tpu.memory_space<vmem>>, vector<256x128xf32>
    %c0_2 = arith.constant 0 : index
    %c0_3 = arith.constant 0 : index
    %4 = vector.load %arg3[%c0_2, %c0_3] : memref<256x128xbf16, #tpu.memory_space<vmem>>, vector<256x128xbf16>
    %c0_4 = arith.constant 0 : index
    %c0_5 = arith.constant 0 : index
    %5 = vector.load %arg4[%c0_4, %c0_5] : memref<128x128xbf16, #tpu.memory_space<vmem>>, vector<128x128xbf16>
    %cst = arith.constant dense<0.000000e+00> : vector<256x128xf32>
    %6 = tpu.matmul %4, %5, %cst {dimension_numbers = #tpu.dot_dimension_numbers<[1], [0], [0], [1], [0, 0, 1, 1], [], []>} : vector<256x128xbf16>, vector<128x128xbf16>, vector<256x128xf32> -> vector<256x128xf32>
    %7 = arith.addf %3, %6 : vector<256x128xf32>
    %c0_6 = arith.constant 0 : index
    %c0_7 = arith.constant 0 : index
    %8 = vector.load %arg7[%c0_6, %c0_7] : memref<256x128xf32, #tpu.memory_space<vmem>>, vector<256x128xf32>
    tpu.vector_store %arg7[%c0_6, %c0_7], %7 {strides = array<i32>} : memref<256x128xf32, #tpu.memory_space<vmem>>, vector<256x128xf32>,
    %c0_i32_8 = arith.constant 0 : i32
    %9 = arith.cmpi eq, %arg2, %c0_i32_8 : i32
    %10 = arith.extui %9 : i1 to i32
    %c0_i32_9 = arith.constant 0 : i32
    %11 = arith.cmpi ne, %10, %c0_i32_9 : i32
    scf.if %11 {
      %c0_10 = arith.constant 0 : index
      %c0_11 = arith.constant 0 : index
      %12 = vector.load %arg7[%c0_10, %c0_11] : memref<256x128xf32, #tpu.memory_space<vmem>>, vector<256x128xf32>
      %c0_12 = arith.constant 0 : index
      %c0_13 = arith.constant 0 : index
      %13 = vector.load %arg5[%c0_12, %c0_13] : memref<1x128xf32, #tpu.memory_space<vmem>>, vector<1x128xf32>
      %14 = vector.broadcast %13 : vector<1x128xf32> to vector<256x128xf32>
      %15 = arith.addf %12, %14 : vector<256x128xf32>
      %cst_14 = arith.constant 0.000000e+00 : f32
      %16 = vector.broadcast %cst_14 : f32 to vector<256x128xf32>
      %17 = arith.maximumf %15, %16 : vector<256x128xf32>
      %18 = arith.truncf %17 : vector<256x128xf32> to vector<256x128xbf16>
      %c0_15 = arith.constant 0 : index
      %c0_16 = arith.constant 0 : index
      %19 = vector.load %arg6[%c0_15, %c0_16] : memref<256x128xbf16, #tpu.memory_space<vmem>>, vector<256x128xbf16>
      tpu.vector_store %arg6[%c0_15, %c0_16], %18 {strides = array<i32>} : memref<256x128xbf16, #tpu.memory_space<vmem>>, vector<256x128xbf16>,
    } else {
    }
    return
  }
  func.func @transform_0(%arg0: i32, %arg1: i32, %arg2: i32) -> (i32, i32) {
    %c0_i32 = arith.constant 0 : i32
    return %arg0, %arg2 : i32, i32
  }
  func.func @transform_1(%arg0: i32, %arg1: i32, %arg2: i32) -> (i32, i32) {
    %c0_i32 = arith.constant 0 : i32
    return %arg2, %arg1 : i32, i32
  }
  func.func @transform_2(%arg0: i32, %arg1: i32, %arg2: i32) -> (i32, i32) {
    %c0_i32 = arith.constant 0 : i32
    %c0_i32_0 = arith.constant 0 : i32
    return %c0_i32, %arg1 : i32, i32
  }
  func.func @transform_3(%arg0: i32, %arg1: i32, %arg2: i32) -> (i32, i32) {
    %c0_i32 = arith.constant 0 : i32
    return %arg0, %arg1 : i32, i32
  }
}

module attributes {stable_mosaic.version = 11 : i64} {
  func.func @_max9_kernel(%arg0: i32, %arg1: memref<9x256x128xbf16, #tpu.memory_space<vmem>>, %arg2: memref<256x128xbf16, #tpu.memory_space<vmem>>) attributes {dimension_semantics = [#tpu.dimension_semantics<parallel>], iteration_bounds = array<i64: 2>, scalar_prefetch = 0 : i64, scratch_operands = 0 : i64, tpu.core_type = #tpu.core_type<tc>, window_params = [{transform_indices = @transform_0, window_bounds = array<i64: 9, 256, 128>}, {transform_indices = @transform_1, window_bounds = array<i64: 256, 128>}]} {
    %c0 = arith.constant 0 : index
    %c0_0 = arith.constant 0 : index
    %c0_1 = arith.constant 0 : index
    %0 = vector.load %arg1[%c0, %c0_0, %c0_1] : memref<9x256x128xbf16, #tpu.memory_space<vmem>>, vector<9x256x128xbf16>
    %1 = arith.extf %0 : vector<9x256x128xbf16> to vector<9x256x128xf32>
    %cst = arith.constant dense<0xFF800000> : vector<256x128xf32>
    %2 = vector.multi_reduction <maximumf>, %1, %cst [0] : vector<9x256x128xf32> to vector<256x128xf32>
    %3 = arith.truncf %2 : vector<256x128xf32> to vector<256x128xbf16>
    %c0_2 = arith.constant 0 : index
    %c0_3 = arith.constant 0 : index
    %4 = vector.load %arg2[%c0_2, %c0_3] : memref<256x128xbf16, #tpu.memory_space<vmem>>, vector<256x128xbf16>
    tpu.vector_store %arg2[%c0_2, %c0_3], %3 {strides = array<i32>} : memref<256x128xbf16, #tpu.memory_space<vmem>>, vector<256x128xbf16>,
    return
  }
  func.func @transform_0(%arg0: i32) -> (i32, i32, i32) {
    %c0_i32 = arith.constant 0 : i32
    %c0_i32_0 = arith.constant 0 : i32
    %c0_i32_1 = arith.constant 0 : i32
    return %c0_i32, %arg0, %c0_i32_0 : i32, i32, i32
  }
  func.func @transform_1(%arg0: i32) -> (i32, i32) {
    %c0_i32 = arith.constant 0 : i32
    %c0_i32_0 = arith.constant 0 : i32
    return %arg0, %c0_i32 : i32, i32
  }
}

module attributes {stable_mosaic.version = 11 : i64} {
  func.func @_mm_bias_kernel(%arg0: i32, %arg1: i32, %arg2: i32, %arg3: memref<256x384xbf16, #tpu.memory_space<vmem>>, %arg4: memref<384x128xbf16, #tpu.memory_space<vmem>>, %arg5: memref<1x128xf32, #tpu.memory_space<vmem>>, %arg6: memref<256x128xbf16, #tpu.memory_space<vmem>>, %arg7: memref<256x128xf32, #tpu.memory_space<vmem>>) attributes {dimension_semantics = [#tpu.dimension_semantics<parallel>, #tpu.dimension_semantics<parallel>, #tpu.dimension_semantics<arbitrary>], iteration_bounds = array<i64: 2, 1, 3>, scalar_prefetch = 0 : i64, scratch_operands = 1 : i64, tpu.core_type = #tpu.core_type<tc>, window_params = [{transform_indices = @transform_0, window_bounds = array<i64: 256, 384>}, {transform_indices = @transform_1, window_bounds = array<i64: 384, 128>}, {transform_indices = @transform_2, window_bounds = array<i64: 1, 128>}, {transform_indices = @transform_3, window_bounds = array<i64: 256, 128>}]} {
    %c0_i32 = arith.constant 0 : i32
    %0 = arith.cmpi eq, %arg2, %c0_i32 : i32
    %1 = arith.extui %0 : i1 to i32
    %c0_i32_0 = arith.constant 0 : i32
    %2 = arith.cmpi ne, %1, %c0_i32_0 : i32
    scf.if %2 {
      %cst_9 = arith.constant 0.000000e+00 : f32
      %12 = vector.broadcast %cst_9 : f32 to vector<256x128xf32>
      %c0_10 = arith.constant 0 : index
      %c0_11 = arith.constant 0 : index
      %13 = vector.load %arg7[%c0_10, %c0_11] : memref<256x128xf32, #tpu.memory_space<vmem>>, vector<256x128xf32>
      tpu.vector_store %arg7[%c0_10, %c0_11], %12 {strides = array<i32>} : memref<256x128xf32, #tpu.memory_space<vmem>>, vector<256x128xf32>,
    } else {
    }
    %c0 = arith.constant 0 : index
    %c0_1 = arith.constant 0 : index
    %3 = vector.load %arg7[%c0, %c0_1] : memref<256x128xf32, #tpu.memory_space<vmem>>, vector<256x128xf32>
    %c0_2 = arith.constant 0 : index
    %c0_3 = arith.constant 0 : index
    %4 = vector.load %arg3[%c0_2, %c0_3] : memref<256x384xbf16, #tpu.memory_space<vmem>>, vector<256x384xbf16>
    %c0_4 = arith.constant 0 : index
    %c0_5 = arith.constant 0 : index
    %5 = vector.load %arg4[%c0_4, %c0_5] : memref<384x128xbf16, #tpu.memory_space<vmem>>, vector<384x128xbf16>
    %cst = arith.constant dense<0.000000e+00> : vector<256x128xf32>
    %6 = tpu.matmul %4, %5, %cst {dimension_numbers = #tpu.dot_dimension_numbers<[1], [0], [0], [1], [0, 0, 1, 1], [], []>} : vector<256x384xbf16>, vector<384x128xbf16>, vector<256x128xf32> -> vector<256x128xf32>
    %7 = arith.addf %3, %6 : vector<256x128xf32>
    %c0_6 = arith.constant 0 : index
    %c0_7 = arith.constant 0 : index
    %8 = vector.load %arg7[%c0_6, %c0_7] : memref<256x128xf32, #tpu.memory_space<vmem>>, vector<256x128xf32>
    tpu.vector_store %arg7[%c0_6, %c0_7], %7 {strides = array<i32>} : memref<256x128xf32, #tpu.memory_space<vmem>>, vector<256x128xf32>,
    %c2_i32 = arith.constant 2 : i32
    %9 = arith.cmpi eq, %arg2, %c2_i32 : i32
    %10 = arith.extui %9 : i1 to i32
    %c0_i32_8 = arith.constant 0 : i32
    %11 = arith.cmpi ne, %10, %c0_i32_8 : i32
    scf.if %11 {
      %c0_9 = arith.constant 0 : index
      %c0_10 = arith.constant 0 : index
      %12 = vector.load %arg7[%c0_9, %c0_10] : memref<256x128xf32, #tpu.memory_space<vmem>>, vector<256x128xf32>
      %c0_11 = arith.constant 0 : index
      %c0_12 = arith.constant 0 : index
      %13 = vector.load %arg5[%c0_11, %c0_12] : memref<1x128xf32, #tpu.memory_space<vmem>>, vector<1x128xf32>
      %14 = vector.broadcast %13 : vector<1x128xf32> to vector<256x128xf32>
      %15 = arith.addf %12, %14 : vector<256x128xf32>
      %cst_13 = arith.constant 0.000000e+00 : f32
      %16 = vector.broadcast %cst_13 : f32 to vector<256x128xf32>
      %17 = arith.maximumf %15, %16 : vector<256x128xf32>
      %18 = arith.truncf %17 : vector<256x128xf32> to vector<256x128xbf16>
      %c0_14 = arith.constant 0 : index
      %c0_15 = arith.constant 0 : index
      %19 = vector.load %arg6[%c0_14, %c0_15] : memref<256x128xbf16, #tpu.memory_space<vmem>>, vector<256x128xbf16>
      tpu.vector_store %arg6[%c0_14, %c0_15], %18 {strides = array<i32>} : memref<256x128xbf16, #tpu.memory_space<vmem>>, vector<256x128xbf16>,
    } else {
    }
    return
  }
  func.func @transform_0(%arg0: i32, %arg1: i32, %arg2: i32) -> (i32, i32) {
    %c0_i32 = arith.constant 0 : i32
    return %arg0, %arg2 : i32, i32
  }
  func.func @transform_1(%arg0: i32, %arg1: i32, %arg2: i32) -> (i32, i32) {
    %c0_i32 = arith.constant 0 : i32
    return %arg2, %arg1 : i32, i32
  }
  func.func @transform_2(%arg0: i32, %arg1: i32, %arg2: i32) -> (i32, i32) {
    %c0_i32 = arith.constant 0 : i32
    %c0_i32_0 = arith.constant 0 : i32
    return %c0_i32, %arg1 : i32, i32
  }
  func.func @transform_3(%arg0: i32, %arg1: i32, %arg2: i32) -> (i32, i32) {
    %c0_i32 = arith.constant 0 : i32
    return %arg0, %arg1 : i32, i32
  }
}

module attributes {stable_mosaic.version = 11 : i64} {
  func.func @_mm_bias_res_kernel(%arg0: i32, %arg1: i32, %arg2: i32, %arg3: memref<256x128xbf16, #tpu.memory_space<vmem>>, %arg4: memref<128x128xbf16, #tpu.memory_space<vmem>>, %arg5: memref<1x128xf32, #tpu.memory_space<vmem>>, %arg6: memref<256x128xbf16, #tpu.memory_space<vmem>>, %arg7: memref<256x128xbf16, #tpu.memory_space<vmem>>, %arg8: memref<256x128xf32, #tpu.memory_space<vmem>>) attributes {dimension_semantics = [#tpu.dimension_semantics<parallel>, #tpu.dimension_semantics<parallel>, #tpu.dimension_semantics<arbitrary>], iteration_bounds = array<i64: 2, 1, 1>, scalar_prefetch = 0 : i64, scratch_operands = 1 : i64, tpu.core_type = #tpu.core_type<tc>, window_params = [{transform_indices = @transform_0, window_bounds = array<i64: 256, 128>}, {transform_indices = @transform_1, window_bounds = array<i64: 128, 128>}, {transform_indices = @transform_2, window_bounds = array<i64: 1, 128>}, {transform_indices = @transform_3, window_bounds = array<i64: 256, 128>}, {transform_indices = @transform_4, window_bounds = array<i64: 256, 128>}]} {
    %c0_i32 = arith.constant 0 : i32
    %0 = arith.cmpi eq, %arg2, %c0_i32 : i32
    %1 = arith.extui %0 : i1 to i32
    %c0_i32_0 = arith.constant 0 : i32
    %2 = arith.cmpi ne, %1, %c0_i32_0 : i32
    scf.if %2 {
      %cst_10 = arith.constant 0.000000e+00 : f32
      %12 = vector.broadcast %cst_10 : f32 to vector<256x128xf32>
      %c0_11 = arith.constant 0 : index
      %c0_12 = arith.constant 0 : index
      %13 = vector.load %arg8[%c0_11, %c0_12] : memref<256x128xf32, #tpu.memory_space<vmem>>, vector<256x128xf32>
      tpu.vector_store %arg8[%c0_11, %c0_12], %12 {strides = array<i32>} : memref<256x128xf32, #tpu.memory_space<vmem>>, vector<256x128xf32>,
    } else {
    }
    %c0 = arith.constant 0 : index
    %c0_1 = arith.constant 0 : index
    %3 = vector.load %arg8[%c0, %c0_1] : memref<256x128xf32, #tpu.memory_space<vmem>>, vector<256x128xf32>
    %c0_2 = arith.constant 0 : index
    %c0_3 = arith.constant 0 : index
    %4 = vector.load %arg3[%c0_2, %c0_3] : memref<256x128xbf16, #tpu.memory_space<vmem>>, vector<256x128xbf16>
    %c0_4 = arith.constant 0 : index
    %c0_5 = arith.constant 0 : index
    %5 = vector.load %arg4[%c0_4, %c0_5] : memref<128x128xbf16, #tpu.memory_space<vmem>>, vector<128x128xbf16>
    %cst = arith.constant dense<0.000000e+00> : vector<256x128xf32>
    %6 = tpu.matmul %4, %5, %cst {dimension_numbers = #tpu.dot_dimension_numbers<[1], [0], [0], [1], [0, 0, 1, 1], [], []>} : vector<256x128xbf16>, vector<128x128xbf16>, vector<256x128xf32> -> vector<256x128xf32>
    %7 = arith.addf %3, %6 : vector<256x128xf32>
    %c0_6 = arith.constant 0 : index
    %c0_7 = arith.constant 0 : index
    %8 = vector.load %arg8[%c0_6, %c0_7] : memref<256x128xf32, #tpu.memory_space<vmem>>, vector<256x128xf32>
    tpu.vector_store %arg8[%c0_6, %c0_7], %7 {strides = array<i32>} : memref<256x128xf32, #tpu.memory_space<vmem>>, vector<256x128xf32>,
    %c0_i32_8 = arith.constant 0 : i32
    %9 = arith.cmpi eq, %arg2, %c0_i32_8 : i32
    %10 = arith.extui %9 : i1 to i32
    %c0_i32_9 = arith.constant 0 : i32
    %11 = arith.cmpi ne, %10, %c0_i32_9 : i32
    scf.if %11 {
      %c0_10 = arith.constant 0 : index
      %c0_11 = arith.constant 0 : index
      %12 = vector.load %arg8[%c0_10, %c0_11] : memref<256x128xf32, #tpu.memory_space<vmem>>, vector<256x128xf32>
      %c0_12 = arith.constant 0 : index
      %c0_13 = arith.constant 0 : index
      %13 = vector.load %arg5[%c0_12, %c0_13] : memref<1x128xf32, #tpu.memory_space<vmem>>, vector<1x128xf32>
      %14 = vector.broadcast %13 : vector<1x128xf32> to vector<256x128xf32>
      %15 = arith.addf %12, %14 : vector<256x128xf32>
      %c0_14 = arith.constant 0 : index
      %c0_15 = arith.constant 0 : index
      %16 = vector.load %arg6[%c0_14, %c0_15] : memref<256x128xbf16, #tpu.memory_space<vmem>>, vector<256x128xbf16>
      %17 = arith.extf %16 : vector<256x128xbf16> to vector<256x128xf32>
      %18 = arith.addf %15, %17 : vector<256x128xf32>
      %cst_16 = arith.constant 0.000000e+00 : f32
      %19 = vector.broadcast %cst_16 : f32 to vector<256x128xf32>
      %20 = arith.maximumf %18, %19 : vector<256x128xf32>
      %21 = arith.truncf %20 : vector<256x128xf32> to vector<256x128xbf16>
      %c0_17 = arith.constant 0 : index
      %c0_18 = arith.constant 0 : index
      %22 = vector.load %arg7[%c0_17, %c0_18] : memref<256x128xbf16, #tpu.memory_space<vmem>>, vector<256x128xbf16>
      tpu.vector_store %arg7[%c0_17, %c0_18], %21 {strides = array<i32>} : memref<256x128xbf16, #tpu.memory_space<vmem>>, vector<256x128xbf16>,
    } else {
    }
    return
  }
  func.func @transform_0(%arg0: i32, %arg1: i32, %arg2: i32) -> (i32, i32) {
    %c0_i32 = arith.constant 0 : i32
    return %arg0, %arg2 : i32, i32
  }
  func.func @transform_1(%arg0: i32, %arg1: i32, %arg2: i32) -> (i32, i32) {
    %c0_i32 = arith.constant 0 : i32
    return %arg2, %arg1 : i32, i32
  }
  func.func @transform_2(%arg0: i32, %arg1: i32, %arg2: i32) -> (i32, i32) {
    %c0_i32 = arith.constant 0 : i32
    %c0_i32_0 = arith.constant 0 : i32
    return %c0_i32, %arg1 : i32, i32
  }
  func.func @transform_3(%arg0: i32, %arg1: i32, %arg2: i32) -> (i32, i32) {
    %c0_i32 = arith.constant 0 : i32
    return %arg0, %arg1 : i32, i32
  }
  func.func @transform_4(%arg0: i32, %arg1: i32, %arg2: i32) -> (i32, i32) {
    %c0_i32 = arith.constant 0 : i32
    return %arg0, %arg1 : i32, i32
  }
}

module attributes {stable_mosaic.version = 11 : i64} {
  func.func @_mm_bias_kernel(%arg0: i32, %arg1: i32, %arg2: i32, %arg3: memref<256x128xbf16, #tpu.memory_space<vmem>>, %arg4: memref<128x128xbf16, #tpu.memory_space<vmem>>, %arg5: memref<1x128xf32, #tpu.memory_space<vmem>>, %arg6: memref<256x128xbf16, #tpu.memory_space<vmem>>, %arg7: memref<256x128xf32, #tpu.memory_space<vmem>>) attributes {dimension_semantics = [#tpu.dimension_semantics<parallel>, #tpu.dimension_semantics<parallel>, #tpu.dimension_semantics<arbitrary>], iteration_bounds = array<i64: 2, 1, 1>, scalar_prefetch = 0 : i64, scratch_operands = 1 : i64, tpu.core_type = #tpu.core_type<tc>, window_params = [{transform_indices = @transform_0, window_bounds = array<i64: 256, 128>}, {transform_indices = @transform_1, window_bounds = array<i64: 128, 128>}, {transform_indices = @transform_2, window_bounds = array<i64: 1, 128>}, {transform_indices = @transform_3, window_bounds = array<i64: 256, 128>}]} {
    %c0_i32 = arith.constant 0 : i32
    %0 = arith.cmpi eq, %arg2, %c0_i32 : i32
    %1 = arith.extui %0 : i1 to i32
    %c0_i32_0 = arith.constant 0 : i32
    %2 = arith.cmpi ne, %1, %c0_i32_0 : i32
    scf.if %2 {
      %cst_10 = arith.constant 0.000000e+00 : f32
      %12 = vector.broadcast %cst_10 : f32 to vector<256x128xf32>
      %c0_11 = arith.constant 0 : index
      %c0_12 = arith.constant 0 : index
      %13 = vector.load %arg7[%c0_11, %c0_12] : memref<256x128xf32, #tpu.memory_space<vmem>>, vector<256x128xf32>
      tpu.vector_store %arg7[%c0_11, %c0_12], %12 {strides = array<i32>} : memref<256x128xf32, #tpu.memory_space<vmem>>, vector<256x128xf32>,
    } else {
    }
    %c0 = arith.constant 0 : index
    %c0_1 = arith.constant 0 : index
    %3 = vector.load %arg7[%c0, %c0_1] : memref<256x128xf32, #tpu.memory_space<vmem>>, vector<256x128xf32>
    %c0_2 = arith.constant 0 : index
    %c0_3 = arith.constant 0 : index
    %4 = vector.load %arg3[%c0_2, %c0_3] : memref<256x128xbf16, #tpu.memory_space<vmem>>, vector<256x128xbf16>
    %c0_4 = arith.constant 0 : index
    %c0_5 = arith.constant 0 : index
    %5 = vector.load %arg4[%c0_4, %c0_5] : memref<128x128xbf16, #tpu.memory_space<vmem>>, vector<128x128xbf16>
    %cst = arith.constant dense<0.000000e+00> : vector<256x128xf32>
    %6 = tpu.matmul %4, %5, %cst {dimension_numbers = #tpu.dot_dimension_numbers<[1], [0], [0], [1], [0, 0, 1, 1], [], []>} : vector<256x128xbf16>, vector<128x128xbf16>, vector<256x128xf32> -> vector<256x128xf32>
    %7 = arith.addf %3, %6 : vector<256x128xf32>
    %c0_6 = arith.constant 0 : index
    %c0_7 = arith.constant 0 : index
    %8 = vector.load %arg7[%c0_6, %c0_7] : memref<256x128xf32, #tpu.memory_space<vmem>>, vector<256x128xf32>
    tpu.vector_store %arg7[%c0_6, %c0_7], %7 {strides = array<i32>} : memref<256x128xf32, #tpu.memory_space<vmem>>, vector<256x128xf32>,
    %c0_i32_8 = arith.constant 0 : i32
    %9 = arith.cmpi eq, %arg2, %c0_i32_8 : i32
    %10 = arith.extui %9 : i1 to i32
    %c0_i32_9 = arith.constant 0 : i32
    %11 = arith.cmpi ne, %10, %c0_i32_9 : i32
    scf.if %11 {
      %c0_10 = arith.constant 0 : index
      %c0_11 = arith.constant 0 : index
      %12 = vector.load %arg7[%c0_10, %c0_11] : memref<256x128xf32, #tpu.memory_space<vmem>>, vector<256x128xf32>
      %c0_12 = arith.constant 0 : index
      %c0_13 = arith.constant 0 : index
      %13 = vector.load %arg5[%c0_12, %c0_13] : memref<1x128xf32, #tpu.memory_space<vmem>>, vector<1x128xf32>
      %14 = vector.broadcast %13 : vector<1x128xf32> to vector<256x128xf32>
      %15 = arith.addf %12, %14 : vector<256x128xf32>
      %16 = arith.truncf %15 : vector<256x128xf32> to vector<256x128xbf16>
      %c0_14 = arith.constant 0 : index
      %c0_15 = arith.constant 0 : index
      %17 = vector.load %arg6[%c0_14, %c0_15] : memref<256x128xbf16, #tpu.memory_space<vmem>>, vector<256x128xbf16>
      tpu.vector_store %arg6[%c0_14, %c0_15], %16 {strides = array<i32>} : memref<256x128xbf16, #tpu.memory_space<vmem>>, vector<256x128xbf16>,
    } else {
    }
    return
  }
  func.func @transform_0(%arg0: i32, %arg1: i32, %arg2: i32) -> (i32, i32) {
    %c0_i32 = arith.constant 0 : i32
    return %arg0, %arg2 : i32, i32
  }
  func.func @transform_1(%arg0: i32, %arg1: i32, %arg2: i32) -> (i32, i32) {
    %c0_i32 = arith.constant 0 : i32
    return %arg2, %arg1 : i32, i32
  }
  func.func @transform_2(%arg0: i32, %arg1: i32, %arg2: i32) -> (i32, i32) {
    %c0_i32 = arith.constant 0 : i32
    %c0_i32_0 = arith.constant 0 : i32
    return %c0_i32, %arg1 : i32, i32
  }
  func.func @transform_3(%arg0: i32, %arg1: i32, %arg2: i32) -> (i32, i32) {
    %c0_i32 = arith.constant 0 : i32
    return %arg0, %arg1 : i32, i32
  }
}

module attributes {stable_mosaic.version = 11 : i64} {
  func.func @_mm_bias_kernel(%arg0: i32, %arg1: i32, %arg2: i32, %arg3: memref<64x384xbf16, #tpu.memory_space<vmem>>, %arg4: memref<384x128xbf16, #tpu.memory_space<vmem>>, %arg5: memref<1x128xf32, #tpu.memory_space<vmem>>, %arg6: memref<64x128xbf16, #tpu.memory_space<vmem>>, %arg7: memref<64x128xf32, #tpu.memory_space<vmem>>) attributes {dimension_semantics = [#tpu.dimension_semantics<parallel>, #tpu.dimension_semantics<parallel>, #tpu.dimension_semantics<arbitrary>], iteration_bounds = array<i64: 2, 1, 3>, scalar_prefetch = 0 : i64, scratch_operands = 1 : i64, tpu.core_type = #tpu.core_type<tc>, window_params = [{transform_indices = @transform_0, window_bounds = array<i64: 64, 384>}, {transform_indices = @transform_1, window_bounds = array<i64: 384, 128>}, {transform_indices = @transform_2, window_bounds = array<i64: 1, 128>}, {transform_indices = @transform_3, window_bounds = array<i64: 64, 128>}]} {
    %c0_i32 = arith.constant 0 : i32
    %0 = arith.cmpi eq, %arg2, %c0_i32 : i32
    %1 = arith.extui %0 : i1 to i32
    %c0_i32_0 = arith.constant 0 : i32
    %2 = arith.cmpi ne, %1, %c0_i32_0 : i32
    scf.if %2 {
      %cst_9 = arith.constant 0.000000e+00 : f32
      %12 = vector.broadcast %cst_9 : f32 to vector<64x128xf32>
      %c0_10 = arith.constant 0 : index
      %c0_11 = arith.constant 0 : index
      %13 = vector.load %arg7[%c0_10, %c0_11] : memref<64x128xf32, #tpu.memory_space<vmem>>, vector<64x128xf32>
      tpu.vector_store %arg7[%c0_10, %c0_11], %12 {strides = array<i32>} : memref<64x128xf32, #tpu.memory_space<vmem>>, vector<64x128xf32>,
    } else {
    }
    %c0 = arith.constant 0 : index
    %c0_1 = arith.constant 0 : index
    %3 = vector.load %arg7[%c0, %c0_1] : memref<64x128xf32, #tpu.memory_space<vmem>>, vector<64x128xf32>
    %c0_2 = arith.constant 0 : index
    %c0_3 = arith.constant 0 : index
    %4 = vector.load %arg3[%c0_2, %c0_3] : memref<64x384xbf16, #tpu.memory_space<vmem>>, vector<64x384xbf16>
    %c0_4 = arith.constant 0 : index
    %c0_5 = arith.constant 0 : index
    %5 = vector.load %arg4[%c0_4, %c0_5] : memref<384x128xbf16, #tpu.memory_space<vmem>>, vector<384x128xbf16>
    %cst = arith.constant dense<0.000000e+00> : vector<64x128xf32>
    %6 = tpu.matmul %4, %5, %cst {dimension_numbers = #tpu.dot_dimension_numbers<[1], [0], [0], [1], [0, 0, 1, 1], [], []>} : vector<64x384xbf16>, vector<384x128xbf16>, vector<64x128xf32> -> vector<64x128xf32>
    %7 = arith.addf %3, %6 : vector<64x128xf32>
    %c0_6 = arith.constant 0 : index
    %c0_7 = arith.constant 0 : index
    %8 = vector.load %arg7[%c0_6, %c0_7] : memref<64x128xf32, #tpu.memory_space<vmem>>, vector<64x128xf32>
    tpu.vector_store %arg7[%c0_6, %c0_7], %7 {strides = array<i32>} : memref<64x128xf32, #tpu.memory_space<vmem>>, vector<64x128xf32>,
    %c2_i32 = arith.constant 2 : i32
    %9 = arith.cmpi eq, %arg2, %c2_i32 : i32
    %10 = arith.extui %9 : i1 to i32
    %c0_i32_8 = arith.constant 0 : i32
    %11 = arith.cmpi ne, %10, %c0_i32_8 : i32
    scf.if %11 {
      %c0_9 = arith.constant 0 : index
      %c0_10 = arith.constant 0 : index
      %12 = vector.load %arg7[%c0_9, %c0_10] : memref<64x128xf32, #tpu.memory_space<vmem>>, vector<64x128xf32>
      %c0_11 = arith.constant 0 : index
      %c0_12 = arith.constant 0 : index
      %13 = vector.load %arg5[%c0_11, %c0_12] : memref<1x128xf32, #tpu.memory_space<vmem>>, vector<1x128xf32>
      %14 = vector.broadcast %13 : vector<1x128xf32> to vector<64x128xf32>
      %15 = arith.addf %12, %14 : vector<64x128xf32>
      %cst_13 = arith.constant 0.000000e+00 : f32
      %16 = vector.broadcast %cst_13 : f32 to vector<64x128xf32>
      %17 = arith.maximumf %15, %16 : vector<64x128xf32>
      %18 = arith.truncf %17 : vector<64x128xf32> to vector<64x128xbf16>
      %c0_14 = arith.constant 0 : index
      %c0_15 = arith.constant 0 : index
      %19 = vector.load %arg6[%c0_14, %c0_15] : memref<64x128xbf16, #tpu.memory_space<vmem>>, vector<64x128xbf16>
      tpu.vector_store %arg6[%c0_14, %c0_15], %18 {strides = array<i32>} : memref<64x128xbf16, #tpu.memory_space<vmem>>, vector<64x128xbf16>,
    } else {
    }
    return
  }
  func.func @transform_0(%arg0: i32, %arg1: i32, %arg2: i32) -> (i32, i32) {
    %c0_i32 = arith.constant 0 : i32
    return %arg0, %arg2 : i32, i32
  }
  func.func @transform_1(%arg0: i32, %arg1: i32, %arg2: i32) -> (i32, i32) {
    %c0_i32 = arith.constant 0 : i32
    return %arg2, %arg1 : i32, i32
  }
  func.func @transform_2(%arg0: i32, %arg1: i32, %arg2: i32) -> (i32, i32) {
    %c0_i32 = arith.constant 0 : i32
    %c0_i32_0 = arith.constant 0 : i32
    return %c0_i32, %arg1 : i32, i32
  }
  func.func @transform_3(%arg0: i32, %arg1: i32, %arg2: i32) -> (i32, i32) {
    %c0_i32 = arith.constant 0 : i32
    return %arg0, %arg1 : i32, i32
  }
}

module attributes {stable_mosaic.version = 11 : i64} {
  func.func @_mm_bias_kernel(%arg0: i32, %arg1: i32, %arg2: i32, %arg3: memref<64x128xbf16, #tpu.memory_space<vmem>>, %arg4: memref<128x128xbf16, #tpu.memory_space<vmem>>, %arg5: memref<1x128xf32, #tpu.memory_space<vmem>>, %arg6: memref<64x128xbf16, #tpu.memory_space<vmem>>, %arg7: memref<64x128xf32, #tpu.memory_space<vmem>>) attributes {dimension_semantics = [#tpu.dimension_semantics<parallel>, #tpu.dimension_semantics<parallel>, #tpu.dimension_semantics<arbitrary>], iteration_bounds = array<i64: 2, 1, 1>, scalar_prefetch = 0 : i64, scratch_operands = 1 : i64, tpu.core_type = #tpu.core_type<tc>, window_params = [{transform_indices = @transform_0, window_bounds = array<i64: 64, 128>}, {transform_indices = @transform_1, window_bounds = array<i64: 128, 128>}, {transform_indices = @transform_2, window_bounds = array<i64: 1, 128>}, {transform_indices = @transform_3, window_bounds = array<i64: 64, 128>}]} {
    %c0_i32 = arith.constant 0 : i32
    %0 = arith.cmpi eq, %arg2, %c0_i32 : i32
    %1 = arith.extui %0 : i1 to i32
    %c0_i32_0 = arith.constant 0 : i32
    %2 = arith.cmpi ne, %1, %c0_i32_0 : i32
    scf.if %2 {
      %cst_10 = arith.constant 0.000000e+00 : f32
      %12 = vector.broadcast %cst_10 : f32 to vector<64x128xf32>
      %c0_11 = arith.constant 0 : index
      %c0_12 = arith.constant 0 : index
      %13 = vector.load %arg7[%c0_11, %c0_12] : memref<64x128xf32, #tpu.memory_space<vmem>>, vector<64x128xf32>
      tpu.vector_store %arg7[%c0_11, %c0_12], %12 {strides = array<i32>} : memref<64x128xf32, #tpu.memory_space<vmem>>, vector<64x128xf32>,
    } else {
    }
    %c0 = arith.constant 0 : index
    %c0_1 = arith.constant 0 : index
    %3 = vector.load %arg7[%c0, %c0_1] : memref<64x128xf32, #tpu.memory_space<vmem>>, vector<64x128xf32>
    %c0_2 = arith.constant 0 : index
    %c0_3 = arith.constant 0 : index
    %4 = vector.load %arg3[%c0_2, %c0_3] : memref<64x128xbf16, #tpu.memory_space<vmem>>, vector<64x128xbf16>
    %c0_4 = arith.constant 0 : index
    %c0_5 = arith.constant 0 : index
    %5 = vector.load %arg4[%c0_4, %c0_5] : memref<128x128xbf16, #tpu.memory_space<vmem>>, vector<128x128xbf16>
    %cst = arith.constant dense<0.000000e+00> : vector<64x128xf32>
    %6 = tpu.matmul %4, %5, %cst {dimension_numbers = #tpu.dot_dimension_numbers<[1], [0], [0], [1], [0, 0, 1, 1], [], []>} : vector<64x128xbf16>, vector<128x128xbf16>, vector<64x128xf32> -> vector<64x128xf32>
    %7 = arith.addf %3, %6 : vector<64x128xf32>
    %c0_6 = arith.constant 0 : index
    %c0_7 = arith.constant 0 : index
    %8 = vector.load %arg7[%c0_6, %c0_7] : memref<64x128xf32, #tpu.memory_space<vmem>>, vector<64x128xf32>
    tpu.vector_store %arg7[%c0_6, %c0_7], %7 {strides = array<i32>} : memref<64x128xf32, #tpu.memory_space<vmem>>, vector<64x128xf32>,
    %c0_i32_8 = arith.constant 0 : i32
    %9 = arith.cmpi eq, %arg2, %c0_i32_8 : i32
    %10 = arith.extui %9 : i1 to i32
    %c0_i32_9 = arith.constant 0 : i32
    %11 = arith.cmpi ne, %10, %c0_i32_9 : i32
    scf.if %11 {
      %c0_10 = arith.constant 0 : index
      %c0_11 = arith.constant 0 : index
      %12 = vector.load %arg7[%c0_10, %c0_11] : memref<64x128xf32, #tpu.memory_space<vmem>>, vector<64x128xf32>
      %c0_12 = arith.constant 0 : index
      %c0_13 = arith.constant 0 : index
      %13 = vector.load %arg5[%c0_12, %c0_13] : memref<1x128xf32, #tpu.memory_space<vmem>>, vector<1x128xf32>
      %14 = vector.broadcast %13 : vector<1x128xf32> to vector<64x128xf32>
      %15 = arith.addf %12, %14 : vector<64x128xf32>
      %16 = arith.truncf %15 : vector<64x128xf32> to vector<64x128xbf16>
      %c0_14 = arith.constant 0 : index
      %c0_15 = arith.constant 0 : index
      %17 = vector.load %arg6[%c0_14, %c0_15] : memref<64x128xbf16, #tpu.memory_space<vmem>>, vector<64x128xbf16>
      tpu.vector_store %arg6[%c0_14, %c0_15], %16 {strides = array<i32>} : memref<64x128xbf16, #tpu.memory_space<vmem>>, vector<64x128xbf16>,
    } else {
    }
    return
  }
  func.func @transform_0(%arg0: i32, %arg1: i32, %arg2: i32) -> (i32, i32) {
    %c0_i32 = arith.constant 0 : i32
    return %arg0, %arg2 : i32, i32
  }
  func.func @transform_1(%arg0: i32, %arg1: i32, %arg2: i32) -> (i32, i32) {
    %c0_i32 = arith.constant 0 : i32
    return %arg2, %arg1 : i32, i32
  }
  func.func @transform_2(%arg0: i32, %arg1: i32, %arg2: i32) -> (i32, i32) {
    %c0_i32 = arith.constant 0 : i32
    %c0_i32_0 = arith.constant 0 : i32
    return %c0_i32, %arg1 : i32, i32
  }
  func.func @transform_3(%arg0: i32, %arg1: i32, %arg2: i32) -> (i32, i32) {
    %c0_i32 = arith.constant 0 : i32
    return %arg0, %arg1 : i32, i32
  }
}

module attributes {stable_mosaic.version = 11 : i64} {
  func.func @_mm_bias_res_kernel(%arg0: i32, %arg1: i32, %arg2: i32, %arg3: memref<64x128xbf16, #tpu.memory_space<vmem>>, %arg4: memref<128x128xbf16, #tpu.memory_space<vmem>>, %arg5: memref<1x128xf32, #tpu.memory_space<vmem>>, %arg6: memref<64x128xbf16, #tpu.memory_space<vmem>>, %arg7: memref<64x128xbf16, #tpu.memory_space<vmem>>, %arg8: memref<64x128xf32, #tpu.memory_space<vmem>>) attributes {dimension_semantics = [#tpu.dimension_semantics<parallel>, #tpu.dimension_semantics<parallel>, #tpu.dimension_semantics<arbitrary>], iteration_bounds = array<i64: 2, 1, 1>, scalar_prefetch = 0 : i64, scratch_operands = 1 : i64, tpu.core_type = #tpu.core_type<tc>, window_params = [{transform_indices = @transform_0, window_bounds = array<i64: 64, 128>}, {transform_indices = @transform_1, window_bounds = array<i64: 128, 128>}, {transform_indices = @transform_2, window_bounds = array<i64: 1, 128>}, {transform_indices = @transform_3, window_bounds = array<i64: 64, 128>}, {transform_indices = @transform_4, window_bounds = array<i64: 64, 128>}]} {
    %c0_i32 = arith.constant 0 : i32
    %0 = arith.cmpi eq, %arg2, %c0_i32 : i32
    %1 = arith.extui %0 : i1 to i32
    %c0_i32_0 = arith.constant 0 : i32
    %2 = arith.cmpi ne, %1, %c0_i32_0 : i32
    scf.if %2 {
      %cst_10 = arith.constant 0.000000e+00 : f32
      %12 = vector.broadcast %cst_10 : f32 to vector<64x128xf32>
      %c0_11 = arith.constant 0 : index
      %c0_12 = arith.constant 0 : index
      %13 = vector.load %arg8[%c0_11, %c0_12] : memref<64x128xf32, #tpu.memory_space<vmem>>, vector<64x128xf32>
      tpu.vector_store %arg8[%c0_11, %c0_12], %12 {strides = array<i32>} : memref<64x128xf32, #tpu.memory_space<vmem>>, vector<64x128xf32>,
    } else {
    }
    %c0 = arith.constant 0 : index
    %c0_1 = arith.constant 0 : index
    %3 = vector.load %arg8[%c0, %c0_1] : memref<64x128xf32, #tpu.memory_space<vmem>>, vector<64x128xf32>
    %c0_2 = arith.constant 0 : index
    %c0_3 = arith.constant 0 : index
    %4 = vector.load %arg3[%c0_2, %c0_3] : memref<64x128xbf16, #tpu.memory_space<vmem>>, vector<64x128xbf16>
    %c0_4 = arith.constant 0 : index
    %c0_5 = arith.constant 0 : index
    %5 = vector.load %arg4[%c0_4, %c0_5] : memref<128x128xbf16, #tpu.memory_space<vmem>>, vector<128x128xbf16>
    %cst = arith.constant dense<0.000000e+00> : vector<64x128xf32>
    %6 = tpu.matmul %4, %5, %cst {dimension_numbers = #tpu.dot_dimension_numbers<[1], [0], [0], [1], [0, 0, 1, 1], [], []>} : vector<64x128xbf16>, vector<128x128xbf16>, vector<64x128xf32> -> vector<64x128xf32>
    %7 = arith.addf %3, %6 : vector<64x128xf32>
    %c0_6 = arith.constant 0 : index
    %c0_7 = arith.constant 0 : index
    %8 = vector.load %arg8[%c0_6, %c0_7] : memref<64x128xf32, #tpu.memory_space<vmem>>, vector<64x128xf32>
    tpu.vector_store %arg8[%c0_6, %c0_7], %7 {strides = array<i32>} : memref<64x128xf32, #tpu.memory_space<vmem>>, vector<64x128xf32>,
    %c0_i32_8 = arith.constant 0 : i32
    %9 = arith.cmpi eq, %arg2, %c0_i32_8 : i32
    %10 = arith.extui %9 : i1 to i32
    %c0_i32_9 = arith.constant 0 : i32
    %11 = arith.cmpi ne, %10, %c0_i32_9 : i32
    scf.if %11 {
      %c0_10 = arith.constant 0 : index
      %c0_11 = arith.constant 0 : index
      %12 = vector.load %arg8[%c0_10, %c0_11] : memref<64x128xf32, #tpu.memory_space<vmem>>, vector<64x128xf32>
      %c0_12 = arith.constant 0 : index
      %c0_13 = arith.constant 0 : index
      %13 = vector.load %arg5[%c0_12, %c0_13] : memref<1x128xf32, #tpu.memory_space<vmem>>, vector<1x128xf32>
      %14 = vector.broadcast %13 : vector<1x128xf32> to vector<64x128xf32>
      %15 = arith.addf %12, %14 : vector<64x128xf32>
      %c0_14 = arith.constant 0 : index
      %c0_15 = arith.constant 0 : index
      %16 = vector.load %arg6[%c0_14, %c0_15] : memref<64x128xbf16, #tpu.memory_space<vmem>>, vector<64x128xbf16>
      %17 = arith.extf %16 : vector<64x128xbf16> to vector<64x128xf32>
      %18 = arith.addf %15, %17 : vector<64x128xf32>
      %cst_16 = arith.constant 0.000000e+00 : f32
      %19 = vector.broadcast %cst_16 : f32 to vector<64x128xf32>
      %20 = arith.maximumf %18, %19 : vector<64x128xf32>
      %21 = arith.truncf %20 : vector<64x128xf32> to vector<64x128xbf16>
      %c0_17 = arith.constant 0 : index
      %c0_18 = arith.constant 0 : index
      %22 = vector.load %arg7[%c0_17, %c0_18] : memref<64x128xbf16, #tpu.memory_space<vmem>>, vector<64x128xbf16>
      tpu.vector_store %arg7[%c0_17, %c0_18], %21 {strides = array<i32>} : memref<64x128xbf16, #tpu.memory_space<vmem>>, vector<64x128xbf16>,
    } else {
    }
    return
  }
  func.func @transform_0(%arg0: i32, %arg1: i32, %arg2: i32) -> (i32, i32) {
    %c0_i32 = arith.constant 0 : i32
    return %arg0, %arg2 : i32, i32
  }
  func.func @transform_1(%arg0: i32, %arg1: i32, %arg2: i32) -> (i32, i32) {
    %c0_i32 = arith.constant 0 : i32
    return %arg2, %arg1 : i32, i32
  }
  func.func @transform_2(%arg0: i32, %arg1: i32, %arg2: i32) -> (i32, i32) {
    %c0_i32 = arith.constant 0 : i32
    %c0_i32_0 = arith.constant 0 : i32
    return %c0_i32, %arg1 : i32, i32
  }
  func.func @transform_3(%arg0: i32, %arg1: i32, %arg2: i32) -> (i32, i32) {
    %c0_i32 = arith.constant 0 : i32
    return %arg0, %arg1 : i32, i32
  }
  func.func @transform_4(%arg0: i32, %arg1: i32, %arg2: i32) -> (i32, i32) {
    %c0_i32 = arith.constant 0 : i32
    return %arg0, %arg1 : i32, i32
  }
}

module attributes {stable_mosaic.version = 11 : i64} {
  func.func @_mm_bias_kernel(%arg0: i32, %arg1: i32, %arg2: i32, %arg3: memref<64x128xbf16, #tpu.memory_space<vmem>>, %arg4: memref<128x128xbf16, #tpu.memory_space<vmem>>, %arg5: memref<1x128xf32, #tpu.memory_space<vmem>>, %arg6: memref<64x128xbf16, #tpu.memory_space<vmem>>, %arg7: memref<64x128xf32, #tpu.memory_space<vmem>>) attributes {dimension_semantics = [#tpu.dimension_semantics<parallel>, #tpu.dimension_semantics<parallel>, #tpu.dimension_semantics<arbitrary>], iteration_bounds = array<i64: 2, 1, 1>, scalar_prefetch = 0 : i64, scratch_operands = 1 : i64, tpu.core_type = #tpu.core_type<tc>, window_params = [{transform_indices = @transform_0, window_bounds = array<i64: 64, 128>}, {transform_indices = @transform_1, window_bounds = array<i64: 128, 128>}, {transform_indices = @transform_2, window_bounds = array<i64: 1, 128>}, {transform_indices = @transform_3, window_bounds = array<i64: 64, 128>}]} {
    %c0_i32 = arith.constant 0 : i32
    %0 = arith.cmpi eq, %arg2, %c0_i32 : i32
    %1 = arith.extui %0 : i1 to i32
    %c0_i32_0 = arith.constant 0 : i32
    %2 = arith.cmpi ne, %1, %c0_i32_0 : i32
    scf.if %2 {
      %cst_10 = arith.constant 0.000000e+00 : f32
      %12 = vector.broadcast %cst_10 : f32 to vector<64x128xf32>
      %c0_11 = arith.constant 0 : index
      %c0_12 = arith.constant 0 : index
      %13 = vector.load %arg7[%c0_11, %c0_12] : memref<64x128xf32, #tpu.memory_space<vmem>>, vector<64x128xf32>
      tpu.vector_store %arg7[%c0_11, %c0_12], %12 {strides = array<i32>} : memref<64x128xf32, #tpu.memory_space<vmem>>, vector<64x128xf32>,
    } else {
    }
    %c0 = arith.constant 0 : index
    %c0_1 = arith.constant 0 : index
    %3 = vector.load %arg7[%c0, %c0_1] : memref<64x128xf32, #tpu.memory_space<vmem>>, vector<64x128xf32>
    %c0_2 = arith.constant 0 : index
    %c0_3 = arith.constant 0 : index
    %4 = vector.load %arg3[%c0_2, %c0_3] : memref<64x128xbf16, #tpu.memory_space<vmem>>, vector<64x128xbf16>
    %c0_4 = arith.constant 0 : index
    %c0_5 = arith.constant 0 : index
    %5 = vector.load %arg4[%c0_4, %c0_5] : memref<128x128xbf16, #tpu.memory_space<vmem>>, vector<128x128xbf16>
    %cst = arith.constant dense<0.000000e+00> : vector<64x128xf32>
    %6 = tpu.matmul %4, %5, %cst {dimension_numbers = #tpu.dot_dimension_numbers<[1], [0], [0], [1], [0, 0, 1, 1], [], []>} : vector<64x128xbf16>, vector<128x128xbf16>, vector<64x128xf32> -> vector<64x128xf32>
    %7 = arith.addf %3, %6 : vector<64x128xf32>
    %c0_6 = arith.constant 0 : index
    %c0_7 = arith.constant 0 : index
    %8 = vector.load %arg7[%c0_6, %c0_7] : memref<64x128xf32, #tpu.memory_space<vmem>>, vector<64x128xf32>
    tpu.vector_store %arg7[%c0_6, %c0_7], %7 {strides = array<i32>} : memref<64x128xf32, #tpu.memory_space<vmem>>, vector<64x128xf32>,
    %c0_i32_8 = arith.constant 0 : i32
    %9 = arith.cmpi eq, %arg2, %c0_i32_8 : i32
    %10 = arith.extui %9 : i1 to i32
    %c0_i32_9 = arith.constant 0 : i32
    %11 = arith.cmpi ne, %10, %c0_i32_9 : i32
    scf.if %11 {
      %c0_10 = arith.constant 0 : index
      %c0_11 = arith.constant 0 : index
      %12 = vector.load %arg7[%c0_10, %c0_11] : memref<64x128xf32, #tpu.memory_space<vmem>>, vector<64x128xf32>
      %c0_12 = arith.constant 0 : index
      %c0_13 = arith.constant 0 : index
      %13 = vector.load %arg5[%c0_12, %c0_13] : memref<1x128xf32, #tpu.memory_space<vmem>>, vector<1x128xf32>
      %14 = vector.broadcast %13 : vector<1x128xf32> to vector<64x128xf32>
      %15 = arith.addf %12, %14 : vector<64x128xf32>
      %cst_14 = arith.constant 0.000000e+00 : f32
      %16 = vector.broadcast %cst_14 : f32 to vector<64x128xf32>
      %17 = arith.maximumf %15, %16 : vector<64x128xf32>
      %18 = arith.truncf %17 : vector<64x128xf32> to vector<64x128xbf16>
      %c0_15 = arith.constant 0 : index
      %c0_16 = arith.constant 0 : index
      %19 = vector.load %arg6[%c0_15, %c0_16] : memref<64x128xbf16, #tpu.memory_space<vmem>>, vector<64x128xbf16>
      tpu.vector_store %arg6[%c0_15, %c0_16], %18 {strides = array<i32>} : memref<64x128xbf16, #tpu.memory_space<vmem>>, vector<64x128xbf16>,
    } else {
    }
    return
  }
  func.func @transform_0(%arg0: i32, %arg1: i32, %arg2: i32) -> (i32, i32) {
    %c0_i32 = arith.constant 0 : i32
    return %arg0, %arg2 : i32, i32
  }
  func.func @transform_1(%arg0: i32, %arg1: i32, %arg2: i32) -> (i32, i32) {
    %c0_i32 = arith.constant 0 : i32
    return %arg2, %arg1 : i32, i32
  }
  func.func @transform_2(%arg0: i32, %arg1: i32, %arg2: i32) -> (i32, i32) {
    %c0_i32 = arith.constant 0 : i32
    %c0_i32_0 = arith.constant 0 : i32
    return %c0_i32, %arg1 : i32, i32
  }
  func.func @transform_3(%arg0: i32, %arg1: i32, %arg2: i32) -> (i32, i32) {
    %c0_i32 = arith.constant 0 : i32
    return %arg0, %arg1 : i32, i32
  }
}

module attributes {stable_mosaic.version = 11 : i64} {
  func.func @_mm_bias_res_kernel(%arg0: i32, %arg1: i32, %arg2: i32, %arg3: memref<16x128xbf16, #tpu.memory_space<vmem>>, %arg4: memref<128x128xbf16, #tpu.memory_space<vmem>>, %arg5: memref<1x128xf32, #tpu.memory_space<vmem>>, %arg6: memref<16x128xbf16, #tpu.memory_space<vmem>>, %arg7: memref<16x128xbf16, #tpu.memory_space<vmem>>, %arg8: memref<16x128xf32, #tpu.memory_space<vmem>>) attributes {dimension_semantics = [#tpu.dimension_semantics<parallel>, #tpu.dimension_semantics<parallel>, #tpu.dimension_semantics<arbitrary>], iteration_bounds = array<i64: 2, 1, 1>, scalar_prefetch = 0 : i64, scratch_operands = 1 : i64, tpu.core_type = #tpu.core_type<tc>, window_params = [{transform_indices = @transform_0, window_bounds = array<i64: 16, 128>}, {transform_indices = @transform_1, window_bounds = array<i64: 128, 128>}, {transform_indices = @transform_2, window_bounds = array<i64: 1, 128>}, {transform_indices = @transform_3, window_bounds = array<i64: 16, 128>}, {transform_indices = @transform_4, window_bounds = array<i64: 16, 128>}]} {
    %c0_i32 = arith.constant 0 : i32
    %0 = arith.cmpi eq, %arg2, %c0_i32 : i32
    %1 = arith.extui %0 : i1 to i32
    %c0_i32_0 = arith.constant 0 : i32
    %2 = arith.cmpi ne, %1, %c0_i32_0 : i32
    scf.if %2 {
      %cst_10 = arith.constant 0.000000e+00 : f32
      %12 = vector.broadcast %cst_10 : f32 to vector<16x128xf32>
      %c0_11 = arith.constant 0 : index
      %c0_12 = arith.constant 0 : index
      %13 = vector.load %arg8[%c0_11, %c0_12] : memref<16x128xf32, #tpu.memory_space<vmem>>, vector<16x128xf32>
      tpu.vector_store %arg8[%c0_11, %c0_12], %12 {strides = array<i32>} : memref<16x128xf32, #tpu.memory_space<vmem>>, vector<16x128xf32>,
    } else {
    }
    %c0 = arith.constant 0 : index
    %c0_1 = arith.constant 0 : index
    %3 = vector.load %arg8[%c0, %c0_1] : memref<16x128xf32, #tpu.memory_space<vmem>>, vector<16x128xf32>
    %c0_2 = arith.constant 0 : index
    %c0_3 = arith.constant 0 : index
    %4 = vector.load %arg3[%c0_2, %c0_3] : memref<16x128xbf16, #tpu.memory_space<vmem>>, vector<16x128xbf16>
    %c0_4 = arith.constant 0 : index
    %c0_5 = arith.constant 0 : index
    %5 = vector.load %arg4[%c0_4, %c0_5] : memref<128x128xbf16, #tpu.memory_space<vmem>>, vector<128x128xbf16>
    %cst = arith.constant dense<0.000000e+00> : vector<16x128xf32>
    %6 = tpu.matmul %4, %5, %cst {dimension_numbers = #tpu.dot_dimension_numbers<[1], [0], [0], [1], [0, 0, 1, 1], [], []>} : vector<16x128xbf16>, vector<128x128xbf16>, vector<16x128xf32> -> vector<16x128xf32>
    %7 = arith.addf %3, %6 : vector<16x128xf32>
    %c0_6 = arith.constant 0 : index
    %c0_7 = arith.constant 0 : index
    %8 = vector.load %arg8[%c0_6, %c0_7] : memref<16x128xf32, #tpu.memory_space<vmem>>, vector<16x128xf32>
    tpu.vector_store %arg8[%c0_6, %c0_7], %7 {strides = array<i32>} : memref<16x128xf32, #tpu.memory_space<vmem>>, vector<16x128xf32>,
    %c0_i32_8 = arith.constant 0 : i32
    %9 = arith.cmpi eq, %arg2, %c0_i32_8 : i32
    %10 = arith.extui %9 : i1 to i32
    %c0_i32_9 = arith.constant 0 : i32
    %11 = arith.cmpi ne, %10, %c0_i32_9 : i32
    scf.if %11 {
      %c0_10 = arith.constant 0 : index
      %c0_11 = arith.constant 0 : index
      %12 = vector.load %arg8[%c0_10, %c0_11] : memref<16x128xf32, #tpu.memory_space<vmem>>, vector<16x128xf32>
      %c0_12 = arith.constant 0 : index
      %c0_13 = arith.constant 0 : index
      %13 = vector.load %arg5[%c0_12, %c0_13] : memref<1x128xf32, #tpu.memory_space<vmem>>, vector<1x128xf32>
      %14 = vector.broadcast %13 : vector<1x128xf32> to vector<16x128xf32>
      %15 = arith.addf %12, %14 : vector<16x128xf32>
      %c0_14 = arith.constant 0 : index
      %c0_15 = arith.constant 0 : index
      %16 = vector.load %arg6[%c0_14, %c0_15] : memref<16x128xbf16, #tpu.memory_space<vmem>>, vector<16x128xbf16>
      %17 = arith.extf %16 : vector<16x128xbf16> to vector<16x128xf32>
      %18 = arith.addf %15, %17 : vector<16x128xf32>
      %cst_16 = arith.constant 0.000000e+00 : f32
      %19 = vector.broadcast %cst_16 : f32 to vector<16x128xf32>
      %20 = arith.maximumf %18, %19 : vector<16x128xf32>
      %21 = arith.truncf %20 : vector<16x128xf32> to vector<16x128xbf16>
      %c0_17 = arith.constant 0 : index
      %c0_18 = arith.constant 0 : index
      %22 = vector.load %arg7[%c0_17, %c0_18] : memref<16x128xbf16, #tpu.memory_space<vmem>>, vector<16x128xbf16>
      tpu.vector_store %arg7[%c0_17, %c0_18], %21 {strides = array<i32>} : memref<16x128xbf16, #tpu.memory_space<vmem>>, vector<16x128xbf16>,
    } else {
    }
    return
  }
  func.func @transform_0(%arg0: i32, %arg1: i32, %arg2: i32) -> (i32, i32) {
    %c0_i32 = arith.constant 0 : i32
    return %arg0, %arg2 : i32, i32
  }
  func.func @transform_1(%arg0: i32, %arg1: i32, %arg2: i32) -> (i32, i32) {
    %c0_i32 = arith.constant 0 : i32
    return %arg2, %arg1 : i32, i32
  }
  func.func @transform_2(%arg0: i32, %arg1: i32, %arg2: i32) -> (i32, i32) {
    %c0_i32 = arith.constant 0 : i32
    %c0_i32_0 = arith.constant 0 : i32
    return %c0_i32, %arg1 : i32, i32
  }
  func.func @transform_3(%arg0: i32, %arg1: i32, %arg2: i32) -> (i32, i32) {
    %c0_i32 = arith.constant 0 : i32
    return %arg0, %arg1 : i32, i32
  }
  func.func @transform_4(%arg0: i32, %arg1: i32, %arg2: i32) -> (i32, i32) {
    %c0_i32 = arith.constant 0 : i32
    return %arg0, %arg1 : i32, i32
  }
}

module attributes {stable_mosaic.version = 11 : i64} {
  func.func @_mm_bias_kernel(%arg0: i32, %arg1: i32, %arg2: i32, %arg3: memref<16x384xbf16, #tpu.memory_space<vmem>>, %arg4: memref<384x128xbf16, #tpu.memory_space<vmem>>, %arg5: memref<1x128xf32, #tpu.memory_space<vmem>>, %arg6: memref<16x128xbf16, #tpu.memory_space<vmem>>, %arg7: memref<16x128xf32, #tpu.memory_space<vmem>>) attributes {dimension_semantics = [#tpu.dimension_semantics<parallel>, #tpu.dimension_semantics<parallel>, #tpu.dimension_semantics<arbitrary>], iteration_bounds = array<i64: 2, 1, 3>, scalar_prefetch = 0 : i64, scratch_operands = 1 : i64, tpu.core_type = #tpu.core_type<tc>, window_params = [{transform_indices = @transform_0, window_bounds = array<i64: 16, 384>}, {transform_indices = @transform_1, window_bounds = array<i64: 384, 128>}, {transform_indices = @transform_2, window_bounds = array<i64: 1, 128>}, {transform_indices = @transform_3, window_bounds = array<i64: 16, 128>}]} {
    %c0_i32 = arith.constant 0 : i32
    %0 = arith.cmpi eq, %arg2, %c0_i32 : i32
    %1 = arith.extui %0 : i1 to i32
    %c0_i32_0 = arith.constant 0 : i32
    %2 = arith.cmpi ne, %1, %c0_i32_0 : i32
    scf.if %2 {
      %cst_9 = arith.constant 0.000000e+00 : f32
      %12 = vector.broadcast %cst_9 : f32 to vector<16x128xf32>
      %c0_10 = arith.constant 0 : index
      %c0_11 = arith.constant 0 : index
      %13 = vector.load %arg7[%c0_10, %c0_11] : memref<16x128xf32, #tpu.memory_space<vmem>>, vector<16x128xf32>
      tpu.vector_store %arg7[%c0_10, %c0_11], %12 {strides = array<i32>} : memref<16x128xf32, #tpu.memory_space<vmem>>, vector<16x128xf32>,
    } else {
    }
    %c0 = arith.constant 0 : index
    %c0_1 = arith.constant 0 : index
    %3 = vector.load %arg7[%c0, %c0_1] : memref<16x128xf32, #tpu.memory_space<vmem>>, vector<16x128xf32>
    %c0_2 = arith.constant 0 : index
    %c0_3 = arith.constant 0 : index
    %4 = vector.load %arg3[%c0_2, %c0_3] : memref<16x384xbf16, #tpu.memory_space<vmem>>, vector<16x384xbf16>
    %c0_4 = arith.constant 0 : index
    %c0_5 = arith.constant 0 : index
    %5 = vector.load %arg4[%c0_4, %c0_5] : memref<384x128xbf16, #tpu.memory_space<vmem>>, vector<384x128xbf16>
    %cst = arith.constant dense<0.000000e+00> : vector<16x128xf32>
    %6 = tpu.matmul %4, %5, %cst {dimension_numbers = #tpu.dot_dimension_numbers<[1], [0], [0], [1], [0, 0, 1, 1], [], []>} : vector<16x384xbf16>, vector<384x128xbf16>, vector<16x128xf32> -> vector<16x128xf32>
    %7 = arith.addf %3, %6 : vector<16x128xf32>
    %c0_6 = arith.constant 0 : index
    %c0_7 = arith.constant 0 : index
    %8 = vector.load %arg7[%c0_6, %c0_7] : memref<16x128xf32, #tpu.memory_space<vmem>>, vector<16x128xf32>
    tpu.vector_store %arg7[%c0_6, %c0_7], %7 {strides = array<i32>} : memref<16x128xf32, #tpu.memory_space<vmem>>, vector<16x128xf32>,
    %c2_i32 = arith.constant 2 : i32
    %9 = arith.cmpi eq, %arg2, %c2_i32 : i32
    %10 = arith.extui %9 : i1 to i32
    %c0_i32_8 = arith.constant 0 : i32
    %11 = arith.cmpi ne, %10, %c0_i32_8 : i32
    scf.if %11 {
      %c0_9 = arith.constant 0 : index
      %c0_10 = arith.constant 0 : index
      %12 = vector.load %arg7[%c0_9, %c0_10] : memref<16x128xf32, #tpu.memory_space<vmem>>, vector<16x128xf32>
      %c0_11 = arith.constant 0 : index
      %c0_12 = arith.constant 0 : index
      %13 = vector.load %arg5[%c0_11, %c0_12] : memref<1x128xf32, #tpu.memory_space<vmem>>, vector<1x128xf32>
      %14 = vector.broadcast %13 : vector<1x128xf32> to vector<16x128xf32>
      %15 = arith.addf %12, %14 : vector<16x128xf32>
      %cst_13 = arith.constant 0.000000e+00 : f32
      %16 = vector.broadcast %cst_13 : f32 to vector<16x128xf32>
      %17 = arith.maximumf %15, %16 : vector<16x128xf32>
      %18 = arith.truncf %17 : vector<16x128xf32> to vector<16x128xbf16>
      %c0_14 = arith.constant 0 : index
      %c0_15 = arith.constant 0 : index
      %19 = vector.load %arg6[%c0_14, %c0_15] : memref<16x128xbf16, #tpu.memory_space<vmem>>, vector<16x128xbf16>
      tpu.vector_store %arg6[%c0_14, %c0_15], %18 {strides = array<i32>} : memref<16x128xbf16, #tpu.memory_space<vmem>>, vector<16x128xbf16>,
    } else {
    }
    return
  }
  func.func @transform_0(%arg0: i32, %arg1: i32, %arg2: i32) -> (i32, i32) {
    %c0_i32 = arith.constant 0 : i32
    return %arg0, %arg2 : i32, i32
  }
  func.func @transform_1(%arg0: i32, %arg1: i32, %arg2: i32) -> (i32, i32) {
    %c0_i32 = arith.constant 0 : i32
    return %arg2, %arg1 : i32, i32
  }
  func.func @transform_2(%arg0: i32, %arg1: i32, %arg2: i32) -> (i32, i32) {
    %c0_i32 = arith.constant 0 : i32
    %c0_i32_0 = arith.constant 0 : i32
    return %c0_i32, %arg1 : i32, i32
  }
  func.func @transform_3(%arg0: i32, %arg1: i32, %arg2: i32) -> (i32, i32) {
    %c0_i32 = arith.constant 0 : i32
    return %arg0, %arg1 : i32, i32
  }
}

module attributes {stable_mosaic.version = 11 : i64} {
  func.func @_mm_bias_kernel(%arg0: i32, %arg1: i32, %arg2: i32, %arg3: memref<16x128xbf16, #tpu.memory_space<vmem>>, %arg4: memref<128x128xbf16, #tpu.memory_space<vmem>>, %arg5: memref<1x128xf32, #tpu.memory_space<vmem>>, %arg6: memref<16x128xbf16, #tpu.memory_space<vmem>>, %arg7: memref<16x128xf32, #tpu.memory_space<vmem>>) attributes {dimension_semantics = [#tpu.dimension_semantics<parallel>, #tpu.dimension_semantics<parallel>, #tpu.dimension_semantics<arbitrary>], iteration_bounds = array<i64: 2, 1, 1>, scalar_prefetch = 0 : i64, scratch_operands = 1 : i64, tpu.core_type = #tpu.core_type<tc>, window_params = [{transform_indices = @transform_0, window_bounds = array<i64: 16, 128>}, {transform_indices = @transform_1, window_bounds = array<i64: 128, 128>}, {transform_indices = @transform_2, window_bounds = array<i64: 1, 128>}, {transform_indices = @transform_3, window_bounds = array<i64: 16, 128>}]} {
    %c0_i32 = arith.constant 0 : i32
    %0 = arith.cmpi eq, %arg2, %c0_i32 : i32
    %1 = arith.extui %0 : i1 to i32
    %c0_i32_0 = arith.constant 0 : i32
    %2 = arith.cmpi ne, %1, %c0_i32_0 : i32
    scf.if %2 {
      %cst_10 = arith.constant 0.000000e+00 : f32
      %12 = vector.broadcast %cst_10 : f32 to vector<16x128xf32>
      %c0_11 = arith.constant 0 : index
      %c0_12 = arith.constant 0 : index
      %13 = vector.load %arg7[%c0_11, %c0_12] : memref<16x128xf32, #tpu.memory_space<vmem>>, vector<16x128xf32>
      tpu.vector_store %arg7[%c0_11, %c0_12], %12 {strides = array<i32>} : memref<16x128xf32, #tpu.memory_space<vmem>>, vector<16x128xf32>,
    } else {
    }
    %c0 = arith.constant 0 : index
    %c0_1 = arith.constant 0 : index
    %3 = vector.load %arg7[%c0, %c0_1] : memref<16x128xf32, #tpu.memory_space<vmem>>, vector<16x128xf32>
    %c0_2 = arith.constant 0 : index
    %c0_3 = arith.constant 0 : index
    %4 = vector.load %arg3[%c0_2, %c0_3] : memref<16x128xbf16, #tpu.memory_space<vmem>>, vector<16x128xbf16>
    %c0_4 = arith.constant 0 : index
    %c0_5 = arith.constant 0 : index
    %5 = vector.load %arg4[%c0_4, %c0_5] : memref<128x128xbf16, #tpu.memory_space<vmem>>, vector<128x128xbf16>
    %cst = arith.constant dense<0.000000e+00> : vector<16x128xf32>
    %6 = tpu.matmul %4, %5, %cst {dimension_numbers = #tpu.dot_dimension_numbers<[1], [0], [0], [1], [0, 0, 1, 1], [], []>} : vector<16x128xbf16>, vector<128x128xbf16>, vector<16x128xf32> -> vector<16x128xf32>
    %7 = arith.addf %3, %6 : vector<16x128xf32>
    %c0_6 = arith.constant 0 : index
    %c0_7 = arith.constant 0 : index
    %8 = vector.load %arg7[%c0_6, %c0_7] : memref<16x128xf32, #tpu.memory_space<vmem>>, vector<16x128xf32>
    tpu.vector_store %arg7[%c0_6, %c0_7], %7 {strides = array<i32>} : memref<16x128xf32, #tpu.memory_space<vmem>>, vector<16x128xf32>,
    %c0_i32_8 = arith.constant 0 : i32
    %9 = arith.cmpi eq, %arg2, %c0_i32_8 : i32
    %10 = arith.extui %9 : i1 to i32
    %c0_i32_9 = arith.constant 0 : i32
    %11 = arith.cmpi ne, %10, %c0_i32_9 : i32
    scf.if %11 {
      %c0_10 = arith.constant 0 : index
      %c0_11 = arith.constant 0 : index
      %12 = vector.load %arg7[%c0_10, %c0_11] : memref<16x128xf32, #tpu.memory_space<vmem>>, vector<16x128xf32>
      %c0_12 = arith.constant 0 : index
      %c0_13 = arith.constant 0 : index
      %13 = vector.load %arg5[%c0_12, %c0_13] : memref<1x128xf32, #tpu.memory_space<vmem>>, vector<1x128xf32>
      %14 = vector.broadcast %13 : vector<1x128xf32> to vector<16x128xf32>
      %15 = arith.addf %12, %14 : vector<16x128xf32>
      %16 = arith.truncf %15 : vector<16x128xf32> to vector<16x128xbf16>
      %c0_14 = arith.constant 0 : index
      %c0_15 = arith.constant 0 : index
      %17 = vector.load %arg6[%c0_14, %c0_15] : memref<16x128xbf16, #tpu.memory_space<vmem>>, vector<16x128xbf16>
      tpu.vector_store %arg6[%c0_14, %c0_15], %16 {strides = array<i32>} : memref<16x128xbf16, #tpu.memory_space<vmem>>, vector<16x128xbf16>,
    } else {
    }
    return
  }
  func.func @transform_0(%arg0: i32, %arg1: i32, %arg2: i32) -> (i32, i32) {
    %c0_i32 = arith.constant 0 : i32
    return %arg0, %arg2 : i32, i32
  }
  func.func @transform_1(%arg0: i32, %arg1: i32, %arg2: i32) -> (i32, i32) {
    %c0_i32 = arith.constant 0 : i32
    return %arg2, %arg1 : i32, i32
  }
  func.func @transform_2(%arg0: i32, %arg1: i32, %arg2: i32) -> (i32, i32) {
    %c0_i32 = arith.constant 0 : i32
    %c0_i32_0 = arith.constant 0 : i32
    return %c0_i32, %arg1 : i32, i32
  }
  func.func @transform_3(%arg0: i32, %arg1: i32, %arg2: i32) -> (i32, i32) {
    %c0_i32 = arith.constant 0 : i32
    return %arg0, %arg1 : i32, i32
  }
}

module attributes {stable_mosaic.version = 11 : i64} {
  func.func @_mm_bias_kernel(%arg0: i32, %arg1: i32, %arg2: i32, %arg3: memref<16x128xbf16, #tpu.memory_space<vmem>>, %arg4: memref<128x128xbf16, #tpu.memory_space<vmem>>, %arg5: memref<1x128xf32, #tpu.memory_space<vmem>>, %arg6: memref<16x128xbf16, #tpu.memory_space<vmem>>, %arg7: memref<16x128xf32, #tpu.memory_space<vmem>>) attributes {dimension_semantics = [#tpu.dimension_semantics<parallel>, #tpu.dimension_semantics<parallel>, #tpu.dimension_semantics<arbitrary>], iteration_bounds = array<i64: 2, 1, 1>, scalar_prefetch = 0 : i64, scratch_operands = 1 : i64, tpu.core_type = #tpu.core_type<tc>, window_params = [{transform_indices = @transform_0, window_bounds = array<i64: 16, 128>}, {transform_indices = @transform_1, window_bounds = array<i64: 128, 128>}, {transform_indices = @transform_2, window_bounds = array<i64: 1, 128>}, {transform_indices = @transform_3, window_bounds = array<i64: 16, 128>}]} {
    %c0_i32 = arith.constant 0 : i32
    %0 = arith.cmpi eq, %arg2, %c0_i32 : i32
    %1 = arith.extui %0 : i1 to i32
    %c0_i32_0 = arith.constant 0 : i32
    %2 = arith.cmpi ne, %1, %c0_i32_0 : i32
    scf.if %2 {
      %cst_10 = arith.constant 0.000000e+00 : f32
      %12 = vector.broadcast %cst_10 : f32 to vector<16x128xf32>
      %c0_11 = arith.constant 0 : index
      %c0_12 = arith.constant 0 : index
      %13 = vector.load %arg7[%c0_11, %c0_12] : memref<16x128xf32, #tpu.memory_space<vmem>>, vector<16x128xf32>
      tpu.vector_store %arg7[%c0_11, %c0_12], %12 {strides = array<i32>} : memref<16x128xf32, #tpu.memory_space<vmem>>, vector<16x128xf32>,
    } else {
    }
    %c0 = arith.constant 0 : index
    %c0_1 = arith.constant 0 : index
    %3 = vector.load %arg7[%c0, %c0_1] : memref<16x128xf32, #tpu.memory_space<vmem>>, vector<16x128xf32>
    %c0_2 = arith.constant 0 : index
    %c0_3 = arith.constant 0 : index
    %4 = vector.load %arg3[%c0_2, %c0_3] : memref<16x128xbf16, #tpu.memory_space<vmem>>, vector<16x128xbf16>
    %c0_4 = arith.constant 0 : index
    %c0_5 = arith.constant 0 : index
    %5 = vector.load %arg4[%c0_4, %c0_5] : memref<128x128xbf16, #tpu.memory_space<vmem>>, vector<128x128xbf16>
    %cst = arith.constant dense<0.000000e+00> : vector<16x128xf32>
    %6 = tpu.matmul %4, %5, %cst {dimension_numbers = #tpu.dot_dimension_numbers<[1], [0], [0], [1], [0, 0, 1, 1], [], []>} : vector<16x128xbf16>, vector<128x128xbf16>, vector<16x128xf32> -> vector<16x128xf32>
    %7 = arith.addf %3, %6 : vector<16x128xf32>
    %c0_6 = arith.constant 0 : index
    %c0_7 = arith.constant 0 : index
    %8 = vector.load %arg7[%c0_6, %c0_7] : memref<16x128xf32, #tpu.memory_space<vmem>>, vector<16x128xf32>
    tpu.vector_store %arg7[%c0_6, %c0_7], %7 {strides = array<i32>} : memref<16x128xf32, #tpu.memory_space<vmem>>, vector<16x128xf32>,
    %c0_i32_8 = arith.constant 0 : i32
    %9 = arith.cmpi eq, %arg2, %c0_i32_8 : i32
    %10 = arith.extui %9 : i1 to i32
    %c0_i32_9 = arith.constant 0 : i32
    %11 = arith.cmpi ne, %10, %c0_i32_9 : i32
    scf.if %11 {
      %c0_10 = arith.constant 0 : index
      %c0_11 = arith.constant 0 : index
      %12 = vector.load %arg7[%c0_10, %c0_11] : memref<16x128xf32, #tpu.memory_space<vmem>>, vector<16x128xf32>
      %c0_12 = arith.constant 0 : index
      %c0_13 = arith.constant 0 : index
      %13 = vector.load %arg5[%c0_12, %c0_13] : memref<1x128xf32, #tpu.memory_space<vmem>>, vector<1x128xf32>
      %14 = vector.broadcast %13 : vector<1x128xf32> to vector<16x128xf32>
      %15 = arith.addf %12, %14 : vector<16x128xf32>
      %cst_14 = arith.constant 0.000000e+00 : f32
      %16 = vector.broadcast %cst_14 : f32 to vector<16x128xf32>
      %17 = arith.maximumf %15, %16 : vector<16x128xf32>
      %18 = arith.truncf %17 : vector<16x128xf32> to vector<16x128xbf16>
      %c0_15 = arith.constant 0 : index
      %c0_16 = arith.constant 0 : index
      %19 = vector.load %arg6[%c0_15, %c0_16] : memref<16x128xbf16, #tpu.memory_space<vmem>>, vector<16x128xbf16>
      tpu.vector_store %arg6[%c0_15, %c0_16], %18 {strides = array<i32>} : memref<16x128xbf16, #tpu.memory_space<vmem>>, vector<16x128xbf16>,
    } else {
    }
    return
  }
  func.func @transform_0(%arg0: i32, %arg1: i32, %arg2: i32) -> (i32, i32) {
    %c0_i32 = arith.constant 0 : i32
    return %arg0, %arg2 : i32, i32
  }
  func.func @transform_1(%arg0: i32, %arg1: i32, %arg2: i32) -> (i32, i32) {
    %c0_i32 = arith.constant 0 : i32
    return %arg2, %arg1 : i32, i32
  }
  func.func @transform_2(%arg0: i32, %arg1: i32, %arg2: i32) -> (i32, i32) {
    %c0_i32 = arith.constant 0 : i32
    %c0_i32_0 = arith.constant 0 : i32
    return %c0_i32, %arg1 : i32, i32
  }
  func.func @transform_3(%arg0: i32, %arg1: i32, %arg2: i32) -> (i32, i32) {
    %c0_i32 = arith.constant 0 : i32
    return %arg0, %arg1 : i32, i32
  }
}

module attributes {stable_mosaic.version = 11 : i64} {
  func.func @_mm_bias_kernel(%arg0: i32, %arg1: i32, %arg2: i32, %arg3: memref<8x384xbf16, #tpu.memory_space<vmem>>, %arg4: memref<384x128xbf16, #tpu.memory_space<vmem>>, %arg5: memref<1x128xf32, #tpu.memory_space<vmem>>, %arg6: memref<8x128xbf16, #tpu.memory_space<vmem>>, %arg7: memref<8x128xf32, #tpu.memory_space<vmem>>) attributes {dimension_semantics = [#tpu.dimension_semantics<parallel>, #tpu.dimension_semantics<parallel>, #tpu.dimension_semantics<arbitrary>], iteration_bounds = array<i64: 1, 1, 3>, scalar_prefetch = 0 : i64, scratch_operands = 1 : i64, tpu.core_type = #tpu.core_type<tc>, window_params = [{transform_indices = @transform_0, window_bounds = array<i64: 8, 384>}, {transform_indices = @transform_1, window_bounds = array<i64: 384, 128>}, {transform_indices = @transform_2, window_bounds = array<i64: 1, 128>}, {transform_indices = @transform_3, window_bounds = array<i64: 8, 128>}]} {
    %c0_i32 = arith.constant 0 : i32
    %0 = arith.cmpi eq, %arg2, %c0_i32 : i32
    %1 = arith.extui %0 : i1 to i32
    %c0_i32_0 = arith.constant 0 : i32
    %2 = arith.cmpi ne, %1, %c0_i32_0 : i32
    scf.if %2 {
      %cst_9 = arith.constant 0.000000e+00 : f32
      %12 = vector.broadcast %cst_9 : f32 to vector<8x128xf32>
      %c0_10 = arith.constant 0 : index
      %c0_11 = arith.constant 0 : index
      %13 = vector.load %arg7[%c0_10, %c0_11] : memref<8x128xf32, #tpu.memory_space<vmem>>, vector<8x128xf32>
      tpu.vector_store %arg7[%c0_10, %c0_11], %12 {strides = array<i32>} : memref<8x128xf32, #tpu.memory_space<vmem>>, vector<8x128xf32>,
    } else {
    }
    %c0 = arith.constant 0 : index
    %c0_1 = arith.constant 0 : index
    %3 = vector.load %arg7[%c0, %c0_1] : memref<8x128xf32, #tpu.memory_space<vmem>>, vector<8x128xf32>
    %c0_2 = arith.constant 0 : index
    %c0_3 = arith.constant 0 : index
    %4 = vector.load %arg3[%c0_2, %c0_3] : memref<8x384xbf16, #tpu.memory_space<vmem>>, vector<8x384xbf16>
    %c0_4 = arith.constant 0 : index
    %c0_5 = arith.constant 0 : index
    %5 = vector.load %arg4[%c0_4, %c0_5] : memref<384x128xbf16, #tpu.memory_space<vmem>>, vector<384x128xbf16>
    %cst = arith.constant dense<0.000000e+00> : vector<8x128xf32>
    %6 = tpu.matmul %4, %5, %cst {dimension_numbers = #tpu.dot_dimension_numbers<[1], [0], [0], [1], [0, 0, 1, 1], [], []>} : vector<8x384xbf16>, vector<384x128xbf16>, vector<8x128xf32> -> vector<8x128xf32>
    %7 = arith.addf %3, %6 : vector<8x128xf32>
    %c0_6 = arith.constant 0 : index
    %c0_7 = arith.constant 0 : index
    %8 = vector.load %arg7[%c0_6, %c0_7] : memref<8x128xf32, #tpu.memory_space<vmem>>, vector<8x128xf32>
    tpu.vector_store %arg7[%c0_6, %c0_7], %7 {strides = array<i32>} : memref<8x128xf32, #tpu.memory_space<vmem>>, vector<8x128xf32>,
    %c2_i32 = arith.constant 2 : i32
    %9 = arith.cmpi eq, %arg2, %c2_i32 : i32
    %10 = arith.extui %9 : i1 to i32
    %c0_i32_8 = arith.constant 0 : i32
    %11 = arith.cmpi ne, %10, %c0_i32_8 : i32
    scf.if %11 {
      %c0_9 = arith.constant 0 : index
      %c0_10 = arith.constant 0 : index
      %12 = vector.load %arg7[%c0_9, %c0_10] : memref<8x128xf32, #tpu.memory_space<vmem>>, vector<8x128xf32>
      %c0_11 = arith.constant 0 : index
      %c0_12 = arith.constant 0 : index
      %13 = vector.load %arg5[%c0_11, %c0_12] : memref<1x128xf32, #tpu.memory_space<vmem>>, vector<1x128xf32>
      %14 = vector.broadcast %13 : vector<1x128xf32> to vector<8x128xf32>
      %15 = arith.addf %12, %14 : vector<8x128xf32>
      %cst_13 = arith.constant 0.000000e+00 : f32
      %16 = vector.broadcast %cst_13 : f32 to vector<8x128xf32>
      %17 = arith.maximumf %15, %16 : vector<8x128xf32>
      %18 = arith.truncf %17 : vector<8x128xf32> to vector<8x128xbf16>
      %c0_14 = arith.constant 0 : index
      %c0_15 = arith.constant 0 : index
      %19 = vector.load %arg6[%c0_14, %c0_15] : memref<8x128xbf16, #tpu.memory_space<vmem>>, vector<8x128xbf16>
      tpu.vector_store %arg6[%c0_14, %c0_15], %18 {strides = array<i32>} : memref<8x128xbf16, #tpu.memory_space<vmem>>, vector<8x128xbf16>,
    } else {
    }
    return
  }
  func.func @transform_0(%arg0: i32, %arg1: i32, %arg2: i32) -> (i32, i32) {
    %c0_i32 = arith.constant 0 : i32
    return %arg0, %arg2 : i32, i32
  }
  func.func @transform_1(%arg0: i32, %arg1: i32, %arg2: i32) -> (i32, i32) {
    %c0_i32 = arith.constant 0 : i32
    return %arg2, %arg1 : i32, i32
  }
  func.func @transform_2(%arg0: i32, %arg1: i32, %arg2: i32) -> (i32, i32) {
    %c0_i32 = arith.constant 0 : i32
    %c0_i32_0 = arith.constant 0 : i32
    return %c0_i32, %arg1 : i32, i32
  }
  func.func @transform_3(%arg0: i32, %arg1: i32, %arg2: i32) -> (i32, i32) {
    %c0_i32 = arith.constant 0 : i32
    return %arg0, %arg1 : i32, i32
  }
}

module attributes {stable_mosaic.version = 11 : i64} {
  func.func @_mm_bias_kernel(%arg0: i32, %arg1: i32, %arg2: i32, %arg3: memref<8x128xbf16, #tpu.memory_space<vmem>>, %arg4: memref<128x256xbf16, #tpu.memory_space<vmem>>, %arg5: memref<1x256xf32, #tpu.memory_space<vmem>>, %arg6: memref<8x256xbf16, #tpu.memory_space<vmem>>, %arg7: memref<8x256xf32, #tpu.memory_space<vmem>>) attributes {dimension_semantics = [#tpu.dimension_semantics<parallel>, #tpu.dimension_semantics<parallel>, #tpu.dimension_semantics<arbitrary>], iteration_bounds = array<i64: 1, 1, 1>, scalar_prefetch = 0 : i64, scratch_operands = 1 : i64, tpu.core_type = #tpu.core_type<tc>, window_params = [{transform_indices = @transform_0, window_bounds = array<i64: 8, 128>}, {transform_indices = @transform_1, window_bounds = array<i64: 128, 256>}, {transform_indices = @transform_2, window_bounds = array<i64: 1, 256>}, {transform_indices = @transform_3, window_bounds = array<i64: 8, 256>}]} {
    %c0_i32 = arith.constant 0 : i32
    %0 = arith.cmpi eq, %arg2, %c0_i32 : i32
    %1 = arith.extui %0 : i1 to i32
    %c0_i32_0 = arith.constant 0 : i32
    %2 = arith.cmpi ne, %1, %c0_i32_0 : i32
    scf.if %2 {
      %cst_10 = arith.constant 0.000000e+00 : f32
      %12 = vector.broadcast %cst_10 : f32 to vector<8x256xf32>
      %c0_11 = arith.constant 0 : index
      %c0_12 = arith.constant 0 : index
      %13 = vector.load %arg7[%c0_11, %c0_12] : memref<8x256xf32, #tpu.memory_space<vmem>>, vector<8x256xf32>
      tpu.vector_store %arg7[%c0_11, %c0_12], %12 {strides = array<i32>} : memref<8x256xf32, #tpu.memory_space<vmem>>, vector<8x256xf32>,
    } else {
    }
    %c0 = arith.constant 0 : index
    %c0_1 = arith.constant 0 : index
    %3 = vector.load %arg7[%c0, %c0_1] : memref<8x256xf32, #tpu.memory_space<vmem>>, vector<8x256xf32>
    %c0_2 = arith.constant 0 : index
    %c0_3 = arith.constant 0 : index
    %4 = vector.load %arg3[%c0_2, %c0_3] : memref<8x128xbf16, #tpu.memory_space<vmem>>, vector<8x128xbf16>
    %c0_4 = arith.constant 0 : index
    %c0_5 = arith.constant 0 : index
    %5 = vector.load %arg4[%c0_4, %c0_5] : memref<128x256xbf16, #tpu.memory_space<vmem>>, vector<128x256xbf16>
    %cst = arith.constant dense<0.000000e+00> : vector<8x256xf32>
    %6 = tpu.matmul %4, %5, %cst {dimension_numbers = #tpu.dot_dimension_numbers<[1], [0], [0], [1], [0, 0, 1, 1], [], []>} : vector<8x128xbf16>, vector<128x256xbf16>, vector<8x256xf32> -> vector<8x256xf32>
    %7 = arith.addf %3, %6 : vector<8x256xf32>
    %c0_6 = arith.constant 0 : index
    %c0_7 = arith.constant 0 : index
    %8 = vector.load %arg7[%c0_6, %c0_7] : memref<8x256xf32, #tpu.memory_space<vmem>>, vector<8x256xf32>
    tpu.vector_store %arg7[%c0_6, %c0_7], %7 {strides = array<i32>} : memref<8x256xf32, #tpu.memory_space<vmem>>, vector<8x256xf32>,
    %c0_i32_8 = arith.constant 0 : i32
    %9 = arith.cmpi eq, %arg2, %c0_i32_8 : i32
    %10 = arith.extui %9 : i1 to i32
    %c0_i32_9 = arith.constant 0 : i32
    %11 = arith.cmpi ne, %10, %c0_i32_9 : i32
    scf.if %11 {
      %c0_10 = arith.constant 0 : index
      %c0_11 = arith.constant 0 : index
      %12 = vector.load %arg7[%c0_10, %c0_11] : memref<8x256xf32, #tpu.memory_space<vmem>>, vector<8x256xf32>
      %c0_12 = arith.constant 0 : index
      %c0_13 = arith.constant 0 : index
      %13 = vector.load %arg5[%c0_12, %c0_13] : memref<1x256xf32, #tpu.memory_space<vmem>>, vector<1x256xf32>
      %14 = vector.broadcast %13 : vector<1x256xf32> to vector<8x256xf32>
      %15 = arith.addf %12, %14 : vector<8x256xf32>
      %16 = arith.truncf %15 : vector<8x256xf32> to vector<8x256xbf16>
      %c0_14 = arith.constant 0 : index
      %c0_15 = arith.constant 0 : index
      %17 = vector.load %arg6[%c0_14, %c0_15] : memref<8x256xbf16, #tpu.memory_space<vmem>>, vector<8x256xbf16>
      tpu.vector_store %arg6[%c0_14, %c0_15], %16 {strides = array<i32>} : memref<8x256xbf16, #tpu.memory_space<vmem>>, vector<8x256xbf16>,
    } else {
    }
    return
  }
  func.func @transform_0(%arg0: i32, %arg1: i32, %arg2: i32) -> (i32, i32) {
    %c0_i32 = arith.constant 0 : i32
    return %arg0, %arg2 : i32, i32
  }
  func.func @transform_1(%arg0: i32, %arg1: i32, %arg2: i32) -> (i32, i32) {
    %c0_i32 = arith.constant 0 : i32
    return %arg2, %arg1 : i32, i32
  }
  func.func @transform_2(%arg0: i32, %arg1: i32, %arg2: i32) -> (i32, i32) {
    %c0_i32 = arith.constant 0 : i32
    %c0_i32_0 = arith.constant 0 : i32
    return %c0_i32, %arg1 : i32, i32
  }
  func.func @transform_3(%arg0: i32, %arg1: i32, %arg2: i32) -> (i32, i32) {
    %c0_i32 = arith.constant 0 : i32
    return %arg0, %arg1 : i32, i32
  }
}

module attributes {stable_mosaic.version = 11 : i64} {
  func.func @_mm_bias_kernel(%arg0: i32, %arg1: i32, %arg2: i32, %arg3: memref<8x256xbf16, #tpu.memory_space<vmem>>, %arg4: memref<256x128xbf16, #tpu.memory_space<vmem>>, %arg5: memref<1x128xf32, #tpu.memory_space<vmem>>, %arg6: memref<8x128xbf16, #tpu.memory_space<vmem>>, %arg7: memref<8x128xf32, #tpu.memory_space<vmem>>) attributes {dimension_semantics = [#tpu.dimension_semantics<parallel>, #tpu.dimension_semantics<parallel>, #tpu.dimension_semantics<arbitrary>], iteration_bounds = array<i64: 1, 1, 1>, scalar_prefetch = 0 : i64, scratch_operands = 1 : i64, tpu.core_type = #tpu.core_type<tc>, window_params = [{transform_indices = @transform_0, window_bounds = array<i64: 8, 256>}, {transform_indices = @transform_1, window_bounds = array<i64: 256, 128>}, {transform_indices = @transform_2, window_bounds = array<i64: 1, 128>}, {transform_indices = @transform_3, window_bounds = array<i64: 8, 128>}]} {
    %c0_i32 = arith.constant 0 : i32
    %0 = arith.cmpi eq, %arg2, %c0_i32 : i32
    %1 = arith.extui %0 : i1 to i32
    %c0_i32_0 = arith.constant 0 : i32
    %2 = arith.cmpi ne, %1, %c0_i32_0 : i32
    scf.if %2 {
      %cst_10 = arith.constant 0.000000e+00 : f32
      %12 = vector.broadcast %cst_10 : f32 to vector<8x128xf32>
      %c0_11 = arith.constant 0 : index
      %c0_12 = arith.constant 0 : index
      %13 = vector.load %arg7[%c0_11, %c0_12] : memref<8x128xf32, #tpu.memory_space<vmem>>, vector<8x128xf32>
      tpu.vector_store %arg7[%c0_11, %c0_12], %12 {strides = array<i32>} : memref<8x128xf32, #tpu.memory_space<vmem>>, vector<8x128xf32>,
    } else {
    }
    %c0 = arith.constant 0 : index
    %c0_1 = arith.constant 0 : index
    %3 = vector.load %arg7[%c0, %c0_1] : memref<8x128xf32, #tpu.memory_space<vmem>>, vector<8x128xf32>
    %c0_2 = arith.constant 0 : index
    %c0_3 = arith.constant 0 : index
    %4 = vector.load %arg3[%c0_2, %c0_3] : memref<8x256xbf16, #tpu.memory_space<vmem>>, vector<8x256xbf16>
    %c0_4 = arith.constant 0 : index
    %c0_5 = arith.constant 0 : index
    %5 = vector.load %arg4[%c0_4, %c0_5] : memref<256x128xbf16, #tpu.memory_space<vmem>>, vector<256x128xbf16>
    %cst = arith.constant dense<0.000000e+00> : vector<8x128xf32>
    %6 = tpu.matmul %4, %5, %cst {dimension_numbers = #tpu.dot_dimension_numbers<[1], [0], [0], [1], [0, 0, 1, 1], [], []>} : vector<8x256xbf16>, vector<256x128xbf16>, vector<8x128xf32> -> vector<8x128xf32>
    %7 = arith.addf %3, %6 : vector<8x128xf32>
    %c0_6 = arith.constant 0 : index
    %c0_7 = arith.constant 0 : index
    %8 = vector.load %arg7[%c0_6, %c0_7] : memref<8x128xf32, #tpu.memory_space<vmem>>, vector<8x128xf32>
    tpu.vector_store %arg7[%c0_6, %c0_7], %7 {strides = array<i32>} : memref<8x128xf32, #tpu.memory_space<vmem>>, vector<8x128xf32>,
    %c0_i32_8 = arith.constant 0 : i32
    %9 = arith.cmpi eq, %arg2, %c0_i32_8 : i32
    %10 = arith.extui %9 : i1 to i32
    %c0_i32_9 = arith.constant 0 : i32
    %11 = arith.cmpi ne, %10, %c0_i32_9 : i32
    scf.if %11 {
      %c0_10 = arith.constant 0 : index
      %c0_11 = arith.constant 0 : index
      %12 = vector.load %arg7[%c0_10, %c0_11] : memref<8x128xf32, #tpu.memory_space<vmem>>, vector<8x128xf32>
      %c0_12 = arith.constant 0 : index
      %c0_13 = arith.constant 0 : index
      %13 = vector.load %arg5[%c0_12, %c0_13] : memref<1x128xf32, #tpu.memory_space<vmem>>, vector<1x128xf32>
      %14 = vector.broadcast %13 : vector<1x128xf32> to vector<8x128xf32>
      %15 = arith.addf %12, %14 : vector<8x128xf32>
      %cst_14 = arith.constant 0.000000e+00 : f32
      %16 = vector.broadcast %cst_14 : f32 to vector<8x128xf32>
      %17 = arith.maximumf %15, %16 : vector<8x128xf32>
      %18 = arith.truncf %17 : vector<8x128xf32> to vector<8x128xbf16>
      %c0_15 = arith.constant 0 : index
      %c0_16 = arith.constant 0 : index
      %19 = vector.load %arg6[%c0_15, %c0_16] : memref<8x128xbf16, #tpu.memory_space<vmem>>, vector<8x128xbf16>
      tpu.vector_store %arg6[%c0_15, %c0_16], %18 {strides = array<i32>} : memref<8x128xbf16, #tpu.memory_space<vmem>>, vector<8x128xbf16>,
    } else {
    }
    return
  }
  func.func @transform_0(%arg0: i32, %arg1: i32, %arg2: i32) -> (i32, i32) {
    %c0_i32 = arith.constant 0 : i32
    return %arg0, %arg2 : i32, i32
  }
  func.func @transform_1(%arg0: i32, %arg1: i32, %arg2: i32) -> (i32, i32) {
    %c0_i32 = arith.constant 0 : i32
    return %arg2, %arg1 : i32, i32
  }
  func.func @transform_2(%arg0: i32, %arg1: i32, %arg2: i32) -> (i32, i32) {
    %c0_i32 = arith.constant 0 : i32
    %c0_i32_0 = arith.constant 0 : i32
    return %c0_i32, %arg1 : i32, i32
  }
  func.func @transform_3(%arg0: i32, %arg1: i32, %arg2: i32) -> (i32, i32) {
    %c0_i32 = arith.constant 0 : i32
    return %arg0, %arg1 : i32, i32
  }
}

module attributes {stable_mosaic.version = 11 : i64} {
  func.func @_mm_bias_res_kernel(%arg0: i32, %arg1: i32, %arg2: i32, %arg3: memref<8x128xbf16, #tpu.memory_space<vmem>>, %arg4: memref<128x256xbf16, #tpu.memory_space<vmem>>, %arg5: memref<1x256xf32, #tpu.memory_space<vmem>>, %arg6: memref<8x256xbf16, #tpu.memory_space<vmem>>, %arg7: memref<8x256xbf16, #tpu.memory_space<vmem>>, %arg8: memref<8x256xf32, #tpu.memory_space<vmem>>) attributes {dimension_semantics = [#tpu.dimension_semantics<parallel>, #tpu.dimension_semantics<parallel>, #tpu.dimension_semantics<arbitrary>], iteration_bounds = array<i64: 1, 1, 1>, scalar_prefetch = 0 : i64, scratch_operands = 1 : i64, tpu.core_type = #tpu.core_type<tc>, window_params = [{transform_indices = @transform_0, window_bounds = array<i64: 8, 128>}, {transform_indices = @transform_1, window_bounds = array<i64: 128, 256>}, {transform_indices = @transform_2, window_bounds = array<i64: 1, 256>}, {transform_indices = @transform_3, window_bounds = array<i64: 8, 256>}, {transform_indices = @transform_4, window_bounds = array<i64: 8, 256>}]} {
    %c0_i32 = arith.constant 0 : i32
    %0 = arith.cmpi eq, %arg2, %c0_i32 : i32
    %1 = arith.extui %0 : i1 to i32
    %c0_i32_0 = arith.constant 0 : i32
    %2 = arith.cmpi ne, %1, %c0_i32_0 : i32
    scf.if %2 {
      %cst_10 = arith.constant 0.000000e+00 : f32
      %12 = vector.broadcast %cst_10 : f32 to vector<8x256xf32>
      %c0_11 = arith.constant 0 : index
      %c0_12 = arith.constant 0 : index
      %13 = vector.load %arg8[%c0_11, %c0_12] : memref<8x256xf32, #tpu.memory_space<vmem>>, vector<8x256xf32>
      tpu.vector_store %arg8[%c0_11, %c0_12], %12 {strides = array<i32>} : memref<8x256xf32, #tpu.memory_space<vmem>>, vector<8x256xf32>,
    } else {
    }
    %c0 = arith.constant 0 : index
    %c0_1 = arith.constant 0 : index
    %3 = vector.load %arg8[%c0, %c0_1] : memref<8x256xf32, #tpu.memory_space<vmem>>, vector<8x256xf32>
    %c0_2 = arith.constant 0 : index
    %c0_3 = arith.constant 0 : index
    %4 = vector.load %arg3[%c0_2, %c0_3] : memref<8x128xbf16, #tpu.memory_space<vmem>>, vector<8x128xbf16>
    %c0_4 = arith.constant 0 : index
    %c0_5 = arith.constant 0 : index
    %5 = vector.load %arg4[%c0_4, %c0_5] : memref<128x256xbf16, #tpu.memory_space<vmem>>, vector<128x256xbf16>
    %cst = arith.constant dense<0.000000e+00> : vector<8x256xf32>
    %6 = tpu.matmul %4, %5, %cst {dimension_numbers = #tpu.dot_dimension_numbers<[1], [0], [0], [1], [0, 0, 1, 1], [], []>} : vector<8x128xbf16>, vector<128x256xbf16>, vector<8x256xf32> -> vector<8x256xf32>
    %7 = arith.addf %3, %6 : vector<8x256xf32>
    %c0_6 = arith.constant 0 : index
    %c0_7 = arith.constant 0 : index
    %8 = vector.load %arg8[%c0_6, %c0_7] : memref<8x256xf32, #tpu.memory_space<vmem>>, vector<8x256xf32>
    tpu.vector_store %arg8[%c0_6, %c0_7], %7 {strides = array<i32>} : memref<8x256xf32, #tpu.memory_space<vmem>>, vector<8x256xf32>,
    %c0_i32_8 = arith.constant 0 : i32
    %9 = arith.cmpi eq, %arg2, %c0_i32_8 : i32
    %10 = arith.extui %9 : i1 to i32
    %c0_i32_9 = arith.constant 0 : i32
    %11 = arith.cmpi ne, %10, %c0_i32_9 : i32
    scf.if %11 {
      %c0_10 = arith.constant 0 : index
      %c0_11 = arith.constant 0 : index
      %12 = vector.load %arg8[%c0_10, %c0_11] : memref<8x256xf32, #tpu.memory_space<vmem>>, vector<8x256xf32>
      %c0_12 = arith.constant 0 : index
      %c0_13 = arith.constant 0 : index
      %13 = vector.load %arg5[%c0_12, %c0_13] : memref<1x256xf32, #tpu.memory_space<vmem>>, vector<1x256xf32>
      %14 = vector.broadcast %13 : vector<1x256xf32> to vector<8x256xf32>
      %15 = arith.addf %12, %14 : vector<8x256xf32>
      %c0_14 = arith.constant 0 : index
      %c0_15 = arith.constant 0 : index
      %16 = vector.load %arg6[%c0_14, %c0_15] : memref<8x256xbf16, #tpu.memory_space<vmem>>, vector<8x256xbf16>
      %17 = arith.extf %16 : vector<8x256xbf16> to vector<8x256xf32>
      %18 = arith.addf %15, %17 : vector<8x256xf32>
      %cst_16 = arith.constant 0.000000e+00 : f32
      %19 = vector.broadcast %cst_16 : f32 to vector<8x256xf32>
      %20 = arith.maximumf %18, %19 : vector<8x256xf32>
      %21 = arith.truncf %20 : vector<8x256xf32> to vector<8x256xbf16>
      %c0_17 = arith.constant 0 : index
      %c0_18 = arith.constant 0 : index
      %22 = vector.load %arg7[%c0_17, %c0_18] : memref<8x256xbf16, #tpu.memory_space<vmem>>, vector<8x256xbf16>
      tpu.vector_store %arg7[%c0_17, %c0_18], %21 {strides = array<i32>} : memref<8x256xbf16, #tpu.memory_space<vmem>>, vector<8x256xbf16>,
    } else {
    }
    return
  }
  func.func @transform_0(%arg0: i32, %arg1: i32, %arg2: i32) -> (i32, i32) {
    %c0_i32 = arith.constant 0 : i32
    return %arg0, %arg2 : i32, i32
  }
  func.func @transform_1(%arg0: i32, %arg1: i32, %arg2: i32) -> (i32, i32) {
    %c0_i32 = arith.constant 0 : i32
    return %arg2, %arg1 : i32, i32
  }
  func.func @transform_2(%arg0: i32, %arg1: i32, %arg2: i32) -> (i32, i32) {
    %c0_i32 = arith.constant 0 : i32
    %c0_i32_0 = arith.constant 0 : i32
    return %c0_i32, %arg1 : i32, i32
  }
  func.func @transform_3(%arg0: i32, %arg1: i32, %arg2: i32) -> (i32, i32) {
    %c0_i32 = arith.constant 0 : i32
    return %arg0, %arg1 : i32, i32
  }
  func.func @transform_4(%arg0: i32, %arg1: i32, %arg2: i32) -> (i32, i32) {
    %c0_i32 = arith.constant 0 : i32
    return %arg0, %arg1 : i32, i32
  }
}

module attributes {stable_mosaic.version = 11 : i64} {
  func.func @_avgpool_kernel(%arg0: i32, %arg1: memref<1x4x256xbf16, #tpu.memory_space<vmem>>, %arg2: memref<1x1x256xf32, #tpu.memory_space<vmem>>) attributes {dimension_semantics = [#tpu.dimension_semantics<parallel>], iteration_bounds = array<i64: 2>, scalar_prefetch = 0 : i64, scratch_operands = 0 : i64, tpu.core_type = #tpu.core_type<tc>, window_params = [{transform_indices = @transform_0, window_bounds = array<i64: 1, 4, 256>}, {transform_indices = @transform_1, window_bounds = array<i64: 1, 1, 256>}]} {
    %c0 = arith.constant 0 : index
    %c0_0 = arith.constant 0 : index
    %c0_1 = arith.constant 0 : index
    %0 = vector.load %arg1[%c0, %c0_0, %c0_1] : memref<1x4x256xbf16, #tpu.memory_space<vmem>>, vector<1x4x256xbf16>
    %1 = arith.extf %0 : vector<1x4x256xbf16> to vector<1x4x256xf32>
    %cst = arith.constant dense<0.000000e+00> : vector<1x256xf32>
    %2 = vector.multi_reduction <add>, %1, %cst [1] : vector<1x4x256xf32> to vector<1x256xf32>
    %3 = vector.shape_cast %2 : vector<1x256xf32> to vector<1x1x256xf32>
    %cst_2 = arith.constant 2.500000e-01 : f32
    %4 = vector.broadcast %cst_2 : f32 to vector<1x1x256xf32>
    %5 = arith.mulf %3, %4 : vector<1x1x256xf32>
    %c0_3 = arith.constant 0 : index
    %c0_4 = arith.constant 0 : index
    %c0_5 = arith.constant 0 : index
    %6 = vector.load %arg2[%c0_3, %c0_4, %c0_5] : memref<1x1x256xf32, #tpu.memory_space<vmem>>, vector<1x1x256xf32>
    tpu.vector_store %arg2[%c0_3, %c0_4, %c0_5], %5 {strides = array<i32>} : memref<1x1x256xf32, #tpu.memory_space<vmem>>, vector<1x1x256xf32>,
    return
  }
  func.func @transform_0(%arg0: i32) -> (i32, i32, i32) {
    %c0_i32 = arith.constant 0 : i32
    %c0_i32_0 = arith.constant 0 : i32
    %c0_i32_1 = arith.constant 0 : i32
    return %arg0, %c0_i32, %c0_i32_0 : i32, i32, i32
  }
  func.func @transform_1(%arg0: i32) -> (i32, i32, i32) {
    %c0_i32 = arith.constant 0 : i32
    %c0_i32_0 = arith.constant 0 : i32
    %c0_i32_1 = arith.constant 0 : i32
    return %arg0, %c0_i32, %c0_i32_0 : i32, i32, i32
  }
}

</mosaic_0001>

<bundles_post_ra>
// kernel: resnet50_bottom_forward.55
= control target key start
LH: loop header
LB: loop body
LE: loop exit
PB: predicated region body
PF: predicated region fallthrough
CT: control target
= control target key end

     0   :  { %s1744_s12 = smov 0   ;;  %s1746_s13 = smov 0   ;;  %s1918_s0 = inlined_call_operand.vmem [shape: bf16[2048,256], index: 0, kind: input, shape index: {}]   ;;  %s1919_s1 = inlined_call_operand.vmem [shape: bf16[256,128], index: 1, kind: input, shape index: {}]   ;;  %s1920_s2 = inlined_call_operand.vmem [shape: f32[1,128], index: 2, kind: input, shape index: {}]   ;;  %s1921_s3 = inlined_call_operand.vmem [shape: bf16[2048,128], index: 3, kind: output, shape index: {}]  }
   0x1   :  { %s1748_s14 = smov 0  }
   0x2 LB: > { %s32_s15 = sadd.s32 1, %s1718_s13  ;;  %p1267_p0 = scmp.ge.s32.totalorder %s1722_s14, 1  ;;  %s1722_s14 = sphi %s1748_s14, %s13_s14   ;;  %s1718_s13 = sphi %s1746_s13, %s1923_s13   ;;  %s1714_s12 = sphi %s1744_s12, %s1922_s12  }
   0x3   : > { %p34_p1 = scmp.ge.s32.totalorder %s32_s15, 8  ;;  %p191_p2 = scmp.lt.s32.totalorder %s1722_s14, 9 }
   0x5   : > { %s1925_s15 = smov (%p34_p1, %s32_s15), 0  ;;  %p192_p3 = pnand %p1267_p0, %p191_p2 }
   0x6   : > { %v1636_v0 = vld [vmem:[%s1919_s1 + $0x40] sm:$0xff] (!%p192_p3)   ;;  %s1268_s18 = sshll.u32 (!%p192_p3), %s1714_s12, 5  ;;  %v1638_v2 = vld [vmem:[%s1919_s1 + $0x48] sm:$0xff] (!%p192_p3)   ;;  %v1640_v4 = vld [vmem:[%s1919_s1 + $0x50] sm:$0xff] (!%p192_p3)  }
   0x7   : > { %195 = sbr.rel (%p192_p3) target bundleno = 320 (0x140), region = 32  ;;  %v1637_v1 = vld [vmem:[%s1919_s1] sm:$0xff] (!%p192_p3)   ;;  %1484 = vmatprep.subr.bf16.mxu0 (!%p192_p3), %v1636_v0  ;;  %1596 = vmatprep.subr.bf16.mxu1 (!%p192_p3), %v1636_v0  ;;  %v1639_v3 = vld [vmem:[%s1919_s1 + $0x8] sm:$0xff] (!%p192_p3)   ;;  %p236_p4 = scmp.lt.s32.totalorder (!%p192_p3), %s1268_s18, 255  ;;  %v1641_v5 = vld [vmem:[%s1919_s1 + $0x10] sm:$0xff] (!%p192_p3)  }
   0x8   : > { %1485 = vmatpush3.bf16.msra.mxu0 (!%p192_p3), %v1637_v1  ;;  %1604 = vmatpush3.bf16.msra.mxu1 (!%p192_p3), %v1637_v1  ;;  %v1642_v6 = vld [vmem:[%s1919_s1 + $0x58] sm:$0xff] (!%p192_p3)   ;;  %v1644_v8 = vld [vmem:[%s1919_s1 + $0x60] sm:$0xff] (!%p192_p3)   ;;  %v1646_v10 = vld [vmem:[%s1919_s1 + $0x68] sm:$0xff] (!%p192_p3)  }
   0x9   : > { %1486 = vmatprep.subr.bf16.mxu0 (!%p192_p3), %v1638_v2  ;;  %1597 = vmatprep.subr.bf16.mxu1 (!%p192_p3), %v1638_v2  ;;  %v1643_v7 = vld [vmem:[%s1919_s1 + $0x18] sm:$0xff] (!%p192_p3)   ;;  %v1645_v9 = vld [vmem:[%s1919_s1 + $0x20] sm:$0xff] (!%p192_p3)   ;;  %v1647_v13 = vld [vmem:[%s1919_s1 + $0x28] sm:$0xff] (!%p192_p3)  }
   0xa   : > { %v1648_v14 = vld [vmem:[%s1919_s1 + $0x70] sm:$0xff] (!%p192_p3)   ;;  %v1650_v16 = vld [vmem:[%s1919_s1 + $0x78] sm:$0xff] (!%p192_p3)   ;;  %v1853_v51 = vld [vmem:[%s1920_s2] ss:$0 sm:$0xff] (!%p192_p3) }
   0xb   : > { %v1649_v15 = vld [vmem:[%s1919_s1 + $0x30] sm:$0xff] (!%p192_p3)   ;;  %v1651_v17 = vld [vmem:[%s1919_s1 + $0x38] sm:$0xff] (!%p192_p3)  }
   0xc   : > { %1487 = vmatpush3.bf16.msra.mxu0 (!%p192_p3), %v1639_v3  ;;  %1605 = vmatpush3.bf16.msra.mxu1 (!%p192_p3), %v1639_v3 }
   0xd   : > { %1488 = vmatprep.subr.bf16.mxu0 (!%p192_p3), %v1640_v4  ;;  %1598 = vmatprep.subr.bf16.mxu1 (!%p192_p3), %v1640_v4 }
   0xe   : > { %s1927_s18 = smov (!%p236_p4, %s1268_s18), 255 }
   0xf   : > { %s1356_s6 = sshll.u32 %s1927_s18, 3  ;;  %s1272_s5 = sshll.u32 %s1927_s18, 2 }
  0x10   : > { %1489 = vmatpush3.bf16.msra.mxu0 %v1641_v5  ;;  %1606 = vmatpush3.bf16.msra.mxu1 %v1641_v5  ;;  %s1795_s11 = scalar_lea.vmem %s1918_s0, %s1356_s6  ;;  %s1863_s8 = scalar_lea.vmem %s1921_s3, %s1272_s5 }
  0x11   : > { %1490 = vmatprep.subr.bf16.mxu0 %v1642_v6  ;;  %1599 = vmatprep.subr.bf16.mxu1 %v1642_v6  ;;  %v1654_v11 = vld [vmem:[%s1795_s11 + $0x4] ss:$8 sps:$4 sm:$0xff]   ;;  %v1652_v18 = vld [vmem:[%s1795_s11] ss:$8 sps:$4 sm:$0xff]   ;;  %v1658_v20 = vld [vmem:[%s1795_s11 + $0x14] ss:$8 sps:$4 sm:$0xff]  }
  0x12   : > { %v1657_v12 = vld [vmem:[%s1795_s11 + $0x84] ss:$8 sps:$4 sm:$0xff]   ;;  %688 = vmatprep.mubr.bf16.mxu0 %v1654_v11  ;;  %v1655_v19 = vld [vmem:[%s1795_s11 + $0x80] ss:$8 sps:$4 sm:$0xff]   ;;  %v1660_v21 = vld [vmem:[%s1795_s11 + $0x94] ss:$8 sps:$4 sm:$0xff]  }
  0x13   : > { %752 = vmatprep.mubr.bf16.mxu1 %v1657_v12  ;;  %v1662_v22 = vld [vmem:[%s1795_s11 + $0x10] ss:$8 sps:$4 sm:$0xff]   ;;  %v1664_v24 = vld [vmem:[%s1795_s11 + $0x24] ss:$8 sps:$4 sm:$0xff]   ;;  %v1668_v26 = vld [vmem:[%s1795_s11 + $0x20] ss:$8 sps:$4 sm:$0xff]  }
  0x14   : > { %1491 = vmatpush3.bf16.msra.mxu0 %v1643_v7  ;;  %1607 = vmatpush3.bf16.msra.mxu1 %v1643_v7  ;;  %v1663_v23 = vld [vmem:[%s1795_s11 + $0x90] ss:$8 sps:$4 sm:$0xff]   ;;  %v1666_v25 = vld [vmem:[%s1795_s11 + $0xa4] ss:$8 sps:$4 sm:$0xff]   ;;  %v1669_v27 = vld [vmem:[%s1795_s11 + $0xa0] ss:$8 sps:$4 sm:$0xff]  }
  0x15   : > { %1492 = vmatprep.subr.bf16.mxu0 %v1644_v8  ;;  %1600 = vmatprep.subr.bf16.mxu1 %v1644_v8  ;;  %v1670_v28 = vld [vmem:[%s1795_s11 + $0x34] ss:$8 sps:$4 sm:$0xff]   ;;  %v1674_v30 = vld [vmem:[%s1795_s11 + $0x30] ss:$8 sps:$4 sm:$0xff]   ;;  %v1676_v32 = vld [vmem:[%s1795_s11 + $0x44] ss:$8 sps:$4 sm:$0xff]  }
  0x16   : > { %v1672_v29 = vld [vmem:[%s1795_s11 + $0xb4] ss:$8 sps:$4 sm:$0xff]   ;;  %v1675_v31 = vld [vmem:[%s1795_s11 + $0xb0] ss:$8 sps:$4 sm:$0xff]   ;;  %v1678_v33 = vld [vmem:[%s1795_s11 + $0xc4] ss:$8 sps:$4 sm:$0xff]  }
  0x17   : > { %v1680_v34 = vld [vmem:[%s1795_s11 + $0x40] ss:$8 sps:$4 sm:$0xff]   ;;  %v1682_v36 = vld [vmem:[%s1795_s11 + $0x54] ss:$8 sps:$4 sm:$0xff]   ;;  %v1686_v38 = vld [vmem:[%s1795_s11 + $0x50] ss:$8 sps:$4 sm:$0xff]  }
  0x18   : > { %1493 = vmatpush3.bf16.msra.mxu0 %v1645_v9  ;;  %1608 = vmatpush3.bf16.msra.mxu1 %v1645_v9  ;;  %v1681_v35 = vld [vmem:[%s1795_s11 + $0xc0] ss:$8 sps:$4 sm:$0xff]   ;;  %v1684_v37 = vld [vmem:[%s1795_s11 + $0xd4] ss:$8 sps:$4 sm:$0xff]   ;;  %v1687_v39 = vld [vmem:[%s1795_s11 + $0xd0] ss:$8 sps:$4 sm:$0xff]  }
  0x19   : > { %1494 = vmatprep.subr.bf16.mxu0 %v1646_v10  ;;  %1601 = vmatprep.subr.bf16.mxu1 %v1646_v10  ;;  %v1688_v40 = vld [vmem:[%s1795_s11 + $0x64] ss:$8 sps:$4 sm:$0xff]   ;;  %v1692_v42 = vld [vmem:[%s1795_s11 + $0x60] ss:$8 sps:$4 sm:$0xff]   ;;  %v1694_v44 = vld [vmem:[%s1795_s11 + $0x74] ss:$8 sps:$4 sm:$0xff]  }
  0x1a   : > { %v1690_v41 = vld [vmem:[%s1795_s11 + $0xe4] ss:$8 sps:$4 sm:$0xff]   ;;  %v1693_v43 = vld [vmem:[%s1795_s11 + $0xe0] ss:$8 sps:$4 sm:$0xff]   ;;  %v1696_v45 = vld [vmem:[%s1795_s11 + $0xf4] ss:$8 sps:$4 sm:$0xff]  }
  0x1b   : > { %v1698_v46 = vld [vmem:[%s1795_s11 + $0x70] ss:$8 sps:$4 sm:$0xff]  }
  0x1c   : > { %1495 = vmatpush3.bf16.msra.mxu0 %v1647_v13  ;;  %1609 = vmatpush3.bf16.msra.mxu1 %v1647_v13  ;;  %v1699_v47 = vld [vmem:[%s1795_s11 + $0xf0] ss:$8 sps:$4 sm:$0xff]  }
  0x1d   : > { %1496 = vmatprep.subr.bf16.mxu0 %v1648_v14  ;;  %1602 = vmatprep.subr.bf16.mxu1 %v1648_v14 }
  0x20   : > { %1497 = vmatpush3.bf16.msra.mxu0 %v1649_v15  ;;  %1610 = vmatpush3.bf16.msra.mxu1 %v1649_v15 }
  0x21   : > { %1498 = vmatprep.subr.bf16.mxu0 %v1650_v16  ;;  %1603 = vmatprep.subr.bf16.mxu1 %v1650_v16 }
  0x24   : > { %1499 = vmatpush3.bf16.msra.mxu0 %v1651_v17  ;;  %1611 = vmatpush3.bf16.msra.mxu1 %v1651_v17 }
  0x27   : > { %689 = vmatmul.mubr.bf16.vlgmr.msra.gmra.mrb[0].mxu0 %v1652_v18  ;;  %753 = vmatmul.mubr.bf16.vlgmr.msra.gmra.mrb[0].mxu1 %v1655_v19 }
  0x28   : > { %696 = vmatprep.mubr.bf16.mxu0 %v1658_v20  ;;  %760 = vmatprep.mubr.bf16.mxu1 %v1660_v21 }
  0x2f   : > { %697 = vmatmul.mubr.bf16.gmra.mrb[4].mxu0 %v1662_v22  ;;  %761 = vmatmul.mubr.bf16.gmra.mrb[4].mxu1 %v1663_v23 }
  0x30   : > { %704 = vmatprep.mubr.bf16.mxu0 %v1664_v24  ;;  %768 = vmatprep.mubr.bf16.mxu1 %v1666_v25 }
  0x37   : > { %705 = vmatmul.mubr.bf16.gmra.mrb[8].mxu0 %v1668_v26  ;;  %769 = vmatmul.mubr.bf16.gmra.mrb[8].mxu1 %v1669_v27 }
  0x38   : > { %712 = vmatprep.mubr.bf16.mxu0 %v1670_v28  ;;  %776 = vmatprep.mubr.bf16.mxu1 %v1672_v29 }
  0x3f   : > { %713 = vmatmul.mubr.bf16.gmra.mrb[12].mxu0 %v1674_v30  ;;  %777 = vmatmul.mubr.bf16.gmra.mrb[12].mxu1 %v1675_v31 }
  0x40   : > { %720 = vmatprep.mubr.bf16.mxu0 %v1676_v32  ;;  %784 = vmatprep.mubr.bf16.mxu1 %v1678_v33 }
  0x47   : > { %721 = vmatmul.mubr.bf16.gmra.mrb[16].mxu0 %v1680_v34  ;;  %785 = vmatmul.mubr.bf16.gmra.mrb[16].mxu1 %v1681_v35 }
  0x48   : > { %728 = vmatprep.mubr.bf16.mxu0 %v1682_v36  ;;  %792 = vmatprep.mubr.bf16.mxu1 %v1684_v37 }
  0x4f   : > { %729 = vmatmul.mubr.bf16.gmra.mrb[20].mxu0 %v1686_v38  ;;  %793 = vmatmul.mubr.bf16.gmra.mrb[20].mxu1 %v1687_v39 }
  0x50   : > { %736 = vmatprep.mubr.bf16.mxu0 %v1688_v40  ;;  %800 = vmatprep.mubr.bf16.mxu1 %v1690_v41 }
  0x57   : > { %737 = vmatmul.mubr.bf16.gmra.mrb[24].mxu0 %v1692_v42  ;;  %801 = vmatmul.mubr.bf16.gmra.mrb[24].mxu1 %v1693_v43 }
  0x58   : > { %744 = vmatprep.mubr.bf16.mxu0 %v1694_v44  ;;  %808 = vmatprep.mubr.bf16.mxu1 %v1696_v45 }
  0x5f   : > { %745 = vmatmul.mubr.bf16.gmra.mrb[28].mxu0 %v1698_v46  ;;  %809 = vmatmul.mubr.bf16.gmra.mrb[28].mxu1 %v1699_v47 }
  0xfa   : > { %v1500_v48 = vpop.f32.mrb[0].mxu0  ;;  %v1548_v49 = vpop.f32.mrb[0].mxu1 }
  0xfb   : > { %v1501_v50 = vpop.f32.mrb[1].mxu0  ;;  %v1549_v52 = vpop.f32.mrb[1].mxu1 }
  0xfc   : > { %v1502_v53 = vadd.f32 %v1501_v50, %v1500_v48  ;;  %v1550_v54 = vadd.f32 %v1549_v52, %v1548_v49  ;;  %v1503_v55 = vpop.f32.mrb[2].mxu0  ;;  %v1551_v56 = vpop.f32.mrb[2].mxu1 }
  0xfd   : > { %v1504_v57 = vpop.f32.mrb[3].mxu0  ;;  %v1552_v58 = vpop.f32.mrb[3].mxu1 }
  0xfe   : > { %v923_v59 = vadd.f32 %v1502_v53, %v1853_v51  ;;  %v939_v60 = vadd.f32 %v1550_v54, %v1853_v51  ;;  %v1505_v61 = vadd.f32 %v1504_v57, %v1503_v55  ;;  %v1553_v62 = vadd.f32 %v1552_v58, %v1551_v56 }
 0x100   : > { %v924_v63 = vadd.f32 %v1505_v61, %v1853_v51  ;;  %v940_v0 = vadd.f32 %v1553_v62, %v1853_v51  ;;  %v955_v1 = vmax.f32 %v923_v59, 0.0  ;;  %v971_v2 = vmax.f32 %v939_v60, 0.0 }
 0x102   : > { %v956_v3 = vmax.f32 %v924_v63, 0.0  ;;  %v972_v4 = vmax.f32 %v940_v0, 0.0  ;;  %v1506_v5 = vpop.f32.mrb[4].mxu0  ;;  %v1554_v6 = vpop.f32.mrb[4].mxu1 }
 0x103   : > { %v1507_v7 = vpop.f32.mrb[5].mxu0  ;;  %v1555_v8 = vpop.f32.mrb[5].mxu1 }
 0x104   : > { %v1392_v9 = vpack.c.bf16 %v956_v3, %v955_v1  ;;  %v1432_v10 = vpack.c.bf16 %v972_v4, %v971_v2  ;;  %v1508_v11 = vadd.f32 %v1507_v7, %v1506_v5  ;;  %v1556_v12 = vadd.f32 %v1555_v8, %v1554_v6  ;;  %v1509_v13 = vpop.f32.mrb[6].mxu0  ;;  %v1557_v14 = vpop.f32.mrb[6].mxu1 }
 0x105   : > { %v1510_v15 = vpop.f32.mrb[7].mxu0  ;;  %v1558_v16 = vpop.f32.mrb[7].mxu1 }
 0x106   : > { %1393 = vst [vmem:[%s1863_s8] sm:$0xff] %v1392_v9   ;;  %1476 = vst [vmem:[%s1863_s8 + $0x40] sm:$0xff] %v1432_v10   ;;  %v925_v17 = vadd.f32 %v1508_v11, %v1853_v51  ;;  %v941_v18 = vadd.f32 %v1556_v12, %v1853_v51  ;;  %v1511_v19 = vadd.f32 %v1510_v15, %v1509_v13 }
 0x107   : > { %v1559_v20 = vadd.f32 %v1558_v16, %v1557_v14 }
 0x108   : > { %v926_v21 = vadd.f32 %v1511_v19, %v1853_v51  ;;  %v957_v23 = vmax.f32 %v925_v17, 0.0  ;;  %v973_v24 = vmax.f32 %v941_v18, 0.0 }
 0x109   : > { %v942_v22 = vadd.f32 %v1559_v20, %v1853_v51 }
 0x10a   : > { %v958_v25 = vmax.f32 %v926_v21, 0.0  ;;  %v1512_v27 = vpop.f32.mrb[8].mxu0  ;;  %v1560_v28 = vpop.f32.mrb[8].mxu1 }
 0x10b   : > { %v974_v26 = vmax.f32 %v942_v22, 0.0  ;;  %v1513_v29 = vpop.f32.mrb[9].mxu0  ;;  %v1561_v30 = vpop.f32.mrb[9].mxu1 }
 0x10c   : > { %v1397_v31 = vpack.c.bf16 %v958_v25, %v957_v23  ;;  %v1514_v33 = vadd.f32 %v1513_v29, %v1512_v27  ;;  %v1562_v34 = vadd.f32 %v1561_v30, %v1560_v28  ;;  %v1515_v35 = vpop.f32.mrb[10].mxu0  ;;  %v1563_v36 = vpop.f32.mrb[10].mxu1 }
 0x10d   : > { %v1437_v32 = vpack.c.bf16 %v974_v26, %v973_v24  ;;  %v1516_v37 = vpop.f32.mrb[11].mxu0  ;;  %v1564_v38 = vpop.f32.mrb[11].mxu1 }
 0x10e   : > { %1469 = vst [vmem:[%s1863_s8 + $0x8] sm:$0xff] %v1397_v31   ;;  %v927_v39 = vadd.f32 %v1514_v33, %v1853_v51  ;;  %v943_v40 = vadd.f32 %v1562_v34, %v1853_v51  ;;  %v1517_v41 = vadd.f32 %v1516_v37, %v1515_v35  ;;  %v1565_v42 = vadd.f32 %v1564_v38, %v1563_v36 }
 0x10f   : > { %1477 = vst [vmem:[%s1863_s8 + $0x48] sm:$0xff] %v1437_v32  }
 0x110   : > { %v928_v43 = vadd.f32 %v1517_v41, %v1853_v51  ;;  %v944_v44 = vadd.f32 %v1565_v42, %v1853_v51  ;;  %v959_v45 = vmax.f32 %v927_v39, 0.0  ;;  %v975_v46 = vmax.f32 %v943_v40, 0.0 }
 0x112   : > { %v960_v47 = vmax.f32 %v928_v43, 0.0  ;;  %v976_v48 = vmax.f32 %v944_v44, 0.0  ;;  %v1518_v49 = vpop.f32.mrb[12].mxu0  ;;  %v1566_v50 = vpop.f32.mrb[12].mxu1 }
 0x113   : > { %v1519_v52 = vpop.f32.mrb[13].mxu0  ;;  %v1567_v53 = vpop.f32.mrb[13].mxu1 }
 0x114   : > { %v1402_v54 = vpack.c.bf16 %v960_v47, %v959_v45  ;;  %v1442_v55 = vpack.c.bf16 %v976_v48, %v975_v46  ;;  %v1520_v56 = vadd.f32 %v1519_v52, %v1518_v49  ;;  %v1568_v57 = vadd.f32 %v1567_v53, %v1566_v50  ;;  %v1521_v58 = vpop.f32.mrb[14].mxu0  ;;  %v1569_v59 = vpop.f32.mrb[14].mxu1 }
 0x115   : > { %v1522_v60 = vpop.f32.mrb[15].mxu0  ;;  %v1570_v61 = vpop.f32.mrb[15].mxu1 }
 0x116   : > { %1470 = vst [vmem:[%s1863_s8 + $0x10] sm:$0xff] %v1402_v54   ;;  %1478 = vst [vmem:[%s1863_s8 + $0x50] sm:$0xff] %v1442_v55   ;;  %v929_v62 = vadd.f32 %v1520_v56, %v1853_v51  ;;  %v945_v63 = vadd.f32 %v1568_v57, %v1853_v51  ;;  %v1523_v0 = vadd.f32 %v1522_v60, %v1521_v58 }
 0x117   : > { %v1571_v1 = vadd.f32 %v1570_v61, %v1569_v59 }
 0x118   : > { %v930_v2 = vadd.f32 %v1523_v0, %v1853_v51  ;;  %v961_v4 = vmax.f32 %v929_v62, 0.0  ;;  %v977_v5 = vmax.f32 %v945_v63, 0.0 }
 0x119   : > { %v946_v3 = vadd.f32 %v1571_v1, %v1853_v51 }
 0x11a   : > { %v962_v6 = vmax.f32 %v930_v2, 0.0  ;;  %v1524_v8 = vpop.f32.mrb[16].mxu0  ;;  %v1572_v9 = vpop.f32.mrb[16].mxu1 }
 0x11b   : > { %v978_v7 = vmax.f32 %v946_v3, 0.0  ;;  %v1525_v10 = vpop.f32.mrb[17].mxu0  ;;  %v1573_v11 = vpop.f32.mrb[17].mxu1 }
 0x11c   : > { %v1407_v12 = vpack.c.bf16 %v962_v6, %v961_v4  ;;  %v1526_v14 = vadd.f32 %v1525_v10, %v1524_v8  ;;  %v1574_v15 = vadd.f32 %v1573_v11, %v1572_v9  ;;  %v1527_v16 = vpop.f32.mrb[18].mxu0  ;;  %v1575_v17 = vpop.f32.mrb[18].mxu1 }
 0x11d   : > { %v1447_v13 = vpack.c.bf16 %v978_v7, %v977_v5  ;;  %v1528_v18 = vpop.f32.mrb[19].mxu0  ;;  %v1576_v19 = vpop.f32.mrb[19].mxu1 }
 0x11e   : > { %1471 = vst [vmem:[%s1863_s8 + $0x18] sm:$0xff] %v1407_v12   ;;  %v931_v20 = vadd.f32 %v1526_v14, %v1853_v51  ;;  %v947_v21 = vadd.f32 %v1574_v15, %v1853_v51  ;;  %v1529_v22 = vadd.f32 %v1528_v18, %v1527_v16  ;;  %v1577_v23 = vadd.f32 %v1576_v19, %v1575_v17 }
 0x11f   : > { %1479 = vst [vmem:[%s1863_s8 + $0x58] sm:$0xff] %v1447_v13  }
 0x120   : > { %v932_v24 = vadd.f32 %v1529_v22, %v1853_v51  ;;  %v948_v25 = vadd.f32 %v1577_v23, %v1853_v51  ;;  %v963_v26 = vmax.f32 %v931_v20, 0.0  ;;  %v979_v27 = vmax.f32 %v947_v21, 0.0 }
 0x122   : > { %v964_v28 = vmax.f32 %v932_v24, 0.0  ;;  %v980_v29 = vmax.f32 %v948_v25, 0.0  ;;  %v1530_v30 = vpop.f32.mrb[20].mxu0  ;;  %v1578_v31 = vpop.f32.mrb[20].mxu1 }
 0x123   : > { %v1531_v32 = vpop.f32.mrb[21].mxu0  ;;  %v1579_v33 = vpop.f32.mrb[21].mxu1 }
 0x124   : > { %v1412_v34 = vpack.c.bf16 %v964_v28, %v963_v26  ;;  %v1452_v35 = vpack.c.bf16 %v980_v29, %v979_v27  ;;  %v1532_v36 = vadd.f32 %v1531_v32, %v1530_v30  ;;  %v1580_v37 = vadd.f32 %v1579_v33, %v1578_v31  ;;  %v1533_v38 = vpop.f32.mrb[22].mxu0  ;;  %v1581_v39 = vpop.f32.mrb[22].mxu1 }
 0x125   : > { %v1534_v40 = vpop.f32.mrb[23].mxu0  ;;  %v1582_v41 = vpop.f32.mrb[23].mxu1 }
 0x126   : > { %1472 = vst [vmem:[%s1863_s8 + $0x20] sm:$0xff] %v1412_v34   ;;  %1480 = vst [vmem:[%s1863_s8 + $0x60] sm:$0xff] %v1452_v35   ;;  %v933_v42 = vadd.f32 %v1532_v36, %v1853_v51  ;;  %v949_v43 = vadd.f32 %v1580_v37, %v1853_v51  ;;  %v1535_v44 = vadd.f32 %v1534_v40, %v1533_v38 }
 0x127   : > { %v1583_v45 = vadd.f32 %v1582_v41, %v1581_v39 }
 0x128   : > { %v934_v46 = vadd.f32 %v1535_v44, %v1853_v51  ;;  %v965_v48 = vmax.f32 %v933_v42, 0.0  ;;  %v981_v49 = vmax.f32 %v949_v43, 0.0 }
 0x129   : > { %v950_v47 = vadd.f32 %v1583_v45, %v1853_v51 }
 0x12a   : > { %v966_v50 = vmax.f32 %v934_v46, 0.0  ;;  %v1536_v53 = vpop.f32.mrb[24].mxu0  ;;  %v1584_v54 = vpop.f32.mrb[24].mxu1 }
 0x12b   : > { %v982_v52 = vmax.f32 %v950_v47, 0.0  ;;  %v1537_v55 = vpop.f32.mrb[25].mxu0  ;;  %v1585_v56 = vpop.f32.mrb[25].mxu1 }
 0x12c   : > { %v1417_v57 = vpack.c.bf16 %v966_v50, %v965_v48  ;;  %v1538_v59 = vadd.f32 %v1537_v55, %v1536_v53  ;;  %v1586_v60 = vadd.f32 %v1585_v56, %v1584_v54  ;;  %v1539_v61 = vpop.f32.mrb[26].mxu0  ;;  %v1587_v62 = vpop.f32.mrb[26].mxu1 }
 0x12d   : > { %v1457_v58 = vpack.c.bf16 %v982_v52, %v981_v49  ;;  %v1540_v63 = vpop.f32.mrb[27].mxu0  ;;  %v1588_v0 = vpop.f32.mrb[27].mxu1 }
 0x12e   : > { %1473 = vst [vmem:[%s1863_s8 + $0x28] sm:$0xff] %v1417_v57   ;;  %v935_v1 = vadd.f32 %v1538_v59, %v1853_v51  ;;  %v951_v2 = vadd.f32 %v1586_v60, %v1853_v51  ;;  %v1541_v3 = vadd.f32 %v1540_v63, %v1539_v61  ;;  %v1589_v4 = vadd.f32 %v1588_v0, %v1587_v62 }
 0x12f   : > { %1481 = vst [vmem:[%s1863_s8 + $0x68] sm:$0xff] %v1457_v58  }
 0x130   : > { %v936_v5 = vadd.f32 %v1541_v3, %v1853_v51  ;;  %v952_v6 = vadd.f32 %v1589_v4, %v1853_v51  ;;  %v967_v7 = vmax.f32 %v935_v1, 0.0  ;;  %v983_v8 = vmax.f32 %v951_v2, 0.0 }
 0x132   : > { %v968_v9 = vmax.f32 %v936_v5, 0.0  ;;  %v984_v10 = vmax.f32 %v952_v6, 0.0  ;;  %v1542_v11 = vpop.f32.mrb[28].mxu0  ;;  %v1590_v12 = vpop.f32.mrb[28].mxu1 }
 0x133   : > { %v1543_v13 = vpop.f32.mrb[29].mxu0  ;;  %v1591_v14 = vpop.f32.mrb[29].mxu1 }
 0x134   : > { %v1422_v15 = vpack.c.bf16 %v968_v9, %v967_v7  ;;  %v1462_v16 = vpack.c.bf16 %v984_v10, %v983_v8  ;;  %v1544_v17 = vadd.f32 %v1543_v13, %v1542_v11  ;;  %v1592_v18 = vadd.f32 %v1591_v14, %v1590_v12  ;;  %v1545_v19 = vpop.f32.mrb[30].mxu0  ;;  %v1593_v20 = vpop.f32.mrb[30].mxu1 }
 0x135   : > { %v1546_v21 = vpop.f32.mrb[31].mxu0  ;;  %v1594_v22 = vpop.f32.mrb[31].mxu1 }
 0x136   : > { %1474 = vst [vmem:[%s1863_s8 + $0x30] sm:$0xff] %v1422_v15   ;;  %1482 = vst [vmem:[%s1863_s8 + $0x70] sm:$0xff] %v1462_v16   ;;  %v937_v23 = vadd.f32 %v1544_v17, %v1853_v51  ;;  %v953_v24 = vadd.f32 %v1592_v18, %v1853_v51  ;;  %v1547_v25 = vadd.f32 %v1546_v21, %v1545_v19 }
 0x137   : > { %v1595_v26 = vadd.f32 %v1594_v22, %v1593_v20 }
 0x138   : > { %v938_v27 = vadd.f32 %v1547_v25, %v1853_v51  ;;  %v969_v29 = vmax.f32 %v937_v23, 0.0  ;;  %v985_v30 = vmax.f32 %v953_v24, 0.0 }
 0x139   : > { %v954_v28 = vadd.f32 %v1595_v26, %v1853_v51 }
 0x13a   : > { %v970_v31 = vmax.f32 %v938_v27, 0.0 }
 0x13b   : > { %v986_v32 = vmax.f32 %v954_v28, 0.0 }
 0x13c   : > { %v1427_v33 = vpack.c.bf16 %v970_v31, %v969_v29 }
 0x13d   : > { %v1467_v34 = vpack.c.bf16 %v986_v32, %v985_v30 }
 0x13e   : > { %1475 = vst [vmem:[%s1863_s8 + $0x38] sm:$0xff] %v1427_v33  }
 0x13f   : > { %1483 = vst [vmem:[%s1863_s8 + $0x78] sm:$0xff] %v1467_v34  }
 0x140 PF: > { %s13_s14 = sadd.s32 1, %s1722_s14   ;;  %s1922_s12 = smov %s1718_s13 }
 0x141   : > { %p10_p5 = scmp.ge.s32.totalorder %s13_s14, 10   ;;  %s1923_s13 = smov %s1925_s15 }
 0x143   :  { %12 = sbr.rel (!%p10_p5) target bundleno = 2 (0x2), region = 76 }

// kernel: resnet50_bottom_forward.58
= control target key start
LH: loop header
LB: loop body
LE: loop exit
PB: predicated region body
PF: predicated region fallthrough
CT: control target
= control target key end

     0   :  { %s1499_s12 = smov 0   ;;  %s1501_s13 = smov 0   ;;  %s1636_s0 = inlined_call_operand.vmem [shape: bf16[512,128], index: 0, kind: input, shape index: {}]   ;;  %s1637_s1 = inlined_call_operand.vmem [shape: bf16[128,128], index: 1, kind: input, shape index: {}]   ;;  %s1638_s2 = inlined_call_operand.vmem [shape: f32[1,128], index: 2, kind: input, shape index: {}]   ;;  %s1639_s3 = inlined_call_operand.vmem [shape: bf16[512,128], index: 3, kind: output, shape index: {}]  }
   0x1   :  { %s1503_s14 = smov 0  }
   0x2 LB: > { %s32_s15 = sadd.s32 1, %s1473_s13  ;;  %p1128_p0 = scmp.ge.s32.totalorder %s1477_s14, 1  ;;  %s1477_s14 = sphi %s1503_s14, %s13_s14   ;;  %s1473_s13 = sphi %s1501_s13, %s1641_s13   ;;  %s1469_s12 = sphi %s1499_s12, %s1640_s12  }
   0x3   : > { %p34_p1 = scmp.ge.s32.totalorder %s32_s15, 2  ;;  %p188_p2 = scmp.lt.s32.totalorder %s1477_s14, 3 }
   0x5   : > { %s1643_s15 = smov (%p34_p1, %s32_s15), 0  ;;  %p189_p3 = pnand %p1128_p0, %p188_p2 }
   0x6   : > { %v1431_v0 = vld [vmem:[%s1637_s1] sm:$0xff] (!%p189_p3)   ;;  %s1129_s18 = sshll.u32 (!%p189_p3), %s1469_s12, 5  ;;  %v1432_v1 = vld [vmem:[%s1637_s1 + $0x8] sm:$0xff] (!%p189_p3)   ;;  %v1433_v2 = vld [vmem:[%s1637_s1 + $0x10] sm:$0xff] (!%p189_p3)  }
   0x7   : > { %192 = sbr.rel (%p189_p3) target bundleno = 285 (0x11d), region = 32  ;;  %p230_p4 = scmp.lt.s32.totalorder (!%p189_p3), %s1129_s18, 63  ;;  %1343 = vmatprep.subr.bf16.mxu0 (!%p189_p3), %v1431_v0  ;;  %1391 = vmatprep.subr.bf16.mxu1 (!%p189_p3), %v1431_v0  ;;  %v1434_v3 = vld [vmem:[%s1637_s1 + $0x18] sm:$0xff] (!%p189_p3)   ;;  %v1435_v6 = vld [vmem:[%s1637_s1 + $0x20] sm:$0xff] (!%p189_p3)   ;;  %v1436_v7 = vld [vmem:[%s1637_s1 + $0x28] sm:$0xff] (!%p189_p3)  }
   0x8   : > { %1344 = vmatpush3.bf16.msra.mxu0 (!%p189_p3), %v1431_v0  ;;  %1399 = vmatpush3.bf16.msra.mxu1 (!%p189_p3), %v1431_v0  ;;  %v1437_v8 = vld [vmem:[%s1637_s1 + $0x30] sm:$0xff] (!%p189_p3)   ;;  %v1438_v9 = vld [vmem:[%s1637_s1 + $0x38] sm:$0xff] (!%p189_p3)   ;;  %v1570_v24 = vld [vmem:[%s1638_s2] ss:$0 sm:$0xff] (!%p189_p3) }
   0x9   : > { %1345 = vmatprep.subr.bf16.mxu0 (!%p189_p3), %v1432_v1  ;;  %1392 = vmatprep.subr.bf16.mxu1 (!%p189_p3), %v1432_v1 }
   0xc   : > { %1346 = vmatpush3.bf16.msra.mxu0 (!%p189_p3), %v1432_v1  ;;  %1400 = vmatpush3.bf16.msra.mxu1 (!%p189_p3), %v1432_v1 }
   0xd   : > { %1347 = vmatprep.subr.bf16.mxu0 (!%p189_p3), %v1433_v2  ;;  %1393 = vmatprep.subr.bf16.mxu1 (!%p189_p3), %v1433_v2 }
   0xe   : > { %s1645_s18 = smov (!%p230_p4, %s1129_s18), 63 }
   0xf   : > { %s1130_s23 = sshll.u32 %s1645_s18, 2 }
  0x10   : > { %s1534_s26 = scalar_lea.vmem %s1636_s0, %s1130_s23  ;;  %1348 = vmatpush3.bf16.msra.mxu0 %v1433_v2  ;;  %1401 = vmatpush3.bf16.msra.mxu1 %v1433_v2  ;;  %s1585_s17 = scalar_lea.vmem %s1639_s3, %s1130_s23 }
  0x11   : > { %v1439_v4 = vld [vmem:[%s1534_s26] sm:$0xff]   ;;  %1349 = vmatprep.subr.bf16.mxu0 %v1434_v3  ;;  %1394 = vmatprep.subr.bf16.mxu1 %v1434_v3  ;;  %v1441_v10 = vld [vmem:[%s1534_s26 + $0x8] sm:$0xff]   ;;  %v1443_v12 = vld [vmem:[%s1534_s26 + $0x10] sm:$0xff]  }
  0x12   : > { %v1440_v5 = vld [vmem:[%s1534_s26 + $0x40] sm:$0xff]   ;;  %1359 = vmatprep.mubr.bf16.mxu0 %v1439_v4  ;;  %v1442_v11 = vld [vmem:[%s1534_s26 + $0x48] sm:$0xff]   ;;  %v1444_v13 = vld [vmem:[%s1534_s26 + $0x50] sm:$0xff]  }
  0x13   : > { %1375 = vmatprep.mubr.bf16.mxu1 %v1440_v5  ;;  %v1445_v14 = vld [vmem:[%s1534_s26 + $0x18] sm:$0xff]   ;;  %v1447_v16 = vld [vmem:[%s1534_s26 + $0x20] sm:$0xff]   ;;  %v1449_v18 = vld [vmem:[%s1534_s26 + $0x28] sm:$0xff]  }
  0x14   : > { %1350 = vmatpush3.bf16.msra.mxu0 %v1434_v3  ;;  %1402 = vmatpush3.bf16.msra.mxu1 %v1434_v3  ;;  %v1446_v15 = vld [vmem:[%s1534_s26 + $0x58] sm:$0xff]   ;;  %v1448_v17 = vld [vmem:[%s1534_s26 + $0x60] sm:$0xff]   ;;  %v1450_v19 = vld [vmem:[%s1534_s26 + $0x68] sm:$0xff]  }
  0x15   : > { %1351 = vmatprep.subr.bf16.mxu0 %v1435_v6  ;;  %1395 = vmatprep.subr.bf16.mxu1 %v1435_v6  ;;  %v1451_v20 = vld [vmem:[%s1534_s26 + $0x30] sm:$0xff]   ;;  %v1453_v22 = vld [vmem:[%s1534_s26 + $0x38] sm:$0xff]  }
  0x16   : > { %v1452_v21 = vld [vmem:[%s1534_s26 + $0x70] sm:$0xff]   ;;  %v1454_v23 = vld [vmem:[%s1534_s26 + $0x78] sm:$0xff]  }
  0x18   : > { %1352 = vmatpush3.bf16.msra.mxu0 %v1435_v6  ;;  %1403 = vmatpush3.bf16.msra.mxu1 %v1435_v6 }
  0x19   : > { %1353 = vmatprep.subr.bf16.mxu0 %v1436_v7  ;;  %1396 = vmatprep.subr.bf16.mxu1 %v1436_v7 }
  0x1c   : > { %1354 = vmatpush3.bf16.msra.mxu0 %v1436_v7  ;;  %1404 = vmatpush3.bf16.msra.mxu1 %v1436_v7 }
  0x1d   : > { %1355 = vmatprep.subr.bf16.mxu0 %v1437_v8  ;;  %1397 = vmatprep.subr.bf16.mxu1 %v1437_v8 }
  0x20   : > { %1356 = vmatpush3.bf16.msra.mxu0 %v1437_v8  ;;  %1405 = vmatpush3.bf16.msra.mxu1 %v1437_v8 }
  0x21   : > { %1357 = vmatprep.subr.bf16.mxu0 %v1438_v9  ;;  %1398 = vmatprep.subr.bf16.mxu1 %v1438_v9 }
  0x24   : > { %1358 = vmatpush3.bf16.msra.mxu0 %v1438_v9  ;;  %1406 = vmatpush3.bf16.msra.mxu1 %v1438_v9 }
  0x27   : > { %1360 = vmatmul.mubr.bf16.vlgmr.msra.gmra.mrb[0].mxu0 %v1441_v10  ;;  %1376 = vmatmul.mubr.bf16.vlgmr.msra.gmra.mrb[0].mxu1 %v1442_v11 }
  0x28   : > { %1363 = vmatprep.mubr.bf16.mxu0 %v1443_v12  ;;  %1379 = vmatprep.mubr.bf16.mxu1 %v1444_v13 }
  0x2f   : > { %1364 = vmatmul.mubr.bf16.gmra.mrb[4].mxu0 %v1445_v14  ;;  %1380 = vmatmul.mubr.bf16.gmra.mrb[4].mxu1 %v1446_v15 }
  0x30   : > { %1367 = vmatprep.mubr.bf16.mxu0 %v1447_v16  ;;  %1383 = vmatprep.mubr.bf16.mxu1 %v1448_v17 }
  0x37   : > { %1368 = vmatmul.mubr.bf16.gmra.mrb[8].mxu0 %v1449_v18  ;;  %1384 = vmatmul.mubr.bf16.gmra.mrb[8].mxu1 %v1450_v19 }
  0x38   : > { %1371 = vmatprep.mubr.bf16.mxu0 %v1451_v20  ;;  %1387 = vmatprep.mubr.bf16.mxu1 %v1452_v21 }
  0x3f   : > { %1372 = vmatmul.mubr.bf16.gmra.mrb[12].mxu0 %v1453_v22  ;;  %1388 = vmatmul.mubr.bf16.gmra.mrb[12].mxu1 %v1454_v23 }
  0xfa   : > { %v1361_v25 = vpop.f32.mrb[0].mxu0  ;;  %v1377_v26 = vpop.f32.mrb[0].mxu1 }
  0xfb   : > { %v789_v27 = vadd.f32 %v1361_v25, %v1570_v24  ;;  %v805_v28 = vadd.f32 %v1377_v26, %v1570_v24  ;;  %v554_v29 = vpop.f32.mrb[1].mxu0  ;;  %v618_v30 = vpop.f32.mrb[1].mxu1 }
  0xfc   : > { %v787_v31 = vadd.f32 %v1570_v24, %v554_v29  ;;  %v803_v32 = vadd.f32 %v1570_v24, %v618_v30  ;;  %v1362_v33 = vpop.f32.mrb[2].mxu0  ;;  %v1378_v34 = vpop.f32.mrb[2].mxu1 }
  0xfd   : > { %v790_v35 = vadd.f32 %v1362_v33, %v1570_v24  ;;  %v806_v36 = vadd.f32 %v1378_v34, %v1570_v24  ;;  %v557_v37 = vpop.f32.mrb[3].mxu0  ;;  %v621_v38 = vpop.f32.mrb[3].mxu1  ;;  %v821_v41 = vmax.f32 %v789_v27, 0.0  ;;  %v837_v42 = vmax.f32 %v805_v28, 0.0 }
  0xfe   : > { %v788_v39 = vadd.f32 %v1570_v24, %v557_v37  ;;  %v804_v40 = vadd.f32 %v1570_v24, %v621_v38  ;;  %v819_v45 = vmax.f32 %v787_v31, 0.0  ;;  %v835_v46 = vmax.f32 %v803_v32, 0.0 }
  0xff   : > { %v822_v43 = vmax.f32 %v790_v35, 0.0  ;;  %v838_v44 = vmax.f32 %v806_v36, 0.0 }
 0x100   : > { %v820_v47 = vmax.f32 %v788_v39, 0.0  ;;  %v836_v48 = vmax.f32 %v804_v40, 0.0 }
 0x101   : > { %v1232_v49 = vpack.c.bf16 %v822_v43, %v821_v41  ;;  %v1272_v50 = vpack.c.bf16 %v838_v44, %v837_v42 }
 0x102   : > { %v1227_v51 = vpack.c.bf16 %v820_v47, %v819_v45  ;;  %v1267_v52 = vpack.c.bf16 %v836_v48, %v835_v46  ;;  %v1365_v53 = vpop.f32.mrb[4].mxu0  ;;  %v1381_v54 = vpop.f32.mrb[4].mxu1 }
 0x103   : > { %1304 = vst [vmem:[%s1585_s17 + $0x8] sm:$0xff] %v1232_v49   ;;  %1312 = vst [vmem:[%s1585_s17 + $0x48] sm:$0xff] %v1272_v50   ;;  %v793_v55 = vadd.f32 %v1365_v53, %v1570_v24  ;;  %v809_v56 = vadd.f32 %v1381_v54, %v1570_v24  ;;  %v570_v57 = vpop.f32.mrb[5].mxu0  ;;  %v634_v58 = vpop.f32.mrb[5].mxu1 }
 0x104   : > { %1228 = vst [vmem:[%s1585_s17] sm:$0xff] %v1227_v51   ;;  %1311 = vst [vmem:[%s1585_s17 + $0x40] sm:$0xff] %v1267_v52   ;;  %v791_v59 = vadd.f32 %v1570_v24, %v570_v57  ;;  %v807_v60 = vadd.f32 %v1570_v24, %v634_v58  ;;  %v1366_v61 = vpop.f32.mrb[6].mxu0  ;;  %v1382_v62 = vpop.f32.mrb[6].mxu1 }
 0x105   : > { %v794_v63 = vadd.f32 %v1366_v61, %v1570_v24  ;;  %v810_v0 = vadd.f32 %v1382_v62, %v1570_v24  ;;  %v573_v1 = vpop.f32.mrb[7].mxu0  ;;  %v637_v2 = vpop.f32.mrb[7].mxu1  ;;  %v825_v5 = vmax.f32 %v793_v55, 0.0  ;;  %v841_v6 = vmax.f32 %v809_v56, 0.0 }
 0x106   : > { %v792_v3 = vadd.f32 %v1570_v24, %v573_v1  ;;  %v808_v4 = vadd.f32 %v1570_v24, %v637_v2  ;;  %v823_v9 = vmax.f32 %v791_v59, 0.0  ;;  %v839_v10 = vmax.f32 %v807_v60, 0.0 }
 0x107   : > { %v826_v7 = vmax.f32 %v794_v63, 0.0  ;;  %v842_v8 = vmax.f32 %v810_v0, 0.0 }
 0x108   : > { %v824_v11 = vmax.f32 %v792_v3, 0.0  ;;  %v840_v12 = vmax.f32 %v808_v4, 0.0 }
 0x109   : > { %v1242_v13 = vpack.c.bf16 %v826_v7, %v825_v5  ;;  %v1282_v14 = vpack.c.bf16 %v842_v8, %v841_v6 }
 0x10a   : > { %v1237_v15 = vpack.c.bf16 %v824_v11, %v823_v9  ;;  %v1277_v16 = vpack.c.bf16 %v840_v12, %v839_v10  ;;  %v1369_v17 = vpop.f32.mrb[8].mxu0  ;;  %v1385_v18 = vpop.f32.mrb[8].mxu1 }
 0x10b   : > { %1306 = vst [vmem:[%s1585_s17 + $0x18] sm:$0xff] %v1242_v13   ;;  %1314 = vst [vmem:[%s1585_s17 + $0x58] sm:$0xff] %v1282_v14   ;;  %v797_v19 = vadd.f32 %v1369_v17, %v1570_v24  ;;  %v813_v20 = vadd.f32 %v1385_v18, %v1570_v24  ;;  %v586_v21 = vpop.f32.mrb[9].mxu0  ;;  %v650_v22 = vpop.f32.mrb[9].mxu1 }
 0x10c   : > { %1305 = vst [vmem:[%s1585_s17 + $0x10] sm:$0xff] %v1237_v15   ;;  %1313 = vst [vmem:[%s1585_s17 + $0x50] sm:$0xff] %v1277_v16   ;;  %v795_v23 = vadd.f32 %v1570_v24, %v586_v21  ;;  %v811_v25 = vadd.f32 %v1570_v24, %v650_v22  ;;  %v1370_v26 = vpop.f32.mrb[10].mxu0  ;;  %v1386_v27 = vpop.f32.mrb[10].mxu1 }
 0x10d   : > { %v798_v28 = vadd.f32 %v1370_v26, %v1570_v24  ;;  %v814_v29 = vadd.f32 %v1386_v27, %v1570_v24  ;;  %v589_v30 = vpop.f32.mrb[11].mxu0  ;;  %v653_v31 = vpop.f32.mrb[11].mxu1  ;;  %v829_v34 = vmax.f32 %v797_v19, 0.0  ;;  %v845_v35 = vmax.f32 %v813_v20, 0.0 }
 0x10e   : > { %v796_v32 = vadd.f32 %v1570_v24, %v589_v30  ;;  %v812_v33 = vadd.f32 %v1570_v24, %v653_v31  ;;  %v827_v38 = vmax.f32 %v795_v23, 0.0  ;;  %v843_v39 = vmax.f32 %v811_v25, 0.0 }
 0x10f   : > { %v830_v36 = vmax.f32 %v798_v28, 0.0  ;;  %v846_v37 = vmax.f32 %v814_v29, 0.0 }
 0x110   : > { %v828_v40 = vmax.f32 %v796_v32, 0.0  ;;  %v844_v41 = vmax.f32 %v812_v33, 0.0 }
 0x111   : > { %v1252_v42 = vpack.c.bf16 %v830_v36, %v829_v34  ;;  %v1292_v43 = vpack.c.bf16 %v846_v37, %v845_v35 }
 0x112   : > { %v1247_v44 = vpack.c.bf16 %v828_v40, %v827_v38  ;;  %v1287_v45 = vpack.c.bf16 %v844_v41, %v843_v39  ;;  %v1373_v46 = vpop.f32.mrb[12].mxu0  ;;  %v1389_v47 = vpop.f32.mrb[12].mxu1 }
 0x113   : > { %1308 = vst [vmem:[%s1585_s17 + $0x28] sm:$0xff] %v1252_v42   ;;  %1316 = vst [vmem:[%s1585_s17 + $0x68] sm:$0xff] %v1292_v43   ;;  %v801_v48 = vadd.f32 %v1373_v46, %v1570_v24  ;;  %v817_v49 = vadd.f32 %v1389_v47, %v1570_v24  ;;  %v602_v50 = vpop.f32.mrb[13].mxu0  ;;  %v666_v51 = vpop.f32.mrb[13].mxu1 }
 0x114   : > { %1307 = vst [vmem:[%s1585_s17 + $0x20] sm:$0xff] %v1247_v44   ;;  %1315 = vst [vmem:[%s1585_s17 + $0x60] sm:$0xff] %v1287_v45   ;;  %v799_v52 = vadd.f32 %v1570_v24, %v602_v50  ;;  %v815_v53 = vadd.f32 %v1570_v24, %v666_v51  ;;  %v1374_v54 = vpop.f32.mrb[14].mxu0  ;;  %v1390_v55 = vpop.f32.mrb[14].mxu1 }
 0x115   : > { %v802_v56 = vadd.f32 %v1374_v54, %v1570_v24  ;;  %v818_v57 = vadd.f32 %v1390_v55, %v1570_v24  ;;  %v605_v58 = vpop.f32.mrb[15].mxu0  ;;  %v669_v59 = vpop.f32.mrb[15].mxu1  ;;  %v833_v62 = vmax.f32 %v801_v48, 0.0  ;;  %v849_v63 = vmax.f32 %v817_v49, 0.0 }
 0x116   : > { %v800_v60 = vadd.f32 %v1570_v24, %v605_v58  ;;  %v816_v61 = vadd.f32 %v1570_v24, %v669_v59  ;;  %v831_v2 = vmax.f32 %v799_v52, 0.0  ;;  %v847_v3 = vmax.f32 %v815_v53, 0.0 }
 0x117   : > { %v834_v0 = vmax.f32 %v802_v56, 0.0  ;;  %v850_v1 = vmax.f32 %v818_v57, 0.0 }
 0x118   : > { %v832_v4 = vmax.f32 %v800_v60, 0.0  ;;  %v848_v5 = vmax.f32 %v816_v61, 0.0 }
 0x119   : > { %v1262_v6 = vpack.c.bf16 %v834_v0, %v833_v62  ;;  %v1302_v7 = vpack.c.bf16 %v850_v1, %v849_v63 }
 0x11a   : > { %v1257_v8 = vpack.c.bf16 %v832_v4, %v831_v2  ;;  %v1297_v9 = vpack.c.bf16 %v848_v5, %v847_v3 }
 0x11b   : > { %1310 = vst [vmem:[%s1585_s17 + $0x38] sm:$0xff] %v1262_v6   ;;  %1318 = vst [vmem:[%s1585_s17 + $0x78] sm:$0xff] %v1302_v7  }
 0x11c   : > { %1309 = vst [vmem:[%s1585_s17 + $0x30] sm:$0xff] %v1257_v8   ;;  %1317 = vst [vmem:[%s1585_s17 + $0x70] sm:$0xff] %v1297_v9  }
 0x11d PF: > { %s13_s14 = sadd.s32 1, %s1477_s14   ;;  %s1640_s12 = smov %s1473_s13 }
 0x11e   : > { %p10_p5 = scmp.ge.s32.totalorder %s13_s14, 4   ;;  %s1641_s13 = smov %s1643_s15 }
 0x120   :  { %12 = sbr.rel (!%p10_p5) target bundleno = 2 (0x2), region = 76 }

// kernel: resnet50_bottom_forward.56
= control target key start
LH: loop header
LB: loop body
LE: loop exit
PB: predicated region body
PF: predicated region fallthrough
CT: control target
= control target key end

     0   :  { %s3313_s6 = smov 0   ;;  %s3315_s7 = smov 0   ;;  %s3830_s0 = inlined_call_operand.vmem [shape: bf16[9,512,128], index: 0, kind: input, shape index: {}]   ;;  %s3831_s1 = inlined_call_operand.vmem [shape: bf16[512,128], index: 1, kind: output, shape index: {}]  }
   0x1   :  { %s3317_s8 = smov 0  }
   0x2 LB: > { %s2363_s9 = sadd.s32 4294967295, %s3301_s8   ;;  %s3330_s10 = sadd.s32 1, %s3301_s8   ;;  %s3301_s8 = sphi %s3317_s8, %s3834_s8   ;;  %s3297_s7 = sphi %s3315_s7, %s3833_s7   ;;  %s3293_s6 = sphi %s3313_s6, %s3832_s6  }
   0x3   : > { %s15_s11 = ssub.s32 %s3301_s8, %s3330_s10  ;;  %s18_s12 = sadd.s32 1, %s3297_s7 }
   0x4   : > { %p16_p0 = scmp.eq.s32.totalorder %s15_s11, 0  ;;  %p25_p1 = scmp.ne.s32.totalorder %s3297_s7, %s3293_s6 }
   0x5   : > { %p26_p2 = scmp.eq.s32.totalorder %s3301_s8, 0  ;;  %p2366_p4 = scmp.ge.s32.totalorder %s3301_s8, 2 }
   0x6   : > { %s3339_s13 = scalar_select %p16_p0, %s3297_s7, %s18_s12  }
   0x7   : > { %p27_p3 = por %p26_p2, %p25_p1  ;;  %77 = sbr.rel (%p2366_p4) target bundleno = 91 (0x5b), region = 16 }
   0xe   : > { %80 = sbr.rel (!%p27_p3) target bundleno = 91 (0x5b), region = 20  ;;  %s82_s14 = sand.u32 (%p27_p3), 1, %s3297_s7  }
   0xf   : > { %s2406_s15 = sshll.u32 (%p27_p3), %s3301_s8, 7  ;;  %s3253_s16 = smul.u32 (%p27_p3), 1152, %s82_s14 }
  0x10   : > { %s3347_s19 = scalar_lea.vmem (%p27_p3), %s3830_s0, %s2406_s15 }
  0x11   : > { %v103_v0 = vld [vmem:[%s3347_s19] sm:$0xff] (%p27_p3)   ;;  %v107_v1 = vld [vmem:[%s3347_s19 + $0x8] sm:$0xff] (%p27_p3)   ;;  %v111_v2 = vld [vmem:[%s3347_s19 + $0x10] sm:$0xff] (%p27_p3)   ;;  %s3355_s20 = scalar_lea.vmem (%p27_p3), [#allocation2], %s3253_s16 }
  0x12   : > { %v115_v3 = vld [vmem:[%s3347_s19 + $0x18] sm:$0xff] (%p27_p3)   ;;  %v119_v4 = vld [vmem:[%s3347_s19 + $0x20] sm:$0xff] (%p27_p3)   ;;  %v123_v5 = vld [vmem:[%s3347_s19 + $0x28] sm:$0xff] (%p27_p3)   ;;  %104 = vst [vmem:[%s3355_s20] sm:$0xff] (%p27_p3), %v103_v0  }
  0x13   : > { %108 = vst [vmem:[%s3355_s20 + $0x8] sm:$0xff] (%p27_p3), %v107_v1   ;;  %112 = vst [vmem:[%s3355_s20 + $0x10] sm:$0xff] (%p27_p3), %v111_v2   ;;  %v127_v6 = vld [vmem:[%s3347_s19 + $0x30] sm:$0xff] (%p27_p3)   ;;  %v131_v7 = vld [vmem:[%s3347_s19 + $0x38] sm:$0xff] (%p27_p3)  }
  0x14   : > { %116 = vst [vmem:[%s3355_s20 + $0x18] sm:$0xff] (%p27_p3), %v115_v3   ;;  %120 = vst [vmem:[%s3355_s20 + $0x20] sm:$0xff] (%p27_p3), %v119_v4   ;;  %v135_v8 = vld [vmem:[%s3347_s19 + $0x40] sm:$0xff] (%p27_p3)   ;;  %v139_v9 = vld [vmem:[%s3347_s19 + $0x48] sm:$0xff] (%p27_p3)  }
  0x15   : > { %124 = vst [vmem:[%s3355_s20 + $0x28] sm:$0xff] %v123_v5   ;;  %128 = vst [vmem:[%s3355_s20 + $0x30] sm:$0xff] %v127_v6   ;;  %v143_v10 = vld [vmem:[%s3347_s19 + $0x50] sm:$0xff]   ;;  %v147_v11 = vld [vmem:[%s3347_s19 + $0x58] sm:$0xff]  }
  0x16   : > { %132 = vst [vmem:[%s3355_s20 + $0x38] sm:$0xff] %v131_v7   ;;  %136 = vst [vmem:[%s3355_s20 + $0x40] sm:$0xff] %v135_v8   ;;  %v151_v12 = vld [vmem:[%s3347_s19 + $0x60] sm:$0xff]   ;;  %v155_v13 = vld [vmem:[%s3347_s19 + $0x68] sm:$0xff]  }
  0x17   : > { %140 = vst [vmem:[%s3355_s20 + $0x48] sm:$0xff] %v139_v9   ;;  %144 = vst [vmem:[%s3355_s20 + $0x50] sm:$0xff] %v143_v10   ;;  %v159_v14 = vld [vmem:[%s3347_s19 + $0x70] sm:$0xff]   ;;  %v163_v15 = vld [vmem:[%s3347_s19 + $0x78] sm:$0xff]  }
  0x18   : > { %148 = vst [vmem:[%s3355_s20 + $0x58] sm:$0xff] %v147_v11   ;;  %152 = vst [vmem:[%s3355_s20 + $0x60] sm:$0xff] %v151_v12   ;;  %v167_v16 = vld [vmem:[%s3347_s19 + $0x100] sm:$0xff]   ;;  %v171_v17 = vld [vmem:[%s3347_s19 + $0x108] sm:$0xff]  }
  0x19   : > { %156 = vst [vmem:[%s3355_s20 + $0x68] sm:$0xff] %v155_v13   ;;  %160 = vst [vmem:[%s3355_s20 + $0x70] sm:$0xff] %v159_v14   ;;  %v175_v18 = vld [vmem:[%s3347_s19 + $0x110] sm:$0xff]   ;;  %v179_v19 = vld [vmem:[%s3347_s19 + $0x118] sm:$0xff]  }
  0x1a   : > { %164 = vst [vmem:[%s3355_s20 + $0x78] sm:$0xff] %v163_v15   ;;  %168 = vst [vmem:[%s3355_s20 + $0x80] sm:$0xff] %v167_v16   ;;  %v183_v20 = vld [vmem:[%s3347_s19 + $0x120] sm:$0xff]   ;;  %v187_v21 = vld [vmem:[%s3347_s19 + $0x128] sm:$0xff]  }
  0x1b   : > { %172 = vst [vmem:[%s3355_s20 + $0x88] sm:$0xff] %v171_v17   ;;  %176 = vst [vmem:[%s3355_s20 + $0x90] sm:$0xff] %v175_v18   ;;  %v191_v22 = vld [vmem:[%s3347_s19 + $0x130] sm:$0xff]   ;;  %v195_v23 = vld [vmem:[%s3347_s19 + $0x138] sm:$0xff]  }
  0x1c   : > { %180 = vst [vmem:[%s3355_s20 + $0x98] sm:$0xff] %v179_v19   ;;  %184 = vst [vmem:[%s3355_s20 + $0xa0] sm:$0xff] %v183_v20   ;;  %v199_v24 = vld [vmem:[%s3347_s19 + $0x140] sm:$0xff]   ;;  %v203_v25 = vld [vmem:[%s3347_s19 + $0x148] sm:$0xff]  }
  0x1d   : > { %188 = vst [vmem:[%s3355_s20 + $0xa8] sm:$0xff] %v187_v21   ;;  %192 = vst [vmem:[%s3355_s20 + $0xb0] sm:$0xff] %v191_v22   ;;  %v207_v26 = vld [vmem:[%s3347_s19 + $0x150] sm:$0xff]   ;;  %v211_v27 = vld [vmem:[%s3347_s19 + $0x158] sm:$0xff]  }
  0x1e   : > { %196 = vst [vmem:[%s3355_s20 + $0xb8] sm:$0xff] %v195_v23   ;;  %200 = vst [vmem:[%s3355_s20 + $0xc0] sm:$0xff] %v199_v24   ;;  %v215_v28 = vld [vmem:[%s3347_s19 + $0x160] sm:$0xff]   ;;  %v219_v29 = vld [vmem:[%s3347_s19 + $0x168] sm:$0xff]  }
  0x1f   : > { %204 = vst [vmem:[%s3355_s20 + $0xc8] sm:$0xff] %v203_v25   ;;  %208 = vst [vmem:[%s3355_s20 + $0xd0] sm:$0xff] %v207_v26   ;;  %v223_v30 = vld [vmem:[%s3347_s19 + $0x170] sm:$0xff]   ;;  %v227_v31 = vld [vmem:[%s3347_s19 + $0x178] sm:$0xff]  }
  0x20   : > { %212 = vst [vmem:[%s3355_s20 + $0xd8] sm:$0xff] %v211_v27   ;;  %216 = vst [vmem:[%s3355_s20 + $0xe0] sm:$0xff] %v215_v28   ;;  %v231_v32 = vld [vmem:[%s3347_s19 + $0x200] sm:$0xff]   ;;  %v235_v33 = vld [vmem:[%s3347_s19 + $0x208] sm:$0xff]  }
  0x21   : > { %220 = vst [vmem:[%s3355_s20 + $0xe8] sm:$0xff] %v219_v29   ;;  %224 = vst [vmem:[%s3355_s20 + $0xf0] sm:$0xff] %v223_v30   ;;  %v239_v34 = vld [vmem:[%s3347_s19 + $0x210] sm:$0xff]   ;;  %v243_v35 = vld [vmem:[%s3347_s19 + $0x218] sm:$0xff]  }
  0x22   : > { %228 = vst [vmem:[%s3355_s20 + $0xf8] sm:$0xff] %v227_v31   ;;  %232 = vst [vmem:[%s3355_s20 + $0x100] sm:$0xff] %v231_v32   ;;  %v247_v36 = vld [vmem:[%s3347_s19 + $0x220] sm:$0xff]   ;;  %v251_v37 = vld [vmem:[%s3347_s19 + $0x228] sm:$0xff]  }
  0x23   : > { %236 = vst [vmem:[%s3355_s20 + $0x108] sm:$0xff] %v235_v33   ;;  %240 = vst [vmem:[%s3355_s20 + $0x110] sm:$0xff] %v239_v34   ;;  %v255_v38 = vld [vmem:[%s3347_s19 + $0x230] sm:$0xff]   ;;  %v259_v39 = vld [vmem:[%s3347_s19 + $0x238] sm:$0xff]  }
  0x24   : > { %244 = vst [vmem:[%s3355_s20 + $0x118] sm:$0xff] %v243_v35   ;;  %248 = vst [vmem:[%s3355_s20 + $0x120] sm:$0xff] %v247_v36   ;;  %v263_v40 = vld [vmem:[%s3347_s19 + $0x240] sm:$0xff]   ;;  %v267_v41 = vld [vmem:[%s3347_s19 + $0x248] sm:$0xff]  }
  0x25   : > { %252 = vst [vmem:[%s3355_s20 + $0x128] sm:$0xff] %v251_v37   ;;  %256 = vst [vmem:[%s3355_s20 + $0x130] sm:$0xff] %v255_v38   ;;  %v271_v42 = vld [vmem:[%s3347_s19 + $0x250] sm:$0xff]   ;;  %v275_v43 = vld [vmem:[%s3347_s19 + $0x258] sm:$0xff]  }
  0x26   : > { %260 = vst [vmem:[%s3355_s20 + $0x138] sm:$0xff] %v259_v39   ;;  %264 = vst [vmem:[%s3355_s20 + $0x140] sm:$0xff] %v263_v40   ;;  %v279_v44 = vld [vmem:[%s3347_s19 + $0x260] sm:$0xff]   ;;  %v283_v45 = vld [vmem:[%s3347_s19 + $0x268] sm:$0xff]  }
  0x27   : > { %268 = vst [vmem:[%s3355_s20 + $0x148] sm:$0xff] %v267_v41   ;;  %272 = vst [vmem:[%s3355_s20 + $0x150] sm:$0xff] %v271_v42   ;;  %v287_v46 = vld [vmem:[%s3347_s19 + $0x270] sm:$0xff]   ;;  %v291_v47 = vld [vmem:[%s3347_s19 + $0x278] sm:$0xff]  }
  0x28   : > { %276 = vst [vmem:[%s3355_s20 + $0x158] sm:$0xff] %v275_v43   ;;  %280 = vst [vmem:[%s3355_s20 + $0x160] sm:$0xff] %v279_v44   ;;  %v295_v48 = vld [vmem:[%s3347_s19 + $0x300] sm:$0xff]   ;;  %v299_v49 = vld [vmem:[%s3347_s19 + $0x308] sm:$0xff]  }
  0x29   : > { %284 = vst [vmem:[%s3355_s20 + $0x168] sm:$0xff] %v283_v45   ;;  %288 = vst [vmem:[%s3355_s20 + $0x170] sm:$0xff] %v287_v46   ;;  %v303_v50 = vld [vmem:[%s3347_s19 + $0x310] sm:$0xff]   ;;  %v307_v51 = vld [vmem:[%s3347_s19 + $0x318] sm:$0xff]  }
  0x2a   : > { %292 = vst [vmem:[%s3355_s20 + $0x178] sm:$0xff] %v291_v47   ;;  %296 = vst [vmem:[%s3355_s20 + $0x180] sm:$0xff] %v295_v48   ;;  %v311_v52 = vld [vmem:[%s3347_s19 + $0x320] sm:$0xff]   ;;  %v315_v53 = vld [vmem:[%s3347_s19 + $0x328] sm:$0xff]  }
  0x2b   : > { %300 = vst [vmem:[%s3355_s20 + $0x188] sm:$0xff] %v299_v49   ;;  %304 = vst [vmem:[%s3355_s20 + $0x190] sm:$0xff] %v303_v50   ;;  %v319_v54 = vld [vmem:[%s3347_s19 + $0x330] sm:$0xff]   ;;  %v323_v55 = vld [vmem:[%s3347_s19 + $0x338] sm:$0xff]  }
  0x2c   : > { %308 = vst [vmem:[%s3355_s20 + $0x198] sm:$0xff] %v307_v51   ;;  %312 = vst [vmem:[%s3355_s20 + $0x1a0] sm:$0xff] %v311_v52   ;;  %v327_v56 = vld [vmem:[%s3347_s19 + $0x340] sm:$0xff]   ;;  %v331_v57 = vld [vmem:[%s3347_s19 + $0x348] sm:$0xff]  }
  0x2d   : > { %316 = vst [vmem:[%s3355_s20 + $0x1a8] sm:$0xff] %v315_v53   ;;  %320 = vst [vmem:[%s3355_s20 + $0x1b0] sm:$0xff] %v319_v54   ;;  %v335_v58 = vld [vmem:[%s3347_s19 + $0x350] sm:$0xff]   ;;  %v339_v59 = vld [vmem:[%s3347_s19 + $0x358] sm:$0xff]  }
  0x2e   : > { %324 = vst [vmem:[%s3355_s20 + $0x1b8] sm:$0xff] %v323_v55   ;;  %328 = vst [vmem:[%s3355_s20 + $0x1c0] sm:$0xff] %v327_v56   ;;  %v343_v60 = vld [vmem:[%s3347_s19 + $0x360] sm:$0xff]   ;;  %v347_v61 = vld [vmem:[%s3347_s19 + $0x368] sm:$0xff]  }
  0x2f   : > { %332 = vst [vmem:[%s3355_s20 + $0x1c8] sm:$0xff] %v331_v57   ;;  %336 = vst [vmem:[%s3355_s20 + $0x1d0] sm:$0xff] %v335_v58   ;;  %v351_v62 = vld [vmem:[%s3347_s19 + $0x370] sm:$0xff]   ;;  %v355_v63 = vld [vmem:[%s3347_s19 + $0x378] sm:$0xff]  }
  0x30   : > { %340 = vst [vmem:[%s3355_s20 + $0x1d8] sm:$0xff] %v339_v59   ;;  %344 = vst [vmem:[%s3355_s20 + $0x1e0] sm:$0xff] %v343_v60   ;;  %v359_v0 = vld [vmem:[%s3347_s19 + $0x400] sm:$0xff]   ;;  %v363_v1 = vld [vmem:[%s3347_s19 + $0x408] sm:$0xff]  }
  0x31   : > { %348 = vst [vmem:[%s3355_s20 + $0x1e8] sm:$0xff] %v347_v61   ;;  %352 = vst [vmem:[%s3355_s20 + $0x1f0] sm:$0xff] %v351_v62   ;;  %v367_v2 = vld [vmem:[%s3347_s19 + $0x410] sm:$0xff]   ;;  %v371_v3 = vld [vmem:[%s3347_s19 + $0x418] sm:$0xff]  }
  0x32   : > { %356 = vst [vmem:[%s3355_s20 + $0x1f8] sm:$0xff] %v355_v63   ;;  %360 = vst [vmem:[%s3355_s20 + $0x200] sm:$0xff] %v359_v0   ;;  %v375_v4 = vld [vmem:[%s3347_s19 + $0x420] sm:$0xff]   ;;  %v379_v5 = vld [vmem:[%s3347_s19 + $0x428] sm:$0xff]  }
  0x33   : > { %364 = vst [vmem:[%s3355_s20 + $0x208] sm:$0xff] %v363_v1   ;;  %368 = vst [vmem:[%s3355_s20 + $0x210] sm:$0xff] %v367_v2   ;;  %v383_v6 = vld [vmem:[%s3347_s19 + $0x430] sm:$0xff]   ;;  %v387_v7 = vld [vmem:[%s3347_s19 + $0x438] sm:$0xff]  }
  0x34   : > { %372 = vst [vmem:[%s3355_s20 + $0x218] sm:$0xff] %v371_v3   ;;  %376 = vst [vmem:[%s3355_s20 + $0x220] sm:$0xff] %v375_v4   ;;  %v391_v8 = vld [vmem:[%s3347_s19 + $0x440] sm:$0xff]   ;;  %v395_v9 = vld [vmem:[%s3347_s19 + $0x448] sm:$0xff]  }
  0x35   : > { %380 = vst [vmem:[%s3355_s20 + $0x228] sm:$0xff] %v379_v5   ;;  %384 = vst [vmem:[%s3355_s20 + $0x230] sm:$0xff] %v383_v6   ;;  %v399_v10 = vld [vmem:[%s3347_s19 + $0x450] sm:$0xff]   ;;  %v403_v11 = vld [vmem:[%s3347_s19 + $0x458] sm:$0xff]  }
  0x36   : > { %388 = vst [vmem:[%s3355_s20 + $0x238] sm:$0xff] %v387_v7   ;;  %392 = vst [vmem:[%s3355_s20 + $0x240] sm:$0xff] %v391_v8   ;;  %v407_v12 = vld [vmem:[%s3347_s19 + $0x460] sm:$0xff]   ;;  %v411_v13 = vld [vmem:[%s3347_s19 + $0x468] sm:$0xff]  }
  0x37   : > { %396 = vst [vmem:[%s3355_s20 + $0x248] sm:$0xff] %v395_v9   ;;  %400 = vst [vmem:[%s3355_s20 + $0x250] sm:$0xff] %v399_v10   ;;  %v415_v14 = vld [vmem:[%s3347_s19 + $0x470] sm:$0xff]   ;;  %v419_v15 = vld [vmem:[%s3347_s19 + $0x478] sm:$0xff]  }
  0x38   : > { %404 = vst [vmem:[%s3355_s20 + $0x258] sm:$0xff] %v403_v11   ;;  %408 = vst [vmem:[%s3355_s20 + $0x260] sm:$0xff] %v407_v12   ;;  %v423_v16 = vld [vmem:[%s3347_s19 + $0x500] sm:$0xff]   ;;  %v427_v17 = vld [vmem:[%s3347_s19 + $0x508] sm:$0xff]  }
  0x39   : > { %412 = vst [vmem:[%s3355_s20 + $0x268] sm:$0xff] %v411_v13   ;;  %416 = vst [vmem:[%s3355_s20 + $0x270] sm:$0xff] %v415_v14   ;;  %v431_v18 = vld [vmem:[%s3347_s19 + $0x510] sm:$0xff]   ;;  %v435_v19 = vld [vmem:[%s3347_s19 + $0x518] sm:$0xff]  }
  0x3a   : > { %420 = vst [vmem:[%s3355_s20 + $0x278] sm:$0xff] %v419_v15   ;;  %424 = vst [vmem:[%s3355_s20 + $0x280] sm:$0xff] %v423_v16   ;;  %v439_v20 = vld [vmem:[%s3347_s19 + $0x520] sm:$0xff]   ;;  %v443_v21 = vld [vmem:[%s3347_s19 + $0x528] sm:$0xff]  }
  0x3b   : > { %428 = vst [vmem:[%s3355_s20 + $0x288] sm:$0xff] %v427_v17   ;;  %432 = vst [vmem:[%s3355_s20 + $0x290] sm:$0xff] %v431_v18   ;;  %v447_v22 = vld [vmem:[%s3347_s19 + $0x530] sm:$0xff]   ;;  %v451_v23 = vld [vmem:[%s3347_s19 + $0x538] sm:$0xff]  }
  0x3c   : > { %436 = vst [vmem:[%s3355_s20 + $0x298] sm:$0xff] %v435_v19   ;;  %440 = vst [vmem:[%s3355_s20 + $0x2a0] sm:$0xff] %v439_v20   ;;  %v455_v24 = vld [vmem:[%s3347_s19 + $0x540] sm:$0xff]   ;;  %v459_v25 = vld [vmem:[%s3347_s19 + $0x548] sm:$0xff]  }
  0x3d   : > { %444 = vst [vmem:[%s3355_s20 + $0x2a8] sm:$0xff] %v443_v21   ;;  %448 = vst [vmem:[%s3355_s20 + $0x2b0] sm:$0xff] %v447_v22   ;;  %v463_v26 = vld [vmem:[%s3347_s19 + $0x550] sm:$0xff]   ;;  %v467_v27 = vld [vmem:[%s3347_s19 + $0x558] sm:$0xff]  }
  0x3e   : > { %452 = vst [vmem:[%s3355_s20 + $0x2b8] sm:$0xff] %v451_v23   ;;  %456 = vst [vmem:[%s3355_s20 + $0x2c0] sm:$0xff] %v455_v24   ;;  %v471_v28 = vld [vmem:[%s3347_s19 + $0x560] sm:$0xff]   ;;  %v475_v29 = vld [vmem:[%s3347_s19 + $0x568] sm:$0xff]  }
  0x3f   : > { %460 = vst [vmem:[%s3355_s20 + $0x2c8] sm:$0xff] %v459_v25   ;;  %464 = vst [vmem:[%s3355_s20 + $0x2d0] sm:$0xff] %v463_v26   ;;  %v479_v30 = vld [vmem:[%s3347_s19 + $0x570] sm:$0xff]   ;;  %v483_v31 = vld [vmem:[%s3347_s19 + $0x578] sm:$0xff]  }
  0x40   : > { %468 = vst [vmem:[%s3355_s20 + $0x2d8] sm:$0xff] %v467_v27   ;;  %472 = vst [vmem:[%s3355_s20 + $0x2e0] sm:$0xff] %v471_v28   ;;  %v487_v32 = vld [vmem:[%s3347_s19 + $0x600] sm:$0xff]   ;;  %v491_v33 = vld [vmem:[%s3347_s19 + $0x608] sm:$0xff]  }
  0x41   : > { %476 = vst [vmem:[%s3355_s20 + $0x2e8] sm:$0xff] %v475_v29   ;;  %480 = vst [vmem:[%s3355_s20 + $0x2f0] sm:$0xff] %v479_v30   ;;  %v495_v34 = vld [vmem:[%s3347_s19 + $0x610] sm:$0xff]   ;;  %v499_v35 = vld [vmem:[%s3347_s19 + $0x618] sm:$0xff]  }
  0x42   : > { %484 = vst [vmem:[%s3355_s20 + $0x2f8] sm:$0xff] %v483_v31   ;;  %488 = vst [vmem:[%s3355_s20 + $0x300] sm:$0xff] %v487_v32   ;;  %v503_v36 = vld [vmem:[%s3347_s19 + $0x620] sm:$0xff]   ;;  %v507_v37 = vld [vmem:[%s3347_s19 + $0x628] sm:$0xff]  }
  0x43   : > { %492 = vst [vmem:[%s3355_s20 + $0x308] sm:$0xff] %v491_v33   ;;  %496 = vst [vmem:[%s3355_s20 + $0x310] sm:$0xff] %v495_v34   ;;  %v511_v38 = vld [vmem:[%s3347_s19 + $0x630] sm:$0xff]   ;;  %v515_v39 = vld [vmem:[%s3347_s19 + $0x638] sm:$0xff]  }
  0x44   : > { %500 = vst [vmem:[%s3355_s20 + $0x318] sm:$0xff] %v499_v35   ;;  %504 = vst [vmem:[%s3355_s20 + $0x320] sm:$0xff] %v503_v36   ;;  %v519_v40 = vld [vmem:[%s3347_s19 + $0x640] sm:$0xff]   ;;  %v523_v41 = vld [vmem:[%s3347_s19 + $0x648] sm:$0xff]  }
  0x45   : > { %508 = vst [vmem:[%s3355_s20 + $0x328] sm:$0xff] %v507_v37   ;;  %512 = vst [vmem:[%s3355_s20 + $0x330] sm:$0xff] %v511_v38   ;;  %v527_v42 = vld [vmem:[%s3347_s19 + $0x650] sm:$0xff]   ;;  %v531_v43 = vld [vmem:[%s3347_s19 + $0x658] sm:$0xff]  }
  0x46   : > { %516 = vst [vmem:[%s3355_s20 + $0x338] sm:$0xff] %v515_v39   ;;  %520 = vst [vmem:[%s3355_s20 + $0x340] sm:$0xff] %v519_v40   ;;  %v535_v44 = vld [vmem:[%s3347_s19 + $0x660] sm:$0xff]   ;;  %v539_v45 = vld [vmem:[%s3347_s19 + $0x668] sm:$0xff]  }
  0x47   : > { %524 = vst [vmem:[%s3355_s20 + $0x348] sm:$0xff] %v523_v41   ;;  %528 = vst [vmem:[%s3355_s20 + $0x350] sm:$0xff] %v527_v42   ;;  %v543_v46 = vld [vmem:[%s3347_s19 + $0x670] sm:$0xff]   ;;  %v547_v47 = vld [vmem:[%s3347_s19 + $0x678] sm:$0xff]  }
  0x48   : > { %532 = vst [vmem:[%s3355_s20 + $0x358] sm:$0xff] %v531_v43   ;;  %536 = vst [vmem:[%s3355_s20 + $0x360] sm:$0xff] %v535_v44   ;;  %v551_v48 = vld [vmem:[%s3347_s19 + $0x700] sm:$0xff]   ;;  %v555_v49 = vld [vmem:[%s3347_s19 + $0x708] sm:$0xff]  }
  0x49   : > { %540 = vst [vmem:[%s3355_s20 + $0x368] sm:$0xff] %v539_v45   ;;  %544 = vst [vmem:[%s3355_s20 + $0x370] sm:$0xff] %v543_v46   ;;  %v559_v50 = vld [vmem:[%s3347_s19 + $0x710] sm:$0xff]   ;;  %v563_v51 = vld [vmem:[%s3347_s19 + $0x718] sm:$0xff]  }
  0x4a   : > { %548 = vst [vmem:[%s3355_s20 + $0x378] sm:$0xff] %v547_v47   ;;  %552 = vst [vmem:[%s3355_s20 + $0x380] sm:$0xff] %v551_v48   ;;  %v567_v52 = vld [vmem:[%s3347_s19 + $0x720] sm:$0xff]   ;;  %v571_v53 = vld [vmem:[%s3347_s19 + $0x728] sm:$0xff]  }
  0x4b   : > { %556 = vst [vmem:[%s3355_s20 + $0x388] sm:$0xff] %v555_v49   ;;  %560 = vst [vmem:[%s3355_s20 + $0x390] sm:$0xff] %v559_v50   ;;  %v575_v54 = vld [vmem:[%s3347_s19 + $0x730] sm:$0xff]   ;;  %v579_v55 = vld [vmem:[%s3347_s19 + $0x738] sm:$0xff]  }
  0x4c   : > { %564 = vst [vmem:[%s3355_s20 + $0x398] sm:$0xff] %v563_v51   ;;  %568 = vst [vmem:[%s3355_s20 + $0x3a0] sm:$0xff] %v567_v52   ;;  %v583_v56 = vld [vmem:[%s3347_s19 + $0x740] sm:$0xff]   ;;  %v587_v57 = vld [vmem:[%s3347_s19 + $0x748] sm:$0xff]  }
  0x4d   : > { %572 = vst [vmem:[%s3355_s20 + $0x3a8] sm:$0xff] %v571_v53   ;;  %576 = vst [vmem:[%s3355_s20 + $0x3b0] sm:$0xff] %v575_v54   ;;  %v591_v58 = vld [vmem:[%s3347_s19 + $0x750] sm:$0xff]   ;;  %v595_v59 = vld [vmem:[%s3347_s19 + $0x758] sm:$0xff]  }
  0x4e   : > { %580 = vst [vmem:[%s3355_s20 + $0x3b8] sm:$0xff] %v579_v55   ;;  %584 = vst [vmem:[%s3355_s20 + $0x3c0] sm:$0xff] %v583_v56   ;;  %v599_v60 = vld [vmem:[%s3347_s19 + $0x760] sm:$0xff]   ;;  %v603_v61 = vld [vmem:[%s3347_s19 + $0x768] sm:$0xff]  }
  0x4f   : > { %588 = vst [vmem:[%s3355_s20 + $0x3c8] sm:$0xff] %v587_v57   ;;  %592 = vst [vmem:[%s3355_s20 + $0x3d0] sm:$0xff] %v591_v58   ;;  %v607_v62 = vld [vmem:[%s3347_s19 + $0x770] sm:$0xff]   ;;  %v611_v63 = vld [vmem:[%s3347_s19 + $0x778] sm:$0xff]  }
  0x50   : > { %596 = vst [vmem:[%s3355_s20 + $0x3d8] sm:$0xff] %v595_v59   ;;  %600 = vst [vmem:[%s3355_s20 + $0x3e0] sm:$0xff] %v599_v60   ;;  %v615_v0 = vld [vmem:[%s3347_s19 + $0x800] sm:$0xff]   ;;  %v619_v1 = vld [vmem:[%s3347_s19 + $0x808] sm:$0xff]  }
  0x51   : > { %604 = vst [vmem:[%s3355_s20 + $0x3e8] sm:$0xff] %v603_v61   ;;  %608 = vst [vmem:[%s3355_s20 + $0x3f0] sm:$0xff] %v607_v62   ;;  %v623_v2 = vld [vmem:[%s3347_s19 + $0x810] sm:$0xff]   ;;  %v627_v3 = vld [vmem:[%s3347_s19 + $0x818] sm:$0xff]  }
  0x52   : > { %612 = vst [vmem:[%s3355_s20 + $0x3f8] sm:$0xff] %v611_v63   ;;  %616 = vst [vmem:[%s3355_s20 + $0x400] sm:$0xff] %v615_v0   ;;  %v631_v4 = vld [vmem:[%s3347_s19 + $0x820] sm:$0xff]   ;;  %v635_v5 = vld [vmem:[%s3347_s19 + $0x828] sm:$0xff]  }
  0x53   : > { %620 = vst [vmem:[%s3355_s20 + $0x408] sm:$0xff] %v619_v1   ;;  %624 = vst [vmem:[%s3355_s20 + $0x410] sm:$0xff] %v623_v2   ;;  %v639_v6 = vld [vmem:[%s3347_s19 + $0x830] sm:$0xff]   ;;  %v643_v7 = vld [vmem:[%s3347_s19 + $0x838] sm:$0xff]  }
  0x54   : > { %628 = vst [vmem:[%s3355_s20 + $0x418] sm:$0xff] %v627_v3   ;;  %632 = vst [vmem:[%s3355_s20 + $0x420] sm:$0xff] %v631_v4   ;;  %v647_v8 = vld [vmem:[%s3347_s19 + $0x840] sm:$0xff]   ;;  %v651_v9 = vld [vmem:[%s3347_s19 + $0x848] sm:$0xff]  }
  0x55   : > { %636 = vst [vmem:[%s3355_s20 + $0x428] sm:$0xff] %v635_v5   ;;  %640 = vst [vmem:[%s3355_s20 + $0x430] sm:$0xff] %v639_v6   ;;  %v655_v10 = vld [vmem:[%s3347_s19 + $0x850] sm:$0xff]   ;;  %v659_v11 = vld [vmem:[%s3347_s19 + $0x858] sm:$0xff]  }
  0x56   : > { %644 = vst [vmem:[%s3355_s20 + $0x438] sm:$0xff] %v643_v7   ;;  %648 = vst [vmem:[%s3355_s20 + $0x440] sm:$0xff] %v647_v8   ;;  %v663_v12 = vld [vmem:[%s3347_s19 + $0x860] sm:$0xff]   ;;  %v667_v13 = vld [vmem:[%s3347_s19 + $0x868] sm:$0xff]  }
  0x57   : > { %652 = vst [vmem:[%s3355_s20 + $0x448] sm:$0xff] %v651_v9   ;;  %656 = vst [vmem:[%s3355_s20 + $0x450] sm:$0xff] %v655_v10   ;;  %v671_v14 = vld [vmem:[%s3347_s19 + $0x870] sm:$0xff]   ;;  %v675_v15 = vld [vmem:[%s3347_s19 + $0x878] sm:$0xff]  }
  0x58   : > { %660 = vst [vmem:[%s3355_s20 + $0x458] sm:$0xff] %v659_v11   ;;  %664 = vst [vmem:[%s3355_s20 + $0x460] sm:$0xff] %v663_v12  }
  0x59   : > { %668 = vst [vmem:[%s3355_s20 + $0x468] sm:$0xff] %v667_v13   ;;  %672 = vst [vmem:[%s3355_s20 + $0x470] sm:$0xff] %v671_v14  }
  0x5a   : > { %676 = vst [vmem:[%s3355_s20 + $0x478] sm:$0xff] %v675_v15  }
  0x5b PF: > { %p2369_p5 = scmp.ge.s32.totalorder %s3301_s8, 1  ;;  %p1276_p6 = scmp.lt.s32.totalorder %s3301_s8, 3 }
  0x5d   : > { %p1277_p7 = pnand %p2369_p5, %p1276_p6 }
  0x5e   : > { %s1283_s21 = sand.u32 (!%p1277_p7), 1, %s3293_s6   ;;  %s3654_s24 = sshll.u32 (!%p1277_p7), %s2363_s9, 5 }
  0x5f   : > { %1280 = sbr.rel (%p1277_p7) target bundleno = 250 (0xfa), region = 61  ;;  %p1304_p8 = scmp.lt.s32.totalorder (!%p1277_p7), %s3654_s24, 63 }
  0x60   : > { %s3254_s22 = smul.u32 (!%p1277_p7), 1152, %s1283_s21 }
  0x62   : > { %s3642_s23 = scalar_lea.vmem (!%p1277_p7), [#allocation2], %s3254_s22 }
  0x63   : > { %v2440_v16 = vld [vmem:[%s3642_s23] sm:$0xff] (!%p1277_p7)   ;;  %v3095_v32 = vld [vmem:[%s3642_s23 + $0x8] sm:$0xff] (!%p1277_p7)   ;;  %v3096_v8 = vld [vmem:[%s3642_s23 + $0x10] sm:$0xff] (!%p1277_p7)  }
  0x64   : > { %v3110_v17 = vld [vmem:[%s3642_s23 + $0x80] sm:$0xff] (!%p1277_p7)   ;;  %v2441_v19 = vunpack.c.l.bf16 (!%p1277_p7), %v2440_v16  ;;  %v2442_v20 = vunpack.c.h.bf16 (!%p1277_p7), %v2440_v16  ;;  %v3111_v33 = vld [vmem:[%s3642_s23 + $0x88] sm:$0xff] (!%p1277_p7)   ;;  %v2445_v44 = vunpack.c.l.bf16 (!%p1277_p7), %v3095_v32  ;;  %v2446_v45 = vunpack.c.h.bf16 (!%p1277_p7), %v3095_v32  ;;  %v3112_v13 = vld [vmem:[%s3642_s23 + $0x90] sm:$0xff] (!%p1277_p7)  }
  0x65   : > { %v3126_v18 = vld [vmem:[%s3642_s23 + $0x100] sm:$0xff] (!%p1277_p7)   ;;  %v2505_v21 = vunpack.c.l.bf16 (!%p1277_p7), %v3110_v17  ;;  %v2506_v22 = vunpack.c.h.bf16 (!%p1277_p7), %v3110_v17  ;;  %v3127_v42 = vld [vmem:[%s3642_s23 + $0x108] sm:$0xff] (!%p1277_p7)   ;;  %v2509_v46 = vunpack.c.l.bf16 (!%p1277_p7), %v3111_v33  ;;  %v2510_v47 = vunpack.c.h.bf16 (!%p1277_p7), %v3111_v33 }
  0x66   : > { %v3142_v23 = vld [vmem:[%s3642_s23 + $0x180] sm:$0xff]   ;;  %v2569_v24 = vunpack.c.l.bf16 %v3126_v18  ;;  %v2570_v25 = vunpack.c.h.bf16 %v3126_v18  ;;  %v3143_v52 = vld [vmem:[%s3642_s23 + $0x188] sm:$0xff]   ;;  %v2573_v55 = vunpack.c.l.bf16 %v3127_v42  ;;  %v2574_v56 = vunpack.c.h.bf16 %v3127_v42  ;;  %s3836_s24 = smov (!%p1304_p8, %s3654_s24), 63 }
  0x67   : > { %v3158_v26 = vld [vmem:[%s3642_s23 + $0x200] sm:$0xff]   ;;  %v2633_v28 = vunpack.c.l.bf16 %v3142_v23  ;;  %v2634_v29 = vunpack.c.h.bf16 %v3142_v23  ;;  %v1885_v30 = vmax.f32 %v2441_v19, %v2505_v21  ;;  %v1893_v31 = vmax.f32 %v2442_v20, %v2506_v22  ;;  %v3159_v57 = vld [vmem:[%s3642_s23 + $0x208] sm:$0xff]   ;;  %v3128_v23 = vld [vmem:[%s3642_s23 + $0x110] sm:$0xff]   ;;  %s2371_s25 = sshll.u32 %s3836_s24, 2 }
  0x68   : > { %v3174_v27 = vld [vmem:[%s3642_s23 + $0x280] sm:$0xff]   ;;  %v2697_v34 = vunpack.c.l.bf16 %v3158_v26  ;;  %v2698_v35 = vunpack.c.h.bf16 %v3158_v26  ;;  %v3175_v62 = vld [vmem:[%s3642_s23 + $0x288] sm:$0xff]   ;;  %v2637_v63 = vunpack.c.l.bf16 %v3143_v52  ;;  %v2638_v0 = vunpack.c.h.bf16 %v3143_v52  ;;  %s3681_s28 = scalar_lea.vmem %s3831_s1, %s2371_s25 }
  0x69   : > { %v3190_v36 = vld [vmem:[%s3642_s23 + $0x300] sm:$0xff]   ;;  %v2761_v37 = vunpack.c.l.bf16 %v3174_v27  ;;  %v2762_v38 = vunpack.c.h.bf16 %v3174_v27  ;;  %v1886_v40 = vmax.f32 %v1885_v30, %v2569_v24  ;;  %v1894_v41 = vmax.f32 %v1893_v31, %v2570_v25  ;;  %v3191_v1 = vld [vmem:[%s3642_s23 + $0x308] sm:$0xff]  }
  0x6a   : > { %v3206_v39 = vld [vmem:[%s3642_s23 + $0x380] sm:$0xff]   ;;  %v2825_v48 = vunpack.c.l.bf16 %v3190_v36  ;;  %v2826_v49 = vunpack.c.h.bf16 %v3190_v36  ;;  %v1901_v2 = vmax.f32 %v2445_v44, %v2509_v46  ;;  %v1909_v3 = vmax.f32 %v2446_v45, %v2510_v47  ;;  %v3207_v18 = vld [vmem:[%s3642_s23 + $0x388] sm:$0xff]   ;;  %v3192_v46 = vld [vmem:[%s3642_s23 + $0x310] sm:$0xff]  }
  0x6b   : > { %v3222_v43 = vld [vmem:[%s3642_s23 + $0x400] sm:$0xff]   ;;  %v1887_v50 = vmax.f32 %v1886_v40, %v2633_v28  ;;  %v1895_v51 = vmax.f32 %v1894_v41, %v2634_v29  ;;  %v2889_v53 = vunpack.c.l.bf16 %v3206_v39  ;;  %v2890_v54 = vunpack.c.h.bf16 %v3206_v39  ;;  %v3223_v26 = vld [vmem:[%s3642_s23 + $0x408] sm:$0xff]   ;;  %v3144_v29 = vld [vmem:[%s3642_s23 + $0x190] sm:$0xff]  }
  0x6c   : > { %v2953_v58 = vunpack.c.l.bf16 %v3222_v43  ;;  %v2954_v59 = vunpack.c.h.bf16 %v3222_v43  ;;  %v2701_v6 = vunpack.c.l.bf16 %v3159_v57  ;;  %v2702_v7 = vunpack.c.h.bf16 %v3159_v57  ;;  %v3176_v43 = vld [vmem:[%s3642_s23 + $0x290] sm:$0xff]  }
  0x6d   : > { %v1888_v60 = vmax.f32 %v1887_v50, %v2697_v34  ;;  %v1896_v61 = vmax.f32 %v1895_v51, %v2698_v35  ;;  %v2765_v9 = vunpack.c.l.bf16 %v3175_v62  ;;  %v2766_v10 = vunpack.c.h.bf16 %v3175_v62 }
  0x6e   : > { %v1902_v11 = vmax.f32 %v1901_v2, %v2573_v55  ;;  %v1910_v12 = vmax.f32 %v1909_v3, %v2574_v56  ;;  %v2829_v16 = vunpack.c.l.bf16 %v3191_v1  ;;  %v2830_v17 = vunpack.c.h.bf16 %v3191_v1 }
  0x6f   : > { %v1889_v4 = vmax.f32 %v1888_v60, %v2761_v37  ;;  %v1897_v5 = vmax.f32 %v1896_v61, %v2762_v38  ;;  %v2449_v21 = vunpack.c.l.bf16 %v3096_v8  ;;  %v2450_v22 = vunpack.c.h.bf16 %v3096_v8  ;;  %v3160_v38 = vld [vmem:[%s3642_s23 + $0x210] sm:$0xff]  }
  0x70   : > { %v1903_v19 = vmax.f32 %v1902_v11, %v2637_v63  ;;  %v1911_v20 = vmax.f32 %v1910_v12, %v2638_v0  ;;  %v2513_v27 = vunpack.c.l.bf16 %v3112_v13  ;;  %v2514_v28 = vunpack.c.h.bf16 %v3112_v13  ;;  %v3208_v63 = vld [vmem:[%s3642_s23 + $0x390] sm:$0xff]  }
  0x71   : > { %v1890_v14 = vmax.f32 %v1889_v4, %v2825_v48  ;;  %v1898_v15 = vmax.f32 %v1897_v5, %v2826_v49  ;;  %v2893_v30 = vunpack.c.l.bf16 %v3207_v18  ;;  %v2894_v31 = vunpack.c.h.bf16 %v3207_v18  ;;  %v3129_v4 = vld [vmem:[%s3642_s23 + $0x118] sm:$0xff]  }
  0x72   : > { %v1904_v32 = vmax.f32 %v1903_v19, %v2701_v6  ;;  %v1912_v33 = vmax.f32 %v1911_v20, %v2702_v7  ;;  %v2577_v36 = vunpack.c.l.bf16 %v3128_v23  ;;  %v2578_v37 = vunpack.c.h.bf16 %v3128_v23  ;;  %v3224_v7 = vld [vmem:[%s3642_s23 + $0x410] sm:$0xff]   ;;  %v3161_v19 = vld [vmem:[%s3642_s23 + $0x218] sm:$0xff]  }
  0x73   : > { %v1891_v24 = vmax.f32 %v1890_v14, %v2889_v53  ;;  %v1899_v25 = vmax.f32 %v1898_v15, %v2890_v54  ;;  %v2957_v39 = vunpack.c.l.bf16 %v3223_v26  ;;  %v2641_v42 = vunpack.c.l.bf16 %v3144_v29  ;;  %v3097_v53 = vld [vmem:[%s3642_s23 + $0x18] sm:$0xff]  }
  0x74   : > { %v1905_v40 = vmax.f32 %v1904_v32, %v2765_v9  ;;  %v1913_v41 = vmax.f32 %v1912_v33, %v2766_v10  ;;  %v2642_v45 = vunpack.c.h.bf16 %v3144_v29  ;;  %v1917_v47 = vmax.f32 %v2449_v21, %v2513_v27  ;;  %v3145_v14 = vld [vmem:[%s3642_s23 + $0x198] sm:$0xff]  }
  0x75   : > { %v1892_v34 = vmax.f32 %v1891_v24, %v2953_v58  ;;  %v1900_v35 = vmax.f32 %v1899_v25, %v2954_v59  ;;  %v1925_v48 = vmax.f32 %v2450_v22, %v2514_v28  ;;  %v2958_v49 = vunpack.c.h.bf16 %v3223_v26  ;;  %v3113_v58 = vld [vmem:[%s3642_s23 + $0x98] sm:$0xff]  }
  0x76   : > { %v1906_v50 = vmax.f32 %v1905_v40, %v2829_v16  ;;  %v1914_v51 = vmax.f32 %v1913_v41, %v2830_v17  ;;  %v2705_v52 = vunpack.c.l.bf16 %v3160_v38  ;;  %v2706_v54 = vunpack.c.h.bf16 %v3160_v38  ;;  %v3177_v24 = vld [vmem:[%s3642_s23 + $0x298] sm:$0xff]  }
  0x77   : > { %v3018_v44 = vpack.c.bf16 %v1900_v35, %v1892_v34  ;;  %v2769_v55 = vunpack.c.l.bf16 %v3176_v43  ;;  %v1918_v56 = vmax.f32 %v1917_v47, %v2577_v36  ;;  %v1926_v57 = vmax.f32 %v1925_v48, %v2578_v37  ;;  %v3193_v27 = vld [vmem:[%s3642_s23 + $0x318] sm:$0xff]   ;;  %v3098_v34 = vld [vmem:[%s3642_s23 + $0x20] sm:$0xff]  }
  0x78   : > { %v1907_v59 = vmax.f32 %v1906_v50, %v2893_v30  ;;  %v1915_v60 = vmax.f32 %v1914_v51, %v2894_v31  ;;  %v2770_v61 = vunpack.c.h.bf16 %v3176_v43  ;;  %v2833_v62 = vunpack.c.l.bf16 %v3192_v46  ;;  %v3114_v35 = vld [vmem:[%s3642_s23 + $0xa0] sm:$0xff]  }
  0x79   : > { %3019 = vst [vmem:[%s3681_s28] sm:$0xff] %v3018_v44   ;;  %v1919_v0 = vmax.f32 %v1918_v56, %v2641_v42  ;;  %v1927_v1 = vmax.f32 %v1926_v57, %v2642_v45  ;;  %v2453_v2 = vunpack.c.l.bf16 %v3097_v53  ;;  %v2454_v3 = vunpack.c.h.bf16 %v3097_v53  ;;  %v3209_v44 = vld [vmem:[%s3642_s23 + $0x398] sm:$0xff]   ;;  %v3130_v45 = vld [vmem:[%s3642_s23 + $0x120] sm:$0xff]  }
  0x7a   : > { %v1908_v5 = vmax.f32 %v1907_v59, %v2957_v39  ;;  %v1916_v6 = vmax.f32 %v1915_v60, %v2958_v49  ;;  %v2517_v8 = vunpack.c.l.bf16 %v3113_v58  ;;  %v2518_v9 = vunpack.c.h.bf16 %v3113_v58  ;;  %v3162_v60 = vld [vmem:[%s3642_s23 + $0x220] sm:$0xff]  }
  0x7b   : > { %v2834_v10 = vunpack.c.h.bf16 %v3192_v46  ;;  %v2897_v11 = vunpack.c.l.bf16 %v3208_v63  ;;  %v1920_v12 = vmax.f32 %v1919_v0, %v2705_v52  ;;  %v1928_v13 = vmax.f32 %v1927_v1, %v2706_v54  ;;  %v3225_v46 = vld [vmem:[%s3642_s23 + $0x418] sm:$0xff]  }
  0x7c   : > { %v3023_v15 = vpack.c.bf16 %v1916_v6, %v1908_v5  ;;  %v2898_v16 = vunpack.c.h.bf16 %v3208_v63  ;;  %v2581_v17 = vunpack.c.l.bf16 %v3129_v4  ;;  %v2582_v18 = vunpack.c.h.bf16 %v3129_v4  ;;  %v3178_v4 = vld [vmem:[%s3642_s23 + $0x2a0] sm:$0xff]  }
  0x7d   : > { %v2961_v20 = vunpack.c.l.bf16 %v3224_v7  ;;  %v2962_v21 = vunpack.c.h.bf16 %v3224_v7  ;;  %v1921_v22 = vmax.f32 %v1920_v12, %v2769_v55  ;;  %v1929_v23 = vmax.f32 %v1928_v13, %v2770_v61  ;;  %v3146_v55 = vld [vmem:[%s3642_s23 + $0x1a0] sm:$0xff]  }
  0x7e   : > { %3238 = vst [vmem:[%s3681_s28 + $0x8] sm:$0xff] %v3023_v15   ;;  %v2645_v25 = vunpack.c.l.bf16 %v3145_v14  ;;  %v2646_v26 = vunpack.c.h.bf16 %v3145_v14  ;;  %v1933_v28 = vmax.f32 %v2453_v2, %v2517_v8  ;;  %v1941_v29 = vmax.f32 %v2454_v3, %v2518_v9  ;;  %v3194_v5 = vld [vmem:[%s3642_s23 + $0x320] sm:$0xff]  }
  0x7f   : > { %v1922_v30 = vmax.f32 %v1921_v22, %v2833_v62  ;;  %v1930_v31 = vmax.f32 %v1929_v23, %v2834_v10  ;;  %v2709_v32 = vunpack.c.l.bf16 %v3161_v19  ;;  %v2710_v33 = vunpack.c.h.bf16 %v3161_v19  ;;  %v3210_v23 = vld [vmem:[%s3642_s23 + $0x3a0] sm:$0xff]  }
  0x80   : > { %v2773_v36 = vunpack.c.l.bf16 %v3177_v24  ;;  %v2774_v37 = vunpack.c.h.bf16 %v3177_v24  ;;  %v1934_v38 = vmax.f32 %v1933_v28, %v2581_v17  ;;  %v1942_v39 = vmax.f32 %v1941_v29, %v2582_v18 }
  0x81   : > { %v1923_v40 = vmax.f32 %v1922_v30, %v2897_v11  ;;  %v1931_v41 = vmax.f32 %v1930_v31, %v2898_v16  ;;  %v2837_v42 = vunpack.c.l.bf16 %v3193_v27  ;;  %v2838_v43 = vunpack.c.h.bf16 %v3193_v27  ;;  %v3099_v11 = vld [vmem:[%s3642_s23 + $0x28] sm:$0xff]  }
  0x82   : > { %v1935_v47 = vmax.f32 %v1934_v38, %v2645_v25  ;;  %v1943_v48 = vmax.f32 %v1942_v39, %v2646_v26  ;;  %v2457_v49 = vunpack.c.l.bf16 %v3098_v34  ;;  %v2521_v50 = vunpack.c.l.bf16 %v3114_v35  ;;  %v3115_v16 = vld [vmem:[%s3642_s23 + $0xa8] sm:$0xff]  }
  0x83   : > { %v1924_v51 = vmax.f32 %v1923_v40, %v2961_v20  ;;  %v1932_v52 = vmax.f32 %v1931_v41, %v2962_v21  ;;  %v2458_v53 = vunpack.c.h.bf16 %v3098_v34  ;;  %v2522_v54 = vunpack.c.h.bf16 %v3114_v35  ;;  %v3131_v26 = vld [vmem:[%s3642_s23 + $0x128] sm:$0xff]  }
  0x84   : > { %v2901_v56 = vunpack.c.l.bf16 %v3209_v44  ;;  %v1936_v57 = vmax.f32 %v1935_v47, %v2709_v32  ;;  %v1944_v58 = vmax.f32 %v1943_v48, %v2710_v33  ;;  %v2585_v59 = vunpack.c.l.bf16 %v3130_v45  ;;  %v3147_v31 = vld [vmem:[%s3642_s23 + $0x1a8] sm:$0xff]  }
  0x85   : > { %v3028_v61 = vpack.c.bf16 %v1932_v52, %v1924_v51  ;;  %v2902_v62 = vunpack.c.h.bf16 %v3209_v44  ;;  %v2965_v63 = vunpack.c.l.bf16 %v3225_v46  ;;  %v2586_v0 = vunpack.c.h.bf16 %v3130_v45  ;;  %v3163_v41 = vld [vmem:[%s3642_s23 + $0x228] sm:$0xff]  }
  0x86   : > { %v1937_v1 = vmax.f32 %v1936_v57, %v2773_v36  ;;  %v1945_v2 = vmax.f32 %v1944_v58, %v2774_v37  ;;  %v2649_v3 = vunpack.c.l.bf16 %v3146_v55  ;;  %v1949_v6 = vmax.f32 %v2457_v49, %v2521_v50  ;;  %v3226_v37 = vld [vmem:[%s3642_s23 + $0x420] sm:$0xff]   ;;  %v3179_v48 = vld [vmem:[%s3642_s23 + $0x2a8] sm:$0xff]  }
  0x87   : > { %3239 = vst [vmem:[%s3681_s28 + $0x10] sm:$0xff] %v3028_v61   ;;  %v2966_v7 = vunpack.c.h.bf16 %v3225_v46  ;;  %v2650_v8 = vunpack.c.h.bf16 %v3146_v55  ;;  %v2713_v9 = vunpack.c.l.bf16 %v3162_v60  ;;  %v1957_v10 = vmax.f32 %v2458_v53, %v2522_v54  ;;  %v3195_v49 = vld [vmem:[%s3642_s23 + $0x328] sm:$0xff]   ;;  %v3116_v61 = vld [vmem:[%s3642_s23 + $0xb0] sm:$0xff]  }
  0x88   : > { %v1938_v12 = vmax.f32 %v1937_v1, %v2837_v42  ;;  %v1946_v13 = vmax.f32 %v1945_v2, %v2838_v43  ;;  %v2714_v14 = vunpack.c.h.bf16 %v3162_v60  ;;  %v1950_v15 = vmax.f32 %v1949_v6, %v2585_v59 }
  0x89   : > { %v2777_v17 = vunpack.c.l.bf16 %v3178_v4  ;;  %v2778_v18 = vunpack.c.h.bf16 %v3178_v4  ;;  %v2841_v19 = vunpack.c.l.bf16 %v3194_v5  ;;  %v1958_v20 = vmax.f32 %v1957_v10, %v2586_v0 }
  0x8a   : > { %v1939_v21 = vmax.f32 %v1938_v12, %v2901_v56  ;;  %v1947_v22 = vmax.f32 %v1946_v13, %v2902_v62  ;;  %v1951_v24 = vmax.f32 %v1950_v15, %v2649_v3  ;;  %v2461_v25 = vunpack.c.l.bf16 %v3099_v11  ;;  %v3100_v56 = vld [vmem:[%s3642_s23 + $0x30] sm:$0xff]   ;;  %v3211_v3 = vld [vmem:[%s3642_s23 + $0x3a8] sm:$0xff]  }
  0x8b   : > { %v1959_v27 = vmax.f32 %v1958_v20, %v2650_v8  ;;  %v2462_v28 = vunpack.c.h.bf16 %v3099_v11  ;;  %v2525_v29 = vunpack.c.l.bf16 %v3115_v16  ;;  %v2526_v30 = vunpack.c.h.bf16 %v3115_v16 }
  0x8c   : > { %v1940_v32 = vmax.f32 %v1939_v21, %v2965_v63  ;;  %v1948_v33 = vmax.f32 %v1947_v22, %v2966_v7  ;;  %v2842_v34 = vunpack.c.h.bf16 %v3194_v5  ;;  %v1952_v35 = vmax.f32 %v1951_v24, %v2713_v9  ;;  %v3132_v7 = vld [vmem:[%s3642_s23 + $0x130] sm:$0xff]   ;;  %v3227_v9 = vld [vmem:[%s3642_s23 + $0x428] sm:$0xff]  }
  0x8d   : > { %v2905_v36 = vunpack.c.l.bf16 %v3210_v23  ;;  %v1960_v38 = vmax.f32 %v1959_v27, %v2714_v14  ;;  %v2589_v39 = vunpack.c.l.bf16 %v3131_v26  ;;  %v2590_v40 = vunpack.c.h.bf16 %v3131_v26  ;;  %v3164_v22 = vld [vmem:[%s3642_s23 + $0x230] sm:$0xff]  }
  0x8e   : > { %v3033_v42 = vpack.c.bf16 %v1948_v33, %v1940_v32  ;;  %v2906_v43 = vunpack.c.h.bf16 %v3210_v23  ;;  %v1953_v44 = vmax.f32 %v1952_v35, %v2777_v17  ;;  %v2653_v45 = vunpack.c.l.bf16 %v3147_v31  ;;  %v3148_v17 = vld [vmem:[%s3642_s23 + $0x1b0] sm:$0xff]  }
  0x8f   : > { %v1961_v46 = vmax.f32 %v1960_v38, %v2778_v18  ;;  %v2654_v47 = vunpack.c.h.bf16 %v3147_v31  ;;  %v1965_v50 = vmax.f32 %v2461_v25, %v2525_v29  ;;  %v1973_v51 = vmax.f32 %v2462_v28, %v2526_v30  ;;  %v3180_v27 = vld [vmem:[%s3642_s23 + $0x2b0] sm:$0xff]  }
  0x90   : > { %3240 = vst [vmem:[%s3681_s28 + $0x18] sm:$0xff] %v3033_v42   ;;  %v2969_v52 = vunpack.c.l.bf16 %v3226_v37  ;;  %v2970_v53 = vunpack.c.h.bf16 %v3226_v37  ;;  %v1954_v54 = vmax.f32 %v1953_v44, %v2841_v19  ;;  %v2717_v55 = vunpack.c.l.bf16 %v3163_v41  ;;  %v3196_v30 = vld [vmem:[%s3642_s23 + $0x330] sm:$0xff]   ;;  %v3101_v37 = vld [vmem:[%s3642_s23 + $0x38] sm:$0xff]  }
  0x91   : > { %v1962_v57 = vmax.f32 %v1961_v46, %v2842_v34  ;;  %v2718_v58 = vunpack.c.h.bf16 %v3163_v41  ;;  %v1966_v59 = vmax.f32 %v1965_v50, %v2589_v39  ;;  %v1974_v60 = vmax.f32 %v1973_v51, %v2590_v40  ;;  %v3117_v42 = vld [vmem:[%s3642_s23 + $0xb8] sm:$0xff]  }
  0x92   : > { %v1955_v62 = vmax.f32 %v1954_v54, %v2905_v36  ;;  %v2781_v63 = vunpack.c.l.bf16 %v3179_v48  ;;  %v2782_v0 = vunpack.c.h.bf16 %v3179_v48  ;;  %v2845_v1 = vunpack.c.l.bf16 %v3195_v49 }
  0x93   : > { %v1963_v2 = vmax.f32 %v1962_v57, %v2906_v43  ;;  %v1967_v4 = vmax.f32 %v1966_v59, %v2653_v45  ;;  %v1975_v5 = vmax.f32 %v1974_v60, %v2654_v47  ;;  %v2465_v6 = vunpack.c.l.bf16 %v3100_v56  ;;  %v3212_v47 = vld [vmem:[%s3642_s23 + $0x3b0] sm:$0xff]  }
  0x94   : > { %v1956_v8 = vmax.f32 %v1955_v62, %v2969_v52  ;;  %v2466_v10 = vunpack.c.h.bf16 %v3100_v56  ;;  %v2529_v11 = vunpack.c.l.bf16 %v3116_v61  ;;  %v2530_v12 = vunpack.c.h.bf16 %v3116_v61  ;;  %v3133_v52 = vld [vmem:[%s3642_s23 + $0x138] sm:$0xff]  }
  0x95   : > { %v1964_v13 = vmax.f32 %v1963_v2, %v2970_v53  ;;  %v2846_v14 = vunpack.c.h.bf16 %v3195_v49  ;;  %v1968_v15 = vmax.f32 %v1967_v4, %v2717_v55  ;;  %v1976_v16 = vmax.f32 %v1975_v5, %v2718_v58  ;;  %v3228_v55 = vld [vmem:[%s3642_s23 + $0x430] sm:$0xff]   ;;  %v3149_v62 = vld [vmem:[%s3642_s23 + $0x1b8] sm:$0xff]  }
  0x96   : > { %v2909_v18 = vunpack.c.l.bf16 %v3211_v3  ;;  %v2910_v19 = vunpack.c.h.bf16 %v3211_v3  ;;  %v2593_v20 = vunpack.c.l.bf16 %v3132_v7  ;;  %v2594_v21 = vunpack.c.h.bf16 %v3132_v7  ;;  %v3165_v3 = vld [vmem:[%s3642_s23 + $0x238] sm:$0xff]  }
  0x97   : > { %v3038_v23 = vpack.c.bf16 %v1964_v13, %v1956_v8  ;;  %v2973_v24 = vunpack.c.l.bf16 %v3227_v9  ;;  %v1969_v25 = vmax.f32 %v1968_v15, %v2781_v63  ;;  %v1977_v26 = vmax.f32 %v1976_v16, %v2782_v0  ;;  %v3181_v8 = vld [vmem:[%s3642_s23 + $0x2b8] sm:$0xff]  }
  0x98   : > { %v2657_v28 = vunpack.c.l.bf16 %v3148_v17  ;;  %v2658_v29 = vunpack.c.h.bf16 %v3148_v17  ;;  %v1981_v31 = vmax.f32 %v2465_v6, %v2529_v11  ;;  %v1989_v32 = vmax.f32 %v2466_v10, %v2530_v12  ;;  %v3197_v11 = vld [vmem:[%s3642_s23 + $0x338] sm:$0xff]  }
  0x99   : > { %3241 = vst [vmem:[%s3681_s28 + $0x20] sm:$0xff] %v3038_v23   ;;  %v2974_v33 = vunpack.c.h.bf16 %v3227_v9  ;;  %v1970_v34 = vmax.f32 %v1969_v25, %v2845_v1  ;;  %v1978_v35 = vmax.f32 %v1977_v26, %v2846_v14  ;;  %v2721_v36 = vunpack.c.l.bf16 %v3164_v22 }
  0x9a   : > { %v2722_v38 = vunpack.c.h.bf16 %v3164_v22  ;;  %v2785_v39 = vunpack.c.l.bf16 %v3180_v27  ;;  %v1982_v40 = vmax.f32 %v1981_v31, %v2593_v20  ;;  %v1990_v41 = vmax.f32 %v1989_v32, %v2594_v21 }
  0x9b   : > { %v1971_v43 = vmax.f32 %v1970_v34, %v2909_v18  ;;  %v1979_v44 = vmax.f32 %v1978_v35, %v2910_v19  ;;  %v2786_v45 = vunpack.c.h.bf16 %v3180_v27  ;;  %v2849_v46 = vunpack.c.l.bf16 %v3196_v30  ;;  %v3102_v18 = vld [vmem:[%s3642_s23 + $0x40] sm:$0xff]  }
  0x9c   : > { %v1983_v48 = vmax.f32 %v1982_v40, %v2657_v28  ;;  %v1991_v49 = vmax.f32 %v1990_v41, %v2658_v29  ;;  %v2469_v50 = vunpack.c.l.bf16 %v3101_v37  ;;  %v2470_v51 = vunpack.c.h.bf16 %v3101_v37  ;;  %v3118_v19 = vld [vmem:[%s3642_s23 + $0xc0] sm:$0xff]   ;;  %v3213_v28 = vld [vmem:[%s3642_s23 + $0x3b8] sm:$0xff]  }
  0x9d   : > { %v1972_v53 = vmax.f32 %v1971_v43, %v2973_v24  ;;  %v1980_v54 = vmax.f32 %v1979_v44, %v2974_v33  ;;  %v2533_v56 = vunpack.c.l.bf16 %v3117_v42  ;;  %v2534_v57 = vunpack.c.h.bf16 %v3117_v42  ;;  %v3134_v29 = vld [vmem:[%s3642_s23 + $0x140] sm:$0xff]  }
  0x9e   : > { %v2850_v58 = vunpack.c.h.bf16 %v3196_v30  ;;  %v2913_v59 = vunpack.c.l.bf16 %v3212_v47  ;;  %v1984_v60 = vmax.f32 %v1983_v48, %v2721_v36  ;;  %v1992_v61 = vmax.f32 %v1991_v49, %v2722_v38  ;;  %v3229_v30 = vld [vmem:[%s3642_s23 + $0x438] sm:$0xff]   ;;  %v3166_v44 = vld [vmem:[%s3642_s23 + $0x240] sm:$0xff]  }
  0x9f   : > { %v3043_v63 = vpack.c.bf16 %v1980_v54, %v1972_v53  ;;  %v2914_v0 = vunpack.c.h.bf16 %v3212_v47  ;;  %v2597_v1 = vunpack.c.l.bf16 %v3133_v52  ;;  %v2598_v2 = vunpack.c.h.bf16 %v3133_v52  ;;  %v3182_v52 = vld [vmem:[%s3642_s23 + $0x2c0] sm:$0xff]  }
  0xa0   : > { %v2977_v4 = vunpack.c.l.bf16 %v3228_v55  ;;  %v2978_v5 = vunpack.c.h.bf16 %v3228_v55  ;;  %v1985_v6 = vmax.f32 %v1984_v60, %v2785_v39  ;;  %v1993_v7 = vmax.f32 %v1992_v61, %v2786_v45  ;;  %v3150_v39 = vld [vmem:[%s3642_s23 + $0x1c0] sm:$0xff]  }
  0xa1   : > { %3242 = vst [vmem:[%s3681_s28 + $0x28] sm:$0xff] %v3043_v63   ;;  %v2661_v9 = vunpack.c.l.bf16 %v3149_v62  ;;  %v2662_v10 = vunpack.c.h.bf16 %v3149_v62  ;;  %v1997_v12 = vmax.f32 %v2469_v50, %v2533_v56  ;;  %v2005_v13 = vmax.f32 %v2470_v51, %v2534_v57  ;;  %v3198_v53 = vld [vmem:[%s3642_s23 + $0x340] sm:$0xff]  }
  0xa2   : > { %v1986_v14 = vmax.f32 %v1985_v6, %v2849_v46  ;;  %v1994_v15 = vmax.f32 %v1993_v7, %v2850_v58  ;;  %v2725_v16 = vunpack.c.l.bf16 %v3165_v3  ;;  %v2726_v17 = vunpack.c.h.bf16 %v3165_v3  ;;  %v3214_v7 = vld [vmem:[%s3642_s23 + $0x3c0] sm:$0xff]  }
  0xa3   : > { %v2789_v20 = vunpack.c.l.bf16 %v3181_v8  ;;  %v2790_v21 = vunpack.c.h.bf16 %v3181_v8  ;;  %v1998_v22 = vmax.f32 %v1997_v12, %v2597_v1  ;;  %v2006_v23 = vmax.f32 %v2005_v13, %v2598_v2 }
  0xa4   : > { %v1987_v24 = vmax.f32 %v1986_v14, %v2913_v59  ;;  %v1995_v25 = vmax.f32 %v1994_v15, %v2914_v0  ;;  %v2853_v26 = vunpack.c.l.bf16 %v3197_v11  ;;  %v2854_v27 = vunpack.c.h.bf16 %v3197_v11  ;;  %v3103_v59 = vld [vmem:[%s3642_s23 + $0x48] sm:$0xff]  }
  0xa5   : > { %v1999_v31 = vmax.f32 %v1998_v22, %v2661_v9  ;;  %v2007_v32 = vmax.f32 %v2006_v23, %v2662_v10  ;;  %v2473_v33 = vunpack.c.l.bf16 %v3102_v18  ;;  %v2537_v34 = vunpack.c.l.bf16 %v3118_v19  ;;  %v3119_v0 = vld [vmem:[%s3642_s23 + $0xc8] sm:$0xff]  }
  0xa6   : > { %v1988_v35 = vmax.f32 %v1987_v24, %v2977_v4  ;;  %v1996_v36 = vmax.f32 %v1995_v25, %v2978_v5  ;;  %v2474_v37 = vunpack.c.h.bf16 %v3102_v18  ;;  %v2538_v38 = vunpack.c.h.bf16 %v3118_v19  ;;  %v3135_v10 = vld [vmem:[%s3642_s23 + $0x148] sm:$0xff]  }
  0xa7   : > { %v2917_v40 = vunpack.c.l.bf16 %v3213_v28  ;;  %v2000_v41 = vmax.f32 %v1999_v31, %v2725_v16  ;;  %v2008_v42 = vmax.f32 %v2007_v32, %v2726_v17  ;;  %v2601_v43 = vunpack.c.l.bf16 %v3134_v29  ;;  %v3151_v15 = vld [vmem:[%s3642_s23 + $0x1c8] sm:$0xff]  }
  0xa8   : > { %v3048_v45 = vpack.c.bf16 %v1996_v36, %v1988_v35  ;;  %v2918_v46 = vunpack.c.h.bf16 %v3213_v28  ;;  %v2981_v47 = vunpack.c.l.bf16 %v3229_v30  ;;  %v2602_v48 = vunpack.c.h.bf16 %v3134_v29  ;;  %v3167_v25 = vld [vmem:[%s3642_s23 + $0x248] sm:$0xff]  }
  0xa9   : > { %v2001_v49 = vmax.f32 %v2000_v41, %v2789_v20  ;;  %v2009_v50 = vmax.f32 %v2008_v42, %v2790_v21  ;;  %v2665_v51 = vunpack.c.l.bf16 %v3150_v39  ;;  %v2013_v54 = vmax.f32 %v2473_v33, %v2537_v34  ;;  %v3230_v21 = vld [vmem:[%s3642_s23 + $0x440] sm:$0xff]   ;;  %v3183_v32 = vld [vmem:[%s3642_s23 + $0x2c8] sm:$0xff]  }
  0xaa   : > { %3243 = vst [vmem:[%s3681_s28 + $0x30] sm:$0xff] %v3048_v45   ;;  %v2982_v55 = vunpack.c.h.bf16 %v3229_v30  ;;  %v2666_v56 = vunpack.c.h.bf16 %v3150_v39  ;;  %v2729_v57 = vunpack.c.l.bf16 %v3166_v44  ;;  %v2021_v58 = vmax.f32 %v2474_v37, %v2538_v38  ;;  %v3199_v33 = vld [vmem:[%s3642_s23 + $0x348] sm:$0xff]   ;;  %v3120_v45 = vld [vmem:[%s3642_s23 + $0xd0] sm:$0xff]  }
  0xab   : > { %v2002_v60 = vmax.f32 %v2001_v49, %v2853_v26  ;;  %v2010_v61 = vmax.f32 %v2009_v50, %v2854_v27  ;;  %v2730_v62 = vunpack.c.h.bf16 %v3166_v44  ;;  %v2014_v63 = vmax.f32 %v2013_v54, %v2601_v43 }
  0xac   : > { %v2793_v1 = vunpack.c.l.bf16 %v3182_v52  ;;  %v2794_v2 = vunpack.c.h.bf16 %v3182_v52  ;;  %v2857_v3 = vunpack.c.l.bf16 %v3198_v53  ;;  %v2022_v4 = vmax.f32 %v2021_v58, %v2602_v48 }
  0xad   : > { %v2003_v5 = vmax.f32 %v2002_v60, %v2917_v40  ;;  %v2011_v6 = vmax.f32 %v2010_v61, %v2918_v46  ;;  %v2015_v8 = vmax.f32 %v2014_v63, %v2665_v51  ;;  %v2477_v9 = vunpack.c.l.bf16 %v3103_v59  ;;  %v3104_v40 = vld [vmem:[%s3642_s23 + $0x50] sm:$0xff]   ;;  %v3215_v51 = vld [vmem:[%s3642_s23 + $0x3c8] sm:$0xff]  }
  0xae   : > { %v2023_v11 = vmax.f32 %v2022_v4, %v2666_v56  ;;  %v2478_v12 = vunpack.c.h.bf16 %v3103_v59  ;;  %v2541_v13 = vunpack.c.l.bf16 %v3119_v0  ;;  %v2542_v14 = vunpack.c.h.bf16 %v3119_v0 }
  0xaf   : > { %v2004_v16 = vmax.f32 %v2003_v5, %v2981_v47  ;;  %v2012_v17 = vmax.f32 %v2011_v6, %v2982_v55  ;;  %v2858_v18 = vunpack.c.h.bf16 %v3198_v53  ;;  %v2016_v19 = vmax.f32 %v2015_v8, %v2729_v57  ;;  %v3136_v55 = vld [vmem:[%s3642_s23 + $0x150] sm:$0xff]   ;;  %v3231_v57 = vld [vmem:[%s3642_s23 + $0x448] sm:$0xff]  }
  0xb0   : > { %v2921_v20 = vunpack.c.l.bf16 %v3214_v7  ;;  %v2024_v22 = vmax.f32 %v2023_v11, %v2730_v62  ;;  %v2605_v23 = vunpack.c.l.bf16 %v3135_v10  ;;  %v2606_v24 = vunpack.c.h.bf16 %v3135_v10  ;;  %v3168_v6 = vld [vmem:[%s3642_s23 + $0x250] sm:$0xff]  }
  0xb1   : > { %v3053_v26 = vpack.c.bf16 %v2012_v17, %v2004_v16  ;;  %v2922_v27 = vunpack.c.h.bf16 %v3214_v7  ;;  %v2017_v28 = vmax.f32 %v2016_v19, %v2793_v1  ;;  %v2669_v29 = vunpack.c.l.bf16 %v3151_v15  ;;  %v3152_v1 = vld [vmem:[%s3642_s23 + $0x1d0] sm:$0xff]  }
  0xb2   : > { %v2025_v30 = vmax.f32 %v2024_v22, %v2794_v2  ;;  %v2670_v31 = vunpack.c.h.bf16 %v3151_v15  ;;  %v2029_v34 = vmax.f32 %v2477_v9, %v2541_v13  ;;  %v2037_v35 = vmax.f32 %v2478_v12, %v2542_v14  ;;  %v3184_v11 = vld [vmem:[%s3642_s23 + $0x2d0] sm:$0xff]  }
  0xb3   : > { %3244 = vst [vmem:[%s3681_s28 + $0x38] sm:$0xff] %v3053_v26   ;;  %v2985_v36 = vunpack.c.l.bf16 %v3230_v21  ;;  %v2986_v37 = vunpack.c.h.bf16 %v3230_v21  ;;  %v2018_v38 = vmax.f32 %v2017_v28, %v2857_v3  ;;  %v2733_v39 = vunpack.c.l.bf16 %v3167_v25  ;;  %v3200_v14 = vld [vmem:[%s3642_s23 + $0x350] sm:$0xff]   ;;  %v3105_v21 = vld [vmem:[%s3642_s23 + $0x58] sm:$0xff]  }
  0xb4   : > { %v2026_v41 = vmax.f32 %v2025_v30, %v2858_v18  ;;  %v2734_v42 = vunpack.c.h.bf16 %v3167_v25  ;;  %v2030_v43 = vmax.f32 %v2029_v34, %v2605_v23  ;;  %v2038_v44 = vmax.f32 %v2037_v35, %v2606_v24  ;;  %v3121_v26 = vld [vmem:[%s3642_s23 + $0xd8] sm:$0xff]  }
  0xb5   : > { %v2019_v46 = vmax.f32 %v2018_v38, %v2921_v20  ;;  %v2797_v47 = vunpack.c.l.bf16 %v3183_v32  ;;  %v2798_v48 = vunpack.c.h.bf16 %v3183_v32  ;;  %v2861_v49 = vunpack.c.l.bf16 %v3199_v33 }
  0xb6   : > { %v2027_v50 = vmax.f32 %v2026_v41, %v2922_v27  ;;  %v2031_v52 = vmax.f32 %v2030_v43, %v2669_v29  ;;  %v2039_v53 = vmax.f32 %v2038_v44, %v2670_v31  ;;  %v2481_v54 = vunpack.c.l.bf16 %v3104_v40  ;;  %v3216_v31 = vld [vmem:[%s3642_s23 + $0x3d0] sm:$0xff]  }
  0xb7   : > { %v2020_v56 = vmax.f32 %v2019_v46, %v2985_v36  ;;  %v2482_v58 = vunpack.c.h.bf16 %v3104_v40  ;;  %v2545_v59 = vunpack.c.l.bf16 %v3120_v45  ;;  %v2546_v60 = vunpack.c.h.bf16 %v3120_v45  ;;  %v3137_v36 = vld [vmem:[%s3642_s23 + $0x158] sm:$0xff]  }
  0xb8   : > { %v2028_v61 = vmax.f32 %v2027_v50, %v2986_v37  ;;  %v2862_v62 = vunpack.c.h.bf16 %v3199_v33  ;;  %v2032_v63 = vmax.f32 %v2031_v52, %v2733_v39  ;;  %v2040_v0 = vmax.f32 %v2039_v53, %v2734_v42  ;;  %v3232_v39 = vld [vmem:[%s3642_s23 + $0x450] sm:$0xff]   ;;  %v3153_v46 = vld [vmem:[%s3642_s23 + $0x1d8] sm:$0xff]  }
  0xb9   : > { %v2925_v2 = vunpack.c.l.bf16 %v3215_v51  ;;  %v2926_v3 = vunpack.c.h.bf16 %v3215_v51  ;;  %v2609_v4 = vunpack.c.l.bf16 %v3136_v55  ;;  %v2610_v5 = vunpack.c.h.bf16 %v3136_v55  ;;  %v3169_v51 = vld [vmem:[%s3642_s23 + $0x258] sm:$0xff]  }
  0xba   : > { %v3058_v7 = vpack.c.bf16 %v2028_v61, %v2020_v56  ;;  %v2989_v8 = vunpack.c.l.bf16 %v3231_v57  ;;  %v2033_v9 = vmax.f32 %v2032_v63, %v2797_v47  ;;  %v2041_v10 = vmax.f32 %v2040_v0, %v2798_v48  ;;  %v3185_v56 = vld [vmem:[%s3642_s23 + $0x2d8] sm:$0xff]  }
  0xbb   : > { %v2673_v12 = vunpack.c.l.bf16 %v3152_v1  ;;  %v2674_v13 = vunpack.c.h.bf16 %v3152_v1  ;;  %v2045_v15 = vmax.f32 %v2481_v54, %v2545_v59  ;;  %v2053_v16 = vmax.f32 %v2482_v58, %v2546_v60  ;;  %v3201_v59 = vld [vmem:[%s3642_s23 + $0x358] sm:$0xff]  }
  0xbc   : > { %3245 = vst [vmem:[%s3681_s28 + $0x40] sm:$0xff] %v3058_v7   ;;  %v2990_v17 = vunpack.c.h.bf16 %v3231_v57  ;;  %v2034_v18 = vmax.f32 %v2033_v9, %v2861_v49  ;;  %v2042_v19 = vmax.f32 %v2041_v10, %v2862_v62  ;;  %v2737_v20 = vunpack.c.l.bf16 %v3168_v6 }
  0xbd   : > { %v2738_v22 = vunpack.c.h.bf16 %v3168_v6  ;;  %v2801_v23 = vunpack.c.l.bf16 %v3184_v11  ;;  %v2046_v24 = vmax.f32 %v2045_v15, %v2609_v4  ;;  %v2054_v25 = vmax.f32 %v2053_v16, %v2610_v5 }
  0xbe   : > { %v2035_v27 = vmax.f32 %v2034_v18, %v2925_v2  ;;  %v2043_v28 = vmax.f32 %v2042_v19, %v2926_v3  ;;  %v2802_v29 = vunpack.c.h.bf16 %v3184_v11  ;;  %v2865_v30 = vunpack.c.l.bf16 %v3200_v14  ;;  %v3106_v2 = vld [vmem:[%s3642_s23 + $0x60] sm:$0xff]  }
  0xbf   : > { %v2047_v32 = vmax.f32 %v2046_v24, %v2673_v12  ;;  %v2055_v33 = vmax.f32 %v2054_v25, %v2674_v13  ;;  %v2485_v34 = vunpack.c.l.bf16 %v3105_v21  ;;  %v2486_v35 = vunpack.c.h.bf16 %v3105_v21  ;;  %v3122_v3 = vld [vmem:[%s3642_s23 + $0xe0] sm:$0xff]   ;;  %v3217_v12 = vld [vmem:[%s3642_s23 + $0x3d8] sm:$0xff]  }
  0xc0   : > { %v2036_v37 = vmax.f32 %v2035_v27, %v2989_v8  ;;  %v2044_v38 = vmax.f32 %v2043_v28, %v2990_v17  ;;  %v2549_v40 = vunpack.c.l.bf16 %v3121_v26  ;;  %v2550_v41 = vunpack.c.h.bf16 %v3121_v26  ;;  %v3138_v13 = vld [vmem:[%s3642_s23 + $0x160] sm:$0xff]  }
  0xc1   : > { %v2866_v42 = vunpack.c.h.bf16 %v3200_v14  ;;  %v2929_v43 = vunpack.c.l.bf16 %v3216_v31  ;;  %v2048_v44 = vmax.f32 %v2047_v32, %v2737_v20  ;;  %v2056_v45 = vmax.f32 %v2055_v33, %v2738_v22  ;;  %v3233_v14 = vld [vmem:[%s3642_s23 + $0x458] sm:$0xff]   ;;  %v3170_v28 = vld [vmem:[%s3642_s23 + $0x260] sm:$0xff]  }
  0xc2   : > { %v3063_v47 = vpack.c.bf16 %v2044_v38, %v2036_v37  ;;  %v2930_v48 = vunpack.c.h.bf16 %v3216_v31  ;;  %v2613_v49 = vunpack.c.l.bf16 %v3137_v36  ;;  %v2614_v50 = vunpack.c.h.bf16 %v3137_v36  ;;  %v3186_v36 = vld [vmem:[%s3642_s23 + $0x2e0] sm:$0xff]  }
  0xc3   : > { %v2993_v52 = vunpack.c.l.bf16 %v3232_v39  ;;  %v2994_v53 = vunpack.c.h.bf16 %v3232_v39  ;;  %v2049_v54 = vmax.f32 %v2048_v44, %v2801_v23  ;;  %v2057_v55 = vmax.f32 %v2056_v45, %v2802_v29  ;;  %v3154_v23 = vld [vmem:[%s3642_s23 + $0x1e0] sm:$0xff]  }
  0xc4   : > { %3246 = vst [vmem:[%s3681_s28 + $0x48] sm:$0xff] %v3063_v47   ;;  %v2677_v57 = vunpack.c.l.bf16 %v3153_v46  ;;  %v2678_v58 = vunpack.c.h.bf16 %v3153_v46  ;;  %v2061_v60 = vmax.f32 %v2485_v34, %v2549_v40  ;;  %v2069_v61 = vmax.f32 %v2486_v35, %v2550_v41  ;;  %v3202_v37 = vld [vmem:[%s3642_s23 + $0x360] sm:$0xff]  }
  0xc5   : > { %v2050_v62 = vmax.f32 %v2049_v54, %v2865_v30  ;;  %v2058_v63 = vmax.f32 %v2057_v55, %v2866_v42  ;;  %v2741_v0 = vunpack.c.l.bf16 %v3169_v51  ;;  %v2742_v1 = vunpack.c.h.bf16 %v3169_v51  ;;  %v3218_v55 = vld [vmem:[%s3642_s23 + $0x3e0] sm:$0xff]  }
  0xc6   : > { %v2805_v4 = vunpack.c.l.bf16 %v3185_v56  ;;  %v2806_v5 = vunpack.c.h.bf16 %v3185_v56  ;;  %v2062_v6 = vmax.f32 %v2061_v60, %v2613_v49  ;;  %v2070_v7 = vmax.f32 %v2069_v61, %v2614_v50 }
  0xc7   : > { %v2051_v8 = vmax.f32 %v2050_v62, %v2929_v43  ;;  %v2059_v9 = vmax.f32 %v2058_v63, %v2930_v48  ;;  %v2869_v10 = vunpack.c.l.bf16 %v3201_v59  ;;  %v2870_v11 = vunpack.c.h.bf16 %v3201_v59  ;;  %v3107_v43 = vld [vmem:[%s3642_s23 + $0x68] sm:$0xff]  }
  0xc8   : > { %v2063_v15 = vmax.f32 %v2062_v6, %v2677_v57  ;;  %v2071_v16 = vmax.f32 %v2070_v7, %v2678_v58  ;;  %v2489_v17 = vunpack.c.l.bf16 %v3106_v2  ;;  %v2553_v18 = vunpack.c.l.bf16 %v3122_v3  ;;  %v3123_v48 = vld [vmem:[%s3642_s23 + $0xe8] sm:$0xff]  }
  0xc9   : > { %v2052_v19 = vmax.f32 %v2051_v8, %v2993_v52  ;;  %v2060_v20 = vmax.f32 %v2059_v9, %v2994_v53  ;;  %v2490_v21 = vunpack.c.h.bf16 %v3106_v2  ;;  %v2554_v22 = vunpack.c.h.bf16 %v3122_v3  ;;  %v3139_v58 = vld [vmem:[%s3642_s23 + $0x168] sm:$0xff]  }
  0xca   : > { %v2933_v24 = vunpack.c.l.bf16 %v3217_v12  ;;  %v2064_v25 = vmax.f32 %v2063_v15, %v2741_v0  ;;  %v2072_v26 = vmax.f32 %v2071_v16, %v2742_v1  ;;  %v2617_v27 = vunpack.c.l.bf16 %v3138_v13  ;;  %v3155_v63 = vld [vmem:[%s3642_s23 + $0x1e8] sm:$0xff]  }
  0xcb   : > { %v3068_v29 = vpack.c.bf16 %v2060_v20, %v2052_v19  ;;  %v2934_v30 = vunpack.c.h.bf16 %v3217_v12  ;;  %v2997_v31 = vunpack.c.l.bf16 %v3233_v14  ;;  %v2618_v32 = vunpack.c.h.bf16 %v3138_v13  ;;  %v3171_v9 = vld [vmem:[%s3642_s23 + $0x268] sm:$0xff]  }
  0xcc   : > { %v2065_v33 = vmax.f32 %v2064_v25, %v2805_v4  ;;  %v2073_v34 = vmax.f32 %v2072_v26, %v2806_v5  ;;  %v2681_v35 = vunpack.c.l.bf16 %v3154_v23  ;;  %v2077_v38 = vmax.f32 %v2489_v17, %v2553_v18  ;;  %v3234_v5 = vld [vmem:[%s3642_s23 + $0x460] sm:$0xff]   ;;  %v3187_v16 = vld [vmem:[%s3642_s23 + $0x2e8] sm:$0xff]  }
  0xcd   : > { %3247 = vst [vmem:[%s3681_s28 + $0x50] sm:$0xff] %v3068_v29   ;;  %v2998_v39 = vunpack.c.h.bf16 %v3233_v14  ;;  %v2682_v40 = vunpack.c.h.bf16 %v3154_v23  ;;  %v2745_v41 = vunpack.c.l.bf16 %v3170_v28  ;;  %v2085_v42 = vmax.f32 %v2490_v21, %v2554_v22  ;;  %v3203_v17 = vld [vmem:[%s3642_s23 + $0x368] sm:$0xff]   ;;  %v3124_v29 = vld [vmem:[%s3642_s23 + $0xf0] sm:$0xff]  }
  0xce   : > { %v2066_v44 = vmax.f32 %v2065_v33, %v2869_v10  ;;  %v2074_v45 = vmax.f32 %v2073_v34, %v2870_v11  ;;  %v2746_v46 = vunpack.c.h.bf16 %v3170_v28  ;;  %v2078_v47 = vmax.f32 %v2077_v38, %v2617_v27 }
  0xcf   : > { %v2809_v49 = vunpack.c.l.bf16 %v3186_v36  ;;  %v2810_v50 = vunpack.c.h.bf16 %v3186_v36  ;;  %v2873_v51 = vunpack.c.l.bf16 %v3202_v37  ;;  %v2086_v52 = vmax.f32 %v2085_v42, %v2618_v32 }
  0xd0   : > { %v2067_v53 = vmax.f32 %v2066_v44, %v2933_v24  ;;  %v2075_v54 = vmax.f32 %v2074_v45, %v2934_v30  ;;  %v2079_v56 = vmax.f32 %v2078_v47, %v2681_v35  ;;  %v2493_v57 = vunpack.c.l.bf16 %v3107_v43  ;;  %v3108_v24 = vld [vmem:[%s3642_s23 + $0x70] sm:$0xff]   ;;  %v3219_v35 = vld [vmem:[%s3642_s23 + $0x3e8] sm:$0xff]  }
  0xd1   : > { %v2087_v59 = vmax.f32 %v2086_v52, %v2682_v40  ;;  %v2494_v60 = vunpack.c.h.bf16 %v3107_v43  ;;  %v2557_v61 = vunpack.c.l.bf16 %v3123_v48  ;;  %v2558_v62 = vunpack.c.h.bf16 %v3123_v48  ;;  %v3156_v48 = vld [vmem:[%s3642_s23 + $0x1f0] sm:$0xff]  }
  0xd2   : > { %v2068_v0 = vmax.f32 %v2067_v53, %v2997_v31  ;;  %v2076_v1 = vmax.f32 %v2075_v54, %v2998_v39  ;;  %v2874_v2 = vunpack.c.h.bf16 %v3202_v37  ;;  %v2080_v3 = vmax.f32 %v2079_v56, %v2745_v41  ;;  %v3140_v39 = vld [vmem:[%s3642_s23 + $0x170] sm:$0xff]  }
  0xd3   : > { %v2937_v4 = vunpack.c.l.bf16 %v3218_v55  ;;  %v2088_v6 = vmax.f32 %v2087_v59, %v2746_v46  ;;  %v2621_v7 = vunpack.c.l.bf16 %v3139_v58  ;;  %v2622_v8 = vunpack.c.h.bf16 %v3139_v58 }
  0xd4   : > { %v3073_v10 = vpack.c.bf16 %v2076_v1, %v2068_v0  ;;  %v2938_v11 = vunpack.c.h.bf16 %v3218_v55  ;;  %v2081_v12 = vmax.f32 %v2080_v3, %v2809_v49  ;;  %v2685_v13 = vunpack.c.l.bf16 %v3155_v63  ;;  %v3109_v3 = vld [vmem:[%s3642_s23 + $0x78] sm:$0xff]  }
  0xd5   : > { %v2089_v14 = vmax.f32 %v2088_v6, %v2810_v50  ;;  %v2686_v15 = vunpack.c.h.bf16 %v3155_v63  ;;  %v2093_v18 = vmax.f32 %v2493_v57, %v2557_v61  ;;  %v2101_v19 = vmax.f32 %v2494_v60, %v2558_v62  ;;  %v3235_v50 = vld [vmem:[%s3642_s23 + $0x468] sm:$0xff]   ;;  %v3172_v57 = vld [vmem:[%s3642_s23 + $0x270] sm:$0xff]  }
  0xd6   : > { %3248 = vst [vmem:[%s3681_s28 + $0x58] sm:$0xff] %v3073_v10   ;;  %v3001_v20 = vunpack.c.l.bf16 %v3234_v5  ;;  %v3002_v21 = vunpack.c.h.bf16 %v3234_v5  ;;  %v2082_v22 = vmax.f32 %v2081_v12, %v2873_v51  ;;  %v2749_v23 = vunpack.c.l.bf16 %v3171_v9  ;;  %v3188_v60 = vld [vmem:[%s3642_s23 + $0x2f0] sm:$0xff]  }
  0xd7   : > { %v2090_v25 = vmax.f32 %v2089_v14, %v2874_v2  ;;  %v2750_v26 = vunpack.c.h.bf16 %v3171_v9  ;;  %v2094_v27 = vmax.f32 %v2093_v18, %v2621_v7  ;;  %v2102_v28 = vmax.f32 %v2101_v19, %v2622_v8  ;;  %v3125_v8 = vld [vmem:[%s3642_s23 + $0xf8] sm:$0xff]  }
  0xd8   : > { %v2083_v30 = vmax.f32 %v2082_v22, %v2937_v4  ;;  %v2813_v31 = vunpack.c.l.bf16 %v3187_v16  ;;  %v2814_v32 = vunpack.c.h.bf16 %v3187_v16  ;;  %v2877_v33 = vunpack.c.l.bf16 %v3203_v17  ;;  %v3141_v18 = vld [vmem:[%s3642_s23 + $0x178] sm:$0xff]  }
  0xd9   : > { %v2091_v34 = vmax.f32 %v2090_v25, %v2938_v11  ;;  %v2095_v36 = vmax.f32 %v2094_v27, %v2685_v13  ;;  %v2103_v37 = vmax.f32 %v2102_v28, %v2686_v15  ;;  %v2497_v38 = vunpack.c.l.bf16 %v3108_v24  ;;  %v3204_v13 = vld [vmem:[%s3642_s23 + $0x370] sm:$0xff]   ;;  %v3157_v28 = vld [vmem:[%s3642_s23 + $0x1f8] sm:$0xff]  }
  0xda   : > { %v2084_v40 = vmax.f32 %v2083_v30, %v3001_v20  ;;  %v2498_v41 = vunpack.c.h.bf16 %v3108_v24  ;;  %v2561_v42 = vunpack.c.l.bf16 %v3124_v29  ;;  %v2562_v43 = vunpack.c.h.bf16 %v3124_v29  ;;  %v3236_v30 = vld [vmem:[%s3642_s23 + $0x470] sm:$0xff]  }
  0xdb   : > { %v2092_v44 = vmax.f32 %v2091_v34, %v3002_v21  ;;  %v2878_v45 = vunpack.c.h.bf16 %v3203_v17  ;;  %v2096_v46 = vmax.f32 %v2095_v36, %v2749_v23  ;;  %v2104_v47 = vmax.f32 %v2103_v37, %v2750_v26  ;;  %v3220_v21 = vld [vmem:[%s3642_s23 + $0x3f0] sm:$0xff]   ;;  %v3173_v37 = vld [vmem:[%s3642_s23 + $0x278] sm:$0xff]  }
  0xdc   : > { %v2941_v49 = vunpack.c.l.bf16 %v3219_v35  ;;  %v2625_v51 = vunpack.c.l.bf16 %v3140_v39  ;;  %v2626_v52 = vunpack.c.h.bf16 %v3140_v39  ;;  %v2942_v54 = vunpack.c.h.bf16 %v3219_v35 }
  0xdd   : > { %v3078_v53 = vpack.c.bf16 %v2092_v44, %v2084_v40  ;;  %v2097_v55 = vmax.f32 %v2096_v46, %v2813_v31  ;;  %v2105_v56 = vmax.f32 %v2104_v47, %v2814_v32  ;;  %v2689_v58 = vunpack.c.l.bf16 %v3156_v48  ;;  %v3189_v46 = vld [vmem:[%s3642_s23 + $0x2f8] sm:$0xff]  }
  0xde   : > { %v2690_v59 = vunpack.c.h.bf16 %v3156_v48  ;;  %v2109_v61 = vmax.f32 %v2497_v38, %v2561_v42  ;;  %v2117_v62 = vmax.f32 %v2498_v41, %v2562_v43  ;;  %v3005_v63 = vunpack.c.l.bf16 %v3235_v50 }
  0xdf   : > { %3249 = vst [vmem:[%s3681_s28 + $0x60] sm:$0xff] %v3078_v53   ;;  %v3006_v0 = vunpack.c.h.bf16 %v3235_v50  ;;  %v2098_v1 = vmax.f32 %v2097_v55, %v2877_v33  ;;  %v2106_v2 = vmax.f32 %v2105_v56, %v2878_v45  ;;  %v2753_v4 = vunpack.c.l.bf16 %v3172_v57  ;;  %v3205_v53 = vld [vmem:[%s3642_s23 + $0x378] sm:$0xff]  }
  0xe0   : > { %v2754_v5 = vunpack.c.h.bf16 %v3172_v57  ;;  %v2110_v6 = vmax.f32 %v2109_v61, %v2625_v51  ;;  %v2118_v7 = vmax.f32 %v2117_v62, %v2626_v52  ;;  %v2817_v11 = vunpack.c.l.bf16 %v3188_v60 }
  0xe1   : > { %v2099_v9 = vmax.f32 %v2098_v1, %v2941_v49  ;;  %v2107_v10 = vmax.f32 %v2106_v2, %v2942_v54  ;;  %v2818_v12 = vunpack.c.h.bf16 %v3188_v60  ;;  %v2501_v16 = vunpack.c.l.bf16 %v3109_v3  ;;  %v3221_v60 = vld [vmem:[%s3642_s23 + $0x3f8] sm:$0xff]  }
  0xe2   : > { %v2111_v14 = vmax.f32 %v2110_v6, %v2689_v58  ;;  %v2119_v15 = vmax.f32 %v2118_v7, %v2690_v59  ;;  %v2502_v17 = vunpack.c.h.bf16 %v3109_v3  ;;  %v2565_v22 = vunpack.c.l.bf16 %v3125_v8  ;;  %v3237_v2 = vld [vmem:[%s3642_s23 + $0x478] sm:$0xff]  }
  0xe3   : > { %v2100_v19 = vmax.f32 %v2099_v9, %v3005_v63  ;;  %v2108_v20 = vmax.f32 %v2107_v10, %v3006_v0  ;;  %v2566_v23 = vunpack.c.h.bf16 %v3125_v8  ;;  %v2881_v24 = vunpack.c.l.bf16 %v3204_v13 }
  0xe4   : > { %v2882_v25 = vunpack.c.h.bf16 %v3204_v13  ;;  %v2112_v26 = vmax.f32 %v2111_v14, %v2753_v4  ;;  %v2120_v27 = vmax.f32 %v2119_v15, %v2754_v5  ;;  %v2629_v31 = vunpack.c.l.bf16 %v3141_v18 }
  0xe5   : > { %v3083_v29 = vpack.c.bf16 %v2108_v20, %v2100_v19  ;;  %v2630_v32 = vunpack.c.h.bf16 %v3141_v18  ;;  %v2945_v33 = vunpack.c.l.bf16 %v3220_v21  ;;  %v2946_v34 = vunpack.c.h.bf16 %v3220_v21 }
  0xe6   : > { %v2113_v35 = vmax.f32 %v2112_v26, %v2817_v11  ;;  %v2121_v36 = vmax.f32 %v2120_v27, %v2818_v12  ;;  %v2693_v38 = vunpack.c.l.bf16 %v3157_v28  ;;  %v2694_v39 = vunpack.c.h.bf16 %v3157_v28 }
  0xe7   : > { %3250 = vst [vmem:[%s3681_s28 + $0x68] sm:$0xff] %v3083_v29   ;;  %v2125_v40 = vmax.f32 %v2501_v16, %v2565_v22  ;;  %v2133_v41 = vmax.f32 %v2502_v17, %v2566_v23  ;;  %v3009_v42 = vunpack.c.l.bf16 %v3236_v30  ;;  %v3010_v43 = vunpack.c.h.bf16 %v3236_v30 }
  0xe8   : > { %v2114_v44 = vmax.f32 %v2113_v35, %v2881_v24  ;;  %v2122_v45 = vmax.f32 %v2121_v36, %v2882_v25  ;;  %v2757_v47 = vunpack.c.l.bf16 %v3173_v37  ;;  %v2758_v48 = vunpack.c.h.bf16 %v3173_v37 }
  0xe9   : > { %v2126_v49 = vmax.f32 %v2125_v40, %v2629_v31  ;;  %v2134_v50 = vmax.f32 %v2133_v41, %v2630_v32  ;;  %v2821_v54 = vunpack.c.l.bf16 %v3189_v46  ;;  %v2822_v55 = vunpack.c.h.bf16 %v3189_v46 }
  0xea   : > { %v2115_v51 = vmax.f32 %v2114_v44, %v2945_v33  ;;  %v2123_v52 = vmax.f32 %v2122_v45, %v2946_v34  ;;  %v2885_v61 = vunpack.c.l.bf16 %v3205_v53  ;;  %v2886_v62 = vunpack.c.h.bf16 %v3205_v53 }
  0xeb   : > { %v2127_v56 = vmax.f32 %v2126_v49, %v2693_v38  ;;  %v2135_v57 = vmax.f32 %v2134_v50, %v2694_v39  ;;  %v2949_v3 = vunpack.c.l.bf16 %v3221_v60  ;;  %v2950_v4 = vunpack.c.h.bf16 %v3221_v60 }
  0xec   : > { %v2116_v58 = vmax.f32 %v2115_v51, %v3009_v42  ;;  %v2124_v59 = vmax.f32 %v2123_v52, %v3010_v43  ;;  %v3013_v7 = vunpack.c.l.bf16 %v3237_v2  ;;  %v3014_v8 = vunpack.c.h.bf16 %v3237_v2 }
  0xed   : > { %v2128_v63 = vmax.f32 %v2127_v56, %v2757_v47  ;;  %v2136_v0 = vmax.f32 %v2135_v57, %v2758_v48 }
  0xee   : > { %v3088_v1 = vpack.c.bf16 %v2124_v59, %v2116_v58 }
  0xef   : > { %v2129_v5 = vmax.f32 %v2128_v63, %v2821_v54  ;;  %v2137_v6 = vmax.f32 %v2136_v0, %v2822_v55 }
  0xf0   : > { %3251 = vst [vmem:[%s3681_s28 + $0x70] sm:$0xff] %v3088_v1  }
  0xf1   : > { %v2130_v9 = vmax.f32 %v2129_v5, %v2885_v61  ;;  %v2138_v10 = vmax.f32 %v2137_v6, %v2886_v62 }
  0xf3   : > { %v2131_v11 = vmax.f32 %v2130_v9, %v2949_v3  ;;  %v2139_v12 = vmax.f32 %v2138_v10, %v2950_v4 }
  0xf5   : > { %v2132_v13 = vmax.f32 %v2131_v11, %v3013_v7  ;;  %v2140_v14 = vmax.f32 %v2139_v12, %v3014_v8 }
  0xf7   : > { %v3093_v15 = vpack.c.bf16 %v2140_v14, %v2132_v13 }
  0xf9   : > { %3252 = vst [vmem:[%s3681_s28 + $0x78] sm:$0xff] %v3093_v15  }
  0xfa PF: > { %p8_p9 = scmp.ge.s32.totalorder %s3330_s10, 4   ;;  %s3832_s6 = smov %s3297_s7 }
  0xfb   : > { %s3833_s7 = smov %s3339_s13  ;;  %s3834_s8 = smov %s3330_s10 }
  0xfc   :  { %10 = sbr.rel (!%p8_p9) target bundleno = 2 (0x2), region = 100 }

// kernel: resnet50_bottom_forward.59
= control target key start
LH: loop header
LB: loop body
LE: loop exit
PB: predicated region body
PF: predicated region fallthrough
CT: control target
= control target key end

     0   :  { %s2500_s12 = smov 0   ;;  %s2502_s13 = smov 0   ;;  %s2887_s0 = inlined_call_operand.vmem [shape: bf16[512,1152], index: 0, kind: input, shape index: {}]   ;;  %s2888_s1 = inlined_call_operand.vmem [shape: bf16[1152,128], index: 1, kind: input, shape index: {}]   ;;  %s2889_s2 = inlined_call_operand.vmem [shape: f32[1,128], index: 2, kind: input, shape index: {}]   ;;  %s2890_s3 = inlined_call_operand.vmem [shape: bf16[512,128], index: 3, kind: output, shape index: {}]  }
   0x1   :  { %s2504_s14 = smov 0   ;;  %s2506_s15 = smov 0  }
   0x2   :  { %s2508_s16 = smov 0   ;;  %s2510_s17 = smov 0  }
   0x3   :  { %s2512_s18 = smov 0  }
   0x4 LB: > { %s25_s19 = sadd.s32 1, %s2469_s16  ;;  %s32_s20 = sadd.s32 1, %s2473_s17  ;;  %s2477_s18 = sphi %s2512_s18, %s13_s18   ;;  %s2473_s17 = sphi %s2510_s17, %s2896_s17   ;;  %s2469_s16 = sphi %s2508_s16, %s2895_s16   ;;  %s2465_s15 = sphi %s2506_s15, %s2894_s15   ;;  %s2461_s14 = sphi %s2504_s14, %s2893_s14   ;;  %s2457_s13 = sphi %s2502_s13, %s2892_s13   ;;  %s2453_s12 = sphi %s2500_s12, %s2891_s12  }
   0x5   : > { %p26_p0 = scmp.ge.s32.totalorder %s25_s19, 3  ;;  %p48_p1 = scmp.ne.s32.totalorder %s2457_s13, %s2453_s12 }
   0x6   : > { %p49_p2 = scmp.eq.s32.totalorder %s2477_s18, 0  ;;  %s41_s24 = sadd.s32 1, %s2457_s13 }
   0x7   : > { %s2898_s19 = smov (%p26_p0, %s25_s19), 0  ;;  %s2900_s20 = smov (!%p26_p0, %s32_s20), %s2473_s17 }
   0x8   : > { %p50_p3 = por %p49_p2, %p48_p1  ;;  %p34_p4 = scmp.ge.s32.totalorder %s2900_s20, 2 }
   0x9   : > { %s37_s21 = ssub.s32 %s2469_s16, %s2898_s19  ;;  %p1767_p6 = scmp.ge.s32.totalorder %s2477_s18, 6 }
   0xa   : > { %s2902_s20 = smov (%p34_p4, %s2900_s20), 0 }
   0xb   : > { %s36_s22 = ssub.s32 %s2473_s17, %s2902_s20  ;;  %162 = sbr.rel (%p1767_p6) target bundleno = 64 (0x40), region = 20 }
   0xc   : > { %s38_s23 = sor.u32 %s37_s21, %s36_s22 }
   0xd   : > { %p39_p5 = scmp.eq.s32.totalorder %s38_s23, 0 }
   0xf   : > { %s2551_s25 = scalar_select %p39_p5, %s2457_s13, %s41_s24  }
  0x12   : > { %165 = sbr.rel (!%p50_p3) target bundleno = 64 (0x40), region = 24  ;;  %s167_s26 = sand.u32 (%p50_p3), 1, %s2457_s13  }
  0x13   : > { %s171_s27 = smul.u32 (%p50_p3), 3, %s2469_s16 }
  0x14   : > { %s2275_s28 = smul.u32 (%p50_p3), 384, %s167_s26 }
  0x15   : > { %s2276_s29 = smul.u32 (%p50_p3), 288, %s2473_s17 }
  0x16   : > { %s2565_s8 = scalar_lea.vmem (%p50_p3), [#allocation3], %s2275_s28 }
  0x17   : > { %s173_s30 = sadd.s32 (%p50_p3), %s2276_s29, %s171_s27 }
  0x18   : > { %s1770_s4 = sshll.u32 (%p50_p3), %s173_s30, 2 }
  0x19   : > { %s2560_s7 = scalar_lea.vmem %s2887_s0, %s1770_s4 }
  0x1a   : > { %v190_v0 = vld [vmem:[%s2560_s7] sm:$0xff]  ;;  %v194_v2 = vld [vmem:[%s2560_s7 + $0x48] sm:$0xff]  ;;  %v198_v4 = vld [vmem:[%s2560_s7 + $0x90] sm:$0xff] }
  0x1b   : > { %v192_v1 = vld [vmem:[%s2560_s7 + $0x24] sm:$0xff]  ;;  %191 = vst [vmem:[%s2565_s8] sm:$0xff] %v190_v0  ;;  %195 = vst [vmem:[%s2565_s8 + $0x18] sm:$0xff] %v194_v2  ;;  %v196_v3 = vld [vmem:[%s2560_s7 + $0x6c] sm:$0xff] }
  0x1c   : > { %193 = vst [vmem:[%s2565_s8 + $0xc] sm:$0xff] %v192_v1  ;;  %v200_v5 = vld [vmem:[%s2560_s7 + $0xb4] sm:$0xff]  ;;  %197 = vst [vmem:[%s2565_s8 + $0x24] sm:$0xff] %v196_v3  ;;  %v204_v7 = vld [vmem:[%s2560_s7 + $0xfc] sm:$0xff] }
  0x1d   : > { %199 = vst [vmem:[%s2565_s8 + $0x30] sm:$0xff] %v198_v4  ;;  %201 = vst [vmem:[%s2565_s8 + $0x3c] sm:$0xff] %v200_v5  ;;  %v202_v6 = vld [vmem:[%s2560_s7 + $0xd8] sm:$0xff]  ;;  %v206_v8 = vld [vmem:[%s2560_s7 + $0x120] sm:$0xff] }
  0x1e   : > { %203 = vst [vmem:[%s2565_s8 + $0x48] sm:$0xff] %v202_v6  ;;  %205 = vst [vmem:[%s2565_s8 + $0x54] sm:$0xff] %v204_v7  ;;  %v208_v9 = vld [vmem:[%s2560_s7 + $0x144] sm:$0xff]  ;;  %v212_v11 = vld [vmem:[%s2560_s7 + $0x18c] sm:$0xff] }
  0x1f   : > { %207 = vst [vmem:[%s2565_s8 + $0x60] sm:$0xff] %v206_v8  ;;  %v210_v10 = vld [vmem:[%s2560_s7 + $0x168] sm:$0xff]  ;;  %209 = vst [vmem:[%s2565_s8 + $0x6c] sm:$0xff] %v208_v9  ;;  %v214_v12 = vld [vmem:[%s2560_s7 + $0x1b0] sm:$0xff] }
  0x20   : > { %211 = vst [vmem:[%s2565_s8 + $0x78] sm:$0xff] %v210_v10  ;;  %213 = vst [vmem:[%s2565_s8 + $0x84] sm:$0xff] %v212_v11  ;;  %v216_v13 = vld [vmem:[%s2560_s7 + $0x1d4] sm:$0xff]  ;;  %v220_v15 = vld [vmem:[%s2560_s7 + $0x21c] sm:$0xff] }
  0x21   : > { %v218_v14 = vld [vmem:[%s2560_s7 + $0x1f8] sm:$0xff]  ;;  %215 = vst [vmem:[%s2565_s8 + $0x90] sm:$0xff] %v214_v12  ;;  %217 = vst [vmem:[%s2565_s8 + $0x9c] sm:$0xff] %v216_v13  ;;  %v222_v16 = vld [vmem:[%s2560_s7 + $0x240] sm:$0xff] }
  0x22   : > { %219 = vst [vmem:[%s2565_s8 + $0xa8] sm:$0xff] %v218_v14  ;;  %v224_v17 = vld [vmem:[%s2560_s7 + $0x264] sm:$0xff]  ;;  %221 = vst [vmem:[%s2565_s8 + $0xb4] sm:$0xff] %v220_v15  ;;  %v228_v19 = vld [vmem:[%s2560_s7 + $0x2ac] sm:$0xff] }
  0x23   : > { %223 = vst [vmem:[%s2565_s8 + $0xc0] sm:$0xff] %v222_v16  ;;  %225 = vst [vmem:[%s2565_s8 + $0xcc] sm:$0xff] %v224_v17  ;;  %v226_v18 = vld [vmem:[%s2560_s7 + $0x288] sm:$0xff]  ;;  %v230_v20 = vld [vmem:[%s2560_s7 + $0x2d0] sm:$0xff] }
  0x24   : > { %227 = vst [vmem:[%s2565_s8 + $0xd8] sm:$0xff] %v226_v18  ;;  %229 = vst [vmem:[%s2565_s8 + $0xe4] sm:$0xff] %v228_v19  ;;  %v232_v21 = vld [vmem:[%s2560_s7 + $0x2f4] sm:$0xff]  ;;  %v236_v23 = vld [vmem:[%s2560_s7 + $0x33c] sm:$0xff] }
  0x25   : > { %231 = vst [vmem:[%s2565_s8 + $0xf0] sm:$0xff] %v230_v20  ;;  %v234_v22 = vld [vmem:[%s2560_s7 + $0x318] sm:$0xff]  ;;  %233 = vst [vmem:[%s2565_s8 + $0xfc] sm:$0xff] %v232_v21  ;;  %v238_v24 = vld [vmem:[%s2560_s7 + $0x360] sm:$0xff] }
  0x26   : > { %235 = vst [vmem:[%s2565_s8 + $0x108] sm:$0xff] %v234_v22  ;;  %237 = vst [vmem:[%s2565_s8 + $0x114] sm:$0xff] %v236_v23  ;;  %v240_v25 = vld [vmem:[%s2560_s7 + $0x384] sm:$0xff]  ;;  %v244_v27 = vld [vmem:[%s2560_s7 + $0x3cc] sm:$0xff] }
  0x27   : > { %v242_v26 = vld [vmem:[%s2560_s7 + $0x3a8] sm:$0xff]  ;;  %239 = vst [vmem:[%s2565_s8 + $0x120] sm:$0xff] %v238_v24  ;;  %241 = vst [vmem:[%s2565_s8 + $0x12c] sm:$0xff] %v240_v25  ;;  %v246_v28 = vld [vmem:[%s2560_s7 + $0x3f0] sm:$0xff] }
  0x28   : > { %243 = vst [vmem:[%s2565_s8 + $0x138] sm:$0xff] %v242_v26  ;;  %v248_v29 = vld [vmem:[%s2560_s7 + $0x414] sm:$0xff]  ;;  %245 = vst [vmem:[%s2565_s8 + $0x144] sm:$0xff] %v244_v27  ;;  %v252_v31 = vld [vmem:[%s2560_s7 + $0x45c] sm:$0xff] }
  0x29   : > { %247 = vst [vmem:[%s2565_s8 + $0x150] sm:$0xff] %v246_v28  ;;  %249 = vst [vmem:[%s2565_s8 + $0x15c] sm:$0xff] %v248_v29  ;;  %v250_v30 = vld [vmem:[%s2560_s7 + $0x438] sm:$0xff]  ;;  %v1771_v32 = vld [vmem:[%s2560_s7 + $0x8] sm:$0xf] }
  0x2a   : > { %251 = vst [vmem:[%s2565_s8 + $0x168] sm:$0xff] %v250_v30  ;;  %253 = vst [vmem:[%s2565_s8 + $0x174] sm:$0xff] %v252_v31  ;;  %v1773_v33 = vld [vmem:[%s2560_s7 + $0x2c] sm:$0xf]  ;;  %v1775_v34 = vld [vmem:[%s2560_s7 + $0x50] sm:$0xf] }
  0x2b   : > { %1772 = vst [vmem:[%s2565_s8 + $0x8] sm:$0xf] %v1771_v32  ;;  %v1777_v35 = vld [vmem:[%s2560_s7 + $0x74] sm:$0xf]  ;;  %1774 = vst [vmem:[%s2565_s8 + $0x14] sm:$0xf] %v1773_v33 }
  0x2c   : > { %1776 = vst [vmem:[%s2565_s8 + $0x20] sm:$0xf] %v1775_v34  ;;  %1778 = vst [vmem:[%s2565_s8 + $0x2c] sm:$0xf] %v1777_v35  ;;  %v1779_v36 = vld [vmem:[%s2560_s7 + $0x98] sm:$0xf] }
  0x2d   : > { %v1781_v37 = vld [vmem:[%s2560_s7 + $0xbc] sm:$0xf]  ;;  %v1783_v38 = vld [vmem:[%s2560_s7 + $0xe0] sm:$0xf]  ;;  %1780 = vst [vmem:[%s2565_s8 + $0x38] sm:$0xf] %v1779_v36 }
  0x2e   : > { %1782 = vst [vmem:[%s2565_s8 + $0x44] sm:$0xf] %v1781_v37  ;;  %1784 = vst [vmem:[%s2565_s8 + $0x50] sm:$0xf] %v1783_v38  ;;  %v1785_v39 = vld [vmem:[%s2560_s7 + $0x104] sm:$0xf] }
  0x2f   : > { %v1787_v40 = vld [vmem:[%s2560_s7 + $0x128] sm:$0xf]  ;;  %v1789_v41 = vld [vmem:[%s2560_s7 + $0x14c] sm:$0xf]  ;;  %1786 = vst [vmem:[%s2565_s8 + $0x5c] sm:$0xf] %v1785_v39 }
  0x30   : > { %1788 = vst [vmem:[%s2565_s8 + $0x68] sm:$0xf] %v1787_v40  ;;  %1790 = vst [vmem:[%s2565_s8 + $0x74] sm:$0xf] %v1789_v41  ;;  %v1791_v42 = vld [vmem:[%s2560_s7 + $0x170] sm:$0xf] }
  0x31   : > { %v1793_v43 = vld [vmem:[%s2560_s7 + $0x194] sm:$0xf]  ;;  %v1795_v44 = vld [vmem:[%s2560_s7 + $0x1b8] sm:$0xf]  ;;  %1792 = vst [vmem:[%s2565_s8 + $0x80] sm:$0xf] %v1791_v42 }
  0x32   : > { %1794 = vst [vmem:[%s2565_s8 + $0x8c] sm:$0xf] %v1793_v43  ;;  %1796 = vst [vmem:[%s2565_s8 + $0x98] sm:$0xf] %v1795_v44  ;;  %v1797_v45 = vld [vmem:[%s2560_s7 + $0x1dc] sm:$0xf] }
  0x33   : > { %v1799_v46 = vld [vmem:[%s2560_s7 + $0x200] sm:$0xf]  ;;  %v1801_v47 = vld [vmem:[%s2560_s7 + $0x224] sm:$0xf]  ;;  %1798 = vst [vmem:[%s2565_s8 + $0xa4] sm:$0xf] %v1797_v45 }
  0x34   : > { %1800 = vst [vmem:[%s2565_s8 + $0xb0] sm:$0xf] %v1799_v46  ;;  %1802 = vst [vmem:[%s2565_s8 + $0xbc] sm:$0xf] %v1801_v47  ;;  %v1803_v48 = vld [vmem:[%s2560_s7 + $0x248] sm:$0xf] }
  0x35   : > { %v1805_v49 = vld [vmem:[%s2560_s7 + $0x26c] sm:$0xf]  ;;  %v1807_v50 = vld [vmem:[%s2560_s7 + $0x290] sm:$0xf]  ;;  %1804 = vst [vmem:[%s2565_s8 + $0xc8] sm:$0xf] %v1803_v48 }
  0x36   : > { %1806 = vst [vmem:[%s2565_s8 + $0xd4] sm:$0xf] %v1805_v49  ;;  %1808 = vst [vmem:[%s2565_s8 + $0xe0] sm:$0xf] %v1807_v50  ;;  %v1809_v51 = vld [vmem:[%s2560_s7 + $0x2b4] sm:$0xf] }
  0x37   : > { %v1811_v52 = vld [vmem:[%s2560_s7 + $0x2d8] sm:$0xf]  ;;  %v1813_v53 = vld [vmem:[%s2560_s7 + $0x2fc] sm:$0xf]  ;;  %1810 = vst [vmem:[%s2565_s8 + $0xec] sm:$0xf] %v1809_v51 }
  0x38   : > { %1812 = vst [vmem:[%s2565_s8 + $0xf8] sm:$0xf] %v1811_v52  ;;  %1814 = vst [vmem:[%s2565_s8 + $0x104] sm:$0xf] %v1813_v53  ;;  %v1815_v54 = vld [vmem:[%s2560_s7 + $0x320] sm:$0xf] }
  0x39   : > { %v1817_v55 = vld [vmem:[%s2560_s7 + $0x344] sm:$0xf]  ;;  %v1819_v56 = vld [vmem:[%s2560_s7 + $0x368] sm:$0xf]  ;;  %1816 = vst [vmem:[%s2565_s8 + $0x110] sm:$0xf] %v1815_v54 }
  0x3a   : > { %1818 = vst [vmem:[%s2565_s8 + $0x11c] sm:$0xf] %v1817_v55  ;;  %1820 = vst [vmem:[%s2565_s8 + $0x128] sm:$0xf] %v1819_v56  ;;  %v1821_v57 = vld [vmem:[%s2560_s7 + $0x38c] sm:$0xf] }
  0x3b   : > { %v1823_v58 = vld [vmem:[%s2560_s7 + $0x3b0] sm:$0xf]  ;;  %v1825_v59 = vld [vmem:[%s2560_s7 + $0x3d4] sm:$0xf]  ;;  %1822 = vst [vmem:[%s2565_s8 + $0x134] sm:$0xf] %v1821_v57 }
  0x3c   : > { %1824 = vst [vmem:[%s2565_s8 + $0x140] sm:$0xf] %v1823_v58  ;;  %1826 = vst [vmem:[%s2565_s8 + $0x14c] sm:$0xf] %v1825_v59  ;;  %v1827_v60 = vld [vmem:[%s2560_s7 + $0x3f8] sm:$0xf] }
  0x3d   : > { %v1829_v61 = vld [vmem:[%s2560_s7 + $0x41c] sm:$0xf]  ;;  %v1831_v62 = vld [vmem:[%s2560_s7 + $0x440] sm:$0xf]  ;;  %1828 = vst [vmem:[%s2565_s8 + $0x158] sm:$0xf] %v1827_v60 }
  0x3e   : > { %1830 = vst [vmem:[%s2565_s8 + $0x164] sm:$0xf] %v1829_v61  ;;  %1832 = vst [vmem:[%s2565_s8 + $0x170] sm:$0xf] %v1831_v62  ;;  %v1833_v63 = vld [vmem:[%s2560_s7 + $0x464] sm:$0xf] }
  0x3f   : > { %1834 = vst [vmem:[%s2565_s8 + $0x17c] sm:$0xf] %v1833_v63 }
  0x40 PF: > { %p1835_p7 = scmp.ge.s32.totalorder %s2477_s18, 1  ;;  %p341_p8 = scmp.lt.s32.totalorder %s2477_s18, 7 }
  0x42   : > { %p342_p9 = pnand %p1835_p7, %p341_p8 }
  0x43   : > { %s348_s9 = sand.u32 (!%p342_p9), 1, %s2453_s12   ;;  %s387_s10 = smul.u32 (!%p342_p9), 48, %s2461_s14 }
  0x44   : > { %345 = sbr.rel (%p342_p9) target bundleno = 456 (0x1c8), region = 54  ;;  %s1837_s21 = sshll.u32 (!%p342_p9), %s2465_s15, 5 }
  0x45   : > { %s2277_s11 = smul.u32 (!%p342_p9), 384, %s348_s9  ;;  %p388_p10 = scmp.lt.s32.totalorder (!%p342_p9), %s387_s10, 143 }
  0x46   : > { %p400_p11 = scmp.lt.s32.totalorder (!%p342_p9), %s1837_s21, 63  ;;  %p1839_p12 = scmp.ne.s32.totalorder (!%p342_p9), %s2461_s14, 0 }
  0x47   : > { %s2707_s12 = scalar_lea.vmem (!%p342_p9), [#allocation3], %s2277_s11 }
  0x4b   : > { %s2904_s10 = smov (!%p388_p10, %s387_s10), 143  ;;  %s2906_s21 = smov (!%p400_p11, %s1837_s21), 63 }
  0x4c   : > { %s1836_s22 = sshll.u32 %s2904_s10, 2  ;;  %s1838_s27 = sshll.u32 %s2906_s21, 2  ;;  %v2479_v0 = vmov (!%p1839_p12), 0.0  }
  0x4d   : > { %s2700_s26 = scalar_lea.vmem %s2888_s1, %s1836_s22  ;;  %s2705_s30 = scalar_lea.vmem %s2890_s3, %s1838_s27  ;;  %413 = vst [vmem:[#allocation2] sm:$0xff] (!%p1839_p12), %v2479_v0  ;;  %414 = vst [vmem:[#allocation2 + $0x8] sm:$0xff] (!%p1839_p12), %v2479_v0 }
  0x4e   : > { %412 = sbr.rel (%p1839_p12) target bundleno = 93 (0x5d), region = 62  ;;  %415 = vst [vmem:[#allocation2 + $0x10] sm:$0xff] (!%p1839_p12), %v2479_v0  ;;  %416 = vst [vmem:[#allocation2 + $0x18] sm:$0xff] (!%p1839_p12), %v2479_v0 }
  0x4f   : > { %417 = vst [vmem:[#allocation2 + $0x20] sm:$0xff] (!%p1839_p12), %v2479_v0  ;;  %418 = vst [vmem:[#allocation2 + $0x28] sm:$0xff] (!%p1839_p12), %v2479_v0 }
  0x50   : > { %419 = vst [vmem:[#allocation2 + $0x30] sm:$0xff] (!%p1839_p12), %v2479_v0  ;;  %420 = vst [vmem:[#allocation2 + $0x38] sm:$0xff] (!%p1839_p12), %v2479_v0 }
  0x51   : > { %421 = vst [vmem:[#allocation2 + $0x40] sm:$0xff] (!%p1839_p12), %v2479_v0  ;;  %422 = vst [vmem:[#allocation2 + $0x48] sm:$0xff] (!%p1839_p12), %v2479_v0 }
  0x52   : > { %423 = vst [vmem:[#allocation2 + $0x50] sm:$0xff] (!%p1839_p12), %v2479_v0  ;;  %424 = vst [vmem:[#allocation2 + $0x58] sm:$0xff] (!%p1839_p12), %v2479_v0 }
  0x53   : > { %425 = vst [vmem:[#allocation2 + $0x60] sm:$0xff] (!%p1839_p12), %v2479_v0  ;;  %426 = vst [vmem:[#allocation2 + $0x68] sm:$0xff] (!%p1839_p12), %v2479_v0 }
  0x54   : > { %427 = vst [vmem:[#allocation2 + $0x70] sm:$0xff] (!%p1839_p12), %v2479_v0  ;;  %428 = vst [vmem:[#allocation2 + $0x78] sm:$0xff] (!%p1839_p12), %v2479_v0 }
  0x55   : > { %429 = vst [vmem:[#allocation2 + $0x80] sm:$0xff] %v2479_v0  ;;  %430 = vst [vmem:[#allocation2 + $0x88] sm:$0xff] %v2479_v0 }
  0x56   : > { %431 = vst [vmem:[#allocation2 + $0x90] sm:$0xff] %v2479_v0  ;;  %432 = vst [vmem:[#allocation2 + $0x98] sm:$0xff] %v2479_v0 }
  0x57   : > { %433 = vst [vmem:[#allocation2 + $0xa0] sm:$0xff] %v2479_v0  ;;  %434 = vst [vmem:[#allocation2 + $0xa8] sm:$0xff] %v2479_v0 }
  0x58   : > { %435 = vst [vmem:[#allocation2 + $0xb0] sm:$0xff] %v2479_v0  ;;  %436 = vst [vmem:[#allocation2 + $0xb8] sm:$0xff] %v2479_v0 }
  0x59   : > { %437 = vst [vmem:[#allocation2 + $0xc0] sm:$0xff] %v2479_v0  ;;  %438 = vst [vmem:[#allocation2 + $0xc8] sm:$0xff] %v2479_v0 }
  0x5a   : > { %439 = vst [vmem:[#allocation2 + $0xd0] sm:$0xff] %v2479_v0  ;;  %440 = vst [vmem:[#allocation2 + $0xd8] sm:$0xff] %v2479_v0 }
  0x5b   : > { %441 = vst [vmem:[#allocation2 + $0xe0] sm:$0xff] %v2479_v0  ;;  %442 = vst [vmem:[#allocation2 + $0xe8] sm:$0xff] %v2479_v0 }
  0x5c   : > { %443 = vst [vmem:[#allocation2 + $0xf0] sm:$0xff] %v2479_v0  ;;  %444 = vst [vmem:[#allocation2 + $0xf8] sm:$0xff] %v2479_v0 }
  0x5d PF: > { %v2335_v1 = vld [vmem:[%s2700_s26 + $0x40] sm:$0xff]   ;;  %v2337_v3 = vld [vmem:[%s2700_s26 + $0x48] sm:$0xff]   ;;  %v2339_v5 = vld [vmem:[%s2700_s26 + $0x50] sm:$0xff]   ;;  %p1912_p13 = scmp.ne.s32.totalorder %s2461_s14, 2 }
  0x5e   : > { %v2336_v2 = vld [vmem:[%s2700_s26] sm:$0xff]   ;;  %2075 = vmatprep.subr.bf16.mxu0 %v2335_v1  ;;  %2259 = vmatprep.subr.bf16.mxu1 %v2335_v1  ;;  %v2338_v4 = vld [vmem:[%s2700_s26 + $0x8] sm:$0xff]   ;;  %v2340_v6 = vld [vmem:[%s2700_s26 + $0x10] sm:$0xff]  }
  0x5f   : > { %2076 = vmatpush3.bf16.msra.mxu0 %v2336_v2  ;;  %2267 = vmatpush3.bf16.msra.mxu1 %v2336_v2  ;;  %v2341_v7 = vld [vmem:[%s2700_s26 + $0x58] sm:$0xff]   ;;  %v2343_v9 = vld [vmem:[%s2700_s26 + $0x60] sm:$0xff]   ;;  %v2345_v11 = vld [vmem:[%s2700_s26 + $0x68] sm:$0xff]  }
  0x60   : > { %2077 = vmatprep.subr.bf16.mxu0 %v2337_v3  ;;  %2260 = vmatprep.subr.bf16.mxu1 %v2337_v3  ;;  %v2342_v8 = vld [vmem:[%s2700_s26 + $0x18] sm:$0xff]   ;;  %v2344_v10 = vld [vmem:[%s2700_s26 + $0x20] sm:$0xff]   ;;  %v2346_v14 = vld [vmem:[%s2700_s26 + $0x28] sm:$0xff]  }
  0x61   : > { %v2353_v12 = vld [vmem:[%s2707_s12 + $0x4] ss:$12 sps:$4 sm:$0xff]   ;;  %v2349_v17 = vld [vmem:[%s2700_s26 + $0x78] sm:$0xff]   ;;  %v2351_v20 = vld [vmem:[%s2707_s12] ss:$12 sps:$4 sm:$0xff]  }
  0x62   : > { %v2356_v13 = vld [vmem:[%s2707_s12 + $0x124] ss:$12 sps:$4 sm:$0xff]   ;;  %1021 = vmatprep.mubr.bf16.mxu0 %v2353_v12  ;;  %v2350_v18 = vld [vmem:[%s2700_s26 + $0x38] sm:$0xff]   ;;  %v2354_v21 = vld [vmem:[%s2707_s12 + $0x120] ss:$12 sps:$4 sm:$0xff]  }
  0x63   : > { %2078 = vmatpush3.bf16.msra.mxu0 %v2338_v4  ;;  %2268 = vmatpush3.bf16.msra.mxu1 %v2338_v4  ;;  %v2347_v15 = vld [vmem:[%s2700_s26 + $0x70] sm:$0xff]   ;;  %v2357_v19 = vld [vmem:[%s2700_s26 + $0x80] sm:$0xff]   ;;  %v2359_v22 = vld [vmem:[%s2707_s12 + $0x1c] ss:$12 sps:$4 sm:$0xff]  }
  0x64   : > { %2079 = vmatprep.subr.bf16.mxu0 %v2339_v5  ;;  %2261 = vmatprep.subr.bf16.mxu1 %v2339_v5  ;;  %v2348_v16 = vld [vmem:[%s2700_s26 + $0x30] sm:$0xff]   ;;  %v2358_v23 = vld [vmem:[%s2700_s26 + $0x88] sm:$0xff]   ;;  %v2363_v25 = vld [vmem:[%s2707_s12 + $0x18] ss:$12 sps:$4 sm:$0xff]  }
  0x65   : > { %1117 = vmatprep.mubr.bf16.mxu1 %v2356_v13  ;;  %v2361_v24 = vld [vmem:[%s2707_s12 + $0x13c] ss:$12 sps:$4 sm:$0xff]   ;;  %v2365_v26 = vld [vmem:[%s2700_s26 + $0x90] sm:$0xff]   ;;  %v2364_v27 = vld [vmem:[%s2707_s12 + $0x138] ss:$12 sps:$4 sm:$0xff]  }
  0x66   : > { %v2366_v28 = vld [vmem:[%s2700_s26 + $0x98] sm:$0xff]   ;;  %v2367_v29 = vld [vmem:[%s2707_s12 + $0x34] ss:$12 sps:$4 sm:$0xff]   ;;  %v2374_v34 = vld [vmem:[%s2700_s26 + $0xa8] sm:$0xff]  }
  0x67   : > { %2080 = vmatpush3.bf16.msra.mxu0 %v2340_v6  ;;  %2269 = vmatpush3.bf16.msra.mxu1 %v2340_v6  ;;  %v2369_v30 = vld [vmem:[%s2707_s12 + $0x154] ss:$12 sps:$4 sm:$0xff]   ;;  %v2371_v32 = vld [vmem:[%s2707_s12 + $0x30] ss:$12 sps:$4 sm:$0xff]   ;;  %v2375_v35 = vld [vmem:[%s2707_s12 + $0x4c] ss:$12 sps:$4 sm:$0xff]  }
  0x68   : > { %2081 = vmatprep.subr.bf16.mxu0 %v2341_v7  ;;  %2262 = vmatprep.subr.bf16.mxu1 %v2341_v7  ;;  %v2373_v31 = vld [vmem:[%s2700_s26 + $0xa0] sm:$0xff]   ;;  %v2372_v33 = vld [vmem:[%s2707_s12 + $0x150] ss:$12 sps:$4 sm:$0xff]   ;;  %v2377_v36 = vld [vmem:[%s2707_s12 + $0x16c] ss:$12 sps:$4 sm:$0xff]  }
  0x69   : > { %v2381_v37 = vld [vmem:[%s2700_s26 + $0xb0] sm:$0xff]   ;;  %v2382_v41 = vld [vmem:[%s2700_s26 + $0xb8] sm:$0xff]   ;;  %v2386_v43 = vld [vmem:[%s2707_s12 + $0x60] ss:$12 sps:$4 sm:$0xff]  }
  0x6a   : > { %v2379_v38 = vld [vmem:[%s2707_s12 + $0x48] ss:$12 sps:$4 sm:$0xff]   ;;  %v2383_v40 = vld [vmem:[%s2707_s12 + $0x64] ss:$12 sps:$4 sm:$0xff]   ;;  %v2387_v44 = vld [vmem:[%s2707_s12 + $0x20] ss:$12 sps:$4 sm:$0xff]  }
  0x6b   : > { %2082 = vmatpush3.bf16.msra.mxu0 %v2342_v8  ;;  %2270 = vmatpush3.bf16.msra.mxu1 %v2342_v8  ;;  %v2380_v39 = vld [vmem:[%s2707_s12 + $0x168] ss:$12 sps:$4 sm:$0xff]   ;;  %v2390_v46 = vld [vmem:[%s2707_s12 + $0x38] ss:$12 sps:$4 sm:$0xff]   ;;  %v2392_v48 = vld [vmem:[%s2707_s12 + $0x50] ss:$12 sps:$4 sm:$0xff]  }
  0x6c   : > { %2083 = vmatprep.subr.bf16.mxu0 %v2343_v9  ;;  %2263 = vmatprep.subr.bf16.mxu1 %v2343_v9  ;;  %v2385_v42 = vld [vmem:[%s2707_s12 + $0x8] ss:$12 sps:$4 sm:$0xff]   ;;  %v2391_v47 = vld [vmem:[%s2707_s12 + $0x78] ss:$12 sps:$4 sm:$0xff]   ;;  %v2396_v51 = vld [vmem:[%s2707_s12 + $0x90] ss:$12 sps:$4 sm:$0xff]  }
  0x6d   : > { %v2388_v45 = vld [vmem:[%s2707_s12 + $0x7c] ss:$12 sps:$4 sm:$0xff]   ;;  %v2393_v49 = vld [vmem:[%s2707_s12 + $0x94] ss:$12 sps:$4 sm:$0xff]   ;;  %v2398_v53 = vld [vmem:[%s2707_s12 + $0xac] ss:$12 sps:$4 sm:$0xff]  }
  0x6e   : > { %v2395_v50 = vld [vmem:[%s2707_s12 + $0x68] ss:$12 sps:$4 sm:$0xff]   ;;  %v2397_v52 = vld [vmem:[%s2707_s12 + $0x80] ss:$12 sps:$4 sm:$0xff]   ;;  %v2400_v54 = vld [vmem:[%s2707_s12 + $0x98] ss:$12 sps:$4 sm:$0xff]  }
  0x6f   : > { %2084 = vmatpush3.bf16.msra.mxu0 %v2344_v10  ;;  %2271 = vmatpush3.bf16.msra.mxu1 %v2344_v10  ;;  %v2401_v55 = vld [vmem:[%s2707_s12 + $0xa8] ss:$12 sps:$4 sm:$0xff]   ;;  %v2402_v56 = vld [vmem:[%s2707_s12 + $0xb0] ss:$12 sps:$4 sm:$0xff]   ;;  %v2406_v59 = vld [vmem:[%s2707_s12 + $0xc0] ss:$12 sps:$4 sm:$0xff]  }
  0x70   : > { %2085 = vmatprep.subr.bf16.mxu0 %v2345_v11  ;;  %2264 = vmatprep.subr.bf16.mxu1 %v2345_v11  ;;  %v2403_v57 = vld [vmem:[%s2707_s12 + $0xc4] ss:$12 sps:$4 sm:$0xff]   ;;  %v2405_v58 = vld [vmem:[%s2707_s12 + $0xc8] ss:$12 sps:$4 sm:$0xff]   ;;  %v2407_v60 = vld [vmem:[%s2707_s12 + $0xe0] ss:$12 sps:$4 sm:$0xff]  }
  0x71   : > { %v2408_v61 = vld [vmem:[%s2707_s12 + $0xdc] ss:$12 sps:$4 sm:$0xff]   ;;  %v2410_v62 = vld [vmem:[%s2707_s12 + $0xf8] ss:$12 sps:$4 sm:$0xff]   ;;  %v2413_v1 = vld [vmem:[%s2707_s12 + $0xf4] ss:$12 sps:$4 sm:$0xff]  }
  0x72   : > { %v2411_v63 = vld [vmem:[%s2707_s12 + $0xd8] ss:$12 sps:$4 sm:$0xff]   ;;  %v2412_v0 = vld [vmem:[%s2707_s12 + $0x110] ss:$12 sps:$4 sm:$0xff]   ;;  %v2415_v2 = vld [vmem:[%s2707_s12 + $0x128] ss:$12 sps:$4 sm:$0xff]  }
  0x73   : > { %2086 = vmatpush3.bf16.msra.mxu0 %v2346_v14  ;;  %2272 = vmatpush3.bf16.msra.mxu1 %v2346_v14  ;;  %v2416_v3 = vld [vmem:[%s2707_s12 + $0xf0] ss:$12 sps:$4 sm:$0xff]   ;;  %v2417_v4 = vld [vmem:[%s2707_s12 + $0x140] ss:$12 sps:$4 sm:$0xff]   ;;  %v2420_v6 = vld [vmem:[%s2707_s12 + $0x158] ss:$12 sps:$4 sm:$0xff]  }
  0x74   : > { %2087 = vmatprep.subr.bf16.mxu0 %v2347_v15  ;;  %2265 = vmatprep.subr.bf16.mxu1 %v2347_v15  ;;  %v2418_v5 = vld [vmem:[%s2707_s12 + $0x10c] ss:$12 sps:$4 sm:$0xff]   ;;  %v2421_v7 = vld [vmem:[%s2707_s12 + $0x108] ss:$12 sps:$4 sm:$0xff]   ;;  %v2422_v8 = vld [vmem:[%s2707_s12 + $0x170] ss:$12 sps:$4 sm:$0xff]  }
  0x77   : > { %2088 = vmatpush3.bf16.msra.mxu0 %v2348_v16  ;;  %2273 = vmatpush3.bf16.msra.mxu1 %v2348_v16 }
  0x78   : > { %2089 = vmatprep.subr.bf16.mxu0 %v2349_v17  ;;  %2266 = vmatprep.subr.bf16.mxu1 %v2349_v17 }
  0x7b   : > { %2090 = vmatpush3.bf16.msra.mxu0 %v2350_v18  ;;  %2274 = vmatpush3.bf16.msra.mxu1 %v2350_v18 }
  0x7c   : > { %2211 = vmatprep.subr.bf16.mxu1 %v2357_v19 }
  0x7e   : > { %1022 = vmatmul.mubr.bf16.vlgmr.msra.gmra.mrb[0].mxu0 %v2351_v20  ;;  %1118 = vmatmul.mubr.bf16.vlgmr.msra.gmra.mrb[0].mxu1 %v2354_v21 }
  0x7f   : > { %2212 = vmatpush3.bf16.msra.mxu1 %v2357_v19  ;;  %1029 = vmatprep.mubr.bf16.mxu0 %v2359_v22 }
  0x80   : > { %2213 = vmatprep.subr.bf16.mxu1 %v2358_v23  ;;  %1125 = vmatprep.mubr.bf16.mxu1 %v2361_v24 }
  0x83   : > { %2214 = vmatpush3.bf16.msra.mxu1 %v2358_v23 }
  0x84   : > { %2215 = vmatprep.subr.bf16.mxu1 %v2365_v26 }
  0x86   : > { %1030 = vmatmul.mubr.bf16.gmra.mrb[4].mxu0 %v2363_v25  ;;  %1126 = vmatmul.mubr.bf16.gmra.mrb[4].mxu1 %v2364_v27 }
  0x87   : > { %2216 = vmatpush3.bf16.msra.mxu1 %v2365_v26  ;;  %1037 = vmatprep.mubr.bf16.mxu0 %v2367_v29 }
  0x88   : > { %2217 = vmatprep.subr.bf16.mxu1 %v2366_v28  ;;  %1133 = vmatprep.mubr.bf16.mxu1 %v2369_v30 }
  0x8b   : > { %2218 = vmatpush3.bf16.msra.mxu1 %v2366_v28 }
  0x8c   : > { %2219 = vmatprep.subr.bf16.mxu1 %v2373_v31 }
  0x8e   : > { %1038 = vmatmul.mubr.bf16.gmra.mrb[8].mxu0 %v2371_v32  ;;  %1134 = vmatmul.mubr.bf16.gmra.mrb[8].mxu1 %v2372_v33 }
  0x8f   : > { %2220 = vmatpush3.bf16.msra.mxu1 %v2373_v31  ;;  %1045 = vmatprep.mubr.bf16.mxu0 %v2375_v35 }
  0x90   : > { %2221 = vmatprep.subr.bf16.mxu1 %v2374_v34  ;;  %1141 = vmatprep.mubr.bf16.mxu1 %v2377_v36 }
  0x93   : > { %2222 = vmatpush3.bf16.msra.mxu1 %v2374_v34 }
  0x94   : > { %2223 = vmatprep.subr.bf16.mxu1 %v2381_v37 }
  0x96   : > { %1046 = vmatmul.mubr.bf16.gmra.mrb[12].mxu0 %v2379_v38  ;;  %1142 = vmatmul.mubr.bf16.gmra.mrb[12].mxu1 %v2380_v39 }
  0x97   : > { %2224 = vmatpush3.bf16.msra.mxu1 %v2381_v37  ;;  %1053 = vmatprep.mubr.bf16.mxu0 %v2383_v40 }
  0x98   : > { %2225 = vmatprep.subr.bf16.mxu1 %v2382_v41  ;;  %2227 = vmatprep.mubr.bf16.mxu1 %v2385_v42 }
  0x9b   : > { %2226 = vmatpush3.bf16.msra.mxu1 %v2382_v41 }
  0x9e   : > { %1054 = vmatmul.mubr.bf16.gmra.mrb[16].mxu0 %v2386_v43  ;;  %2228 = vmatmul.mubr.bf16.vlgmr.msra.gmra.mrb[16].mxu1 %v2387_v44 }
  0x9f   : > { %1061 = vmatprep.mubr.bf16.mxu0 %v2388_v45  ;;  %2231 = vmatprep.mubr.bf16.mxu1 %v2390_v46 }
  0xa6   : > { %1062 = vmatmul.mubr.bf16.gmra.mrb[20].mxu0 %v2391_v47  ;;  %2232 = vmatmul.mubr.bf16.gmra.mrb[20].mxu1 %v2392_v48 }
  0xa7   : > { %1069 = vmatprep.mubr.bf16.mxu0 %v2393_v49  ;;  %2235 = vmatprep.mubr.bf16.mxu1 %v2395_v50 }
  0xae   : > { %1070 = vmatmul.mubr.bf16.gmra.mrb[24].mxu0 %v2396_v51  ;;  %2236 = vmatmul.mubr.bf16.gmra.mrb[24].mxu1 %v2397_v52 }
  0xaf   : > { %1077 = vmatprep.mubr.bf16.mxu0 %v2398_v53  ;;  %2239 = vmatprep.mubr.bf16.mxu1 %v2400_v54 }
  0xb6   : > { %1078 = vmatmul.mubr.bf16.gmra.mrb[28].mxu0 %v2401_v55  ;;  %2240 = vmatmul.mubr.bf16.gmra.mrb[28].mxu1 %v2402_v56 }
  0xb7   : > { %1085 = vmatprep.mubr.bf16.mxu0 %v2403_v57  ;;  %2243 = vmatprep.mubr.bf16.mxu1 %v2405_v58  ;;  %v447_v58 = vld [vmem:[#allocation2 + $0x10] sm:$0xff] }
  0xbe   : > { %1086 = vmatmul.mubr.bf16.gmra.mrb[32].mxu0 %v2406_v59  ;;  %2244 = vmatmul.mubr.bf16.gmra.mrb[32].mxu1 %v2407_v60 }
  0xbf   : > { %1093 = vmatprep.mubr.bf16.mxu0 %v2408_v61  ;;  %2247 = vmatprep.mubr.bf16.mxu1 %v2410_v62  ;;  %v445_v62 = vld [vmem:[#allocation2] sm:$0xff] }
  0xc6   : > { %1094 = vmatmul.mubr.bf16.gmra.mrb[36].mxu0 %v2411_v63  ;;  %2248 = vmatmul.mubr.bf16.gmra.mrb[36].mxu1 %v2412_v0 }
  0xc7   : > { %1101 = vmatprep.mubr.bf16.mxu0 %v2413_v1  ;;  %2251 = vmatprep.mubr.bf16.mxu1 %v2415_v2 }
  0xce   : > { %1102 = vmatmul.mubr.bf16.gmra.mrb[40].mxu0 %v2416_v3  ;;  %2252 = vmatmul.mubr.bf16.gmra.mrb[40].mxu1 %v2417_v4  ;;  %v448_v3 = vld [vmem:[#allocation2 + $0x18] sm:$0xff] }
  0xcf   : > { %1109 = vmatprep.mubr.bf16.mxu0 %v2418_v5  ;;  %2255 = vmatprep.mubr.bf16.mxu1 %v2420_v6 }
  0xd6   : > { %1110 = vmatmul.mubr.bf16.gmra.mrb[44].mxu0 %v2421_v7  ;;  %2256 = vmatmul.mubr.bf16.gmra.mrb[44].mxu1 %v2422_v8  ;;  %v446_v8 = vld [vmem:[#allocation2 + $0x8] sm:$0xff] }
 0x151   : > { %v2091_v9 = vpop.f32.mrb[0].mxu0  ;;  %v2163_v10 = vpop.f32.mrb[0].mxu1 }
 0x152   : > { %v2092_v11 = vpop.f32.mrb[1].mxu0  ;;  %v2164_v12 = vpop.f32.mrb[1].mxu1 }
 0x153   : > { %v2093_v13 = vadd.f32 %v2092_v11, %v2091_v9  ;;  %v2782_v14 = vadd.f32 %v2164_v12, %v2163_v10  ;;  %v2094_v15 = vpop.f32.mrb[2].mxu0  ;;  %v2166_v16 = vpop.f32.mrb[2].mxu1 }
 0x154   : > { %v2095_v17 = vpop.f32.mrb[3].mxu0  ;;  %v2167_v18 = vpop.f32.mrb[3].mxu1 }
 0x155   : > { %v2096_v19 = vadd.f32 %v2095_v17, %v2094_v15  ;;  %v2784_v20 = vadd.f32 %v2167_v18, %v2166_v16  ;;  %v451_v18 = vld [vmem:[#allocation2 + $0x30] sm:$0xff] }
 0x159   : > { %v2097_v21 = vpop.f32.mrb[4].mxu0  ;;  %v2169_v22 = vpop.f32.mrb[4].mxu1 }
 0x15a   : > { %v2098_v23 = vpop.f32.mrb[5].mxu0  ;;  %v2170_v24 = vpop.f32.mrb[5].mxu1 }
 0x15b   : > { %v2099_v25 = vadd.f32 %v2098_v23, %v2097_v21  ;;  %v2786_v26 = vadd.f32 %v2170_v24, %v2169_v22  ;;  %v2100_v27 = vpop.f32.mrb[6].mxu0  ;;  %v2172_v28 = vpop.f32.mrb[6].mxu1  ;;  %v449_v23 = vld [vmem:[#allocation2 + $0x20] sm:$0xff] }
 0x15c   : > { %v2101_v29 = vpop.f32.mrb[7].mxu0  ;;  %v2173_v30 = vpop.f32.mrb[7].mxu1 }
 0x15d   : > { %v2102_v31 = vadd.f32 %v2101_v29, %v2100_v27  ;;  %v2788_v32 = vadd.f32 %v2173_v30, %v2172_v28  ;;  %v452_v29 = vld [vmem:[#allocation2 + $0x38] sm:$0xff] }
 0x161   : > { %v2103_v33 = vpop.f32.mrb[8].mxu0  ;;  %v2175_v34 = vpop.f32.mrb[8].mxu1 }
 0x162   : > { %v2104_v35 = vpop.f32.mrb[9].mxu0  ;;  %v2176_v36 = vpop.f32.mrb[9].mxu1 }
 0x163   : > { %v2105_v37 = vadd.f32 %v2104_v35, %v2103_v33  ;;  %v2790_v38 = vadd.f32 %v2176_v36, %v2175_v34  ;;  %v2106_v39 = vpop.f32.mrb[10].mxu0  ;;  %v2178_v40 = vpop.f32.mrb[10].mxu1  ;;  %v450_v34 = vld [vmem:[#allocation2 + $0x28] sm:$0xff] }
 0x164   : > { %v2107_v41 = vpop.f32.mrb[11].mxu0  ;;  %v2179_v42 = vpop.f32.mrb[11].mxu1 }
 0x165   : > { %v2108_v43 = vadd.f32 %v2107_v41, %v2106_v39  ;;  %v2792_v44 = vadd.f32 %v2179_v42, %v2178_v40 }
 0x169   : > { %v2109_v45 = vpop.f32.mrb[12].mxu0  ;;  %v2181_v46 = vpop.f32.mrb[12].mxu1 }
 0x16a   : > { %v2110_v47 = vpop.f32.mrb[13].mxu0  ;;  %v2182_v48 = vpop.f32.mrb[13].mxu1 }
 0x16b   : > { %v2111_v49 = vadd.f32 %v2110_v47, %v2109_v45  ;;  %v2794_v50 = vadd.f32 %v2182_v48, %v2181_v46  ;;  %v2112_v51 = vpop.f32.mrb[14].mxu0  ;;  %v2184_v52 = vpop.f32.mrb[14].mxu1  ;;  %v455_v46 = vld [vmem:[#allocation2 + $0x50] sm:$0xff] }
 0x16c   : > { %v2113_v53 = vpop.f32.mrb[15].mxu0  ;;  %v2185_v54 = vpop.f32.mrb[15].mxu1 }
 0x16d   : > { %v2114_v55 = vadd.f32 %v2113_v53, %v2112_v51  ;;  %v2796_v56 = vadd.f32 %v2185_v54, %v2184_v52 }
 0x171   : > { %v2115_v57 = vpop.f32.mrb[16].mxu0  ;;  %v2229_v59 = vpop.f32.mrb[16].mxu1 }
 0x172   : > { %v1193_v60 = vadd.f32 %v2229_v59, %v2099_v25  ;;  %v2116_v61 = vpop.f32.mrb[17].mxu0  ;;  %v1184_v63 = vpop.f32.mrb[17].mxu1 }
 0x173   : > { %v2117_v0 = vadd.f32 %v2116_v61, %v2115_v57  ;;  %v1185_v1 = vadd.f32 %v2093_v13, %v1184_v63  ;;  %v2118_v2 = vpop.f32.mrb[18].mxu0  ;;  %v2230_v4 = vpop.f32.mrb[18].mxu1 }
 0x174   : > { %v1313_v5 = vadd.f32 %v1193_v60, %v447_v58  ;;  %v1196_v6 = vadd.f32 %v2230_v4, %v2102_v31  ;;  %v2119_v7 = vpop.f32.mrb[19].mxu0  ;;  %v1187_v9 = vpop.f32.mrb[19].mxu1  ;;  %v454_v60 = vld [vmem:[#allocation2 + $0x48] sm:$0xff] }
 0x175   : > { %v1311_v10 = vadd.f32 %v1185_v1, %v445_v62  ;;  %v2120_v11 = vadd.f32 %v2119_v7, %v2118_v2  ;;  %v1188_v12 = vadd.f32 %v2096_v19, %v1187_v9 }
 0x176   : > { %1345 = vst [vmem:[#allocation2 + $0x10] sm:$0xff] %v1313_v5  ;;  %v1314_v15 = vadd.f32 %v1196_v6, %v448_v3  ;;  %v457_v6 = vld [vmem:[#allocation2 + $0x60] sm:$0xff] }
 0x177   : > { %1343 = vst [vmem:[#allocation2] sm:$0xff] %v1311_v10  ;;  %v1312_v16 = vadd.f32 %v1188_v12, %v446_v8 }
 0x178   : > { %1346 = vst [vmem:[#allocation2 + $0x18] sm:$0xff] %v1314_v15  ;;  %v459_v15 = vld [vmem:[#allocation2 + $0x70] sm:$0xff] }
 0x179   : > { %1344 = vst [vmem:[#allocation2 + $0x8] sm:$0xff] %v1312_v16  ;;  %v2121_v17 = vpop.f32.mrb[20].mxu0  ;;  %v2233_v13 = vpop.f32.mrb[20].mxu1 }
 0x17a   : > { %v1209_v21 = vadd.f32 %v2233_v13, %v2111_v49  ;;  %v2122_v22 = vpop.f32.mrb[21].mxu0  ;;  %v1200_v24 = vpop.f32.mrb[21].mxu1  ;;  %v453_v49 = vld [vmem:[#allocation2 + $0x40] sm:$0xff] }
 0x17b   : > { %v2123_v25 = vadd.f32 %v2122_v22, %v2121_v17  ;;  %v1201_v27 = vadd.f32 %v2105_v37, %v1200_v24  ;;  %v2124_v28 = vpop.f32.mrb[22].mxu0  ;;  %v2234_v30 = vpop.f32.mrb[22].mxu1  ;;  %v458_v17 = vld [vmem:[#allocation2 + $0x68] sm:$0xff] }
 0x17c   : > { %v1317_v31 = vadd.f32 %v1209_v21, %v451_v18  ;;  %v1212_v19 = vadd.f32 %v2234_v30, %v2114_v55  ;;  %v2125_v33 = vpop.f32.mrb[23].mxu0  ;;  %v1203_v35 = vpop.f32.mrb[23].mxu1  ;;  %v456_v55 = vld [vmem:[#allocation2 + $0x58] sm:$0xff] }
 0x17d   : > { %v1315_v36 = vadd.f32 %v1201_v27, %v449_v23  ;;  %v2126_v39 = vadd.f32 %v2125_v33, %v2124_v28  ;;  %v1204_v40 = vadd.f32 %v2108_v43, %v1203_v35  ;;  %v460_v23 = vld [vmem:[#allocation2 + $0x78] sm:$0xff] }
 0x17e   : > { %1349 = vst [vmem:[#allocation2 + $0x30] sm:$0xff] %v1317_v31  ;;  %v1318_v41 = vadd.f32 %v1212_v19, %v452_v29 }
 0x17f   : > { %1347 = vst [vmem:[#allocation2 + $0x20] sm:$0xff] %v1315_v36  ;;  %v1316_v42 = vadd.f32 %v1204_v40, %v450_v34  ;;  %v461_v36 = vld [vmem:[#allocation2 + $0x80] sm:$0xff] }
 0x180   : > { %1350 = vst [vmem:[#allocation2 + $0x38] sm:$0xff] %v1318_v41 }
 0x181   : > { %1348 = vst [vmem:[#allocation2 + $0x28] sm:$0xff] %v1316_v42  ;;  %v2127_v45 = vpop.f32.mrb[24].mxu0  ;;  %v2237_v37 = vpop.f32.mrb[24].mxu1 }
 0x182   : > { %v1225_v47 = vadd.f32 %v2237_v37, %v2123_v25  ;;  %v2128_v48 = vpop.f32.mrb[25].mxu0  ;;  %v1216_v51 = vpop.f32.mrb[25].mxu1 }
 0x183   : > { %v2129_v52 = vadd.f32 %v2128_v48, %v2127_v45  ;;  %v1217_v53 = vadd.f32 %v2117_v0, %v1216_v51  ;;  %v2130_v54 = vpop.f32.mrb[26].mxu0  ;;  %v2238_v57 = vpop.f32.mrb[26].mxu1  ;;  %v462_v45 = vld [vmem:[#allocation2 + $0x88] sm:$0xff] }
 0x184   : > { %v1321_v58 = vadd.f32 %v1225_v47, %v455_v46  ;;  %v1228_v43 = vadd.f32 %v2238_v57, %v2126_v39  ;;  %v2131_v59 = vpop.f32.mrb[27].mxu0  ;;  %v1219_v61 = vpop.f32.mrb[27].mxu1  ;;  %v463_v57 = vld [vmem:[#allocation2 + $0x90] sm:$0xff] }
 0x185   : > { %v1319_v62 = vadd.f32 %v1217_v53, %v453_v49  ;;  %v2132_v63 = vadd.f32 %v2131_v59, %v2130_v54  ;;  %v1220_v1 = vadd.f32 %v2120_v11, %v1219_v61  ;;  %v464_v61 = vld [vmem:[#allocation2 + $0x98] sm:$0xff] }
 0x186   : > { %1353 = vst [vmem:[#allocation2 + $0x50] sm:$0xff] %v1321_v58  ;;  %v1322_v2 = vadd.f32 %v1228_v43, %v456_v55 }
 0x187   : > { %1351 = vst [vmem:[#allocation2 + $0x40] sm:$0xff] %v1319_v62  ;;  %v1320_v3 = vadd.f32 %v1220_v1, %v454_v60 }
 0x188   : > { %1354 = vst [vmem:[#allocation2 + $0x58] sm:$0xff] %v1322_v2 }
 0x189   : > { %1352 = vst [vmem:[#allocation2 + $0x48] sm:$0xff] %v1320_v3  ;;  %v2133_v4 = vpop.f32.mrb[28].mxu0  ;;  %v2241_v5 = vpop.f32.mrb[28].mxu1  ;;  %v471_v3 = vld [vmem:[#allocation2 + $0xd0] sm:$0xff] }
 0x18a   : > { %v2134_v0 = vpop.f32.mrb[29].mxu0  ;;  %v1232_v7 = vpop.f32.mrb[29].mxu1 }
 0x18b   : > { %v2135_v8 = vadd.f32 %v2134_v0, %v2133_v4  ;;  %v1233_v9 = vadd.f32 %v2129_v52, %v1232_v7  ;;  %v2136_v10 = vpop.f32.mrb[30].mxu0  ;;  %v2242_v12 = vpop.f32.mrb[30].mxu1 }
 0x18c   : > { %v2137_v16 = vpop.f32.mrb[31].mxu0  ;;  %v1235_v18 = vpop.f32.mrb[31].mxu1 }
 0x18d   : > { %v1241_v11 = vadd.f32 %v2241_v5, %v2135_v8  ;;  %v1323_v13 = vadd.f32 %v1233_v9, %v457_v6  ;;  %v2138_v21 = vadd.f32 %v2137_v16, %v2136_v10  ;;  %v1236_v22 = vadd.f32 %v2132_v63, %v1235_v18  ;;  %v469_v6 = vld [vmem:[#allocation2 + $0xc0] sm:$0xff] }
 0x18f   : > { %v1325_v24 = vadd.f32 %v1241_v11, %v459_v15  ;;  %1355 = vst [vmem:[#allocation2 + $0x60] sm:$0xff] %v1323_v13  ;;  %v1244_v25 = vadd.f32 %v2242_v12, %v2138_v21  ;;  %v1324_v27 = vadd.f32 %v1236_v22, %v458_v17  ;;  %v472_v12 = vld [vmem:[#allocation2 + $0xd8] sm:$0xff]  ;;  %v465_v17 = vld [vmem:[#allocation2 + $0xa0] sm:$0xff]  ;;  %v470_v13 = vld [vmem:[#allocation2 + $0xc8] sm:$0xff] }
 0x191   : > { %1357 = vst [vmem:[#allocation2 + $0x70] sm:$0xff] %v1325_v24  ;;  %v1326_v28 = vadd.f32 %v1244_v25, %v460_v23  ;;  %1356 = vst [vmem:[#allocation2 + $0x68] sm:$0xff] %v1324_v27  ;;  %v2139_v29 = vpop.f32.mrb[32].mxu0  ;;  %v2245_v30 = vpop.f32.mrb[32].mxu1  ;;  %v466_v27 = vld [vmem:[#allocation2 + $0xa8] sm:$0xff] }
 0x192   : > { %v2140_v31 = vpop.f32.mrb[33].mxu0  ;;  %v1248_v19 = vpop.f32.mrb[33].mxu1 }
 0x193   : > { %1358 = vst [vmem:[#allocation2 + $0x78] sm:$0xff] %v1326_v28  ;;  %v2141_v33 = vadd.f32 %v2140_v31, %v2139_v29  ;;  %v2142_v34 = vpop.f32.mrb[34].mxu0  ;;  %v2246_v35 = vpop.f32.mrb[34].mxu1  ;;  %v475_v31 = vld [vmem:[#allocation2 + $0xf0] sm:$0xff] }
 0x194   : > { %v2143_v39 = vpop.f32.mrb[35].mxu0  ;;  %v1251_v40 = vpop.f32.mrb[35].mxu1 }
 0x195   : > { %v1249_v41 = vadd.f32 %v2141_v33, %v1248_v19  ;;  %v2144_v42 = vadd.f32 %v2143_v39, %v2142_v34 }
 0x197   : > { %v1327_v46 = vadd.f32 %v1249_v41, %v461_v36  ;;  %v1252_v37 = vadd.f32 %v2144_v42, %v1251_v40  ;;  %v476_v41 = vld [vmem:[#allocation2 + $0xf8] sm:$0xff] }
 0x199   : > { %1359 = vst [vmem:[#allocation2 + $0x80] sm:$0xff] %v1327_v46  ;;  %v1328_v47 = vadd.f32 %v1252_v37, %v462_v45  ;;  %v2145_v48 = vpop.f32.mrb[36].mxu0  ;;  %v2798_v49 = vpop.f32.mrb[36].mxu1  ;;  %v467_v46 = vld [vmem:[#allocation2 + $0xb0] sm:$0xff] }
 0x19a   : > { %v2146_v51 = vpop.f32.mrb[37].mxu0  ;;  %v1264_v52 = vpop.f32.mrb[37].mxu1 }
 0x19b   : > { %1360 = vst [vmem:[#allocation2 + $0x88] sm:$0xff] %v1328_v47  ;;  %v2147_v53 = vadd.f32 %v2146_v51, %v2145_v48  ;;  %v2148_v54 = vpop.f32.mrb[38].mxu0  ;;  %v2800_v55 = vpop.f32.mrb[38].mxu1  ;;  %v474_v48 = vld [vmem:[#allocation2 + $0xe8] sm:$0xff] }
 0x19c   : > { %v2149_v58 = vpop.f32.mrb[39].mxu0  ;;  %v1267_v43 = vpop.f32.mrb[39].mxu1 }
 0x19d   : > { %v1257_v59 = vadd.f32 %v2245_v30, %v2147_v53  ;;  %v2150_v60 = vadd.f32 %v2149_v58, %v2148_v54  ;;  %v468_v58 = vld [vmem:[#allocation2 + $0xb8] sm:$0xff] }
 0x19f   : > { %v1329_v62 = vadd.f32 %v1257_v59, %v463_v57  ;;  %v1260_v63 = vadd.f32 %v2246_v35, %v2150_v60  ;;  %v473_v35 = vld [vmem:[#allocation2 + $0xe0] sm:$0xff]  ;;  %v1380_v60 = vld [vmem:[#allocation2 + $0x8] sm:$0xff] (!%p1912_p13) }
 0x1a1   : > { %1361 = vst [vmem:[#allocation2 + $0x90] sm:$0xff] %v1329_v62  ;;  %v1330_v1 = vadd.f32 %v1260_v63, %v464_v61  ;;  %v2151_v2 = vpop.f32.mrb[40].mxu0  ;;  %v2253_v4 = vpop.f32.mrb[40].mxu1  ;;  %v1381_v62 = vld [vmem:[#allocation2 + $0x10] sm:$0xff] (!%p1912_p13)  ;;  %v1382_v63 = vld [vmem:[#allocation2 + $0x18] sm:$0xff] (!%p1912_p13) }
 0x1a2   : > { %v1289_v5 = vadd.f32 %v2253_v4, %v2786_v26  ;;  %v2152_v0 = vpop.f32.mrb[41].mxu0  ;;  %v1280_v7 = vpop.f32.mrb[41].mxu1  ;;  %v1384_v4 = vld [vmem:[#allocation2 + $0x28] sm:$0xff] (!%p1912_p13) }
 0x1a3   : > { %1362 = vst [vmem:[#allocation2 + $0x98] sm:$0xff] %v1330_v1  ;;  %v2153_v8 = vadd.f32 %v2152_v0, %v2151_v2  ;;  %v1281_v9 = vadd.f32 %v2782_v14, %v1280_v7  ;;  %v2154_v10 = vpop.f32.mrb[42].mxu0  ;;  %v2254_v15 = vpop.f32.mrb[42].mxu1  ;;  %v1383_v1 = vld [vmem:[#allocation2 + $0x20] sm:$0xff] (!%p1912_p13)  ;;  %v1385_v0 = vld [vmem:[#allocation2 + $0x30] sm:$0xff] (!%p1912_p13) }
 0x1a4   : > { %v1337_v16 = vadd.f32 %v1289_v5, %v471_v3  ;;  %v1292_v18 = vadd.f32 %v2254_v15, %v2788_v32  ;;  %v2155_v11 = vpop.f32.mrb[43].mxu0  ;;  %v1283_v21 = vpop.f32.mrb[43].mxu1  ;;  %v1388_v15 = vld [vmem:[#allocation2 + $0x48] sm:$0xff] (!%p1912_p13) }
 0x1a5   : > { %v1265_v22 = vadd.f32 %v2153_v8, %v1264_v52  ;;  %v1335_v23 = vadd.f32 %v1281_v9, %v469_v6  ;;  %v2156_v26 = vadd.f32 %v2155_v11, %v2154_v10  ;;  %v1284_v24 = vadd.f32 %v2784_v20, %v1283_v21  ;;  %v1386_v6 = vld [vmem:[#allocation2 + $0x38] sm:$0xff] (!%p1912_p13) }
 0x1a6   : > { %1369 = vst [vmem:[#allocation2 + $0xd0] sm:$0xff] %v1337_v16  ;;  %v1338_v25 = vadd.f32 %v1292_v18, %v472_v12  ;;  %v1387_v12 = vld [vmem:[#allocation2 + $0x40] sm:$0xff] (!%p1912_p13)  ;;  %v1389_v16 = vld [vmem:[#allocation2 + $0x50] sm:$0xff] (!%p1912_p13)  ;;  %v1390_v21 = vld [vmem:[#allocation2 + $0x58] sm:$0xff] (!%p1912_p13) }
 0x1a7   : > { %v1331_v28 = vadd.f32 %v1265_v22, %v465_v17  ;;  %1367 = vst [vmem:[#allocation2 + $0xc0] sm:$0xff] %v1335_v23  ;;  %v1268_v14 = vadd.f32 %v2156_v26, %v1267_v43  ;;  %v1336_v29 = vadd.f32 %v1284_v24, %v470_v13  ;;  %v1391_v22 = vld [vmem:[#allocation2 + $0x60] sm:$0xff] (!%p1912_p13) }
 0x1a8   : > { %1370 = vst [vmem:[#allocation2 + $0xd8] sm:$0xff] %v1338_v25 }
 0x1a9   : > { %1363 = vst [vmem:[#allocation2 + $0xa0] sm:$0xff] %v1331_v28  ;;  %v1332_v30 = vadd.f32 %v1268_v14, %v466_v27  ;;  %1368 = vst [vmem:[#allocation2 + $0xc8] sm:$0xff] %v1336_v29  ;;  %v2157_v32 = vpop.f32.mrb[44].mxu0  ;;  %v2257_v19 = vpop.f32.mrb[44].mxu1  ;;  %v1392_v27 = vld [vmem:[#allocation2 + $0x68] sm:$0xff] (!%p1912_p13) }
 0x1aa   : > { %v1305_v33 = vadd.f32 %v2257_v19, %v2794_v50  ;;  %v2158_v34 = vpop.f32.mrb[45].mxu0  ;;  %v1296_v36 = vpop.f32.mrb[45].mxu1 }
 0x1ab   : > { %1364 = vst [vmem:[#allocation2 + $0xa8] sm:$0xff] %v1332_v30  ;;  %v2159_v20 = vadd.f32 %v2158_v34, %v2157_v32  ;;  %v1297_v39 = vadd.f32 %v2790_v38, %v1296_v36  ;;  %v2160_v40 = vpop.f32.mrb[46].mxu0  ;;  %v2258_v42 = vpop.f32.mrb[46].mxu1  ;;  %v1393_v32 = vld [vmem:[#allocation2 + $0x70] sm:$0xff] (!%p1912_p13)  ;;  %v1395_v36 = vld [vmem:[#allocation2 + $0x80] sm:$0xff] (!%p1912_p13) }
 0x1ac   : > { %v1341_v45 = vadd.f32 %v1305_v33, %v475_v31  ;;  %v1308_v37 = vadd.f32 %v2258_v42, %v2796_v56  ;;  %v2161_v47 = vpop.f32.mrb[47].mxu0  ;;  %v1299_v51 = vpop.f32.mrb[47].mxu1  ;;  %v1394_v31 = vld [vmem:[#allocation2 + $0x78] sm:$0xff] (!%p1912_p13) }
 0x1ad   : > { %v1273_v52 = vadd.f32 %v2798_v49, %v2159_v20  ;;  %v1339_v50 = vadd.f32 %v1297_v39, %v473_v35  ;;  %v2162_v53 = vadd.f32 %v2161_v47, %v2160_v40  ;;  %v1300_v54 = vadd.f32 %v2792_v44, %v1299_v51  ;;  %1378 = sbr.rel (%p1912_p13) target bundleno = 456 (0x1c8), region = 66  ;;  %v1379_v49 = vld [vmem:[#allocation2] sm:$0xff] (!%p1912_p13)  ;;  %v1396_v20 = vld [vmem:[#allocation2 + $0x88] sm:$0xff] (!%p1912_p13)  ;;  %v1398_v51 = vld [vmem:[#allocation2 + $0x98] sm:$0xff] (!%p1912_p13) }
 0x1ae   : > { %1373 = vst [vmem:[#allocation2 + $0xf0] sm:$0xff] %v1341_v45  ;;  %v1342_v57 = vadd.f32 %v1308_v37, %v476_v41  ;;  %v2816_v44 = vld [vmem:[%s2889_s2] ss:$0 sm:$0xff] (!%p1912_p13)  ;;  %v1397_v45 = vld [vmem:[#allocation2 + $0x90] sm:$0xff] (!%p1912_p13) }
 0x1af   : > { %v1333_v38 = vadd.f32 %v1273_v52, %v467_v46  ;;  %1371 = vst [vmem:[#allocation2 + $0xe0] sm:$0xff] %v1339_v50  ;;  %v1276_v43 = vadd.f32 %v2800_v55, %v2162_v53  ;;  %v1340_v59 = vadd.f32 %v1300_v54, %v474_v48  ;;  %v1418_v61 = vadd.f32 (!%p1912_p13), %v2816_v44, %v1379_v49 }
 0x1b0   : > { %1374 = vst [vmem:[#allocation2 + $0xf8] sm:$0xff] %v1342_v57  ;;  %v1419_v55 = vadd.f32 (!%p1912_p13), %v2816_v44, %v1380_v60  ;;  %v1420_v2 = vadd.f32 (!%p1912_p13), %v2816_v44, %v1381_v62  ;;  %v1421_v3 = vadd.f32 (!%p1912_p13), %v2816_v44, %v1382_v63  ;;  %v1422_v5 = vadd.f32 (!%p1912_p13), %v2816_v44, %v1383_v1  ;;  %v1399_v57 = vld [vmem:[#allocation2 + $0xa0] sm:$0xff] (!%p1912_p13) }
 0x1b1   : > { %1365 = vst [vmem:[#allocation2 + $0xb0] sm:$0xff] %v1333_v38  ;;  %v1334_v56 = vadd.f32 %v1276_v43, %v468_v58  ;;  %1372 = vst [vmem:[#allocation2 + $0xe8] sm:$0xff] %v1340_v59  ;;  %v1450_v7 = vmax.f32 (!%p1912_p13), %v1418_v61, 0.0  ;;  %v1423_v9 = vadd.f32 (!%p1912_p13), %v2816_v44, %v1384_v4  ;;  %v1424_v10 = vadd.f32 (!%p1912_p13), %v2816_v44, %v1385_v0  ;;  %v1403_v1 = vld [vmem:[#allocation2 + $0xc0] sm:$0xff] (!%p1912_p13) }
 0x1b2   : > { %v1451_v8 = vmax.f32 (!%p1912_p13), %v1419_v55, 0.0  ;;  %v1452_v17 = vmax.f32 (!%p1912_p13), %v1420_v2, 0.0  ;;  %v1453_v18 = vmax.f32 (!%p1912_p13), %v1421_v3, 0.0  ;;  %v1454_v11 = vmax.f32 (!%p1912_p13), %v1422_v5, 0.0  ;;  %v1400_v58 = vld [vmem:[#allocation2 + $0xa8] sm:$0xff] (!%p1912_p13) }
 0x1b3   : > { %1366 = vst [vmem:[#allocation2 + $0xb8] sm:$0xff] %v1334_v56  ;;  %v1425_v13 = vadd.f32 (!%p1912_p13), %v2816_v44, %v1386_v6  ;;  %v1455_v26 = vmax.f32 (!%p1912_p13), %v1423_v9, 0.0  ;;  %v1456_v24 = vmax.f32 (!%p1912_p13), %v1424_v10, 0.0  ;;  %v1426_v25 = vadd.f32 (!%p1912_p13), %v2816_v44, %v1387_v12  ;;  %v1404_v2 = vld [vmem:[#allocation2 + $0xc8] sm:$0xff] (!%p1912_p13)  ;;  %v1405_v6 = vld [vmem:[#allocation2 + $0xd0] sm:$0xff] (!%p1912_p13)  ;;  %v1406_v12 = vld [vmem:[#allocation2 + $0xd8] sm:$0xff] (!%p1912_p13) }
 0x1b4   : > { %v1983_v23 = vpack.c.bf16 %v1451_v8, %v1450_v7  ;;  %v1988_v28 = vpack.c.bf16 %v1453_v18, %v1452_v17  ;;  %v1427_v29 = vadd.f32 %v2816_v44, %v1388_v15  ;;  %v1428_v30 = vadd.f32 %v2816_v44, %v1389_v16 }
 0x1b5   : > { %v1457_v14 = vmax.f32 %v1425_v13, 0.0  ;;  %v1993_v19 = vpack.c.bf16 %v1455_v26, %v1454_v11  ;;  %v1458_v33 = vmax.f32 %v1426_v25, 0.0  ;;  %v1429_v34 = vadd.f32 %v2816_v44, %v1390_v21 }
 0x1b6   : > { %1984 = vst [vmem:[%s2705_s30] sm:$0xff] %v1983_v23   ;;  %v1430_v35 = vadd.f32 %v2816_v44, %v1391_v22  ;;  %2060 = vst [vmem:[%s2705_s30 + $0x8] sm:$0xff] %v1988_v28   ;;  %v1459_v40 = vmax.f32 %v1427_v29, 0.0  ;;  %v1460_v41 = vmax.f32 %v1428_v30, 0.0  ;;  %v1431_v42 = vadd.f32 %v2816_v44, %v1392_v27  ;;  %v1407_v11 = vld [vmem:[#allocation2 + $0xe0] sm:$0xff] }
 0x1b7   : > { %v1998_v39 = vpack.c.bf16 %v1457_v14, %v1456_v24  ;;  %2061 = vst [vmem:[%s2705_s30 + $0x10] sm:$0xff] %v1993_v19   ;;  %v1461_v46 = vmax.f32 %v1429_v34, 0.0  ;;  %v1432_v47 = vadd.f32 %v2816_v44, %v1393_v32  ;;  %v1433_v48 = vadd.f32 %v2816_v44, %v1394_v31  ;;  %v1409_v24 = vld [vmem:[#allocation2 + $0xf0] sm:$0xff]  ;;  %v1410_v25 = vld [vmem:[#allocation2 + $0xf8] sm:$0xff] }
 0x1b8   : > { %v1462_v37 = vmax.f32 %v1430_v35, 0.0  ;;  %v2003_v52 = vpack.c.bf16 %v1459_v40, %v1458_v33  ;;  %v1463_v50 = vmax.f32 %v1431_v42, 0.0  ;;  %v1434_v53 = vadd.f32 %v2816_v44, %v1395_v36  ;;  %v1401_v49 = vld [vmem:[#allocation2 + $0xb0] sm:$0xff]  ;;  %v1408_v13 = vld [vmem:[#allocation2 + $0xe8] sm:$0xff] }
 0x1b9   : > { %2062 = vst [vmem:[%s2705_s30 + $0x18] sm:$0xff] %v1998_v39   ;;  %v1435_v54 = vadd.f32 %v2816_v44, %v1396_v20  ;;  %v2008_v38 = vpack.c.bf16 %v1461_v46, %v1460_v41  ;;  %v1464_v43 = vmax.f32 %v1432_v47, 0.0  ;;  %v1465_v59 = vmax.f32 %v1433_v48, 0.0 }
 0x1ba   : > { %v1436_v56 = vadd.f32 %v2816_v44, %v1397_v45  ;;  %v1402_v60 = vld [vmem:[#allocation2 + $0xb8] sm:$0xff]  ;;  %2063 = vst [vmem:[%s2705_s30 + $0x20] sm:$0xff] %v2003_v52   ;;  %v2013_v61 = vpack.c.bf16 %v1463_v50, %v1462_v37  ;;  %v1466_v55 = vmax.f32 %v1434_v53, 0.0  ;;  %v1437_v63 = vadd.f32 %v2816_v44, %v1398_v51 }
 0x1bb   : > { %v1467_v62 = vmax.f32 %v1435_v54, 0.0  ;;  %2064 = vst [vmem:[%s2705_s30 + $0x28] sm:$0xff] %v2008_v38   ;;  %v2018_v3 = vpack.c.bf16 %v1465_v59, %v1464_v43  ;;  %v1438_v5 = vadd.f32 %v2816_v44, %v1399_v57  ;;  %v1439_v0 = vadd.f32 %v2816_v44, %v1400_v58 }
 0x1bc   : > { %v1468_v4 = vmax.f32 %v1436_v56, 0.0  ;;  %2065 = vst [vmem:[%s2705_s30 + $0x30] sm:$0xff] %v2013_v61   ;;  %v1469_v8 = vmax.f32 %v1437_v63, 0.0  ;;  %v1440_v9 = vadd.f32 %v2816_v44, %v1401_v49  ;;  %v1441_v10 = vadd.f32 %v2816_v44, %v1402_v60 }
 0x1bd   : > { %v2023_v7 = vpack.c.bf16 %v1467_v62, %v1466_v55  ;;  %2066 = vst [vmem:[%s2705_s30 + $0x38] sm:$0xff] %v2018_v3   ;;  %v1470_v15 = vmax.f32 %v1438_v5, 0.0  ;;  %v1471_v16 = vmax.f32 %v1439_v0, 0.0  ;;  %v1442_v17 = vadd.f32 %v2816_v44, %v1403_v1 }
 0x1be   : > { %v1443_v18 = vadd.f32 %v2816_v44, %v1404_v2  ;;  %v2028_v21 = vpack.c.bf16 %v1469_v8, %v1468_v4  ;;  %v1472_v22 = vmax.f32 %v1440_v9, 0.0  ;;  %v1473_v23 = vmax.f32 %v1441_v10, 0.0 }
 0x1bf   : > { %2067 = vst [vmem:[%s2705_s30 + $0x40] sm:$0xff] %v2023_v7   ;;  %v1444_v26 = vadd.f32 %v2816_v44, %v1405_v6  ;;  %v2033_v27 = vpack.c.bf16 %v1471_v16, %v1470_v15  ;;  %v1474_v28 = vmax.f32 %v1442_v17, 0.0  ;;  %v1445_v29 = vadd.f32 %v2816_v44, %v1406_v12 }
 0x1c0   : > { %v1475_v14 = vmax.f32 %v1443_v18, 0.0  ;;  %2068 = vst [vmem:[%s2705_s30 + $0x48] sm:$0xff] %v2028_v21   ;;  %v2038_v30 = vpack.c.bf16 %v1473_v23, %v1472_v22  ;;  %v1446_v31 = vadd.f32 %v2816_v44, %v1407_v11  ;;  %v1447_v19 = vadd.f32 %v2816_v44, %v1408_v13 }
 0x1c1   : > { %v1476_v32 = vmax.f32 %v1444_v26, 0.0  ;;  %2069 = vst [vmem:[%s2705_s30 + $0x50] sm:$0xff] %v2033_v27   ;;  %v1477_v34 = vmax.f32 %v1445_v29, 0.0  ;;  %v1448_v35 = vadd.f32 %v2816_v44, %v1409_v24  ;;  %v1449_v36 = vadd.f32 %v2816_v44, %v1410_v25 }
 0x1c2   : > { %v2043_v33 = vpack.c.bf16 %v1475_v14, %v1474_v28  ;;  %2070 = vst [vmem:[%s2705_s30 + $0x58] sm:$0xff] %v2038_v30   ;;  %v1478_v20 = vmax.f32 %v1446_v31, 0.0  ;;  %v1479_v39 = vmax.f32 %v1447_v19, 0.0 }
 0x1c3   : > { %v2048_v40 = vpack.c.bf16 %v1477_v34, %v1476_v32  ;;  %v1480_v41 = vmax.f32 %v1448_v35, 0.0  ;;  %v1481_v42 = vmax.f32 %v1449_v36, 0.0 }
 0x1c4   : > { %2071 = vst [vmem:[%s2705_s30 + $0x60] sm:$0xff] %v2043_v33   ;;  %v2053_v45 = vpack.c.bf16 %v1479_v39, %v1478_v20 }
 0x1c5   : > { %2072 = vst [vmem:[%s2705_s30 + $0x68] sm:$0xff] %v2048_v40   ;;  %v2058_v46 = vpack.c.bf16 %v1481_v42, %v1480_v41 }
 0x1c6   : > { %2073 = vst [vmem:[%s2705_s30 + $0x70] sm:$0xff] %v2053_v45  }
 0x1c7   : > { %2074 = vst [vmem:[%s2705_s30 + $0x78] sm:$0xff] %v2058_v46  }
 0x1c8 PF: > { %s13_s18 = sadd.s32 1, %s2477_s18   ;;  %s2891_s12 = smov %s2457_s13 }
 0x1c9   : > { %p10_p0 = scmp.ge.s32.totalorder %s13_s18, 8   ;;  %s2892_s13 = smov %s2551_s25 }
 0x1ca   : > { %s2893_s14 = smov %s2469_s16  ;;  %s2894_s15 = smov %s2473_s17 }
 0x1cb   : > { %s2895_s16 = smov %s2898_s19  ;;  %s2896_s17 = smov %s2902_s20 }
 0x1cc   :  { %12 = sbr.rel (!%p10_p0) target bundleno = 4 (0x4), region = 113 }

// kernel: resnet50_bottom_forward.60
= control target key start
LH: loop header
LB: loop body
LE: loop exit
PB: predicated region body
PF: predicated region fallthrough
CT: control target
= control target key end

     0   :  { %s1756_s15 = smov 0   ;;  %s1758_s16 = smov 0   ;;  %s2000_s0 = inlined_call_operand.vmem [shape: bf16[512,128], index: 0, kind: input, shape index: {}]   ;;  %s2001_s1 = inlined_call_operand.vmem [shape: bf16[128,128], index: 1, kind: input, shape index: {}]   ;;  %s2002_s2 = inlined_call_operand.vmem [shape: f32[1,128], index: 2, kind: input, shape index: {}]   ;;  %s2003_s3 = inlined_call_operand.vmem [shape: bf16[512,128], index: 3, kind: input, shape index: {}]   ;;  %s2004_s4 = inlined_call_operand.vmem [shape: bf16[512,128], index: 4, kind: output, shape index: {}]  }
   0x1   :  { %s1760_s17 = smov 0  }
   0x2 LB: > { %s33_s18 = sadd.s32 1, %s1725_s16  ;;  %p1299_p0 = scmp.ge.s32.totalorder %s1729_s17, 1  ;;  %s1729_s17 = sphi %s1760_s17, %s14_s17   ;;  %s1725_s16 = sphi %s1758_s16, %s2006_s16   ;;  %s1721_s15 = sphi %s1756_s15, %s2005_s15  }
   0x3   : > { %p35_p1 = scmp.ge.s32.totalorder %s33_s18, 2  ;;  %p229_p2 = scmp.lt.s32.totalorder %s1729_s17, 3 }
   0x5   : > { %s2008_s18 = smov (%p35_p1, %s33_s18), 0  ;;  %p230_p3 = pnand %p1299_p0, %p229_p2 }
   0x6   : > { %v1683_v0 = vld [vmem:[%s2001_s1] sm:$0xff] (!%p230_p3)   ;;  %s1300_s21 = sshll.u32 (!%p230_p3), %s1721_s15, 5  ;;  %v1684_v1 = vld [vmem:[%s2001_s1 + $0x8] sm:$0xff] (!%p230_p3)   ;;  %v1685_v2 = vld [vmem:[%s2001_s1 + $0x10] sm:$0xff] (!%p230_p3)  }
   0x7   : > { %233 = sbr.rel (%p230_p3) target bundleno = 288 (0x120), region = 36  ;;  %p281_p4 = scmp.lt.s32.totalorder (!%p230_p3), %s1300_s21, 63  ;;  %1595 = vmatprep.subr.bf16.mxu0 (!%p230_p3), %v1683_v0  ;;  %1643 = vmatprep.subr.bf16.mxu1 (!%p230_p3), %v1683_v0  ;;  %v1686_v3 = vld [vmem:[%s2001_s1 + $0x18] sm:$0xff] (!%p230_p3)   ;;  %v1687_v6 = vld [vmem:[%s2001_s1 + $0x20] sm:$0xff] (!%p230_p3)   ;;  %v1688_v7 = vld [vmem:[%s2001_s1 + $0x28] sm:$0xff] (!%p230_p3)  }
   0x8   : > { %1596 = vmatpush3.bf16.msra.mxu0 (!%p230_p3), %v1683_v0  ;;  %1651 = vmatpush3.bf16.msra.mxu1 (!%p230_p3), %v1683_v0  ;;  %v1689_v8 = vld [vmem:[%s2001_s1 + $0x30] sm:$0xff] (!%p230_p3)   ;;  %v1690_v9 = vld [vmem:[%s2001_s1 + $0x38] sm:$0xff] (!%p230_p3)   ;;  %v1847_v36 = vld [vmem:[%s2002_s2] ss:$0 sm:$0xff] (!%p230_p3) }
   0x9   : > { %1597 = vmatprep.subr.bf16.mxu0 (!%p230_p3), %v1684_v1  ;;  %1644 = vmatprep.subr.bf16.mxu1 (!%p230_p3), %v1684_v1 }
   0xc   : > { %1598 = vmatpush3.bf16.msra.mxu0 (!%p230_p3), %v1684_v1  ;;  %1652 = vmatpush3.bf16.msra.mxu1 (!%p230_p3), %v1684_v1 }
   0xd   : > { %1599 = vmatprep.subr.bf16.mxu0 (!%p230_p3), %v1685_v2  ;;  %1645 = vmatprep.subr.bf16.mxu1 (!%p230_p3), %v1685_v2 }
   0xe   : > { %s2010_s21 = smov (!%p281_p4, %s1300_s21), 63 }
   0xf   : > { %s1783_s26 = sshll.u32 %s2010_s21, 2 }
  0x10   : > { %s1789_s29 = scalar_lea.vmem %s2000_s0, %s1783_s26  ;;  %1600 = vmatpush3.bf16.msra.mxu0 %v1685_v2  ;;  %1653 = vmatpush3.bf16.msra.mxu1 %v1685_v2  ;;  %s1826_s19 = scalar_lea.vmem %s2003_s3, %s1783_s26 }
  0x11   : > { %v1691_v4 = vld [vmem:[%s1789_s29] sm:$0xff]   ;;  %1601 = vmatprep.subr.bf16.mxu0 %v1686_v3  ;;  %1646 = vmatprep.subr.bf16.mxu1 %v1686_v3  ;;  %v1693_v10 = vld [vmem:[%s1789_s29 + $0x8] sm:$0xff]   ;;  %v1695_v12 = vld [vmem:[%s1789_s29 + $0x10] sm:$0xff]   ;;  %s1889_s24 = scalar_lea.vmem %s2004_s4, %s1783_s26 }
  0x12   : > { %v1692_v5 = vld [vmem:[%s1789_s29 + $0x40] sm:$0xff]   ;;  %1611 = vmatprep.mubr.bf16.mxu0 %v1691_v4  ;;  %v1694_v11 = vld [vmem:[%s1789_s29 + $0x48] sm:$0xff]   ;;  %v1696_v13 = vld [vmem:[%s1789_s29 + $0x50] sm:$0xff]  }
  0x13   : > { %1627 = vmatprep.mubr.bf16.mxu1 %v1692_v5  ;;  %v1697_v14 = vld [vmem:[%s1789_s29 + $0x18] sm:$0xff]   ;;  %v1699_v16 = vld [vmem:[%s1789_s29 + $0x20] sm:$0xff]   ;;  %v1701_v18 = vld [vmem:[%s1789_s29 + $0x28] sm:$0xff]  }
  0x14   : > { %1602 = vmatpush3.bf16.msra.mxu0 %v1686_v3  ;;  %1654 = vmatpush3.bf16.msra.mxu1 %v1686_v3  ;;  %v1698_v15 = vld [vmem:[%s1789_s29 + $0x58] sm:$0xff]   ;;  %v1700_v17 = vld [vmem:[%s1789_s29 + $0x60] sm:$0xff]   ;;  %v1702_v19 = vld [vmem:[%s1789_s29 + $0x68] sm:$0xff]  }
  0x15   : > { %1603 = vmatprep.subr.bf16.mxu0 %v1687_v6  ;;  %1647 = vmatprep.subr.bf16.mxu1 %v1687_v6  ;;  %v1703_v20 = vld [vmem:[%s1789_s29 + $0x30] sm:$0xff]   ;;  %v1705_v22 = vld [vmem:[%s1789_s29 + $0x38] sm:$0xff]   ;;  %v1541_v24 = vld [vmem:[%s1826_s19 + $0x8] sm:$0xff]  }
  0x16   : > { %v1704_v21 = vld [vmem:[%s1789_s29 + $0x70] sm:$0xff]   ;;  %v1706_v23 = vld [vmem:[%s1789_s29 + $0x78] sm:$0xff]   ;;  %v1549_v25 = vld [vmem:[%s1826_s19 + $0x48] sm:$0xff]   ;;  %v1403_v32 = vunpack.c.l.bf16 %v1541_v24  ;;  %v1404_v37 = vunpack.c.h.bf16 %v1541_v24 }
  0x17   : > { %v1398_v26 = vld [vmem:[%s1826_s19] sm:$0xff]   ;;  %v1833_v28 = vld [vmem:[%s1826_s19 + $0x18] sm:$0xff]   ;;  %v1839_v30 = vld [vmem:[%s1826_s19 + $0x10] sm:$0xff]   ;;  %v1435_v33 = vunpack.c.l.bf16 %v1549_v25  ;;  %v1436_v38 = vunpack.c.h.bf16 %v1549_v25 }
  0x18   : > { %1604 = vmatpush3.bf16.msra.mxu0 %v1687_v6  ;;  %1655 = vmatpush3.bf16.msra.mxu1 %v1687_v6  ;;  %v1548_v27 = vld [vmem:[%s1826_s19 + $0x40] sm:$0xff]   ;;  %v1836_v29 = vld [vmem:[%s1826_s19 + $0x58] sm:$0xff]   ;;  %v1842_v31 = vld [vmem:[%s1826_s19 + $0x50] sm:$0xff]   ;;  %v1399_v34 = vunpack.c.l.bf16 %v1398_v26  ;;  %v1400_v39 = vunpack.c.h.bf16 %v1398_v26  ;;  %v1411_v43 = vunpack.c.l.bf16 %v1833_v28  ;;  %v1407_v45 = vunpack.c.l.bf16 %v1839_v30 }
  0x19   : > { %1605 = vmatprep.subr.bf16.mxu0 %v1688_v7  ;;  %1648 = vmatprep.subr.bf16.mxu1 %v1688_v7  ;;  %v1431_v35 = vunpack.c.l.bf16 %v1548_v27  ;;  %v1432_v40 = vunpack.c.h.bf16 %v1548_v27  ;;  %v1850_v41 = vld [vmem:[%s1826_s19 + $0x28] sm:$0xff]   ;;  %v1443_v44 = vunpack.c.l.bf16 %v1836_v29  ;;  %v1439_v46 = vunpack.c.l.bf16 %v1842_v31  ;;  %v1860_v47 = vld [vmem:[%s1826_s19 + $0x20] sm:$0xff]  }
  0x1a   : > { %v1853_v42 = vld [vmem:[%s1826_s19 + $0x68] sm:$0xff]   ;;  %v1863_v48 = vld [vmem:[%s1826_s19 + $0x60] sm:$0xff]   ;;  %v1412_v51 = vunpack.c.h.bf16 %v1833_v28  ;;  %v1444_v52 = vunpack.c.h.bf16 %v1836_v29  ;;  %v1408_v53 = vunpack.c.h.bf16 %v1839_v30  ;;  %v1440_v54 = vunpack.c.h.bf16 %v1842_v31 }
  0x1b   : > { %v1419_v59 = vunpack.c.l.bf16 %v1850_v41  ;;  %v1451_v60 = vunpack.c.l.bf16 %v1853_v42  ;;  %v1415_v1 = vunpack.c.l.bf16 %v1860_v47  ;;  %v1447_v2 = vunpack.c.l.bf16 %v1863_v48 }
  0x1c   : > { %1606 = vmatpush3.bf16.msra.mxu0 %v1688_v7  ;;  %1656 = vmatpush3.bf16.msra.mxu1 %v1688_v7 }
  0x1d   : > { %1607 = vmatprep.subr.bf16.mxu0 %v1689_v8  ;;  %1649 = vmatprep.subr.bf16.mxu1 %v1689_v8 }
  0x20   : > { %1608 = vmatpush3.bf16.msra.mxu0 %v1689_v8  ;;  %1657 = vmatpush3.bf16.msra.mxu1 %v1689_v8 }
  0x21   : > { %1609 = vmatprep.subr.bf16.mxu0 %v1690_v9  ;;  %1650 = vmatprep.subr.bf16.mxu1 %v1690_v9 }
  0x24   : > { %1610 = vmatpush3.bf16.msra.mxu0 %v1690_v9  ;;  %1658 = vmatpush3.bf16.msra.mxu1 %v1690_v9 }
  0x27   : > { %1612 = vmatmul.mubr.bf16.vlgmr.msra.gmra.mrb[0].mxu0 %v1693_v10  ;;  %1628 = vmatmul.mubr.bf16.vlgmr.msra.gmra.mrb[0].mxu1 %v1694_v11 }
  0x28   : > { %1615 = vmatprep.mubr.bf16.mxu0 %v1695_v12  ;;  %1631 = vmatprep.mubr.bf16.mxu1 %v1696_v13 }
  0x2f   : > { %1616 = vmatmul.mubr.bf16.gmra.mrb[4].mxu0 %v1697_v14  ;;  %1632 = vmatmul.mubr.bf16.gmra.mrb[4].mxu1 %v1698_v15  ;;  %v1420_v15 = vunpack.c.h.bf16 %v1850_v41 }
  0x30   : > { %1619 = vmatprep.mubr.bf16.mxu0 %v1699_v16  ;;  %1635 = vmatprep.mubr.bf16.mxu1 %v1700_v17  ;;  %v1452_v16 = vunpack.c.h.bf16 %v1853_v42 }
  0x37   : > { %1620 = vmatmul.mubr.bf16.gmra.mrb[8].mxu0 %v1701_v18  ;;  %1636 = vmatmul.mubr.bf16.gmra.mrb[8].mxu1 %v1702_v19  ;;  %v1416_v19 = vunpack.c.h.bf16 %v1860_v47 }
  0x38   : > { %1623 = vmatprep.mubr.bf16.mxu0 %v1703_v20  ;;  %1639 = vmatprep.mubr.bf16.mxu1 %v1704_v21  ;;  %v1448_v20 = vunpack.c.h.bf16 %v1863_v48 }
  0x3f   : > { %1624 = vmatmul.mubr.bf16.gmra.mrb[12].mxu0 %v1705_v22  ;;  %1640 = vmatmul.mubr.bf16.gmra.mrb[12].mxu1 %v1706_v23 }
  0xfa   : > { %v1613_v49 = vpop.f32.mrb[0].mxu0  ;;  %v1629_v50 = vpop.f32.mrb[0].mxu1 }
  0xfb   : > { %v849_v55 = vadd.f32 %v1613_v49, %v1847_v36  ;;  %v865_v56 = vadd.f32 %v1629_v50, %v1847_v36  ;;  %v614_v57 = vpop.f32.mrb[1].mxu0  ;;  %v678_v58 = vpop.f32.mrb[1].mxu1 }
  0xfc   : > { %v847_v61 = vadd.f32 %v1847_v36, %v614_v57  ;;  %v863_v62 = vadd.f32 %v1847_v36, %v678_v58  ;;  %v1614_v63 = vpop.f32.mrb[2].mxu0  ;;  %v1630_v0 = vpop.f32.mrb[2].mxu1 }
  0xfd   : > { %v945_v3 = vadd.f32 %v1403_v32, %v849_v55  ;;  %v961_v4 = vadd.f32 %v1435_v33, %v865_v56  ;;  %v850_v5 = vadd.f32 %v1614_v63, %v1847_v36  ;;  %v866_v6 = vadd.f32 %v1630_v0, %v1847_v36  ;;  %v617_v7 = vpop.f32.mrb[3].mxu0  ;;  %v681_v8 = vpop.f32.mrb[3].mxu1  ;;  %v1899_v63 = vld [vmem:[%s1826_s19 + $0x78] sm:$0xff]  }
  0xfe   : > { %v943_v9 = vadd.f32 %v1399_v34, %v847_v61  ;;  %v959_v10 = vadd.f32 %v1431_v35, %v863_v62  ;;  %v848_v11 = vadd.f32 %v1847_v36, %v617_v7  ;;  %v864_v12 = vadd.f32 %v1847_v36, %v681_v8  ;;  %v1896_v62 = vld [vmem:[%s1826_s19 + $0x38] sm:$0xff]   ;;  %v1910_v8 = vld [vmem:[%s1826_s19 + $0x30] sm:$0xff]  }
  0xff   : > { %v946_v13 = vadd.f32 %v1404_v37, %v850_v5  ;;  %v962_v14 = vadd.f32 %v1436_v38, %v866_v6  ;;  %v977_v21 = vmax.f32 %v945_v3, 0.0  ;;  %v993_v22 = vmax.f32 %v961_v4, 0.0 }
 0x100   : > { %v944_v17 = vadd.f32 %v1400_v39, %v848_v11  ;;  %v960_v18 = vadd.f32 %v1432_v40, %v864_v12  ;;  %v975_v25 = vmax.f32 %v943_v9, 0.0  ;;  %v991_v26 = vmax.f32 %v959_v10, 0.0  ;;  %v1913_v9 = vld [vmem:[%s1826_s19 + $0x70] sm:$0xff]  }
 0x101   : > { %v978_v23 = vmax.f32 %v946_v13, 0.0  ;;  %v994_v24 = vmax.f32 %v962_v14, 0.0  ;;  %v1427_v14 = vunpack.c.l.bf16 %v1896_v62 }
 0x102   : > { %v976_v27 = vmax.f32 %v944_v17, 0.0  ;;  %v992_v32 = vmax.f32 %v960_v18, 0.0  ;;  %v1617_v33 = vpop.f32.mrb[4].mxu0  ;;  %v1633_v34 = vpop.f32.mrb[4].mxu1  ;;  %v1459_v17 = vunpack.c.l.bf16 %v1899_v63  ;;  %v1423_v18 = vunpack.c.l.bf16 %v1910_v8 }
 0x103   : > { %v1469_v35 = vpack.c.bf16 %v978_v23, %v977_v21  ;;  %v1509_v37 = vpack.c.bf16 %v994_v24, %v993_v22  ;;  %v853_v38 = vadd.f32 %v1617_v33, %v1847_v36  ;;  %v869_v39 = vadd.f32 %v1633_v34, %v1847_v36  ;;  %v630_v40 = vpop.f32.mrb[5].mxu0  ;;  %v694_v49 = vpop.f32.mrb[5].mxu1 }
 0x104   : > { %v1464_v50 = vpack.c.bf16 %v976_v27, %v975_v25  ;;  %v1504_v55 = vpack.c.bf16 %v992_v32, %v991_v26  ;;  %v851_v56 = vadd.f32 %v1847_v36, %v630_v40  ;;  %v867_v57 = vadd.f32 %v1847_v36, %v694_v49  ;;  %v1618_v58 = vpop.f32.mrb[6].mxu0  ;;  %v1634_v61 = vpop.f32.mrb[6].mxu1 }
 0x105   : > { %1556 = vst [vmem:[%s1889_s24 + $0x8] sm:$0xff] %v1469_v35   ;;  %1564 = vst [vmem:[%s1889_s24 + $0x48] sm:$0xff] %v1509_v37   ;;  %v949_v0 = vadd.f32 %v1411_v43, %v853_v38  ;;  %v965_v3 = vadd.f32 %v1443_v44, %v869_v39  ;;  %v854_v4 = vadd.f32 %v1618_v58, %v1847_v36  ;;  %v633_v6 = vpop.f32.mrb[7].mxu0  ;;  %v697_v7 = vpop.f32.mrb[7].mxu1  ;;  %v1455_v21 = vunpack.c.l.bf16 %v1913_v9 }
 0x106   : > { %v870_v5 = vadd.f32 %v1634_v61, %v1847_v36  ;;  %1465 = vst [vmem:[%s1889_s24] sm:$0xff] %v1464_v50   ;;  %1563 = vst [vmem:[%s1889_s24 + $0x40] sm:$0xff] %v1504_v55   ;;  %v947_v10 = vadd.f32 %v1407_v45, %v851_v56  ;;  %v963_v43 = vadd.f32 %v1439_v46, %v867_v57 }
 0x107   : > { %v852_v44 = vadd.f32 %v1847_v36, %v633_v6  ;;  %v868_v11 = vadd.f32 %v1847_v36, %v697_v7  ;;  %v950_v12 = vadd.f32 %v1412_v51, %v854_v4  ;;  %v981_v22 = vmax.f32 %v949_v0, 0.0 }
 0x108   : > { %v966_v13 = vadd.f32 %v1444_v52, %v870_v5  ;;  %v997_v28 = vmax.f32 %v965_v3, 0.0  ;;  %v979_v29 = vmax.f32 %v947_v10, 0.0  ;;  %v995_v52 = vmax.f32 %v963_v43, 0.0 }
 0x109   : > { %v948_v45 = vadd.f32 %v1408_v53, %v852_v44  ;;  %v964_v46 = vadd.f32 %v1440_v54, %v868_v11  ;;  %v982_v51 = vmax.f32 %v950_v12, 0.0  ;;  %v1428_v5 = vunpack.c.h.bf16 %v1896_v62 }
 0x10a   : > { %v998_v23 = vmax.f32 %v966_v13, 0.0  ;;  %v1621_v26 = vpop.f32.mrb[8].mxu0  ;;  %v1637_v30 = vpop.f32.mrb[8].mxu1  ;;  %v1460_v6 = vunpack.c.h.bf16 %v1899_v63  ;;  %v1424_v7 = vunpack.c.h.bf16 %v1910_v8  ;;  %v1456_v10 = vunpack.c.h.bf16 %v1913_v9 }
 0x10b   : > { %v980_v24 = vmax.f32 %v948_v45, 0.0  ;;  %v996_v25 = vmax.f32 %v964_v46, 0.0  ;;  %v1479_v53 = vpack.c.bf16 %v982_v51, %v981_v22  ;;  %v857_v31 = vadd.f32 %v1621_v26, %v1847_v36  ;;  %v646_v32 = vpop.f32.mrb[9].mxu0  ;;  %v710_v33 = vpop.f32.mrb[9].mxu1 }
 0x10c   : > { %v1519_v27 = vpack.c.bf16 %v998_v23, %v997_v28  ;;  %v873_v54 = vadd.f32 %v1637_v30, %v1847_v36  ;;  %v855_v37 = vadd.f32 %v1847_v36, %v646_v32  ;;  %v871_v38 = vadd.f32 %v1847_v36, %v710_v33  ;;  %v1622_v39 = vpop.f32.mrb[10].mxu0  ;;  %v1638_v40 = vpop.f32.mrb[10].mxu1 }
 0x10d   : > { %v1474_v34 = vpack.c.bf16 %v980_v24, %v979_v29  ;;  %v1514_v35 = vpack.c.bf16 %v996_v25, %v995_v52  ;;  %1558 = vst [vmem:[%s1889_s24 + $0x18] sm:$0xff] %v1479_v53   ;;  %v953_v49 = vadd.f32 %v1419_v59, %v857_v31  ;;  %v858_v55 = vadd.f32 %v1622_v39, %v1847_v36  ;;  %v649_v57 = vpop.f32.mrb[11].mxu0  ;;  %v713_v58 = vpop.f32.mrb[11].mxu1 }
 0x10e   : > { %1566 = vst [vmem:[%s1889_s24 + $0x58] sm:$0xff] %v1519_v27   ;;  %v969_v50 = vadd.f32 %v1451_v60, %v873_v54  ;;  %v874_v56 = vadd.f32 %v1638_v40, %v1847_v36  ;;  %v951_v61 = vadd.f32 %v1415_v1, %v855_v37  ;;  %v967_v0 = vadd.f32 %v1447_v2, %v871_v38 }
 0x10f   : > { %1557 = vst [vmem:[%s1889_s24 + $0x10] sm:$0xff] %v1474_v34   ;;  %1565 = vst [vmem:[%s1889_s24 + $0x50] sm:$0xff] %v1514_v35   ;;  %v856_v3 = vadd.f32 %v1847_v36, %v649_v57  ;;  %v872_v59 = vadd.f32 %v1847_v36, %v713_v58  ;;  %v954_v60 = vadd.f32 %v1420_v15, %v858_v55  ;;  %v985_v43 = vmax.f32 %v953_v49, 0.0 }
 0x110   : > { %v970_v4 = vadd.f32 %v1452_v16, %v874_v56  ;;  %v1001_v41 = vmax.f32 %v969_v50, 0.0  ;;  %v983_v42 = vmax.f32 %v951_v61, 0.0  ;;  %v999_v16 = vmax.f32 %v967_v0, 0.0 }
 0x111   : > { %v952_v1 = vadd.f32 %v1416_v19, %v856_v3  ;;  %v968_v2 = vadd.f32 %v1448_v20, %v872_v59  ;;  %v986_v15 = vmax.f32 %v954_v60, 0.0 }
 0x112   : > { %v1002_v44 = vmax.f32 %v970_v4, 0.0  ;;  %v1625_v13 = vpop.f32.mrb[12].mxu0  ;;  %v1641_v47 = vpop.f32.mrb[12].mxu1 }
 0x113   : > { %v984_v11 = vmax.f32 %v952_v1, 0.0  ;;  %v1000_v12 = vmax.f32 %v968_v2, 0.0  ;;  %v1489_v19 = vpack.c.bf16 %v986_v15, %v985_v43  ;;  %v861_v48 = vadd.f32 %v1625_v13, %v1847_v36  ;;  %v662_v46 = vpop.f32.mrb[13].mxu0  ;;  %v726_v22 = vpop.f32.mrb[13].mxu1 }
 0x114   : > { %v1529_v45 = vpack.c.bf16 %v1002_v44, %v1001_v41  ;;  %v877_v20 = vadd.f32 %v1641_v47, %v1847_v36  ;;  %v859_v23 = vadd.f32 %v1847_v36, %v662_v46  ;;  %v875_v29 = vadd.f32 %v1847_v36, %v726_v22  ;;  %v1626_v52 = vpop.f32.mrb[14].mxu0  ;;  %v1642_v24 = vpop.f32.mrb[14].mxu1 }
 0x115   : > { %v1484_v28 = vpack.c.bf16 %v984_v11, %v983_v42  ;;  %v1524_v51 = vpack.c.bf16 %v1000_v12, %v999_v16  ;;  %1560 = vst [vmem:[%s1889_s24 + $0x28] sm:$0xff] %v1489_v19   ;;  %v957_v25 = vadd.f32 %v1427_v14, %v861_v48  ;;  %v862_v30 = vadd.f32 %v1626_v52, %v1847_v36  ;;  %v665_v27 = vpop.f32.mrb[15].mxu0  ;;  %v729_v31 = vpop.f32.mrb[15].mxu1 }
 0x116   : > { %1568 = vst [vmem:[%s1889_s24 + $0x68] sm:$0xff] %v1529_v45   ;;  %v973_v26 = vadd.f32 %v1459_v17, %v877_v20  ;;  %v878_v53 = vadd.f32 %v1642_v24, %v1847_v36  ;;  %v955_v54 = vadd.f32 %v1423_v18, %v859_v23  ;;  %v971_v32 = vadd.f32 %v1455_v21, %v875_v29 }
 0x117   : > { %1559 = vst [vmem:[%s1889_s24 + $0x20] sm:$0xff] %v1484_v28   ;;  %1567 = vst [vmem:[%s1889_s24 + $0x60] sm:$0xff] %v1524_v51   ;;  %v860_v62 = vadd.f32 %v1847_v36, %v665_v27  ;;  %v876_v14 = vadd.f32 %v1847_v36, %v729_v31  ;;  %v958_v63 = vadd.f32 %v1428_v5, %v862_v30  ;;  %v989_v35 = vmax.f32 %v957_v25, 0.0 }
 0x118   : > { %v974_v17 = vadd.f32 %v1460_v6, %v878_v53  ;;  %v1005_v37 = vmax.f32 %v973_v26, 0.0  ;;  %v987_v18 = vmax.f32 %v955_v54, 0.0  ;;  %v1003_v39 = vmax.f32 %v971_v32, 0.0 }
 0x119   : > { %v956_v33 = vadd.f32 %v1424_v7, %v860_v62  ;;  %v972_v34 = vadd.f32 %v1456_v10, %v876_v14  ;;  %v990_v38 = vmax.f32 %v958_v63, 0.0 }
 0x11a   : > { %v1006_v8 = vmax.f32 %v974_v17, 0.0 }
 0x11b   : > { %v988_v9 = vmax.f32 %v956_v33, 0.0  ;;  %v1004_v21 = vmax.f32 %v972_v34, 0.0  ;;  %v1499_v40 = vpack.c.bf16 %v990_v38, %v989_v35 }
 0x11c   : > { %v1539_v49 = vpack.c.bf16 %v1006_v8, %v1005_v37 }
 0x11d   : > { %v1494_v50 = vpack.c.bf16 %v988_v9, %v987_v18  ;;  %v1534_v36 = vpack.c.bf16 %v1004_v21, %v1003_v39  ;;  %1562 = vst [vmem:[%s1889_s24 + $0x38] sm:$0xff] %v1499_v40  }
 0x11e   : > { %1570 = vst [vmem:[%s1889_s24 + $0x78] sm:$0xff] %v1539_v49  }
 0x11f   : > { %1561 = vst [vmem:[%s1889_s24 + $0x30] sm:$0xff] %v1494_v50   ;;  %1569 = vst [vmem:[%s1889_s24 + $0x70] sm:$0xff] %v1534_v36  }
 0x120 PF: > { %s14_s17 = sadd.s32 1, %s1729_s17   ;;  %s2005_s15 = smov %s1725_s16 }
 0x121   : > { %p11_p5 = scmp.ge.s32.totalorder %s14_s17, 4   ;;  %s2006_s16 = smov %s2008_s18 }
 0x123   :  { %13 = sbr.rel (!%p11_p5) target bundleno = 2 (0x2), region = 83 }

// kernel: resnet50_bottom_forward.57
= control target key start
LH: loop header
LB: loop body
LE: loop exit
PB: predicated region body
PF: predicated region fallthrough
CT: control target
= control target key end

     0   :  { %s1467_s12 = smov 0   ;;  %s1469_s13 = smov 0   ;;  %s1604_s0 = inlined_call_operand.vmem [shape: bf16[512,128], index: 0, kind: input, shape index: {}]   ;;  %s1605_s1 = inlined_call_operand.vmem [shape: bf16[128,128], index: 1, kind: input, shape index: {}]   ;;  %s1606_s2 = inlined_call_operand.vmem [shape: f32[1,128], index: 2, kind: input, shape index: {}]   ;;  %s1607_s3 = inlined_call_operand.vmem [shape: bf16[512,128], index: 3, kind: output, shape index: {}]  }
   0x1   :  { %s1471_s14 = smov 0  }
   0x2 LB: > { %s32_s15 = sadd.s32 1, %s1441_s13  ;;  %p1096_p0 = scmp.ge.s32.totalorder %s1445_s14, 1  ;;  %s1445_s14 = sphi %s1471_s14, %s13_s14   ;;  %s1441_s13 = sphi %s1469_s13, %s1609_s13   ;;  %s1437_s12 = sphi %s1467_s12, %s1608_s12  }
   0x3   : > { %p34_p1 = scmp.ge.s32.totalorder %s32_s15, 2  ;;  %p188_p2 = scmp.lt.s32.totalorder %s1445_s14, 3 }
   0x5   : > { %s1611_s15 = smov (%p34_p1, %s32_s15), 0  ;;  %p189_p3 = pnand %p1096_p0, %p188_p2 }
   0x6   : > { %v1399_v0 = vld [vmem:[%s1605_s1] sm:$0xff] (!%p189_p3)   ;;  %s1097_s18 = sshll.u32 (!%p189_p3), %s1437_s12, 5  ;;  %v1400_v1 = vld [vmem:[%s1605_s1 + $0x8] sm:$0xff] (!%p189_p3)   ;;  %v1401_v2 = vld [vmem:[%s1605_s1 + $0x10] sm:$0xff] (!%p189_p3)  }
   0x7   : > { %192 = sbr.rel (%p189_p3) target bundleno = 283 (0x11b), region = 32  ;;  %p230_p4 = scmp.lt.s32.totalorder (!%p189_p3), %s1097_s18, 63  ;;  %1311 = vmatprep.subr.bf16.mxu0 (!%p189_p3), %v1399_v0  ;;  %1359 = vmatprep.subr.bf16.mxu1 (!%p189_p3), %v1399_v0  ;;  %v1402_v3 = vld [vmem:[%s1605_s1 + $0x18] sm:$0xff] (!%p189_p3)   ;;  %v1403_v6 = vld [vmem:[%s1605_s1 + $0x20] sm:$0xff] (!%p189_p3)   ;;  %v1404_v7 = vld [vmem:[%s1605_s1 + $0x28] sm:$0xff] (!%p189_p3)  }
   0x8   : > { %1312 = vmatpush3.bf16.msra.mxu0 (!%p189_p3), %v1399_v0  ;;  %1367 = vmatpush3.bf16.msra.mxu1 (!%p189_p3), %v1399_v0  ;;  %v1405_v8 = vld [vmem:[%s1605_s1 + $0x30] sm:$0xff] (!%p189_p3)   ;;  %v1406_v9 = vld [vmem:[%s1605_s1 + $0x38] sm:$0xff] (!%p189_p3)   ;;  %v1538_v25 = vld [vmem:[%s1606_s2] ss:$0 sm:$0xff] (!%p189_p3) }
   0x9   : > { %1313 = vmatprep.subr.bf16.mxu0 (!%p189_p3), %v1400_v1  ;;  %1360 = vmatprep.subr.bf16.mxu1 (!%p189_p3), %v1400_v1 }
   0xc   : > { %1314 = vmatpush3.bf16.msra.mxu0 (!%p189_p3), %v1400_v1  ;;  %1368 = vmatpush3.bf16.msra.mxu1 (!%p189_p3), %v1400_v1 }
   0xd   : > { %1315 = vmatprep.subr.bf16.mxu0 (!%p189_p3), %v1401_v2  ;;  %1361 = vmatprep.subr.bf16.mxu1 (!%p189_p3), %v1401_v2 }
   0xe   : > { %s1613_s18 = smov (!%p230_p4, %s1097_s18), 63 }
   0xf   : > { %s1098_s23 = sshll.u32 %s1613_s18, 2 }
  0x10   : > { %s1502_s26 = scalar_lea.vmem %s1604_s0, %s1098_s23  ;;  %1316 = vmatpush3.bf16.msra.mxu0 %v1401_v2  ;;  %1369 = vmatpush3.bf16.msra.mxu1 %v1401_v2  ;;  %s1551_s17 = scalar_lea.vmem %s1607_s3, %s1098_s23 }
  0x11   : > { %v1407_v4 = vld [vmem:[%s1502_s26] sm:$0xff]   ;;  %1317 = vmatprep.subr.bf16.mxu0 %v1402_v3  ;;  %1362 = vmatprep.subr.bf16.mxu1 %v1402_v3  ;;  %v1409_v10 = vld [vmem:[%s1502_s26 + $0x8] sm:$0xff]   ;;  %v1411_v12 = vld [vmem:[%s1502_s26 + $0x10] sm:$0xff]  }
  0x12   : > { %v1408_v5 = vld [vmem:[%s1502_s26 + $0x40] sm:$0xff]   ;;  %1327 = vmatprep.mubr.bf16.mxu0 %v1407_v4  ;;  %v1410_v11 = vld [vmem:[%s1502_s26 + $0x48] sm:$0xff]   ;;  %v1412_v13 = vld [vmem:[%s1502_s26 + $0x50] sm:$0xff]  }
  0x13   : > { %1343 = vmatprep.mubr.bf16.mxu1 %v1408_v5  ;;  %v1413_v14 = vld [vmem:[%s1502_s26 + $0x18] sm:$0xff]   ;;  %v1415_v16 = vld [vmem:[%s1502_s26 + $0x20] sm:$0xff]   ;;  %v1417_v18 = vld [vmem:[%s1502_s26 + $0x28] sm:$0xff]  }
  0x14   : > { %1318 = vmatpush3.bf16.msra.mxu0 %v1402_v3  ;;  %1370 = vmatpush3.bf16.msra.mxu1 %v1402_v3  ;;  %v1414_v15 = vld [vmem:[%s1502_s26 + $0x58] sm:$0xff]   ;;  %v1416_v17 = vld [vmem:[%s1502_s26 + $0x60] sm:$0xff]   ;;  %v1418_v19 = vld [vmem:[%s1502_s26 + $0x68] sm:$0xff]  }
  0x15   : > { %1319 = vmatprep.subr.bf16.mxu0 %v1403_v6  ;;  %1363 = vmatprep.subr.bf16.mxu1 %v1403_v6  ;;  %v1419_v20 = vld [vmem:[%s1502_s26 + $0x30] sm:$0xff]   ;;  %v1421_v22 = vld [vmem:[%s1502_s26 + $0x38] sm:$0xff]  }
  0x16   : > { %v1420_v21 = vld [vmem:[%s1502_s26 + $0x70] sm:$0xff]   ;;  %v1422_v23 = vld [vmem:[%s1502_s26 + $0x78] sm:$0xff]  }
  0x18   : > { %1320 = vmatpush3.bf16.msra.mxu0 %v1403_v6  ;;  %1371 = vmatpush3.bf16.msra.mxu1 %v1403_v6 }
  0x19   : > { %1321 = vmatprep.subr.bf16.mxu0 %v1404_v7  ;;  %1364 = vmatprep.subr.bf16.mxu1 %v1404_v7 }
  0x1c   : > { %1322 = vmatpush3.bf16.msra.mxu0 %v1404_v7  ;;  %1372 = vmatpush3.bf16.msra.mxu1 %v1404_v7 }
  0x1d   : > { %1323 = vmatprep.subr.bf16.mxu0 %v1405_v8  ;;  %1365 = vmatprep.subr.bf16.mxu1 %v1405_v8 }
  0x20   : > { %1324 = vmatpush3.bf16.msra.mxu0 %v1405_v8  ;;  %1373 = vmatpush3.bf16.msra.mxu1 %v1405_v8 }
  0x21   : > { %1325 = vmatprep.subr.bf16.mxu0 %v1406_v9  ;;  %1366 = vmatprep.subr.bf16.mxu1 %v1406_v9 }
  0x24   : > { %1326 = vmatpush3.bf16.msra.mxu0 %v1406_v9  ;;  %1374 = vmatpush3.bf16.msra.mxu1 %v1406_v9 }
  0x27   : > { %1328 = vmatmul.mubr.bf16.vlgmr.msra.gmra.mrb[0].mxu0 %v1409_v10  ;;  %1344 = vmatmul.mubr.bf16.vlgmr.msra.gmra.mrb[0].mxu1 %v1410_v11 }
  0x28   : > { %1331 = vmatprep.mubr.bf16.mxu0 %v1411_v12  ;;  %1347 = vmatprep.mubr.bf16.mxu1 %v1412_v13 }
  0x2f   : > { %1332 = vmatmul.mubr.bf16.gmra.mrb[4].mxu0 %v1413_v14  ;;  %1348 = vmatmul.mubr.bf16.gmra.mrb[4].mxu1 %v1414_v15 }
  0x30   : > { %1335 = vmatprep.mubr.bf16.mxu0 %v1415_v16  ;;  %1351 = vmatprep.mubr.bf16.mxu1 %v1416_v17 }
  0x37   : > { %1336 = vmatmul.mubr.bf16.gmra.mrb[8].mxu0 %v1417_v18  ;;  %1352 = vmatmul.mubr.bf16.gmra.mrb[8].mxu1 %v1418_v19 }
  0x38   : > { %1339 = vmatprep.mubr.bf16.mxu0 %v1419_v20  ;;  %1355 = vmatprep.mubr.bf16.mxu1 %v1420_v21 }
  0x3f   : > { %1340 = vmatmul.mubr.bf16.gmra.mrb[12].mxu0 %v1421_v22  ;;  %1356 = vmatmul.mubr.bf16.gmra.mrb[12].mxu1 %v1422_v23 }
  0xfa   : > { %v1329_v24 = vpop.f32.mrb[0].mxu0  ;;  %v1345_v26 = vpop.f32.mrb[0].mxu1 }
  0xfb   : > { %v554_v27 = vpop.f32.mrb[1].mxu0  ;;  %v618_v28 = vpop.f32.mrb[1].mxu1  ;;  %v789_v31 = vadd.f32 %v1329_v24, %v1538_v25  ;;  %v805_v32 = vadd.f32 %v1345_v26, %v1538_v25 }
  0xfc   : > { %v1330_v29 = vpop.f32.mrb[2].mxu0  ;;  %v1346_v30 = vpop.f32.mrb[2].mxu1  ;;  %v787_v37 = vadd.f32 %v1538_v25, %v554_v27  ;;  %v803_v38 = vadd.f32 %v1538_v25, %v618_v28 }
  0xfd   : > { %v790_v33 = vadd.f32 %v1330_v29, %v1538_v25  ;;  %v806_v34 = vadd.f32 %v1346_v30, %v1538_v25  ;;  %v557_v35 = vpop.f32.mrb[3].mxu0  ;;  %v621_v36 = vpop.f32.mrb[3].mxu1 }
  0xfe   : > { %v788_v39 = vadd.f32 %v1538_v25, %v557_v35  ;;  %v804_v40 = vadd.f32 %v1538_v25, %v621_v36 }
  0xff   : > { %v1200_v41 = vpack.c.bf16 %v790_v33, %v789_v31  ;;  %v1240_v42 = vpack.c.bf16 %v806_v34, %v805_v32 }
 0x100   : > { %v1195_v43 = vpack.c.bf16 %v788_v39, %v787_v37  ;;  %v1235_v44 = vpack.c.bf16 %v804_v40, %v803_v38 }
 0x101   : > { %1272 = vst [vmem:[%s1551_s17 + $0x8] sm:$0xff] %v1200_v41   ;;  %1280 = vst [vmem:[%s1551_s17 + $0x48] sm:$0xff] %v1240_v42  }
 0x102   : > { %1196 = vst [vmem:[%s1551_s17] sm:$0xff] %v1195_v43   ;;  %1279 = vst [vmem:[%s1551_s17 + $0x40] sm:$0xff] %v1235_v44   ;;  %v1333_v45 = vpop.f32.mrb[4].mxu0  ;;  %v1349_v46 = vpop.f32.mrb[4].mxu1 }
 0x103   : > { %v570_v47 = vpop.f32.mrb[5].mxu0  ;;  %v634_v48 = vpop.f32.mrb[5].mxu1  ;;  %v793_v51 = vadd.f32 %v1333_v45, %v1538_v25  ;;  %v809_v52 = vadd.f32 %v1349_v46, %v1538_v25 }
 0x104   : > { %v1334_v49 = vpop.f32.mrb[6].mxu0  ;;  %v1350_v50 = vpop.f32.mrb[6].mxu1  ;;  %v791_v57 = vadd.f32 %v1538_v25, %v570_v47  ;;  %v807_v58 = vadd.f32 %v1538_v25, %v634_v48 }
 0x105   : > { %v794_v53 = vadd.f32 %v1334_v49, %v1538_v25  ;;  %v810_v54 = vadd.f32 %v1350_v50, %v1538_v25  ;;  %v573_v55 = vpop.f32.mrb[7].mxu0  ;;  %v637_v56 = vpop.f32.mrb[7].mxu1 }
 0x106   : > { %v792_v59 = vadd.f32 %v1538_v25, %v573_v55  ;;  %v808_v60 = vadd.f32 %v1538_v25, %v637_v56 }
 0x107   : > { %v1210_v61 = vpack.c.bf16 %v794_v53, %v793_v51  ;;  %v1250_v62 = vpack.c.bf16 %v810_v54, %v809_v52 }
 0x108   : > { %v1205_v63 = vpack.c.bf16 %v792_v59, %v791_v57  ;;  %v1245_v0 = vpack.c.bf16 %v808_v60, %v807_v58 }
 0x109   : > { %1274 = vst [vmem:[%s1551_s17 + $0x18] sm:$0xff] %v1210_v61   ;;  %1282 = vst [vmem:[%s1551_s17 + $0x58] sm:$0xff] %v1250_v62  }
 0x10a   : > { %1273 = vst [vmem:[%s1551_s17 + $0x10] sm:$0xff] %v1205_v63   ;;  %1281 = vst [vmem:[%s1551_s17 + $0x50] sm:$0xff] %v1245_v0   ;;  %v1337_v1 = vpop.f32.mrb[8].mxu0  ;;  %v1353_v2 = vpop.f32.mrb[8].mxu1 }
 0x10b   : > { %v586_v3 = vpop.f32.mrb[9].mxu0  ;;  %v650_v4 = vpop.f32.mrb[9].mxu1  ;;  %v797_v7 = vadd.f32 %v1337_v1, %v1538_v25  ;;  %v813_v8 = vadd.f32 %v1353_v2, %v1538_v25 }
 0x10c   : > { %v1338_v5 = vpop.f32.mrb[10].mxu0  ;;  %v1354_v6 = vpop.f32.mrb[10].mxu1  ;;  %v795_v13 = vadd.f32 %v1538_v25, %v586_v3  ;;  %v811_v14 = vadd.f32 %v1538_v25, %v650_v4 }
 0x10d   : > { %v798_v9 = vadd.f32 %v1338_v5, %v1538_v25  ;;  %v814_v10 = vadd.f32 %v1354_v6, %v1538_v25  ;;  %v589_v11 = vpop.f32.mrb[11].mxu0  ;;  %v653_v12 = vpop.f32.mrb[11].mxu1 }
 0x10e   : > { %v796_v15 = vadd.f32 %v1538_v25, %v589_v11  ;;  %v812_v16 = vadd.f32 %v1538_v25, %v653_v12 }
 0x10f   : > { %v1220_v17 = vpack.c.bf16 %v798_v9, %v797_v7  ;;  %v1260_v18 = vpack.c.bf16 %v814_v10, %v813_v8 }
 0x110   : > { %v1215_v19 = vpack.c.bf16 %v796_v15, %v795_v13  ;;  %v1255_v20 = vpack.c.bf16 %v812_v16, %v811_v14 }
 0x111   : > { %1276 = vst [vmem:[%s1551_s17 + $0x28] sm:$0xff] %v1220_v17   ;;  %1284 = vst [vmem:[%s1551_s17 + $0x68] sm:$0xff] %v1260_v18  }
 0x112   : > { %1275 = vst [vmem:[%s1551_s17 + $0x20] sm:$0xff] %v1215_v19   ;;  %1283 = vst [vmem:[%s1551_s17 + $0x60] sm:$0xff] %v1255_v20   ;;  %v1341_v21 = vpop.f32.mrb[12].mxu0  ;;  %v1357_v22 = vpop.f32.mrb[12].mxu1 }
 0x113   : > { %v602_v23 = vpop.f32.mrb[13].mxu0  ;;  %v666_v24 = vpop.f32.mrb[13].mxu1  ;;  %v801_v28 = vadd.f32 %v1341_v21, %v1538_v25  ;;  %v817_v29 = vadd.f32 %v1357_v22, %v1538_v25 }
 0x114   : > { %v1342_v26 = vpop.f32.mrb[14].mxu0  ;;  %v1358_v27 = vpop.f32.mrb[14].mxu1  ;;  %v799_v34 = vadd.f32 %v1538_v25, %v602_v23  ;;  %v815_v35 = vadd.f32 %v1538_v25, %v666_v24 }
 0x115   : > { %v802_v30 = vadd.f32 %v1342_v26, %v1538_v25  ;;  %v818_v31 = vadd.f32 %v1358_v27, %v1538_v25  ;;  %v605_v32 = vpop.f32.mrb[15].mxu0  ;;  %v669_v33 = vpop.f32.mrb[15].mxu1 }
 0x116   : > { %v800_v36 = vadd.f32 %v1538_v25, %v605_v32  ;;  %v816_v37 = vadd.f32 %v1538_v25, %v669_v33 }
 0x117   : > { %v1230_v38 = vpack.c.bf16 %v802_v30, %v801_v28  ;;  %v1270_v39 = vpack.c.bf16 %v818_v31, %v817_v29 }
 0x118   : > { %v1225_v40 = vpack.c.bf16 %v800_v36, %v799_v34  ;;  %v1265_v41 = vpack.c.bf16 %v816_v37, %v815_v35 }
 0x119   : > { %1278 = vst [vmem:[%s1551_s17 + $0x38] sm:$0xff] %v1230_v38   ;;  %1286 = vst [vmem:[%s1551_s17 + $0x78] sm:$0xff] %v1270_v39  }
 0x11a   : > { %1277 = vst [vmem:[%s1551_s17 + $0x30] sm:$0xff] %v1225_v40   ;;  %1285 = vst [vmem:[%s1551_s17 + $0x70] sm:$0xff] %v1265_v41  }
 0x11b PF: > { %s13_s14 = sadd.s32 1, %s1445_s14   ;;  %s1608_s12 = smov %s1441_s13 }
 0x11c   : > { %p10_p5 = scmp.ge.s32.totalorder %s13_s14, 4   ;;  %s1609_s13 = smov %s1611_s15 }
 0x11e   :  { %12 = sbr.rel (!%p10_p5) target bundleno = 2 (0x2), region = 76 }

// kernel: resnet50_bottom_forward.67
= control target key start
LH: loop header
LB: loop body
LE: loop exit
PB: predicated region body
PF: predicated region fallthrough
CT: control target
= control target key end

     0   :  { %s831_s12 = smov 0   ;;  %s833_s13 = smov 0   ;;  %s904_s0 = inlined_call_operand.vmem [shape: bf16[128,128], index: 0, kind: input, shape index: {}]   ;;  %s905_s1 = inlined_call_operand.vmem [shape: bf16[128,128], index: 1, kind: input, shape index: {}]   ;;  %s906_s2 = inlined_call_operand.vmem [shape: f32[1,128], index: 2, kind: input, shape index: {}]   ;;  %s907_s3 = inlined_call_operand.vmem [shape: bf16[128,128], index: 3, kind: output, shape index: {}]  }
   0x1   :  { %s835_s14 = smov 0  }
   0x2 LB: > { %s32_s15 = sadd.s32 1, %s805_s13  ;;  %p640_p0 = scmp.ge.s32.totalorder %s809_s14, 1  ;;  %s809_s14 = sphi %s835_s14, %s13_s14   ;;  %s805_s13 = sphi %s833_s13, %s909_s13   ;;  %s801_s12 = sphi %s831_s12, %s908_s12  }
   0x3   : > { %p34_p1 = scmp.ge.s32.totalorder %s32_s15, 2  ;;  %p188_p2 = scmp.lt.s32.totalorder %s809_s14, 3 }
   0x5   : > { %s911_s15 = smov (%p34_p1, %s32_s15), 0  ;;  %p189_p3 = pnand %p640_p0, %p188_p2 }
   0x6   : > { %v775_v0 = vld [vmem:[%s905_s1] sm:$0xff] (!%p189_p3)   ;;  %s641_s18 = sshll.u32 (!%p189_p3), %s801_s12, 3  ;;  %v776_v1 = vld [vmem:[%s905_s1 + $0x8] sm:$0xff] (!%p189_p3)   ;;  %v777_v2 = vld [vmem:[%s905_s1 + $0x10] sm:$0xff] (!%p189_p3)  }
   0x7   : > { %192 = sbr.rel (%p189_p3) target bundleno = 259 (0x103), region = 32  ;;  %p230_p4 = scmp.lt.s32.totalorder (!%p189_p3), %s641_s18, 15  ;;  %711 = vmatprep.subr.bf16.mxu0 (!%p189_p3), %v775_v0  ;;  %735 = vmatprep.subr.bf16.mxu1 (!%p189_p3), %v775_v0  ;;  %v778_v3 = vld [vmem:[%s905_s1 + $0x18] sm:$0xff] (!%p189_p3)   ;;  %v779_v6 = vld [vmem:[%s905_s1 + $0x20] sm:$0xff] (!%p189_p3)   ;;  %v780_v7 = vld [vmem:[%s905_s1 + $0x28] sm:$0xff] (!%p189_p3)  }
   0x8   : > { %712 = vmatpush3.bf16.msra.mxu0 (!%p189_p3), %v775_v0  ;;  %743 = vmatpush3.bf16.msra.mxu1 (!%p189_p3), %v775_v0  ;;  %v781_v8 = vld [vmem:[%s905_s1 + $0x30] sm:$0xff] (!%p189_p3)   ;;  %v782_v9 = vld [vmem:[%s905_s1 + $0x38] sm:$0xff] (!%p189_p3)   ;;  %v657_v13 = vld [vmem:[%s906_s2] ss:$0 sm:$0xff] (!%p189_p3) }
   0x9   : > { %713 = vmatprep.subr.bf16.mxu0 (!%p189_p3), %v776_v1  ;;  %736 = vmatprep.subr.bf16.mxu1 (!%p189_p3), %v776_v1 }
   0xc   : > { %714 = vmatpush3.bf16.msra.mxu0 (!%p189_p3), %v776_v1  ;;  %744 = vmatpush3.bf16.msra.mxu1 (!%p189_p3), %v776_v1 }
   0xd   : > { %715 = vmatprep.subr.bf16.mxu0 (!%p189_p3), %v777_v2  ;;  %737 = vmatprep.subr.bf16.mxu1 (!%p189_p3), %v777_v2 }
   0xe   : > { %s913_s18 = smov (!%p230_p4, %s641_s18), 15 }
   0xf   : > { %s642_s23 = sshll.u32 %s913_s18, 2 }
  0x10   : > { %s866_s26 = scalar_lea.vmem %s904_s0, %s642_s23  ;;  %716 = vmatpush3.bf16.msra.mxu0 %v777_v2  ;;  %745 = vmatpush3.bf16.msra.mxu1 %v777_v2  ;;  %s257_s17 = scalar_lea.vmem %s907_s3, %s642_s23 }
  0x11   : > { %v783_v4 = vld [vmem:[%s866_s26] sm:$0xff]   ;;  %v784_v5 = vld [vmem:[%s866_s26 + $0x10] sm:$0xff]   ;;  %717 = vmatprep.subr.bf16.mxu0 %v778_v3  ;;  %738 = vmatprep.subr.bf16.mxu1 %v778_v3  ;;  %v785_v10 = vld [vmem:[%s866_s26 + $0x8] sm:$0xff]  }
  0x12   : > { %727 = vmatprep.mubr.bf16.mxu0 %v783_v4  ;;  %731 = vmatprep.mubr.bf16.mxu1 %v784_v5  ;;  %v786_v11 = vld [vmem:[%s866_s26 + $0x18] sm:$0xff]  }
  0x14   : > { %718 = vmatpush3.bf16.msra.mxu0 %v778_v3  ;;  %746 = vmatpush3.bf16.msra.mxu1 %v778_v3 }
  0x15   : > { %719 = vmatprep.subr.bf16.mxu0 %v779_v6  ;;  %739 = vmatprep.subr.bf16.mxu1 %v779_v6 }
  0x18   : > { %720 = vmatpush3.bf16.msra.mxu0 %v779_v6  ;;  %747 = vmatpush3.bf16.msra.mxu1 %v779_v6 }
  0x19   : > { %721 = vmatprep.subr.bf16.mxu0 %v780_v7  ;;  %740 = vmatprep.subr.bf16.mxu1 %v780_v7 }
  0x1c   : > { %722 = vmatpush3.bf16.msra.mxu0 %v780_v7  ;;  %748 = vmatpush3.bf16.msra.mxu1 %v780_v7 }
  0x1d   : > { %723 = vmatprep.subr.bf16.mxu0 %v781_v8  ;;  %741 = vmatprep.subr.bf16.mxu1 %v781_v8 }
  0x20   : > { %724 = vmatpush3.bf16.msra.mxu0 %v781_v8  ;;  %749 = vmatpush3.bf16.msra.mxu1 %v781_v8 }
  0x21   : > { %725 = vmatprep.subr.bf16.mxu0 %v782_v9  ;;  %742 = vmatprep.subr.bf16.mxu1 %v782_v9 }
  0x24   : > { %726 = vmatpush3.bf16.msra.mxu0 %v782_v9  ;;  %750 = vmatpush3.bf16.msra.mxu1 %v782_v9 }
  0x27   : > { %728 = vmatmul.mubr.bf16.vlgmr.msra.gmra.mrb[0].mxu0 %v785_v10  ;;  %732 = vmatmul.mubr.bf16.vlgmr.msra.gmra.mrb[0].mxu1 %v786_v11 }
  0xfa   : > { %v729_v12 = vpop.f32.mrb[0].mxu0  ;;  %v733_v14 = vpop.f32.mrb[0].mxu1 }
  0xfb   : > { %v410_v15 = vpop.f32.mrb[1].mxu0  ;;  %v426_v16 = vpop.f32.mrb[1].mxu1  ;;  %v477_v19 = vadd.f32 %v729_v12, %v657_v13  ;;  %v481_v20 = vadd.f32 %v733_v14, %v657_v13 }
  0xfc   : > { %v730_v17 = vpop.f32.mrb[2].mxu0  ;;  %v734_v18 = vpop.f32.mrb[2].mxu1  ;;  %v475_v25 = vadd.f32 %v657_v13, %v410_v15  ;;  %v479_v26 = vadd.f32 %v657_v13, %v426_v16 }
  0xfd   : > { %v478_v21 = vadd.f32 %v730_v17, %v657_v13  ;;  %v482_v22 = vadd.f32 %v734_v18, %v657_v13  ;;  %v413_v23 = vpop.f32.mrb[3].mxu0  ;;  %v429_v24 = vpop.f32.mrb[3].mxu1 }
  0xfe   : > { %v476_v27 = vadd.f32 %v657_v13, %v413_v23  ;;  %v480_v28 = vadd.f32 %v657_v13, %v429_v24 }
  0xff   : > { %v684_v29 = vpack.c.bf16 %v478_v21, %v477_v19  ;;  %v694_v30 = vpack.c.bf16 %v482_v22, %v481_v20 }
 0x100   : > { %v679_v31 = vpack.c.bf16 %v476_v27, %v475_v25  ;;  %v689_v32 = vpack.c.bf16 %v480_v28, %v479_v26 }
 0x101   : > { %696 = vst [vmem:[%s257_s17 + $0x8] sm:$0xff] %v684_v29   ;;  %698 = vst [vmem:[%s257_s17 + $0x18] sm:$0xff] %v694_v30  }
 0x102   : > { %680 = vst [vmem:[%s257_s17] sm:$0xff] %v679_v31   ;;  %697 = vst [vmem:[%s257_s17 + $0x10] sm:$0xff] %v689_v32  }
 0x103 PF: > { %s13_s14 = sadd.s32 1, %s809_s14   ;;  %s908_s12 = smov %s805_s13 }
 0x104   : > { %p10_p5 = scmp.ge.s32.totalorder %s13_s14, 4   ;;  %s909_s13 = smov %s911_s15 }
 0x106   :  { %12 = sbr.rel (!%p10_p5) target bundleno = 2 (0x2), region = 76 }

// kernel: resnet50_bottom_forward.69
= control target key start
LH: loop header
LB: loop body
LE: loop exit
PB: predicated region body
PF: predicated region fallthrough
CT: control target
= control target key end

     0   :  { %s1308_s12 = smov 0   ;;  %s1310_s13 = smov 0   ;;  %s1469_s0 = inlined_call_operand.vmem [shape: bf16[128,1152], index: 0, kind: input, shape index: {}]   ;;  %s1470_s1 = inlined_call_operand.vmem [shape: bf16[1152,128], index: 1, kind: input, shape index: {}]   ;;  %s1471_s2 = inlined_call_operand.vmem [shape: f32[1,128], index: 2, kind: input, shape index: {}]   ;;  %s1472_s3 = inlined_call_operand.vmem [shape: bf16[128,128], index: 3, kind: output, shape index: {}]  }
   0x1   :  { %s1312_s14 = smov 0   ;;  %s1314_s15 = smov 0  }
   0x2   :  { %s1316_s16 = smov 0   ;;  %s1318_s17 = smov 0  }
   0x3   :  { %s1320_s18 = smov 0  }
   0x4 LB: > { %s25_s19 = sadd.s32 1, %s1277_s16  ;;  %s32_s20 = sadd.s32 1, %s1281_s17  ;;  %s1285_s18 = sphi %s1320_s18, %s13_s18   ;;  %s1281_s17 = sphi %s1318_s17, %s1478_s17   ;;  %s1277_s16 = sphi %s1316_s16, %s1477_s16   ;;  %s1273_s15 = sphi %s1314_s15, %s1476_s15   ;;  %s1269_s14 = sphi %s1312_s14, %s1475_s14   ;;  %s1265_s13 = sphi %s1310_s13, %s1474_s13   ;;  %s1261_s12 = sphi %s1308_s12, %s1473_s12  }
   0x5   : > { %p26_p0 = scmp.ge.s32.totalorder %s25_s19, 3  ;;  %p48_p1 = scmp.ne.s32.totalorder %s1265_s13, %s1261_s12 }
   0x6   : > { %p49_p2 = scmp.eq.s32.totalorder %s1285_s18, 0  ;;  %s41_s24 = sadd.s32 1, %s1265_s13 }
   0x7   : > { %s1480_s19 = smov (%p26_p0, %s25_s19), 0  ;;  %s1482_s20 = smov (!%p26_p0, %s32_s20), %s1281_s17 }
   0x8   : > { %p50_p3 = por %p49_p2, %p48_p1  ;;  %p34_p4 = scmp.ge.s32.totalorder %s1482_s20, 2 }
   0x9   : > { %s37_s21 = ssub.s32 %s1277_s16, %s1480_s19  ;;  %p951_p6 = scmp.ge.s32.totalorder %s1285_s18, 6 }
   0xa   : > { %s1484_s20 = smov (%p34_p4, %s1482_s20), 0 }
   0xb   : > { %s36_s22 = ssub.s32 %s1281_s17, %s1484_s20  ;;  %162 = sbr.rel (%p951_p6) target bundleno = 36 (0x24), region = 20 }
   0xc   : > { %s38_s23 = sor.u32 %s37_s21, %s36_s22 }
   0xd   : > { %p39_p5 = scmp.eq.s32.totalorder %s38_s23, 0 }
   0xf   : > { %s1359_s25 = scalar_select %p39_p5, %s1265_s13, %s41_s24  }
  0x12   : > { %165 = sbr.rel (!%p50_p3) target bundleno = 36 (0x24), region = 24  ;;  %s167_s26 = sand.u32 (%p50_p3), 1, %s1265_s13  }
  0x13   : > { %s171_s27 = smul.u32 (%p50_p3), 3, %s1277_s16 }
  0x14   : > { %s1131_s28 = smul.u32 (%p50_p3), 96, %s167_s26 }
  0x15   : > { %s1132_s29 = smul.u32 (%p50_p3), 72, %s1281_s17 }
  0x16   : > { %s169_s8 = scalar_lea.vmem (%p50_p3), [#allocation3], %s1131_s28 }
  0x17   : > { %s173_s30 = sadd.s32 (%p50_p3), %s1132_s29, %s171_s27 }
  0x18   : > { %s954_s4 = sshll.u32 (%p50_p3), %s173_s30, 2 }
  0x19   : > { %s1368_s7 = scalar_lea.vmem %s1469_s0, %s954_s4 }
  0x1a   : > { %v190_v0 = vld [vmem:[%s1368_s7] sm:$0xff]  ;;  %v194_v2 = vld [vmem:[%s1368_s7 + $0x48] sm:$0xff]  ;;  %v198_v4 = vld [vmem:[%s1368_s7 + $0x90] sm:$0xff] }
  0x1b   : > { %v192_v1 = vld [vmem:[%s1368_s7 + $0x24] sm:$0xff]  ;;  %191 = vst [vmem:[%s169_s8] sm:$0xff] %v190_v0  ;;  %195 = vst [vmem:[%s169_s8 + $0x18] sm:$0xff] %v194_v2  ;;  %v196_v3 = vld [vmem:[%s1368_s7 + $0x6c] sm:$0xff] }
  0x1c   : > { %193 = vst [vmem:[%s169_s8 + $0xc] sm:$0xff] %v192_v1  ;;  %v200_v5 = vld [vmem:[%s1368_s7 + $0xb4] sm:$0xff]  ;;  %197 = vst [vmem:[%s169_s8 + $0x24] sm:$0xff] %v196_v3  ;;  %v204_v7 = vld [vmem:[%s1368_s7 + $0xfc] sm:$0xff] }
  0x1d   : > { %199 = vst [vmem:[%s169_s8 + $0x30] sm:$0xff] %v198_v4  ;;  %201 = vst [vmem:[%s169_s8 + $0x3c] sm:$0xff] %v200_v5  ;;  %v202_v6 = vld [vmem:[%s1368_s7 + $0xd8] sm:$0xff]  ;;  %v955_v8 = vld [vmem:[%s1368_s7 + $0x8] sm:$0xf] }
  0x1e   : > { %203 = vst [vmem:[%s169_s8 + $0x48] sm:$0xff] %v202_v6  ;;  %205 = vst [vmem:[%s169_s8 + $0x54] sm:$0xff] %v204_v7  ;;  %v957_v9 = vld [vmem:[%s1368_s7 + $0x2c] sm:$0xf]  ;;  %v959_v10 = vld [vmem:[%s1368_s7 + $0x50] sm:$0xf] }
  0x1f   : > { %956 = vst [vmem:[%s169_s8 + $0x8] sm:$0xf] %v955_v8  ;;  %v961_v11 = vld [vmem:[%s1368_s7 + $0x74] sm:$0xf]  ;;  %958 = vst [vmem:[%s169_s8 + $0x14] sm:$0xf] %v957_v9 }
  0x20   : > { %960 = vst [vmem:[%s169_s8 + $0x20] sm:$0xf] %v959_v10  ;;  %962 = vst [vmem:[%s169_s8 + $0x2c] sm:$0xf] %v961_v11  ;;  %v963_v12 = vld [vmem:[%s1368_s7 + $0x98] sm:$0xf] }
  0x21   : > { %v965_v13 = vld [vmem:[%s1368_s7 + $0xbc] sm:$0xf]  ;;  %v967_v14 = vld [vmem:[%s1368_s7 + $0xe0] sm:$0xf]  ;;  %964 = vst [vmem:[%s169_s8 + $0x38] sm:$0xf] %v963_v12 }
  0x22   : > { %966 = vst [vmem:[%s169_s8 + $0x44] sm:$0xf] %v965_v13  ;;  %968 = vst [vmem:[%s169_s8 + $0x50] sm:$0xf] %v967_v14  ;;  %v969_v15 = vld [vmem:[%s1368_s7 + $0x104] sm:$0xf] }
  0x23   : > { %970 = vst [vmem:[%s169_s8 + $0x5c] sm:$0xf] %v969_v15 }
  0x24 PF: > { %p971_p7 = scmp.ge.s32.totalorder %s1285_s18, 1  ;;  %p245_p8 = scmp.lt.s32.totalorder %s1285_s18, 7 }
  0x26   : > { %p246_p9 = pnand %p971_p7, %p245_p8 }
  0x27   : > { %s252_s9 = sand.u32 (!%p246_p9), 1, %s1261_s12   ;;  %s291_s10 = smul.u32 (!%p246_p9), 48, %s1269_s14 }
  0x28   : > { %249 = sbr.rel (%p246_p9) target bundleno = 350 (0x15e), region = 54  ;;  %s973_s21 = sshll.u32 (!%p246_p9), %s1273_s15, 3 }
  0x29   : > { %s1133_s11 = smul.u32 (!%p246_p9), 96, %s252_s9  ;;  %p292_p10 = scmp.lt.s32.totalorder (!%p246_p9), %s291_s10, 143 }
  0x2a   : > { %p304_p11 = scmp.lt.s32.totalorder (!%p246_p9), %s973_s21, 15  ;;  %p975_p12 = scmp.ne.s32.totalorder (!%p246_p9), %s1269_s14, 0 }
  0x2b   : > { %s1401_s12 = scalar_lea.vmem (!%p246_p9), [#allocation3], %s1133_s11 }
  0x2f   : > { %s1486_s10 = smov (!%p292_p10, %s291_s10), 143  ;;  %s1488_s21 = smov (!%p304_p11, %s973_s21), 15 }
  0x30   : > { %s972_s22 = sshll.u32 %s1486_s10, 2  ;;  %s974_s27 = sshll.u32 %s1488_s21, 2  ;;  %v1287_v16 = vmov (!%p975_p12), 0.0  }
  0x31   : > { %s1394_s26 = scalar_lea.vmem %s1470_s1, %s972_s22  ;;  %s1399_s30 = scalar_lea.vmem %s1472_s3, %s974_s27  ;;  %317 = vst [vmem:[#allocation2] sm:$0xff] (!%p975_p12), %v1287_v16  ;;  %318 = vst [vmem:[#allocation2 + $0x8] sm:$0xff] (!%p975_p12), %v1287_v16 }
  0x32   : > { %316 = sbr.rel (%p975_p12) target bundleno = 57 (0x39), region = 62  ;;  %319 = vst [vmem:[#allocation2 + $0x10] sm:$0xff] (!%p975_p12), %v1287_v16  ;;  %320 = vst [vmem:[#allocation2 + $0x18] sm:$0xff] (!%p975_p12), %v1287_v16 }
  0x33   : > { %321 = vst [vmem:[#allocation2 + $0x20] sm:$0xff] (!%p975_p12), %v1287_v16  ;;  %322 = vst [vmem:[#allocation2 + $0x28] sm:$0xff] (!%p975_p12), %v1287_v16 }
  0x34   : > { %323 = vst [vmem:[#allocation2 + $0x30] sm:$0xff] (!%p975_p12), %v1287_v16  ;;  %324 = vst [vmem:[#allocation2 + $0x38] sm:$0xff] (!%p975_p12), %v1287_v16 }
  0x39 PF: > { %v1191_v17 = vld [vmem:[%s1394_s26 + $0x40] sm:$0xff]   ;;  %v1194_v20 = vld [vmem:[%s1394_s26 + $0x48] sm:$0xff]   ;;  %v1197_v23 = vld [vmem:[%s1394_s26 + $0x50] sm:$0xff]   ;;  %p1012_p13 = scmp.ne.s32.totalorder %s1269_s14, 2 }
  0x3a   : > { %v1192_v18 = vld [vmem:[%s1394_s26] sm:$0xff]   ;;  %1055 = vmatprep.subr.bf16.mxu0 %v1191_v17  ;;  %v1195_v21 = vld [vmem:[%s1394_s26 + $0x8] sm:$0xff]   ;;  %v1198_v24 = vld [vmem:[%s1394_s26 + $0x10] sm:$0xff]  }
  0x3b   : > { %v1193_v19 = vld [vmem:[%s1394_s26 + $0x80] sm:$0xff]   ;;  %1056 = vmatpush3.bf16.msra.mxu0 %v1192_v18  ;;  %v1196_v22 = vld [vmem:[%s1394_s26 + $0x88] sm:$0xff]   ;;  %v1199_v25 = vld [vmem:[%s1394_s26 + $0x90] sm:$0xff]  }
  0x3c   : > { %1107 = vmatprep.subr.bf16.mxu1 %v1193_v19  ;;  %1057 = vmatprep.subr.bf16.mxu0 %v1194_v20  ;;  %v1200_v26 = vld [vmem:[%s1394_s26 + $0x58] sm:$0xff]   ;;  %v1203_v29 = vld [vmem:[%s1394_s26 + $0x60] sm:$0xff]   ;;  %v1206_v32 = vld [vmem:[%s1394_s26 + $0x68] sm:$0xff]  }
  0x3d   : > { %1108 = vmatpush3.bf16.msra.mxu1 %v1193_v19  ;;  %v1201_v27 = vld [vmem:[%s1394_s26 + $0x18] sm:$0xff]   ;;  %v1205_v30 = vld [vmem:[%s1394_s26 + $0xa0] sm:$0xff]   ;;  %v1208_v33 = vld [vmem:[%s1394_s26 + $0xa8] sm:$0xff]  }
  0x3e   : > { %1109 = vmatprep.subr.bf16.mxu1 %v1196_v22  ;;  %v1202_v28 = vld [vmem:[%s1394_s26 + $0x98] sm:$0xff]   ;;  %v1204_v31 = vld [vmem:[%s1394_s26 + $0x20] sm:$0xff]   ;;  %v1207_v34 = vld [vmem:[%s1394_s26 + $0x28] sm:$0xff]  }
  0x3f   : > { %1058 = vmatpush3.bf16.msra.mxu0 %v1195_v21  ;;  %v1209_v35 = vld [vmem:[%s1394_s26 + $0x70] sm:$0xff]   ;;  %v1212_v38 = vld [vmem:[%s1394_s26 + $0x78] sm:$0xff]   ;;  %v1215_v43 = vld [vmem:[%s1401_s12] ss:$12 sps:$4 sm:$0xff]  }
  0x40   : > { %1059 = vmatprep.subr.bf16.mxu0 %v1197_v23  ;;  %v1210_v36 = vld [vmem:[%s1394_s26 + $0x30] sm:$0xff]   ;;  %v1214_v39 = vld [vmem:[%s1394_s26 + $0xb8] sm:$0xff]   ;;  %v1219_v45 = vld [vmem:[%s1401_s12 + $0x20] ss:$12 sps:$4 sm:$0xff]  }
  0x41   : > { %1110 = vmatpush3.bf16.msra.mxu1 %v1196_v22  ;;  %v1211_v37 = vld [vmem:[%s1394_s26 + $0xb0] sm:$0xff]   ;;  %v1213_v42 = vld [vmem:[%s1394_s26 + $0x38] sm:$0xff]   ;;  %v325_v59 = vld [vmem:[#allocation2] sm:$0xff] }
  0x42   : > { %1111 = vmatprep.subr.bf16.mxu1 %v1199_v25  ;;  %v1217_v40 = vld [vmem:[%s1401_s12 + $0x4] ss:$12 sps:$4 sm:$0xff]   ;;  %v1218_v41 = vld [vmem:[%s1401_s12 + $0x8] ss:$12 sps:$4 sm:$0xff]   ;;  %v1228_v51 = vld [vmem:[%s1401_s12 + $0x4c] ss:$12 sps:$4 sm:$0xff]  }
  0x43   : > { %1060 = vmatpush3.bf16.msra.mxu0 %v1198_v24  ;;  %637 = vmatprep.mubr.bf16.mxu0 %v1217_v40  ;;  %v1220_v44 = vld [vmem:[%s1401_s12 + $0x1c] ss:$12 sps:$4 sm:$0xff]   ;;  %v1226_v46 = vld [vmem:[%s1401_s12 + $0x38] ss:$12 sps:$4 sm:$0xff]   ;;  %v1223_v48 = vld [vmem:[%s1401_s12 + $0x34] ss:$12 sps:$4 sm:$0xff]  }
  0x44   : > { %1061 = vmatprep.subr.bf16.mxu0 %v1200_v26  ;;  %1123 = vmatprep.mubr.bf16.mxu1 %v1218_v41  ;;  %v1222_v47 = vld [vmem:[%s1401_s12 + $0x18] ss:$12 sps:$4 sm:$0xff]   ;;  %v1227_v49 = vld [vmem:[%s1401_s12 + $0x50] ss:$12 sps:$4 sm:$0xff]   ;;  %v1230_v52 = vld [vmem:[%s1401_s12 + $0x48] ss:$12 sps:$4 sm:$0xff]  }
  0x45   : > { %1112 = vmatpush3.bf16.msra.mxu1 %v1199_v25  ;;  %v1225_v50 = vld [vmem:[%s1401_s12 + $0x30] ss:$12 sps:$4 sm:$0xff]   ;;  %v326_v0 = vld [vmem:[#allocation2 + $0x8] sm:$0xff]  ;;  %v329_v26 = vld [vmem:[#allocation2 + $0x20] sm:$0xff] }
  0x46   : > { %1113 = vmatprep.subr.bf16.mxu1 %v1202_v28  ;;  %v327_v10 = vld [vmem:[#allocation2 + $0x10] sm:$0xff]  ;;  %v328_v16 = vld [vmem:[#allocation2 + $0x18] sm:$0xff] }
  0x47   : > { %1062 = vmatpush3.bf16.msra.mxu0 %v1201_v27  ;;  %v332_v41 = vld [vmem:[#allocation2 + $0x38] sm:$0xff] }
  0x48   : > { %1063 = vmatprep.subr.bf16.mxu0 %v1203_v29  ;;  %v330_v29 = vld [vmem:[#allocation2 + $0x28] sm:$0xff] }
  0x49   : > { %1114 = vmatpush3.bf16.msra.mxu1 %v1202_v28 }
  0x4a   : > { %1115 = vmatprep.subr.bf16.mxu1 %v1205_v30 }
  0x4b   : > { %1064 = vmatpush3.bf16.msra.mxu0 %v1204_v31 }
  0x4c   : > { %1065 = vmatprep.subr.bf16.mxu0 %v1206_v32 }
  0x4d   : > { %1116 = vmatpush3.bf16.msra.mxu1 %v1205_v30 }
  0x4e   : > { %1117 = vmatprep.subr.bf16.mxu1 %v1208_v33 }
  0x4f   : > { %1066 = vmatpush3.bf16.msra.mxu0 %v1207_v34 }
  0x50   : > { %1067 = vmatprep.subr.bf16.mxu0 %v1209_v35 }
  0x51   : > { %1118 = vmatpush3.bf16.msra.mxu1 %v1208_v33 }
  0x52   : > { %1119 = vmatprep.subr.bf16.mxu1 %v1211_v37 }
  0x53   : > { %1068 = vmatpush3.bf16.msra.mxu0 %v1210_v36 }
  0x54   : > { %1069 = vmatprep.subr.bf16.mxu0 %v1212_v38 }
  0x55   : > { %1120 = vmatpush3.bf16.msra.mxu1 %v1211_v37  ;;  %v331_v37 = vld [vmem:[#allocation2 + $0x30] sm:$0xff] }
  0x56   : > { %1121 = vmatprep.subr.bf16.mxu1 %v1214_v39 }
  0x57   : > { %1070 = vmatpush3.bf16.msra.mxu0 %v1213_v42 }
  0x59   : > { %1122 = vmatpush3.bf16.msra.mxu1 %v1214_v39 }
  0x5a   : > { %638 = vmatmul.mubr.bf16.vlgmr.msra.gmra.mrb[0].mxu0 %v1215_v43 }
  0x5b   : > { %645 = vmatprep.mubr.bf16.mxu0 %v1220_v44 }
  0x5c   : > { %1124 = vmatmul.mubr.bf16.vlgmr.msra.gmra.mrb[0].mxu1 %v1219_v45 }
  0x5d   : > { %1127 = vmatprep.mubr.bf16.mxu1 %v1226_v46 }
  0x62   : > { %646 = vmatmul.mubr.bf16.gmra.mrb[4].mxu0 %v1222_v47  ;;  %v1013_v47 = vld [vmem:[%s1471_s2] ss:$0 sm:$0xff] (!%p1012_p13) }
  0x63   : > { %653 = vmatprep.mubr.bf16.mxu0 %v1223_v48 }
  0x64   : > { %1128 = vmatmul.mubr.bf16.gmra.mrb[4].mxu1 %v1227_v49 }
  0x6a   : > { %654 = vmatmul.mubr.bf16.gmra.mrb[8].mxu0 %v1225_v50 }
  0x6b   : > { %661 = vmatprep.mubr.bf16.mxu0 %v1228_v51 }
  0x72   : > { %662 = vmatmul.mubr.bf16.gmra.mrb[12].mxu0 %v1230_v52 }
 0x12d   : > { %v1071_v53 = vpop.f32.mrb[0].mxu0 }
 0x12e   : > { %v1072_v54 = vpop.f32.mrb[1].mxu0 }
 0x12f   : > { %v1073_v55 = vadd.f32 %v1072_v54, %v1071_v53  ;;  %v1074_v56 = vpop.f32.mrb[2].mxu0  ;;  %v1125_v57 = vpop.f32.mrb[0].mxu1 }
 0x130   : > { %v1075_v58 = vpop.f32.mrb[3].mxu0  ;;  %v704_v60 = vpop.f32.mrb[1].mxu1 }
 0x131   : > { %v1076_v61 = vadd.f32 %v1075_v58, %v1074_v56  ;;  %v705_v62 = vadd.f32 %v1073_v55, %v704_v60  ;;  %v1126_v63 = vpop.f32.mrb[2].mxu1 }
 0x132   : > { %v707_v1 = vpop.f32.mrb[3].mxu1 }
 0x133   : > { %v735_v2 = vadd.f32 %v705_v62, %v325_v59  ;;  %v708_v3 = vadd.f32 %v1076_v61, %v707_v1 }
 0x135   : > { %743 = vst [vmem:[#allocation2] sm:$0xff] %v735_v2  ;;  %v736_v4 = vadd.f32 %v708_v3, %v326_v0  ;;  %v1077_v5 = vpop.f32.mrb[4].mxu0 }
 0x136   : > { %v1078_v6 = vpop.f32.mrb[5].mxu0 }
 0x137   : > { %744 = vst [vmem:[#allocation2 + $0x8] sm:$0xff] %v736_v4  ;;  %v1079_v7 = vadd.f32 %v1078_v6, %v1077_v5  ;;  %v1080_v8 = vpop.f32.mrb[6].mxu0  ;;  %v1129_v9 = vpop.f32.mrb[4].mxu1 }
 0x138   : > { %v1081_v11 = vpop.f32.mrb[7].mxu0  ;;  %v720_v12 = vpop.f32.mrb[5].mxu1 }
 0x139   : > { %v713_v13 = vadd.f32 %v1125_v57, %v1079_v7  ;;  %v1082_v14 = vadd.f32 %v1081_v11, %v1080_v8  ;;  %v1130_v15 = vpop.f32.mrb[6].mxu1 }
 0x13a   : > { %v723_v17 = vpop.f32.mrb[7].mxu1 }
 0x13b   : > { %v737_v18 = vadd.f32 %v713_v13, %v327_v10  ;;  %v716_v19 = vadd.f32 %v1126_v63, %v1082_v14 }
 0x13c   : > { %v755_v45 = vld [vmem:[#allocation2] sm:$0xff] (!%p1012_p13) }
 0x13d   : > { %745 = vst [vmem:[#allocation2 + $0x10] sm:$0xff] %v737_v18  ;;  %v738_v20 = vadd.f32 %v716_v19, %v328_v16  ;;  %v1083_v21 = vpop.f32.mrb[8].mxu0  ;;  %v770_v48 = vadd.f32 (!%p1012_p13), %v1013_v47, %v755_v45 }
 0x13e   : > { %v1084_v22 = vpop.f32.mrb[9].mxu0  ;;  %v756_v46 = vld [vmem:[#allocation2 + $0x8] sm:$0xff] (!%p1012_p13) }
 0x13f   : > { %746 = vst [vmem:[#allocation2 + $0x18] sm:$0xff] %v738_v20  ;;  %v1085_v23 = vadd.f32 %v1084_v22, %v1083_v21  ;;  %v1086_v24 = vpop.f32.mrb[10].mxu0  ;;  %v771_v49 = vadd.f32 (!%p1012_p13), %v1013_v47, %v756_v46  ;;  %v778_v59 = vmax.f32 (!%p1012_p13), %v770_v48, 0.0 }
 0x140   : > { %v1087_v25 = vpop.f32.mrb[11].mxu0 }
 0x141   : > { %v1088_v27 = vadd.f32 %v1087_v25, %v1086_v24  ;;  %v721_v28 = vadd.f32 %v1085_v23, %v720_v12  ;;  %v779_v60 = vmax.f32 (!%p1012_p13), %v771_v49, 0.0 }
 0x143   : > { %v739_v30 = vadd.f32 %v721_v28, %v329_v26  ;;  %v724_v31 = vadd.f32 %v1088_v27, %v723_v17  ;;  %v1035_v3 = vpack.c.bf16 (!%p1012_p13), %v779_v60, %v778_v59 }
 0x144   : > { %v757_v50 = vld [vmem:[#allocation2 + $0x10] sm:$0xff] (!%p1012_p13) }
 0x145   : > { %747 = vst [vmem:[#allocation2 + $0x20] sm:$0xff] %v739_v30  ;;  %v740_v32 = vadd.f32 %v724_v31, %v330_v29  ;;  %v1089_v33 = vpop.f32.mrb[12].mxu0  ;;  %v772_v53 = vadd.f32 (!%p1012_p13), %v1013_v47, %v757_v50  ;;  %1036 = vst [vmem:[%s1399_s30] sm:$0xff] (!%p1012_p13), %v1035_v3  }
 0x146   : > { %v1090_v34 = vpop.f32.mrb[13].mxu0  ;;  %v758_v51 = vld [vmem:[#allocation2 + $0x18] sm:$0xff] (!%p1012_p13) }
 0x147   : > { %748 = vst [vmem:[#allocation2 + $0x28] sm:$0xff] %v740_v32  ;;  %v1091_v35 = vadd.f32 %v1090_v34, %v1089_v33  ;;  %v1092_v36 = vpop.f32.mrb[14].mxu0  ;;  %v773_v54 = vadd.f32 (!%p1012_p13), %v1013_v47, %v758_v51  ;;  %v780_v63 = vmax.f32 (!%p1012_p13), %v772_v53, 0.0 }
 0x148   : > { %v1093_v38 = vpop.f32.mrb[15].mxu0 }
 0x149   : > { %v729_v39 = vadd.f32 %v1129_v9, %v1091_v35  ;;  %v1094_v40 = vadd.f32 %v1093_v38, %v1092_v36  ;;  %754 = sbr.rel (%p1012_p13) target bundleno = 350 (0x15e), region = 66  ;;  %v781_v0 = vmax.f32 (!%p1012_p13), %v773_v54, 0.0 }
 0x14b   : > { %v741_v42 = vadd.f32 %v729_v39, %v331_v37  ;;  %v732_v43 = vadd.f32 %v1130_v15, %v1094_v40  ;;  %v1040_v6 = vpack.c.bf16 (!%p1012_p13), %v781_v0, %v780_v63 }
 0x14c   : > { %v759_v52 = vld [vmem:[#allocation2 + $0x20] sm:$0xff] (!%p1012_p13) }
 0x14d   : > { %749 = vst [vmem:[#allocation2 + $0x30] sm:$0xff] %v741_v42  ;;  %v742_v44 = vadd.f32 %v732_v43, %v332_v41  ;;  %v774_v56 = vadd.f32 (!%p1012_p13), %v1013_v47, %v759_v52  ;;  %1052 = vst [vmem:[%s1399_s30 + $0x8] sm:$0xff] (!%p1012_p13), %v1040_v6  }
 0x14e   : > { %v760_v55 = vld [vmem:[#allocation2 + $0x28] sm:$0xff] (!%p1012_p13) }
 0x14f   : > { %750 = vst [vmem:[#allocation2 + $0x38] sm:$0xff] %v742_v44  ;;  %v775_v61 = vadd.f32 (!%p1012_p13), %v1013_v47, %v760_v55  ;;  %v782_v1 = vmax.f32 (!%p1012_p13), %v774_v56, 0.0 }
 0x151   : > { %v783_v4 = vmax.f32 %v775_v61, 0.0 }
 0x153   : > { %v1045_v8 = vpack.c.bf16 %v783_v4, %v782_v1 }
 0x154   : > { %v761_v57 = vld [vmem:[#allocation2 + $0x30] sm:$0xff] }
 0x155   : > { %v776_v62 = vadd.f32 %v1013_v47, %v761_v57  ;;  %1053 = vst [vmem:[%s1399_s30 + $0x10] sm:$0xff] %v1045_v8  }
 0x156   : > { %v762_v58 = vld [vmem:[#allocation2 + $0x38] sm:$0xff] }
 0x157   : > { %v777_v2 = vadd.f32 %v1013_v47, %v762_v58  ;;  %v784_v5 = vmax.f32 %v776_v62, 0.0 }
 0x159   : > { %v785_v7 = vmax.f32 %v777_v2, 0.0 }
 0x15b   : > { %v1050_v9 = vpack.c.bf16 %v785_v7, %v784_v5 }
 0x15d   : > { %1054 = vst [vmem:[%s1399_s30 + $0x18] sm:$0xff] %v1050_v9  }
 0x15e PF: > { %s13_s18 = sadd.s32 1, %s1285_s18   ;;  %s1473_s12 = smov %s1265_s13 }
 0x15f   : > { %p10_p0 = scmp.ge.s32.totalorder %s13_s18, 8   ;;  %s1474_s13 = smov %s1359_s25 }
 0x160   : > { %s1475_s14 = smov %s1277_s16  ;;  %s1476_s15 = smov %s1281_s17 }
 0x161   : > { %s1477_s16 = smov %s1480_s19  ;;  %s1478_s17 = smov %s1484_s20 }
 0x162   :  { %12 = sbr.rel (!%p10_p0) target bundleno = 4 (0x4), region = 113 }

// kernel: resnet50_bottom_forward.71
= control target key start
LH: loop header
LB: loop body
LE: loop exit
PB: predicated region body
PF: predicated region fallthrough
CT: control target
= control target key end

     0   :  { %s839_s12 = smov 0   ;;  %s841_s13 = smov 0   ;;  %s912_s0 = inlined_call_operand.vmem [shape: bf16[128,128], index: 0, kind: input, shape index: {}]   ;;  %s913_s1 = inlined_call_operand.vmem [shape: bf16[128,128], index: 1, kind: input, shape index: {}]   ;;  %s914_s2 = inlined_call_operand.vmem [shape: f32[1,128], index: 2, kind: input, shape index: {}]   ;;  %s915_s3 = inlined_call_operand.vmem [shape: bf16[128,128], index: 3, kind: output, shape index: {}]  }
   0x1   :  { %s843_s14 = smov 0  }
   0x2 LB: > { %s32_s15 = sadd.s32 1, %s813_s13  ;;  %p648_p0 = scmp.ge.s32.totalorder %s817_s14, 1  ;;  %s817_s14 = sphi %s843_s14, %s13_s14   ;;  %s813_s13 = sphi %s841_s13, %s917_s13   ;;  %s809_s12 = sphi %s839_s12, %s916_s12  }
   0x3   : > { %p34_p1 = scmp.ge.s32.totalorder %s32_s15, 2  ;;  %p188_p2 = scmp.lt.s32.totalorder %s817_s14, 3 }
   0x5   : > { %s919_s15 = smov (%p34_p1, %s32_s15), 0  ;;  %p189_p3 = pnand %p648_p0, %p188_p2 }
   0x6   : > { %v783_v0 = vld [vmem:[%s913_s1] sm:$0xff] (!%p189_p3)   ;;  %s649_s18 = sshll.u32 (!%p189_p3), %s809_s12, 3  ;;  %v784_v1 = vld [vmem:[%s913_s1 + $0x8] sm:$0xff] (!%p189_p3)   ;;  %v785_v2 = vld [vmem:[%s913_s1 + $0x10] sm:$0xff] (!%p189_p3)  }
   0x7   : > { %192 = sbr.rel (%p189_p3) target bundleno = 261 (0x105), region = 32  ;;  %p230_p4 = scmp.lt.s32.totalorder (!%p189_p3), %s649_s18, 15  ;;  %719 = vmatprep.subr.bf16.mxu0 (!%p189_p3), %v783_v0  ;;  %743 = vmatprep.subr.bf16.mxu1 (!%p189_p3), %v783_v0  ;;  %v786_v3 = vld [vmem:[%s913_s1 + $0x18] sm:$0xff] (!%p189_p3)   ;;  %v787_v6 = vld [vmem:[%s913_s1 + $0x20] sm:$0xff] (!%p189_p3)   ;;  %v788_v7 = vld [vmem:[%s913_s1 + $0x28] sm:$0xff] (!%p189_p3)  }
   0x8   : > { %720 = vmatpush3.bf16.msra.mxu0 (!%p189_p3), %v783_v0  ;;  %751 = vmatpush3.bf16.msra.mxu1 (!%p189_p3), %v783_v0  ;;  %v789_v8 = vld [vmem:[%s913_s1 + $0x30] sm:$0xff] (!%p189_p3)   ;;  %v790_v9 = vld [vmem:[%s913_s1 + $0x38] sm:$0xff] (!%p189_p3)   ;;  %v665_v12 = vld [vmem:[%s914_s2] ss:$0 sm:$0xff] (!%p189_p3) }
   0x9   : > { %721 = vmatprep.subr.bf16.mxu0 (!%p189_p3), %v784_v1  ;;  %744 = vmatprep.subr.bf16.mxu1 (!%p189_p3), %v784_v1 }
   0xc   : > { %722 = vmatpush3.bf16.msra.mxu0 (!%p189_p3), %v784_v1  ;;  %752 = vmatpush3.bf16.msra.mxu1 (!%p189_p3), %v784_v1 }
   0xd   : > { %723 = vmatprep.subr.bf16.mxu0 (!%p189_p3), %v785_v2  ;;  %745 = vmatprep.subr.bf16.mxu1 (!%p189_p3), %v785_v2 }
   0xe   : > { %s921_s18 = smov (!%p230_p4, %s649_s18), 15 }
   0xf   : > { %s650_s23 = sshll.u32 %s921_s18, 2 }
  0x10   : > { %s874_s26 = scalar_lea.vmem %s912_s0, %s650_s23  ;;  %724 = vmatpush3.bf16.msra.mxu0 %v785_v2  ;;  %753 = vmatpush3.bf16.msra.mxu1 %v785_v2  ;;  %s257_s17 = scalar_lea.vmem %s915_s3, %s650_s23 }
  0x11   : > { %v791_v4 = vld [vmem:[%s874_s26] sm:$0xff]   ;;  %v792_v5 = vld [vmem:[%s874_s26 + $0x10] sm:$0xff]   ;;  %725 = vmatprep.subr.bf16.mxu0 %v786_v3  ;;  %746 = vmatprep.subr.bf16.mxu1 %v786_v3  ;;  %v793_v10 = vld [vmem:[%s874_s26 + $0x8] sm:$0xff]  }
  0x12   : > { %735 = vmatprep.mubr.bf16.mxu0 %v791_v4  ;;  %739 = vmatprep.mubr.bf16.mxu1 %v792_v5  ;;  %v794_v11 = vld [vmem:[%s874_s26 + $0x18] sm:$0xff]  }
  0x14   : > { %726 = vmatpush3.bf16.msra.mxu0 %v786_v3  ;;  %754 = vmatpush3.bf16.msra.mxu1 %v786_v3 }
  0x15   : > { %727 = vmatprep.subr.bf16.mxu0 %v787_v6  ;;  %747 = vmatprep.subr.bf16.mxu1 %v787_v6 }
  0x18   : > { %728 = vmatpush3.bf16.msra.mxu0 %v787_v6  ;;  %755 = vmatpush3.bf16.msra.mxu1 %v787_v6 }
  0x19   : > { %729 = vmatprep.subr.bf16.mxu0 %v788_v7  ;;  %748 = vmatprep.subr.bf16.mxu1 %v788_v7 }
  0x1c   : > { %730 = vmatpush3.bf16.msra.mxu0 %v788_v7  ;;  %756 = vmatpush3.bf16.msra.mxu1 %v788_v7 }
  0x1d   : > { %731 = vmatprep.subr.bf16.mxu0 %v789_v8  ;;  %749 = vmatprep.subr.bf16.mxu1 %v789_v8 }
  0x20   : > { %732 = vmatpush3.bf16.msra.mxu0 %v789_v8  ;;  %757 = vmatpush3.bf16.msra.mxu1 %v789_v8 }
  0x21   : > { %733 = vmatprep.subr.bf16.mxu0 %v790_v9  ;;  %750 = vmatprep.subr.bf16.mxu1 %v790_v9 }
  0x24   : > { %734 = vmatpush3.bf16.msra.mxu0 %v790_v9  ;;  %758 = vmatpush3.bf16.msra.mxu1 %v790_v9 }
  0x27   : > { %736 = vmatmul.mubr.bf16.vlgmr.msra.gmra.mrb[0].mxu0 %v793_v10  ;;  %740 = vmatmul.mubr.bf16.vlgmr.msra.gmra.mrb[0].mxu1 %v794_v11 }
  0xfa   : > { %v737_v13 = vpop.f32.mrb[0].mxu0  ;;  %v741_v14 = vpop.f32.mrb[0].mxu1 }
  0xfb   : > { %v477_v15 = vadd.f32 %v737_v13, %v665_v12  ;;  %v481_v16 = vadd.f32 %v741_v14, %v665_v12  ;;  %v410_v17 = vpop.f32.mrb[1].mxu0  ;;  %v426_v18 = vpop.f32.mrb[1].mxu1 }
  0xfc   : > { %v475_v19 = vadd.f32 %v665_v12, %v410_v17  ;;  %v479_v20 = vadd.f32 %v665_v12, %v426_v18  ;;  %v738_v21 = vpop.f32.mrb[2].mxu0  ;;  %v742_v22 = vpop.f32.mrb[2].mxu1 }
  0xfd   : > { %v478_v23 = vadd.f32 %v738_v21, %v665_v12  ;;  %v482_v24 = vadd.f32 %v742_v22, %v665_v12  ;;  %v413_v25 = vpop.f32.mrb[3].mxu0  ;;  %v429_v26 = vpop.f32.mrb[3].mxu1  ;;  %v485_v29 = vmax.f32 %v477_v15, 0.0  ;;  %v489_v30 = vmax.f32 %v481_v16, 0.0 }
  0xfe   : > { %v476_v27 = vadd.f32 %v665_v12, %v413_v25  ;;  %v480_v28 = vadd.f32 %v665_v12, %v429_v26  ;;  %v483_v33 = vmax.f32 %v475_v19, 0.0  ;;  %v487_v34 = vmax.f32 %v479_v20, 0.0 }
  0xff   : > { %v486_v31 = vmax.f32 %v478_v23, 0.0  ;;  %v490_v32 = vmax.f32 %v482_v24, 0.0 }
 0x100   : > { %v484_v35 = vmax.f32 %v476_v27, 0.0  ;;  %v488_v36 = vmax.f32 %v480_v28, 0.0 }
 0x101   : > { %v692_v37 = vpack.c.bf16 %v486_v31, %v485_v29  ;;  %v702_v38 = vpack.c.bf16 %v490_v32, %v489_v30 }
 0x102   : > { %v687_v39 = vpack.c.bf16 %v484_v35, %v483_v33  ;;  %v697_v40 = vpack.c.bf16 %v488_v36, %v487_v34 }
 0x103   : > { %704 = vst [vmem:[%s257_s17 + $0x8] sm:$0xff] %v692_v37   ;;  %706 = vst [vmem:[%s257_s17 + $0x18] sm:$0xff] %v702_v38  }
 0x104   : > { %688 = vst [vmem:[%s257_s17] sm:$0xff] %v687_v39   ;;  %705 = vst [vmem:[%s257_s17 + $0x10] sm:$0xff] %v697_v40  }
 0x105 PF: > { %s13_s14 = sadd.s32 1, %s817_s14   ;;  %s916_s12 = smov %s813_s13 }
 0x106   : > { %p10_p5 = scmp.ge.s32.totalorder %s13_s14, 4   ;;  %s917_s13 = smov %s919_s15 }
 0x108   :  { %12 = sbr.rel (!%p10_p5) target bundleno = 2 (0x2), region = 76 }

// kernel: resnet50_bottom_forward.70
= control target key start
LH: loop header
LB: loop body
LE: loop exit
PB: predicated region body
PF: predicated region fallthrough
CT: control target
= control target key end

     0   :  { %s964_s15 = smov 0   ;;  %s966_s16 = smov 0   ;;  %s1038_s0 = inlined_call_operand.vmem [shape: bf16[128,128], index: 0, kind: input, shape index: {}]   ;;  %s1039_s1 = inlined_call_operand.vmem [shape: bf16[128,128], index: 1, kind: input, shape index: {}]   ;;  %s1040_s2 = inlined_call_operand.vmem [shape: f32[1,128], index: 2, kind: input, shape index: {}]   ;;  %s1041_s3 = inlined_call_operand.vmem [shape: bf16[128,128], index: 3, kind: input, shape index: {}]   ;;  %s1042_s4 = inlined_call_operand.vmem [shape: bf16[128,128], index: 4, kind: output, shape index: {}]  }
   0x1   :  { %s968_s17 = smov 0  }
   0x2 LB: > { %s33_s18 = sadd.s32 1, %s933_s16  ;;  %p747_p0 = scmp.ge.s32.totalorder %s937_s17, 1  ;;  %s937_s17 = sphi %s968_s17, %s14_s17   ;;  %s933_s16 = sphi %s966_s16, %s1044_s16   ;;  %s929_s15 = sphi %s964_s15, %s1043_s15  }
   0x3   : > { %p35_p1 = scmp.ge.s32.totalorder %s33_s18, 2  ;;  %p229_p2 = scmp.lt.s32.totalorder %s937_s17, 3 }
   0x5   : > { %s1046_s18 = smov (%p35_p1, %s33_s18), 0  ;;  %p230_p3 = pnand %p747_p0, %p229_p2 }
   0x6   : > { %v903_v0 = vld [vmem:[%s1039_s1] sm:$0xff] (!%p230_p3)   ;;  %s748_s21 = sshll.u32 (!%p230_p3), %s929_s15, 3  ;;  %v904_v1 = vld [vmem:[%s1039_s1 + $0x8] sm:$0xff] (!%p230_p3)   ;;  %v905_v2 = vld [vmem:[%s1039_s1 + $0x10] sm:$0xff] (!%p230_p3)  }
   0x7   : > { %233 = sbr.rel (%p230_p3) target bundleno = 263 (0x107), region = 36  ;;  %p281_p4 = scmp.lt.s32.totalorder (!%p230_p3), %s748_s21, 15  ;;  %839 = vmatprep.subr.bf16.mxu0 (!%p230_p3), %v903_v0  ;;  %863 = vmatprep.subr.bf16.mxu1 (!%p230_p3), %v903_v0  ;;  %v906_v3 = vld [vmem:[%s1039_s1 + $0x18] sm:$0xff] (!%p230_p3)   ;;  %v907_v6 = vld [vmem:[%s1039_s1 + $0x20] sm:$0xff] (!%p230_p3)   ;;  %v908_v7 = vld [vmem:[%s1039_s1 + $0x28] sm:$0xff] (!%p230_p3)  }
   0x8   : > { %840 = vmatpush3.bf16.msra.mxu0 (!%p230_p3), %v903_v0  ;;  %871 = vmatpush3.bf16.msra.mxu1 (!%p230_p3), %v903_v0  ;;  %v909_v8 = vld [vmem:[%s1039_s1 + $0x30] sm:$0xff] (!%p230_p3)   ;;  %v910_v9 = vld [vmem:[%s1039_s1 + $0x38] sm:$0xff] (!%p230_p3)   ;;  %v766_v16 = vld [vmem:[%s1040_s2] ss:$0 sm:$0xff] (!%p230_p3) }
   0x9   : > { %841 = vmatprep.subr.bf16.mxu0 (!%p230_p3), %v904_v1  ;;  %864 = vmatprep.subr.bf16.mxu1 (!%p230_p3), %v904_v1 }
   0xc   : > { %842 = vmatpush3.bf16.msra.mxu0 (!%p230_p3), %v904_v1  ;;  %872 = vmatpush3.bf16.msra.mxu1 (!%p230_p3), %v904_v1 }
   0xd   : > { %843 = vmatprep.subr.bf16.mxu0 (!%p230_p3), %v905_v2  ;;  %865 = vmatprep.subr.bf16.mxu1 (!%p230_p3), %v905_v2 }
   0xe   : > { %s1048_s21 = smov (!%p281_p4, %s748_s21), 15 }
   0xf   : > { %s991_s26 = sshll.u32 %s1048_s21, 2 }
  0x10   : > { %s997_s29 = scalar_lea.vmem %s1038_s0, %s991_s26  ;;  %844 = vmatpush3.bf16.msra.mxu0 %v905_v2  ;;  %873 = vmatpush3.bf16.msra.mxu1 %v905_v2  ;;  %s308_s19 = scalar_lea.vmem %s1041_s3, %s991_s26 }
  0x11   : > { %v911_v4 = vld [vmem:[%s997_s29] sm:$0xff]   ;;  %v912_v5 = vld [vmem:[%s997_s29 + $0x10] sm:$0xff]   ;;  %845 = vmatprep.subr.bf16.mxu0 %v906_v3  ;;  %866 = vmatprep.subr.bf16.mxu1 %v906_v3  ;;  %v913_v10 = vld [vmem:[%s997_s29 + $0x8] sm:$0xff]   ;;  %s317_s24 = scalar_lea.vmem %s1042_s4, %s991_s26 }
  0x12   : > { %855 = vmatprep.mubr.bf16.mxu0 %v911_v4  ;;  %859 = vmatprep.mubr.bf16.mxu1 %v912_v5  ;;  %v914_v11 = vld [vmem:[%s997_s29 + $0x18] sm:$0xff]   ;;  %v821_v12 = vld [vmem:[%s308_s19 + $0x8] sm:$0xff]   ;;  %v786_v14 = vld [vmem:[%s308_s19] sm:$0xff]  }
  0x13   : > { %v823_v13 = vld [vmem:[%s308_s19 + $0x18] sm:$0xff]   ;;  %v822_v15 = vld [vmem:[%s308_s19 + $0x10] sm:$0xff]   ;;  %v791_v17 = vunpack.c.l.bf16 %v821_v12  ;;  %v787_v21 = vunpack.c.l.bf16 %v786_v14  ;;  %v792_v27 = vunpack.c.h.bf16 %v821_v12  ;;  %v788_v33 = vunpack.c.h.bf16 %v786_v14 }
  0x14   : > { %846 = vmatpush3.bf16.msra.mxu0 %v906_v3  ;;  %874 = vmatpush3.bf16.msra.mxu1 %v906_v3  ;;  %v799_v18 = vunpack.c.l.bf16 %v823_v13  ;;  %v795_v22 = vunpack.c.l.bf16 %v822_v15  ;;  %v800_v28 = vunpack.c.h.bf16 %v823_v13  ;;  %v796_v34 = vunpack.c.h.bf16 %v822_v15 }
  0x15   : > { %847 = vmatprep.subr.bf16.mxu0 %v907_v6  ;;  %867 = vmatprep.subr.bf16.mxu1 %v907_v6 }
  0x18   : > { %848 = vmatpush3.bf16.msra.mxu0 %v907_v6  ;;  %875 = vmatpush3.bf16.msra.mxu1 %v907_v6 }
  0x19   : > { %849 = vmatprep.subr.bf16.mxu0 %v908_v7  ;;  %868 = vmatprep.subr.bf16.mxu1 %v908_v7 }
  0x1c   : > { %850 = vmatpush3.bf16.msra.mxu0 %v908_v7  ;;  %876 = vmatpush3.bf16.msra.mxu1 %v908_v7 }
  0x1d   : > { %851 = vmatprep.subr.bf16.mxu0 %v909_v8  ;;  %869 = vmatprep.subr.bf16.mxu1 %v909_v8 }
  0x20   : > { %852 = vmatpush3.bf16.msra.mxu0 %v909_v8  ;;  %877 = vmatpush3.bf16.msra.mxu1 %v909_v8 }
  0x21   : > { %853 = vmatprep.subr.bf16.mxu0 %v910_v9  ;;  %870 = vmatprep.subr.bf16.mxu1 %v910_v9 }
  0x24   : > { %854 = vmatpush3.bf16.msra.mxu0 %v910_v9  ;;  %878 = vmatpush3.bf16.msra.mxu1 %v910_v9 }
  0x27   : > { %856 = vmatmul.mubr.bf16.vlgmr.msra.gmra.mrb[0].mxu0 %v913_v10  ;;  %860 = vmatmul.mubr.bf16.vlgmr.msra.gmra.mrb[0].mxu1 %v914_v11 }
  0xfa   : > { %v857_v19 = vpop.f32.mrb[0].mxu0  ;;  %v861_v20 = vpop.f32.mrb[0].mxu1 }
  0xfb   : > { %v537_v23 = vadd.f32 %v857_v19, %v766_v16  ;;  %v541_v24 = vadd.f32 %v861_v20, %v766_v16  ;;  %v470_v25 = vpop.f32.mrb[1].mxu0  ;;  %v486_v26 = vpop.f32.mrb[1].mxu1 }
  0xfc   : > { %v535_v29 = vadd.f32 %v766_v16, %v470_v25  ;;  %v539_v30 = vadd.f32 %v766_v16, %v486_v26  ;;  %v858_v31 = vpop.f32.mrb[2].mxu0  ;;  %v862_v32 = vpop.f32.mrb[2].mxu1 }
  0xfd   : > { %v561_v35 = vadd.f32 %v791_v17, %v537_v23  ;;  %v565_v36 = vadd.f32 %v799_v18, %v541_v24  ;;  %v538_v37 = vadd.f32 %v858_v31, %v766_v16  ;;  %v542_v38 = vadd.f32 %v862_v32, %v766_v16  ;;  %v473_v39 = vpop.f32.mrb[3].mxu0  ;;  %v489_v40 = vpop.f32.mrb[3].mxu1 }
  0xfe   : > { %v559_v41 = vadd.f32 %v787_v21, %v535_v29  ;;  %v563_v42 = vadd.f32 %v795_v22, %v539_v30  ;;  %v536_v43 = vadd.f32 %v766_v16, %v473_v39  ;;  %v540_v44 = vadd.f32 %v766_v16, %v489_v40 }
  0xff   : > { %v562_v45 = vadd.f32 %v792_v27, %v538_v37  ;;  %v566_v46 = vadd.f32 %v800_v28, %v542_v38  ;;  %v569_v49 = vmax.f32 %v561_v35, 0.0  ;;  %v573_v50 = vmax.f32 %v565_v36, 0.0 }
 0x100   : > { %v560_v47 = vadd.f32 %v788_v33, %v536_v43  ;;  %v564_v48 = vadd.f32 %v796_v34, %v540_v44  ;;  %v567_v53 = vmax.f32 %v559_v41, 0.0  ;;  %v571_v54 = vmax.f32 %v563_v42, 0.0 }
 0x101   : > { %v570_v51 = vmax.f32 %v562_v45, 0.0  ;;  %v574_v52 = vmax.f32 %v566_v46, 0.0 }
 0x102   : > { %v568_v55 = vmax.f32 %v560_v47, 0.0  ;;  %v572_v56 = vmax.f32 %v564_v48, 0.0 }
 0x103   : > { %v809_v57 = vpack.c.bf16 %v570_v51, %v569_v49  ;;  %v819_v58 = vpack.c.bf16 %v574_v52, %v573_v50 }
 0x104   : > { %v804_v59 = vpack.c.bf16 %v568_v55, %v567_v53  ;;  %v814_v60 = vpack.c.bf16 %v572_v56, %v571_v54 }
 0x105   : > { %824 = vst [vmem:[%s317_s24 + $0x8] sm:$0xff] %v809_v57   ;;  %826 = vst [vmem:[%s317_s24 + $0x18] sm:$0xff] %v819_v58  }
 0x106   : > { %805 = vst [vmem:[%s317_s24] sm:$0xff] %v804_v59   ;;  %825 = vst [vmem:[%s317_s24 + $0x10] sm:$0xff] %v814_v60  }
 0x107 PF: > { %s14_s17 = sadd.s32 1, %s937_s17   ;;  %s1043_s15 = smov %s933_s16 }
 0x108   : > { %p11_p5 = scmp.ge.s32.totalorder %s14_s17, 4   ;;  %s1044_s16 = smov %s1046_s18 }
 0x10a   :  { %13 = sbr.rel (!%p11_p5) target bundleno = 2 (0x2), region = 83 }

// kernel: resnet50_bottom_forward.83
= control target key start
LH: loop header
LB: loop body
LE: loop exit
PB: predicated region body
PF: predicated region fallthrough
CT: control target
= control target key end

     0   :  { %s756_s15 = smov 0   ;;  %s758_s16 = smov 0   ;;  %s824_s0 = inlined_call_operand.vmem [shape: bf16[32,128], index: 0, kind: input, shape index: {}]   ;;  %s825_s1 = inlined_call_operand.vmem [shape: bf16[128,128], index: 1, kind: input, shape index: {}]   ;;  %s826_s2 = inlined_call_operand.vmem [shape: f32[1,128], index: 2, kind: input, shape index: {}]   ;;  %s827_s3 = inlined_call_operand.vmem [shape: bf16[32,128], index: 3, kind: input, shape index: {}]   ;;  %s828_s4 = inlined_call_operand.vmem [shape: bf16[32,128], index: 4, kind: output, shape index: {}]  }
   0x1   :  { %s760_s17 = smov 0  }
   0x2 LB: > { %s33_s18 = sadd.s32 1, %s723_s16  ;;  %p609_p0 = scmp.ge.s32.totalorder %s727_s17, 1  ;;  %s727_s17 = sphi %s760_s17, %s14_s17   ;;  %s723_s16 = sphi %s758_s16, %s830_s16   ;;  %s719_s15 = sphi %s756_s15, %s829_s15  }
   0x3   : > { %p35_p1 = scmp.ge.s32.totalorder %s33_s18, 2  ;;  %p229_p2 = scmp.lt.s32.totalorder %s727_s17, 3 }
   0x5   : > { %s832_s18 = smov (%p35_p1, %s33_s18), 0  ;;  %p230_p3 = pnand %p609_p0, %p229_p2 }
   0x6   : > { %v696_v0 = vld [vmem:[%s825_s1] sm:$0xff] (!%p230_p3)   ;;  %v729_v1 = vmov (!%p230_p3), 0.0   ;;  %v697_v2 = vld [vmem:[%s825_s1 + $0x8] sm:$0xff] (!%p230_p3)   ;;  %vm730_vm0 = vmmov (!%p230_p3), 0   ;;  %s610_s23 = sshll.u32 (!%p230_p3), %s719_s15, 1  ;;  %v698_v3 = vld [vmem:[%s825_s1 + $0x10] sm:$0xff] (!%p230_p3)  }
   0x7   : > { %233 = sbr.rel (%p230_p3) target bundleno = 262 (0x106), region = 36  ;;  %650 = vmatprep.subr.bf16.mxu0 (!%p230_p3), %v729_v1  ;;  %666 = vmatprep.mubr.msk.bf16.mxu0 (!%p230_p3), %vm730_vm0, %v729_v1  ;;  %p281_p4 = scmp.lt.s32.totalorder (!%p230_p3), %s610_s23, 3  ;;  %v699_v4 = vld [vmem:[%s825_s1 + $0x18] sm:$0xff] (!%p230_p3)   ;;  %v700_v5 = vld [vmem:[%s825_s1 + $0x20] sm:$0xff] (!%p230_p3)   ;;  %v701_v6 = vld [vmem:[%s825_s1 + $0x28] sm:$0xff] (!%p230_p3)  }
   0x8   : > { %651 = vmatpush3.bf16.msra.mxu0 (!%p230_p3), %v696_v0  ;;  %v702_v7 = vld [vmem:[%s825_s1 + $0x30] sm:$0xff] (!%p230_p3)   ;;  %v703_v8 = vld [vmem:[%s825_s1 + $0x38] sm:$0xff] (!%p230_p3)   ;;  %v625_v11 = vld [vmem:[%s826_s2] ss:$0 sm:$0xff] (!%p230_p3) }
   0x9   : > { %652 = vmatprep.subr.bf16.mxu0 (!%p230_p3), %v729_v1 }
   0xc   : > { %653 = vmatpush3.bf16.msra.mxu0 (!%p230_p3), %v697_v2 }
   0xd   : > { %654 = vmatprep.subr.bf16.mxu0 (!%p230_p3), %v729_v1 }
   0xe   : > { %s834_s23 = smov (!%p281_p4, %s610_s23), 3 }
   0xf   : > { %s783_s26 = sshll.u32 %s834_s23, 2 }
  0x10   : > { %s287_s29 = scalar_lea.vmem %s824_s0, %s783_s26  ;;  %655 = vmatpush3.bf16.msra.mxu0 %v698_v3  ;;  %s308_s19 = scalar_lea.vmem %s827_s3, %s783_s26 }
  0x11   : > { %656 = vmatprep.subr.bf16.mxu0 %v729_v1  ;;  %v704_v9 = vld [vmem:[%s287_s29] sm:$0xff]   ;;  %s317_s24 = scalar_lea.vmem %s828_s4, %s783_s26 }
  0x12   : > { %v633_v10 = vld [vmem:[%s308_s19] sm:$0xff]  }
  0x13   : > { %v634_v12 = vunpack.c.l.bf16 %v633_v10  ;;  %v635_v16 = vunpack.c.h.bf16 %v633_v10 }
  0x14   : > { %657 = vmatpush3.bf16.msra.mxu0 %v699_v4 }
  0x15   : > { %658 = vmatprep.subr.bf16.mxu0 %v729_v1 }
  0x18   : > { %659 = vmatpush3.bf16.msra.mxu0 %v700_v5 }
  0x19   : > { %660 = vmatprep.subr.bf16.mxu0 %v729_v1 }
  0x1c   : > { %661 = vmatpush3.bf16.msra.mxu0 %v701_v6 }
  0x1d   : > { %662 = vmatprep.subr.bf16.mxu0 %v729_v1 }
  0x20   : > { %663 = vmatpush3.bf16.msra.mxu0 %v702_v7 }
  0x21   : > { %664 = vmatprep.subr.bf16.mxu0 %v729_v1 }
  0x24   : > { %665 = vmatpush3.bf16.msra.mxu0 %v703_v8 }
  0x27   : > { %667 = vmatmul.mubr.bf16.vlgmr.msra.gmra.mrb[0].mxu0 %v704_v9 }
  0xfa   : > { %v434_v13 = vpop.f32.mrb[0].mxu0 }
  0xfb   : > { %v457_v14 = vadd.f32 %v625_v11, %v434_v13  ;;  %v668_v15 = vpop.f32.mrb[1].mxu0 }
  0xfc   : > { %v437_v17 = vpop.f32.mrb[2].mxu0 }
  0xfd   : > { %v463_v18 = vadd.f32 %v634_v12, %v457_v14  ;;  %v458_v19 = vadd.f32 %v625_v11, %v437_v17  ;;  %v669_v20 = vpop.f32.mrb[3].mxu0 }
  0xff   : > { %v464_v21 = vadd.f32 %v635_v16, %v458_v19  ;;  %v465_v22 = vmax.f32 %v463_v18, 0.0 }
 0x101   : > { %v466_v23 = vmax.f32 %v464_v21, 0.0 }
 0x103   : > { %v639_v24 = vpack.c.bf16 %v466_v23, %v465_v22 }
 0x105   : > { %640 = vst [vmem:[%s317_s24] sm:$0xff] %v639_v24  }
 0x106 PF: > { %s14_s17 = sadd.s32 1, %s727_s17   ;;  %s829_s15 = smov %s723_s16 }
 0x107   : > { %p11_p5 = scmp.ge.s32.totalorder %s14_s17, 4   ;;  %s830_s16 = smov %s832_s18 }
 0x109   :  { %13 = sbr.rel (!%p11_p5) target bundleno = 2 (0x2), region = 83 }

// kernel: resnet50_bottom_forward.80
= control target key start
LH: loop header
LB: loop body
LE: loop exit
PB: predicated region body
PF: predicated region fallthrough
CT: control target
= control target key end

     0   :  { %s662_s12 = smov 0   ;;  %s664_s13 = smov 0   ;;  %s725_s0 = inlined_call_operand.vmem [shape: bf16[32,128], index: 0, kind: input, shape index: {}]   ;;  %s726_s1 = inlined_call_operand.vmem [shape: bf16[128,128], index: 1, kind: input, shape index: {}]   ;;  %s727_s2 = inlined_call_operand.vmem [shape: f32[1,128], index: 2, kind: input, shape index: {}]   ;;  %s728_s3 = inlined_call_operand.vmem [shape: bf16[32,128], index: 3, kind: output, shape index: {}]  }
   0x1   :  { %s666_s14 = smov 0  }
   0x2 LB: > { %s32_s15 = sadd.s32 1, %s634_s13  ;;  %p526_p0 = scmp.ge.s32.totalorder %s638_s14, 1  ;;  %s638_s14 = sphi %s666_s14, %s13_s14   ;;  %s634_s13 = sphi %s664_s13, %s730_s13   ;;  %s630_s12 = sphi %s662_s12, %s729_s12  }
   0x3   : > { %p34_p1 = scmp.ge.s32.totalorder %s32_s15, 2  ;;  %p188_p2 = scmp.lt.s32.totalorder %s638_s14, 3 }
   0x5   : > { %s732_s15 = smov (%p34_p1, %s32_s15), 0  ;;  %p189_p3 = pnand %p526_p0, %p188_p2 }
   0x6   : > { %v607_v0 = vld [vmem:[%s726_s1] sm:$0xff] (!%p189_p3)   ;;  %v640_v1 = vmov (!%p189_p3), 0.0   ;;  %v608_v2 = vld [vmem:[%s726_s1 + $0x8] sm:$0xff] (!%p189_p3)   ;;  %vm641_vm0 = vmmov (!%p189_p3), 0   ;;  %s527_s20 = sshll.u32 (!%p189_p3), %s630_s12, 1  ;;  %v609_v3 = vld [vmem:[%s726_s1 + $0x10] sm:$0xff] (!%p189_p3)  }
   0x7   : > { %192 = sbr.rel (%p189_p3) target bundleno = 258 (0x102), region = 32  ;;  %561 = vmatprep.subr.bf16.mxu0 (!%p189_p3), %v640_v1  ;;  %577 = vmatprep.mubr.msk.bf16.mxu0 (!%p189_p3), %vm641_vm0, %v640_v1  ;;  %p230_p4 = scmp.lt.s32.totalorder (!%p189_p3), %s527_s20, 3  ;;  %v610_v4 = vld [vmem:[%s726_s1 + $0x18] sm:$0xff] (!%p189_p3)   ;;  %v611_v5 = vld [vmem:[%s726_s1 + $0x20] sm:$0xff] (!%p189_p3)   ;;  %v612_v6 = vld [vmem:[%s726_s1 + $0x28] sm:$0xff] (!%p189_p3)  }
   0x8   : > { %562 = vmatpush3.bf16.msra.mxu0 (!%p189_p3), %v607_v0  ;;  %v613_v7 = vld [vmem:[%s726_s1 + $0x30] sm:$0xff] (!%p189_p3)   ;;  %v614_v8 = vld [vmem:[%s726_s1 + $0x38] sm:$0xff] (!%p189_p3)   ;;  %v540_v11 = vld [vmem:[%s727_s2] ss:$0 sm:$0xff] (!%p189_p3) }
   0x9   : > { %563 = vmatprep.subr.bf16.mxu0 (!%p189_p3), %v640_v1 }
   0xc   : > { %564 = vmatpush3.bf16.msra.mxu0 (!%p189_p3), %v608_v2 }
   0xd   : > { %565 = vmatprep.subr.bf16.mxu0 (!%p189_p3), %v640_v1 }
   0xe   : > { %s734_s20 = smov (!%p230_p4, %s527_s20), 3 }
   0xf   : > { %s528_s23 = sshll.u32 %s734_s20, 2 }
  0x10   : > { %s236_s26 = scalar_lea.vmem %s725_s0, %s528_s23  ;;  %566 = vmatpush3.bf16.msra.mxu0 %v609_v3  ;;  %s257_s17 = scalar_lea.vmem %s728_s3, %s528_s23 }
  0x11   : > { %567 = vmatprep.subr.bf16.mxu0 %v640_v1  ;;  %v615_v9 = vld [vmem:[%s236_s26] sm:$0xff]  }
  0x14   : > { %568 = vmatpush3.bf16.msra.mxu0 %v610_v4 }
  0x15   : > { %569 = vmatprep.subr.bf16.mxu0 %v640_v1 }
  0x18   : > { %570 = vmatpush3.bf16.msra.mxu0 %v611_v5 }
  0x19   : > { %571 = vmatprep.subr.bf16.mxu0 %v640_v1 }
  0x1c   : > { %572 = vmatpush3.bf16.msra.mxu0 %v612_v6 }
  0x1d   : > { %573 = vmatprep.subr.bf16.mxu0 %v640_v1 }
  0x20   : > { %574 = vmatpush3.bf16.msra.mxu0 %v613_v7 }
  0x21   : > { %575 = vmatprep.subr.bf16.mxu0 %v640_v1 }
  0x24   : > { %576 = vmatpush3.bf16.msra.mxu0 %v614_v8 }
  0x27   : > { %578 = vmatmul.mubr.bf16.vlgmr.msra.gmra.mrb[0].mxu0 %v615_v9 }
  0xfa   : > { %v374_v10 = vpop.f32.mrb[0].mxu0 }
  0xfb   : > { %v579_v12 = vpop.f32.mrb[1].mxu0  ;;  %v397_v14 = vadd.f32 %v540_v11, %v374_v10 }
  0xfc   : > { %v377_v13 = vpop.f32.mrb[2].mxu0 }
  0xfd   : > { %v398_v15 = vadd.f32 %v540_v11, %v377_v13  ;;  %v580_v16 = vpop.f32.mrb[3].mxu0 }
  0xff   : > { %v550_v17 = vpack.c.bf16 %v398_v15, %v397_v14 }
 0x101   : > { %551 = vst [vmem:[%s257_s17] sm:$0xff] %v550_v17  }
 0x102 PF: > { %s13_s14 = sadd.s32 1, %s638_s14   ;;  %s729_s12 = smov %s634_s13 }
 0x103   : > { %p10_p5 = scmp.ge.s32.totalorder %s13_s14, 4   ;;  %s730_s13 = smov %s732_s15 }
 0x105   :  { %12 = sbr.rel (!%p10_p5) target bundleno = 2 (0x2), region = 76 }

// kernel: resnet50_bottom_forward.82
= control target key start
LH: loop header
LB: loop body
LE: loop exit
PB: predicated region body
PF: predicated region fallthrough
CT: control target
= control target key end

     0   :  { %s1020_s12 = smov 0   ;;  %s1022_s13 = smov 0   ;;  %s1151_s0 = inlined_call_operand.vmem [shape: bf16[32,1152], index: 0, kind: input, shape index: {}]   ;;  %s1152_s1 = inlined_call_operand.vmem [shape: bf16[1152,128], index: 1, kind: input, shape index: {}]   ;;  %s1153_s2 = inlined_call_operand.vmem [shape: f32[1,128], index: 2, kind: input, shape index: {}]   ;;  %s1154_s3 = inlined_call_operand.vmem [shape: bf16[32,128], index: 3, kind: output, shape index: {}]  }
   0x1   :  { %s1024_s14 = smov 0   ;;  %s1026_s15 = smov 0  }
   0x2   :  { %s1028_s16 = smov 0   ;;  %s1030_s17 = smov 0  }
   0x3   :  { %s1032_s18 = smov 0  }
   0x4 LB: > { %s25_s19 = sadd.s32 1, %s987_s16  ;;  %s32_s20 = sadd.s32 1, %s991_s17  ;;  %s995_s18 = sphi %s1032_s18, %s13_s18   ;;  %s991_s17 = sphi %s1030_s17, %s1160_s17   ;;  %s987_s16 = sphi %s1028_s16, %s1159_s16   ;;  %s983_s15 = sphi %s1026_s15, %s1158_s15   ;;  %s979_s14 = sphi %s1024_s14, %s1157_s14   ;;  %s975_s13 = sphi %s1022_s13, %s1156_s13   ;;  %s971_s12 = sphi %s1020_s12, %s1155_s12  }
   0x5   : > { %p26_p0 = scmp.ge.s32.totalorder %s25_s19, 3  ;;  %p48_p1 = scmp.ne.s32.totalorder %s975_s13, %s971_s12 }
   0x6   : > { %p49_p2 = scmp.eq.s32.totalorder %s995_s18, 0  ;;  %s41_s24 = sadd.s32 1, %s975_s13 }
   0x7   : > { %s1162_s19 = smov (%p26_p0, %s25_s19), 0  ;;  %s1164_s20 = smov (!%p26_p0, %s32_s20), %s991_s17 }
   0x8   : > { %p50_p3 = por %p49_p2, %p48_p1  ;;  %p34_p4 = scmp.ge.s32.totalorder %s1164_s20, 2 }
   0x9   : > { %s37_s21 = ssub.s32 %s987_s16, %s1162_s19  ;;  %p747_p6 = scmp.ge.s32.totalorder %s995_s18, 6 }
   0xa   : > { %s1166_s20 = smov (%p34_p4, %s1164_s20), 0 }
   0xb   : > { %s36_s22 = ssub.s32 %s991_s17, %s1166_s20  ;;  %162 = sbr.rel (%p747_p6) target bundleno = 29 (0x1d), region = 20 }
   0xc   : > { %s38_s23 = sor.u32 %s37_s21, %s36_s22 }
   0xd   : > { %p39_p5 = scmp.eq.s32.totalorder %s38_s23, 0 }
   0xf   : > { %s1071_s25 = scalar_select %p39_p5, %s975_s13, %s41_s24  }
  0x12   : > { %165 = sbr.rel (!%p50_p3) target bundleno = 29 (0x1d), region = 24  ;;  %s167_s26 = sand.u32 (%p50_p3), 1, %s975_s13  }
  0x13   : > { %s171_s27 = smul.u32 (%p50_p3), 3, %s987_s16 }
  0x14   : > { %s851_s28 = smul.u32 (%p50_p3), 24, %s167_s26 }
  0x15   : > { %s852_s29 = smul.u32 (%p50_p3), 18, %s991_s17 }
  0x16   : > { %s169_s8 = scalar_lea.vmem (%p50_p3), [#allocation3], %s851_s28 }
  0x17   : > { %s173_s30 = sadd.s32 (%p50_p3), %s852_s29, %s171_s27 }
  0x18   : > { %s750_s4 = sshll.u32 (%p50_p3), %s173_s30, 2 }
  0x19   : > { %s175_s7 = scalar_lea.vmem %s1151_s0, %s750_s4 }
  0x1a   : > { %v190_v0 = vld [vmem:[%s175_s7] sm:$0xff]  ;;  %v751_v2 = vld [vmem:[%s175_s7 + $0x8] sm:$0xf]  ;;  %v753_v3 = vld [vmem:[%s175_s7 + $0x2c] sm:$0xf] }
  0x1b   : > { %v192_v1 = vld [vmem:[%s175_s7 + $0x24] sm:$0xff]  ;;  %191 = vst [vmem:[%s169_s8] sm:$0xff] %v190_v0  ;;  %752 = vst [vmem:[%s169_s8 + $0x8] sm:$0xf] %v751_v2 }
  0x1c   : > { %193 = vst [vmem:[%s169_s8 + $0xc] sm:$0xff] %v192_v1  ;;  %754 = vst [vmem:[%s169_s8 + $0x14] sm:$0xf] %v753_v3 }
  0x1d PF: > { %p755_p7 = scmp.ge.s32.totalorder %s995_s18, 1  ;;  %p221_p8 = scmp.lt.s32.totalorder %s995_s18, 7 }
  0x1f   : > { %p222_p9 = pnand %p755_p7, %p221_p8 }
  0x20   : > { %s228_s9 = sand.u32 (!%p222_p9), 1, %s971_s12   ;;  %s267_s10 = smul.u32 (!%p222_p9), 48, %s979_s14 }
  0x21   : > { %225 = sbr.rel (%p222_p9) target bundleno = 319 (0x13f), region = 54  ;;  %s757_s21 = sshll.u32 (!%p222_p9), %s983_s15, 1 }
  0x22   : > { %s853_s11 = smul.u32 (!%p222_p9), 24, %s228_s9  ;;  %p268_p10 = scmp.lt.s32.totalorder (!%p222_p9), %s267_s10, 143 }
  0x23   : > { %p280_p11 = scmp.lt.s32.totalorder (!%p222_p9), %s757_s21, 3  ;;  %p759_p12 = scmp.ne.s32.totalorder (!%p222_p9), %s979_s14, 0 }
  0x24   : > { %s1095_s12 = scalar_lea.vmem (!%p222_p9), [#allocation3], %s853_s11 }
  0x28   : > { %s1168_s10 = smov (!%p268_p10, %s267_s10), 143  ;;  %s1170_s21 = smov (!%p280_p11, %s757_s21), 3 }
  0x29   : > { %s756_s22 = sshll.u32 %s1168_s10, 2  ;;  %s758_s27 = sshll.u32 %s1170_s21, 2  ;;  %v997_v4 = vmov (!%p759_p12), 0.0  }
  0x2a   : > { %s1088_s26 = scalar_lea.vmem %s1152_s1, %s756_s22  ;;  %s1093_s30 = scalar_lea.vmem %s1154_s3, %s758_s27  ;;  %293 = vst [vmem:[#allocation2] sm:$0xff] (!%p759_p12), %v997_v4  ;;  %294 = vst [vmem:[#allocation2 + $0x8] sm:$0xff] (!%p759_p12), %v997_v4 }
  0x2b   : > { %292 = sbr.rel (%p759_p12) target bundleno = 50 (0x32), region = 62 }
  0x32 PF: > { %v913_v5 = vld [vmem:[%s1088_s26 + $0x40] sm:$0xff]   ;;  %v998_v6 = vmov 0.0   ;;  %vm999_vm0 = vmmov 0   ;;  %v916_v9 = vld [vmem:[%s1088_s26 + $0x48] sm:$0xff]   ;;  %v919_v12 = vld [vmem:[%s1088_s26 + $0x50] sm:$0xff]   ;;  %p787_p13 = scmp.ne.s32.totalorder %s979_s14, 2 }
  0x33   : > { %831 = vmatprep.subr.bf16.mxu1 %v998_v6  ;;  %v914_v7 = vld [vmem:[%s1088_s26] sm:$0xff]   ;;  %800 = vmatprep.subr.bf16.mxu0 %v913_v5  ;;  %v917_v10 = vld [vmem:[%s1088_s26 + $0x8] sm:$0xff]   ;;  %v920_v13 = vld [vmem:[%s1088_s26 + $0x10] sm:$0xff]  }
  0x34   : > { %v915_v8 = vld [vmem:[%s1088_s26 + $0x80] sm:$0xff]   ;;  %847 = vmatprep.mubr.msk.bf16.mxu1 %vm999_vm0, %v998_v6  ;;  %801 = vmatpush3.bf16.msra.mxu0 %v914_v7  ;;  %v918_v11 = vld [vmem:[%s1088_s26 + $0x88] sm:$0xff]   ;;  %v921_v14 = vld [vmem:[%s1088_s26 + $0x90] sm:$0xff]  }
  0x35   : > { %832 = vmatpush3.bf16.msra.mxu1 %v915_v8  ;;  %802 = vmatprep.subr.bf16.mxu0 %v916_v9  ;;  %v922_v15 = vld [vmem:[%s1088_s26 + $0x58] sm:$0xff]   ;;  %v925_v18 = vld [vmem:[%s1088_s26 + $0x60] sm:$0xff]   ;;  %v928_v21 = vld [vmem:[%s1088_s26 + $0x68] sm:$0xff]  }
  0x36   : > { %833 = vmatprep.subr.bf16.mxu1 %v998_v6  ;;  %v923_v16 = vld [vmem:[%s1088_s26 + $0x18] sm:$0xff]   ;;  %v926_v19 = vld [vmem:[%s1088_s26 + $0x20] sm:$0xff]   ;;  %v929_v22 = vld [vmem:[%s1088_s26 + $0x28] sm:$0xff]  }
  0x37   : > { %v924_v17 = vld [vmem:[%s1088_s26 + $0x98] sm:$0xff]   ;;  %v927_v20 = vld [vmem:[%s1088_s26 + $0xa0] sm:$0xff]   ;;  %v930_v23 = vld [vmem:[%s1088_s26 + $0xa8] sm:$0xff]  }
  0x38   : > { %803 = vmatpush3.bf16.msra.mxu0 %v917_v10  ;;  %v931_v24 = vld [vmem:[%s1088_s26 + $0x70] sm:$0xff]   ;;  %v934_v27 = vld [vmem:[%s1088_s26 + $0x78] sm:$0xff]   ;;  %v295_v39 = vld [vmem:[#allocation2] sm:$0xff] }
  0x39   : > { %834 = vmatpush3.bf16.msra.mxu1 %v918_v11  ;;  %804 = vmatprep.subr.bf16.mxu0 %v919_v12  ;;  %v932_v25 = vld [vmem:[%s1088_s26 + $0x30] sm:$0xff]   ;;  %v935_v29 = vld [vmem:[%s1088_s26 + $0x38] sm:$0xff]   ;;  %v296_v45 = vld [vmem:[#allocation2 + $0x8] sm:$0xff] }
  0x3a   : > { %835 = vmatprep.subr.bf16.mxu1 %v998_v6  ;;  %v933_v26 = vld [vmem:[%s1088_s26 + $0xb0] sm:$0xff]   ;;  %v936_v30 = vld [vmem:[%s1088_s26 + $0xb8] sm:$0xff]   ;;  %v788_v51 = vld [vmem:[%s1153_s2] ss:$0 sm:$0xff] (!%p787_p13) }
  0x3b   : > { %v939_v28 = vld [vmem:[%s1095_s12 + $0x4] ss:$12 sps:$4 sm:$0xff]   ;;  %v937_v31 = vld [vmem:[%s1095_s12] ss:$12 sps:$4 sm:$0xff]   ;;  %v940_v32 = vld [vmem:[%s1095_s12 + $0x8] ss:$12 sps:$4 sm:$0xff]  }
  0x3c   : > { %805 = vmatpush3.bf16.msra.mxu0 %v920_v13  ;;  %541 = vmatprep.mubr.bf16.mxu0 %v939_v28 }
  0x3d   : > { %836 = vmatpush3.bf16.msra.mxu1 %v921_v14  ;;  %806 = vmatprep.subr.bf16.mxu0 %v922_v15 }
  0x3e   : > { %837 = vmatprep.subr.bf16.mxu1 %v998_v6 }
  0x40   : > { %807 = vmatpush3.bf16.msra.mxu0 %v923_v16 }
  0x41   : > { %838 = vmatpush3.bf16.msra.mxu1 %v924_v17  ;;  %808 = vmatprep.subr.bf16.mxu0 %v925_v18 }
  0x42   : > { %839 = vmatprep.subr.bf16.mxu1 %v998_v6 }
  0x44   : > { %809 = vmatpush3.bf16.msra.mxu0 %v926_v19 }
  0x45   : > { %840 = vmatpush3.bf16.msra.mxu1 %v927_v20  ;;  %810 = vmatprep.subr.bf16.mxu0 %v928_v21 }
  0x46   : > { %841 = vmatprep.subr.bf16.mxu1 %v998_v6 }
  0x48   : > { %811 = vmatpush3.bf16.msra.mxu0 %v929_v22 }
  0x49   : > { %842 = vmatpush3.bf16.msra.mxu1 %v930_v23  ;;  %812 = vmatprep.subr.bf16.mxu0 %v931_v24 }
  0x4a   : > { %843 = vmatprep.subr.bf16.mxu1 %v998_v6 }
  0x4c   : > { %813 = vmatpush3.bf16.msra.mxu0 %v932_v25 }
  0x4d   : > { %844 = vmatpush3.bf16.msra.mxu1 %v933_v26  ;;  %814 = vmatprep.subr.bf16.mxu0 %v934_v27 }
  0x4e   : > { %845 = vmatprep.subr.bf16.mxu1 %v998_v6 }
  0x50   : > { %815 = vmatpush3.bf16.msra.mxu0 %v935_v29 }
  0x51   : > { %846 = vmatpush3.bf16.msra.mxu1 %v936_v30 }
  0x53   : > { %542 = vmatmul.mubr.bf16.vlgmr.msra.gmra.mrb[0].mxu0 %v937_v31 }
  0x54   : > { %848 = vmatmul.mubr.bf16.vlgmr.msra.gmra.mrb[0].mxu1 %v940_v32 }
 0x126   : > { %v816_v33 = vpop.f32.mrb[0].mxu0 }
 0x127   : > { %v584_v34 = vpop.f32.mrb[0].mxu1  ;;  %v817_v35 = vpop.f32.mrb[1].mxu0 }
 0x128   : > { %v818_v36 = vadd.f32 %v817_v35, %v816_v33  ;;  %v849_v37 = vpop.f32.mrb[1].mxu1  ;;  %v819_v38 = vpop.f32.mrb[2].mxu0 }
 0x129   : > { %v587_v40 = vpop.f32.mrb[2].mxu1  ;;  %v820_v41 = vpop.f32.mrb[3].mxu0 }
 0x12a   : > { %v585_v42 = vadd.f32 %v818_v36, %v584_v34  ;;  %v821_v43 = vadd.f32 %v820_v41, %v819_v38  ;;  %v850_v44 = vpop.f32.mrb[3].mxu1  ;;  %598 = sbr.rel (%p787_p13) target bundleno = 319 (0x13f), region = 66 }
 0x12c   : > { %v591_v46 = vadd.f32 %v585_v42, %v295_v39  ;;  %v588_v47 = vadd.f32 %v821_v43, %v587_v40 }
 0x12e   : > { %593 = vst [vmem:[#allocation2] sm:$0xff] %v591_v46  ;;  %v592_v48 = vadd.f32 %v588_v47, %v296_v45 }
 0x130   : > { %594 = vst [vmem:[#allocation2 + $0x8] sm:$0xff] %v592_v48 }
 0x135   : > { %v599_v49 = vld [vmem:[#allocation2] sm:$0xff] }
 0x136   : > { %v608_v52 = vadd.f32 %v788_v51, %v599_v49 }
 0x137   : > { %v600_v50 = vld [vmem:[#allocation2 + $0x8] sm:$0xff] }
 0x138   : > { %v609_v53 = vadd.f32 %v788_v51, %v600_v50  ;;  %v610_v54 = vmax.f32 %v608_v52, 0.0 }
 0x13a   : > { %v611_v55 = vmax.f32 %v609_v53, 0.0 }
 0x13c   : > { %v798_v56 = vpack.c.bf16 %v611_v55, %v610_v54 }
 0x13e   : > { %799 = vst [vmem:[%s1093_s30] sm:$0xff] %v798_v56  }
 0x13f PF: > { %s13_s18 = sadd.s32 1, %s995_s18   ;;  %s1155_s12 = smov %s975_s13 }
 0x140   : > { %p10_p0 = scmp.ge.s32.totalorder %s13_s18, 8   ;;  %s1156_s13 = smov %s1071_s25 }
 0x141   : > { %s1157_s14 = smov %s987_s16  ;;  %s1158_s15 = smov %s991_s17 }
 0x142   : > { %s1159_s16 = smov %s1162_s19  ;;  %s1160_s17 = smov %s1166_s20 }
 0x143   :  { %12 = sbr.rel (!%p10_p0) target bundleno = 4 (0x4), region = 113 }

// kernel: resnet50_bottom_forward.84
= control target key start
LH: loop header
LB: loop body
LE: loop exit
PB: predicated region body
PF: predicated region fallthrough
CT: control target
= control target key end

     0   :  { %s664_s12 = smov 0   ;;  %s666_s13 = smov 0   ;;  %s731_s0 = inlined_call_operand.vmem [shape: bf16[32,128], index: 0, kind: input, shape index: {}]   ;;  %s732_s1 = inlined_call_operand.vmem [shape: bf16[128,128], index: 1, kind: input, shape index: {}]   ;;  %s733_s2 = inlined_call_operand.vmem [shape: f32[1,128], index: 2, kind: input, shape index: {}]   ;;  %s734_s3 = inlined_call_operand.vmem [shape: bf16[32,128], index: 3, kind: output, shape index: {}]  }
   0x1   :  { %s668_s14 = smov 0  }
   0x2 LB: > { %s32_s15 = sadd.s32 1, %s636_s13  ;;  %p528_p0 = scmp.ge.s32.totalorder %s640_s14, 1  ;;  %s640_s14 = sphi %s668_s14, %s13_s14   ;;  %s636_s13 = sphi %s666_s13, %s736_s13   ;;  %s632_s12 = sphi %s664_s12, %s735_s12  }
   0x3   : > { %p34_p1 = scmp.ge.s32.totalorder %s32_s15, 2  ;;  %p188_p2 = scmp.lt.s32.totalorder %s640_s14, 3 }
   0x5   : > { %s738_s15 = smov (%p34_p1, %s32_s15), 0  ;;  %p189_p3 = pnand %p528_p0, %p188_p2 }
   0x6   : > { %v609_v0 = vld [vmem:[%s732_s1] sm:$0xff] (!%p189_p3)   ;;  %v642_v1 = vmov (!%p189_p3), 0.0   ;;  %v610_v2 = vld [vmem:[%s732_s1 + $0x8] sm:$0xff] (!%p189_p3)   ;;  %vm643_vm0 = vmmov (!%p189_p3), 0   ;;  %s529_s20 = sshll.u32 (!%p189_p3), %s632_s12, 1  ;;  %v611_v3 = vld [vmem:[%s732_s1 + $0x10] sm:$0xff] (!%p189_p3)  }
   0x7   : > { %192 = sbr.rel (%p189_p3) target bundleno = 260 (0x104), region = 32  ;;  %563 = vmatprep.subr.bf16.mxu0 (!%p189_p3), %v642_v1  ;;  %579 = vmatprep.mubr.msk.bf16.mxu0 (!%p189_p3), %vm643_vm0, %v642_v1  ;;  %p230_p4 = scmp.lt.s32.totalorder (!%p189_p3), %s529_s20, 3  ;;  %v612_v4 = vld [vmem:[%s732_s1 + $0x18] sm:$0xff] (!%p189_p3)   ;;  %v613_v5 = vld [vmem:[%s732_s1 + $0x20] sm:$0xff] (!%p189_p3)   ;;  %v614_v6 = vld [vmem:[%s732_s1 + $0x28] sm:$0xff] (!%p189_p3)  }
   0x8   : > { %564 = vmatpush3.bf16.msra.mxu0 (!%p189_p3), %v609_v0  ;;  %v615_v7 = vld [vmem:[%s732_s1 + $0x30] sm:$0xff] (!%p189_p3)   ;;  %v616_v8 = vld [vmem:[%s732_s1 + $0x38] sm:$0xff] (!%p189_p3)   ;;  %v542_v10 = vld [vmem:[%s733_s2] ss:$0 sm:$0xff] (!%p189_p3) }
   0x9   : > { %565 = vmatprep.subr.bf16.mxu0 (!%p189_p3), %v642_v1 }
   0xc   : > { %566 = vmatpush3.bf16.msra.mxu0 (!%p189_p3), %v610_v2 }
   0xd   : > { %567 = vmatprep.subr.bf16.mxu0 (!%p189_p3), %v642_v1 }
   0xe   : > { %s740_s20 = smov (!%p230_p4, %s529_s20), 3 }
   0xf   : > { %s530_s23 = sshll.u32 %s740_s20, 2 }
  0x10   : > { %s236_s26 = scalar_lea.vmem %s731_s0, %s530_s23  ;;  %568 = vmatpush3.bf16.msra.mxu0 %v611_v3  ;;  %s257_s17 = scalar_lea.vmem %s734_s3, %s530_s23 }
  0x11   : > { %569 = vmatprep.subr.bf16.mxu0 %v642_v1  ;;  %v617_v9 = vld [vmem:[%s236_s26] sm:$0xff]  }
  0x14   : > { %570 = vmatpush3.bf16.msra.mxu0 %v612_v4 }
  0x15   : > { %571 = vmatprep.subr.bf16.mxu0 %v642_v1 }
  0x18   : > { %572 = vmatpush3.bf16.msra.mxu0 %v613_v5 }
  0x19   : > { %573 = vmatprep.subr.bf16.mxu0 %v642_v1 }
  0x1c   : > { %574 = vmatpush3.bf16.msra.mxu0 %v614_v6 }
  0x1d   : > { %575 = vmatprep.subr.bf16.mxu0 %v642_v1 }
  0x20   : > { %576 = vmatpush3.bf16.msra.mxu0 %v615_v7 }
  0x21   : > { %577 = vmatprep.subr.bf16.mxu0 %v642_v1 }
  0x24   : > { %578 = vmatpush3.bf16.msra.mxu0 %v616_v8 }
  0x27   : > { %580 = vmatmul.mubr.bf16.vlgmr.msra.gmra.mrb[0].mxu0 %v617_v9 }
  0xfa   : > { %v374_v11 = vpop.f32.mrb[0].mxu0 }
  0xfb   : > { %v397_v12 = vadd.f32 %v542_v10, %v374_v11  ;;  %v581_v13 = vpop.f32.mrb[1].mxu0 }
  0xfc   : > { %v377_v14 = vpop.f32.mrb[2].mxu0 }
  0xfd   : > { %v398_v15 = vadd.f32 %v542_v10, %v377_v14  ;;  %v582_v16 = vpop.f32.mrb[3].mxu0  ;;  %v399_v17 = vmax.f32 %v397_v12, 0.0 }
  0xff   : > { %v400_v18 = vmax.f32 %v398_v15, 0.0 }
 0x101   : > { %v552_v19 = vpack.c.bf16 %v400_v18, %v399_v17 }
 0x103   : > { %553 = vst [vmem:[%s257_s17] sm:$0xff] %v552_v19  }
 0x104 PF: > { %s13_s14 = sadd.s32 1, %s640_s14   ;;  %s735_s12 = smov %s636_s13 }
 0x105   : > { %p10_p5 = scmp.ge.s32.totalorder %s13_s14, 4   ;;  %s736_s13 = smov %s738_s15 }
 0x107   :  { %12 = sbr.rel (!%p10_p5) target bundleno = 2 (0x2), region = 76 }

// kernel: resnet50_bottom_forward.101
= control target key start
LH: loop header
LB: loop body
LE: loop exit
PB: predicated region body
PF: predicated region fallthrough
CT: control target
= control target key end

     0   :  { %s866_s12 = smov 0   ;;  %s868_s13 = smov 0   ;;  %s941_s0 = inlined_call_operand.vmem [shape: bf16[8,1152], index: 0, kind: input, shape index: {}]   ;;  %s942_s1 = inlined_call_operand.vmem [shape: bf16[1152,128], index: 1, kind: input, shape index: {}]   ;;  %s943_s2 = inlined_call_operand.vmem [shape: f32[1,128], index: 2, kind: input, shape index: {}]   ;;  %s944_s3 = inlined_call_operand.vmem [shape: bf16[8,128], index: 3, kind: output, shape index: {}]  }
   0x1   :  { %s870_s14 = smov 0  }
   0x2 LB: > { %s25_s15 = sadd.s32 1, %s837_s13  ;;  %p678_p0 = scmp.ge.s32.totalorder %s841_s14, 1  ;;  %s841_s14 = sphi %s870_s14, %s13_s14   ;;  %s837_s13 = sphi %s868_s13, %s946_s13   ;;  %s833_s12 = sphi %s866_s12, %s945_s12  }
   0x3   : > { %p26_p1 = scmp.ge.s32.totalorder %s25_s15, 3  ;;  %p189_p2 = scmp.lt.s32.totalorder %s841_s14, 4 }
   0x5   : > { %s948_s15 = smov (%p26_p1, %s25_s15), 0  ;;  %p190_p3 = pnand %p678_p0, %p189_p2 }
   0x6   : > { %s230_s16 = smul.u32 (!%p190_p3), 3, %s833_s12  ;;  %p681_p6 = scmp.ne.s32.totalorder (!%p190_p3), %s833_s12, 0 }
   0x7   : > { %193 = sbr.rel (%p190_p3) target bundleno = 291 (0x123), region = 32 }
   0x8   : > { %s240_s17 = smul.u32 (!%p190_p3), 48, %s833_s12  ;;  %p233_p4 = scmp.lt.s32.totalorder (!%p190_p3), %s230_s16, 8 }
   0xa   : > { %p241_p5 = scmp.lt.s32.totalorder (!%p190_p3), %s240_s17, 143 }
   0xe   : > { %s950_s16 = smov (!%p233_p4, %s230_s16), 8  ;;  %s952_s17 = smov (!%p241_p5, %s240_s17), 143 }
   0xf   : > { %s679_s18 = sshll.u32 %s950_s16, 2  ;;  %s680_s22 = sshll.u32 %s952_s17, 2  ;;  %v843_v0 = vmov (!%p681_p6), 0.0  }
  0x10   : > { %s891_s21 = scalar_lea.vmem %s941_s0, %s679_s18  ;;  %s896_s25 = scalar_lea.vmem %s942_s1, %s680_s22  ;;  %264 = vst [vmem:[#allocation2] sm:$0xff] (!%p681_p6), %v843_v0 }
  0x11   : > { %263 = sbr.rel (%p681_p6) target bundleno = 24 (0x18), region = 36 }
  0x18 PF: > { %v792_v1 = vld [vmem:[%s896_s25 + $0x40] sm:$0xff]   ;;  %v844_v2 = vmov 0.0   ;;  %vm845_vm0 = vmmov 0   ;;  %v795_v5 = vld [vmem:[%s896_s25 + $0x48] sm:$0xff]   ;;  %v798_v8 = vld [vmem:[%s896_s25 + $0x50] sm:$0xff]   ;;  %p709_p7 = scmp.ne.s32.totalorder %s833_s12, 2 }
  0x19   : > { %745 = vmatprep.subr.bf16.mxu1 %v844_v2  ;;  %v793_v3 = vld [vmem:[%s896_s25] sm:$0xff]   ;;  %714 = vmatprep.subr.bf16.mxu0 %v792_v1  ;;  %v796_v6 = vld [vmem:[%s896_s25 + $0x8] sm:$0xff]   ;;  %v799_v9 = vld [vmem:[%s896_s25 + $0x10] sm:$0xff]  }
  0x1a   : > { %v794_v4 = vld [vmem:[%s896_s25 + $0x80] sm:$0xff]   ;;  %761 = vmatprep.mubr.msk.bf16.mxu1 %vm845_vm0, %v844_v2  ;;  %715 = vmatpush3.bf16.msra.mxu0 %v793_v3  ;;  %v797_v7 = vld [vmem:[%s896_s25 + $0x88] sm:$0xff]   ;;  %v800_v10 = vld [vmem:[%s896_s25 + $0x90] sm:$0xff]  }
  0x1b   : > { %746 = vmatpush3.bf16.msra.mxu1 %v794_v4  ;;  %716 = vmatprep.subr.bf16.mxu0 %v795_v5  ;;  %v801_v11 = vld [vmem:[%s896_s25 + $0x58] sm:$0xff]   ;;  %v804_v14 = vld [vmem:[%s896_s25 + $0x60] sm:$0xff]   ;;  %v807_v17 = vld [vmem:[%s896_s25 + $0x68] sm:$0xff]  }
  0x1c   : > { %747 = vmatprep.subr.bf16.mxu1 %v844_v2  ;;  %v802_v12 = vld [vmem:[%s896_s25 + $0x18] sm:$0xff]   ;;  %v805_v15 = vld [vmem:[%s896_s25 + $0x20] sm:$0xff]   ;;  %v808_v18 = vld [vmem:[%s896_s25 + $0x28] sm:$0xff]  }
  0x1d   : > { %v803_v13 = vld [vmem:[%s896_s25 + $0x98] sm:$0xff]   ;;  %v806_v16 = vld [vmem:[%s896_s25 + $0xa0] sm:$0xff]   ;;  %v809_v19 = vld [vmem:[%s896_s25 + $0xa8] sm:$0xff]  }
  0x1e   : > { %717 = vmatpush3.bf16.msra.mxu0 %v796_v6  ;;  %v810_v20 = vld [vmem:[%s896_s25 + $0x70] sm:$0xff]   ;;  %v813_v23 = vld [vmem:[%s896_s25 + $0x78] sm:$0xff]   ;;  %v266_v24 = vld [vmem:[%s891_s21] sm:$0xff] }
  0x1f   : > { %748 = vmatpush3.bf16.msra.mxu1 %v797_v7  ;;  %718 = vmatprep.subr.bf16.mxu0 %v798_v8  ;;  %v811_v21 = vld [vmem:[%s896_s25 + $0x30] sm:$0xff]   ;;  %v683_v25 = vcombine.high %v266_v24, %v266_v24  ;;  %v814_v26 = vld [vmem:[%s896_s25 + $0x38] sm:$0xff]   ;;  %v682_v28 = vcombine.low %v266_v24, %v266_v24  ;;  %v818_v29 = vld [vmem:[%s891_s21 + $0x8] ss:$0 sps:$4 sm:$0xff]  }
  0x20   : > { %749 = vmatprep.subr.bf16.mxu1 %v844_v2  ;;  %v812_v22 = vld [vmem:[%s896_s25 + $0xb0] sm:$0xff]   ;;  %v815_v27 = vld [vmem:[%s896_s25 + $0xb8] sm:$0xff]   ;;  %v265_v36 = vld [vmem:[#allocation2] sm:$0xff] }
  0x21   : > { %503 = vmatprep.mubr.bf16.mxu0 %v683_v25  ;;  %v710_v43 = vld [vmem:[%s943_s2] ss:$0 sm:$0xff] (!%p709_p7) }
  0x22   : > { %719 = vmatpush3.bf16.msra.mxu0 %v799_v9 }
  0x23   : > { %750 = vmatpush3.bf16.msra.mxu1 %v800_v10  ;;  %720 = vmatprep.subr.bf16.mxu0 %v801_v11 }
  0x24   : > { %751 = vmatprep.subr.bf16.mxu1 %v844_v2 }
  0x26   : > { %721 = vmatpush3.bf16.msra.mxu0 %v802_v12 }
  0x27   : > { %752 = vmatpush3.bf16.msra.mxu1 %v803_v13  ;;  %722 = vmatprep.subr.bf16.mxu0 %v804_v14 }
  0x28   : > { %753 = vmatprep.subr.bf16.mxu1 %v844_v2 }
  0x2a   : > { %723 = vmatpush3.bf16.msra.mxu0 %v805_v15 }
  0x2b   : > { %754 = vmatpush3.bf16.msra.mxu1 %v806_v16  ;;  %724 = vmatprep.subr.bf16.mxu0 %v807_v17 }
  0x2c   : > { %755 = vmatprep.subr.bf16.mxu1 %v844_v2 }
  0x2e   : > { %725 = vmatpush3.bf16.msra.mxu0 %v808_v18 }
  0x2f   : > { %756 = vmatpush3.bf16.msra.mxu1 %v809_v19  ;;  %726 = vmatprep.subr.bf16.mxu0 %v810_v20 }
  0x30   : > { %757 = vmatprep.subr.bf16.mxu1 %v844_v2 }
  0x32   : > { %727 = vmatpush3.bf16.msra.mxu0 %v811_v21 }
  0x33   : > { %758 = vmatpush3.bf16.msra.mxu1 %v812_v22  ;;  %728 = vmatprep.subr.bf16.mxu0 %v813_v23 }
  0x34   : > { %759 = vmatprep.subr.bf16.mxu1 %v844_v2 }
  0x36   : > { %729 = vmatpush3.bf16.msra.mxu0 %v814_v26 }
  0x37   : > { %760 = vmatpush3.bf16.msra.mxu1 %v815_v27 }
  0x39   : > { %504 = vmatmul.mubr.bf16.vlgmr.msra.gmra.mrb[0].mxu0 %v682_v28 }
  0x3a   : > { %762 = vmatmul.mubr.bf16.vlgmr.msra.gmra.mrb[0].mxu1 %v818_v29 }
 0x10c   : > { %v730_v30 = vpop.f32.mrb[0].mxu0 }
 0x10d   : > { %v545_v31 = vpop.f32.mrb[0].mxu1  ;;  %v731_v32 = vpop.f32.mrb[1].mxu0 }
 0x10e   : > { %v732_v33 = vadd.f32 %v731_v32, %v730_v30  ;;  %v763_v34 = vpop.f32.mrb[1].mxu1  ;;  %v733_v35 = vpop.f32.mrb[2].mxu0  ;;  %556 = sbr.rel (%p709_p7) target bundleno = 291 (0x123), region = 40 }
 0x10f   : > { %v548_v37 = vpop.f32.mrb[2].mxu1  ;;  %v734_v38 = vpop.f32.mrb[3].mxu0 }
 0x110   : > { %v546_v39 = vadd.f32 %v732_v33, %v545_v31  ;;  %v764_v40 = vpop.f32.mrb[3].mxu1 }
 0x112   : > { %v551_v41 = vadd.f32 %v546_v39, %v265_v36 }
 0x114   : > { %552 = vst [vmem:[#allocation2] sm:$0xff] %v551_v41 }
 0x11b   : > { %v557_v42 = vld [vmem:[#allocation2] sm:$0xff] }
 0x11c   : > { %v565_v44 = vadd.f32 %v710_v43, %v557_v42 }
 0x11e   : > { %v566_v45 = vmax.f32 %v565_v44, 0.0 }
 0x120   : > { %v567_v46 = vpack.c.bf16 %v566_v45, %v566_v45 }
 0x122   : > { %568 = vst [vmem:[%s944_s3] sm:$0xf] %v567_v46 }
 0x123 PF: > { %s13_s14 = sadd.s32 1, %s841_s14   ;;  %s945_s12 = smov %s837_s13 }
 0x124   : > { %p10_p8 = scmp.ge.s32.totalorder %s13_s14, 5   ;;  %s946_s13 = smov %s948_s15 }
 0x126   :  { %12 = sbr.rel (!%p10_p8) target bundleno = 2 (0x2), region = 76 }

// kernel: resnet50_bottom_forward.99
= control target key start
LH: loop header
LB: loop body
LE: loop exit
PB: predicated region body
PF: predicated region fallthrough
CT: control target
= control target key end

     0   :  { %v240_v1 = vmov 0   ;;  %v172_v18 = vlaneseq  ;;  %s318_s1 = inlined_call_operand.vmem [shape: bf16[128,256], index: 1, kind: input, shape index: {}]   ;;  %s319_s0 = inlined_call_operand.vmem [shape: bf16[8,128], index: 0, kind: input, shape index: {}]   ;;  %s320_s2 = inlined_call_operand.vmem [shape: f32[1,256], index: 2, kind: input, shape index: {}]   ;;  %s321_s3 = inlined_call_operand.vmem [shape: bf16[8,256], index: 3, kind: output, shape index: {}]  }
   0x1   :  { %v216_v0 = vld [vmem:[%s318_s1 + $0x4] ss:$8 sps:$4 sm:$0xff]   ;;  %152 = vmatprep.mubr.bf16.mxu0 %v240_v1  ;;  %v218_v2 = vld [vmem:[%s318_s1] ss:$8 sps:$4 sm:$0xff]   ;;  %v219_v3 = vld [vmem:[%s318_s1 + $0x14] ss:$8 sps:$4 sm:$0xff]  }
   0x2   :  { %120 = vmatprep.subr.bf16.mxu0 %v216_v0  ;;  %v221_v4 = vld [vmem:[%s318_s1 + $0x10] ss:$8 sps:$4 sm:$0xff]   ;;  %v222_v5 = vld [vmem:[%s318_s1 + $0x24] ss:$8 sps:$4 sm:$0xff]   ;;  %v224_v6 = vld [vmem:[%s318_s1 + $0x20] ss:$8 sps:$4 sm:$0xff]  }
   0x3   :  { %121 = vmatpush1.bf16.msra.mxu0 %v218_v2  ;;  %v225_v7 = vld [vmem:[%s318_s1 + $0x34] ss:$8 sps:$4 sm:$0xff]   ;;  %v227_v8 = vld [vmem:[%s318_s1 + $0x30] ss:$8 sps:$4 sm:$0xff]   ;;  %v228_v9 = vld [vmem:[%s318_s1 + $0x44] ss:$8 sps:$4 sm:$0xff]  }
   0x4   :  { %122 = vmatprep.subr.bf16.mxu0 %v219_v3  ;;  %v230_v10 = vld [vmem:[%s318_s1 + $0x40] ss:$8 sps:$4 sm:$0xff]   ;;  %v231_v11 = vld [vmem:[%s318_s1 + $0x54] ss:$8 sps:$4 sm:$0xff]   ;;  %v233_v12 = vld [vmem:[%s318_s1 + $0x50] ss:$8 sps:$4 sm:$0xff]  }
   0x5   :  { %v234_v13 = vld [vmem:[%s318_s1 + $0x64] ss:$8 sps:$4 sm:$0xff]   ;;  %v236_v14 = vld [vmem:[%s318_s1 + $0x60] ss:$8 sps:$4 sm:$0xff]   ;;  %v237_v15 = vld [vmem:[%s318_s1 + $0x74] ss:$8 sps:$4 sm:$0xff]  }
   0x6   :  { %v239_v16 = vld [vmem:[%s318_s1 + $0x70] ss:$8 sps:$4 sm:$0xff]   ;;  %v23_v17 = vld [vmem:[%s319_s0] sm:$0xf]  ;;  %v173_v19 = vshrl.u32 %v172_v18, 7 }
   0x7   :  { %123 = vmatpush1.bf16.msra.mxu0 %v221_v4  ;;  %v170_v21 = vld [vmem:[%s320_s2] sm:$0x3] }
   0x8   :  { %124 = vmatprep.subr.bf16.mxu0 %v222_v5  ;;  %v174_v20 = vsub.s32 0, %v173_v19  ;;  %v178_v22 = vsub.s32 1, %v173_v19 }
   0xa   :  { %v175_v23 = vrot.slane %v170_v21, %v174_v20  ;;  %v179_v24 = vrot.slane %v170_v21, %v178_v22 }
   0xb   :  { %125 = vmatpush1.bf16.msra.mxu0 %v224_v6 }
   0xc   :  { %126 = vmatprep.subr.bf16.mxu0 %v225_v7 }
   0xf   :  { %127 = vmatpush1.bf16.msra.mxu0 %v227_v8 }
  0x10   :  { %128 = vmatprep.subr.bf16.mxu0 %v228_v9 }
  0x13   :  { %129 = vmatpush1.bf16.msra.mxu0 %v230_v10 }
  0x14   :  { %130 = vmatprep.subr.bf16.mxu0 %v231_v11 }
  0x17   :  { %131 = vmatpush1.bf16.msra.mxu0 %v233_v12 }
  0x18   :  { %132 = vmatprep.subr.bf16.mxu0 %v234_v13 }
  0x1b   :  { %133 = vmatpush1.bf16.msra.mxu0 %v236_v14 }
  0x1c   :  { %134 = vmatprep.subr.bf16.mxu0 %v237_v15 }
  0x1f   :  { %135 = vmatpush1.bf16.msra.mxu0 %v239_v16 }
  0x22   :  { %153 = vmatmul.mubr.bf16.vlgmr.msra.gmra.mrb[0].mxu0 %v23_v17 }
  0xf5   :  { %v154_v25 = vpop.f32.mrb[0].mxu0 }
  0xf6   :  { %v182_v26 = vadd.f32 %v175_v23, %v154_v25  ;;  %v156_v27 = vpop.f32.mrb[1].mxu0 }
  0xf7   :  { %v183_v28 = vadd.f32 %v179_v24, %v156_v27  ;;  %v158_v29 = vpop.f32.mrb[2].mxu0 }
  0xf8   :  { %v159_v30 = vpop.f32.mrb[3].mxu0 }
  0xf9   :  { %v214_v31 = vpack.c.bf16 %v183_v28, %v182_v26 }
  0xfb   :  { %192 = vst [vmem:[%s321_s3] sm:$0xff] %v214_v31 }

// kernel: resnet50_bottom_forward.103
= control target key start
LH: loop header
LB: loop body
LE: loop exit
PB: predicated region body
PF: predicated region fallthrough
CT: control target
= control target key end

     0   :  { %s354_s1 = inlined_call_operand.vmem [shape: bf16[256,128], index: 1, kind: input, shape index: {}]   ;;  %s355_s0 = inlined_call_operand.vmem [shape: bf16[8,256], index: 0, kind: input, shape index: {}]   ;;  %s356_s2 = inlined_call_operand.vmem [shape: f32[1,128], index: 2, kind: input, shape index: {}]   ;;  %s357_s3 = inlined_call_operand.vmem [shape: bf16[8,128], index: 3, kind: output, shape index: {}]  }
   0x1   :  { %v259_v0 = vld [vmem:[%s354_s1 + $0x40] sm:$0xff]   ;;  %v261_v2 = vld [vmem:[%s354_s1 + $0x48] sm:$0xff]   ;;  %v263_v4 = vld [vmem:[%s354_s1 + $0x50] sm:$0xff]  }
   0x2   :  { %v260_v1 = vld [vmem:[%s354_s1] sm:$0xff]   ;;  %237 = vmatprep.subr.bf16.mxu0 %v259_v0  ;;  %v262_v3 = vld [vmem:[%s354_s1 + $0x8] sm:$0xff]   ;;  %v264_v5 = vld [vmem:[%s354_s1 + $0x10] sm:$0xff]  }
   0x3   :  { %238 = vmatpush3.bf16.msra.mxu0 %v260_v1  ;;  %v265_v6 = vld [vmem:[%s354_s1 + $0x58] sm:$0xff]   ;;  %v267_v8 = vld [vmem:[%s354_s1 + $0x60] sm:$0xff]   ;;  %v269_v10 = vld [vmem:[%s354_s1 + $0x68] sm:$0xff]  }
   0x4   :  { %239 = vmatprep.subr.bf16.mxu0 %v261_v2  ;;  %v266_v7 = vld [vmem:[%s354_s1 + $0x18] sm:$0xff]   ;;  %v268_v9 = vld [vmem:[%s354_s1 + $0x20] sm:$0xff]   ;;  %v270_v13 = vld [vmem:[%s354_s1 + $0x28] sm:$0xff]  }
   0x5   :  { %v21_v11 = vld [vmem:[%s355_s0] sm:$0xff]  ;;  %v271_v14 = vld [vmem:[%s354_s1 + $0x70] sm:$0xff]   ;;  %v273_v16 = vld [vmem:[%s354_s1 + $0x78] sm:$0xff]  }
   0x6   :  { %v219_v12 = vcombine.high %v21_v11, %v21_v11  ;;  %v272_v15 = vld [vmem:[%s354_s1 + $0x30] sm:$0xff]   ;;  %v274_v17 = vld [vmem:[%s354_s1 + $0x38] sm:$0xff]   ;;  %v218_v18 = vcombine.low %v21_v11, %v21_v11  ;;  %v236_v21 = vld [vmem:[%s356_s2] ss:$0 sm:$0xff] }
   0x7   :  { %240 = vmatpush3.bf16.msra.mxu0 %v262_v3 }
   0x8   :  { %241 = vmatprep.subr.bf16.mxu0 %v263_v4  ;;  %189 = vmatprep.mubr.bf16.mxu0 %v219_v12 }
   0xb   :  { %242 = vmatpush3.bf16.msra.mxu0 %v264_v5 }
   0xc   :  { %243 = vmatprep.subr.bf16.mxu0 %v265_v6 }
   0xf   :  { %244 = vmatpush3.bf16.msra.mxu0 %v266_v7 }
  0x10   :  { %245 = vmatprep.subr.bf16.mxu0 %v267_v8 }
  0x13   :  { %246 = vmatpush3.bf16.msra.mxu0 %v268_v9 }
  0x14   :  { %247 = vmatprep.subr.bf16.mxu0 %v269_v10 }
  0x17   :  { %248 = vmatpush3.bf16.msra.mxu0 %v270_v13 }
  0x18   :  { %249 = vmatprep.subr.bf16.mxu0 %v271_v14 }
  0x1b   :  { %250 = vmatpush3.bf16.msra.mxu0 %v272_v15 }
  0x1c   :  { %251 = vmatprep.subr.bf16.mxu0 %v273_v16 }
  0x1f   :  { %252 = vmatpush3.bf16.msra.mxu0 %v274_v17 }
  0x22   :  { %190 = vmatmul.mubr.bf16.vlgmr.msra.gmra.mrb[0].mxu0 %v218_v18 }
  0xf5   :  { %v253_v19 = vpop.f32.mrb[0].mxu0 }
  0xf6   :  { %v254_v20 = vpop.f32.mrb[1].mxu0 }
  0xf7   :  { %v255_v22 = vadd.f32 %v254_v20, %v253_v19  ;;  %v256_v23 = vpop.f32.mrb[2].mxu0 }
  0xf8   :  { %v257_v24 = vpop.f32.mrb[3].mxu0 }
  0xf9   :  { %v210_v25 = vadd.f32 %v255_v22, %v236_v21 }
  0xfb   :  { %v211_v26 = vmax.f32 %v210_v25, 0.0 }
  0xfd   :  { %v212_v27 = vpack.c.bf16 %v211_v26, %v211_v26 }
  0xff   :  { %213 = vst [vmem:[%s357_s3] sm:$0xf] %v212_v27 }

// kernel: resnet50_bottom_forward.102
= control target key start
LH: loop header
LB: loop body
LE: loop exit
PB: predicated region body
PF: predicated region fallthrough
CT: control target
= control target key end

     0   :  { %v250_v1 = vmov 0   ;;  %v175_v18 = vlaneseq  ;;  %s336_s1 = inlined_call_operand.vmem [shape: bf16[128,256], index: 1, kind: input, shape index: {}]   ;;  %s337_s0 = inlined_call_operand.vmem [shape: bf16[8,128], index: 0, kind: input, shape index: {}]   ;;  %s338_s2 = inlined_call_operand.vmem [shape: f32[1,256], index: 2, kind: input, shape index: {}]   ;;  %s339_s3 = inlined_call_operand.vmem [shape: bf16[8,256], index: 3, kind: input, shape index: {}]   ;;  %s340_s4 = inlined_call_operand.vmem [shape: bf16[8,256], index: 4, kind: output, shape index: {}]  }
   0x1   :  { %v226_v0 = vld [vmem:[%s336_s1 + $0x4] ss:$8 sps:$4 sm:$0xff]   ;;  %155 = vmatprep.mubr.bf16.mxu0 %v250_v1  ;;  %v228_v2 = vld [vmem:[%s336_s1] ss:$8 sps:$4 sm:$0xff]   ;;  %v229_v3 = vld [vmem:[%s336_s1 + $0x14] ss:$8 sps:$4 sm:$0xff]  }
   0x2   :  { %123 = vmatprep.subr.bf16.mxu0 %v226_v0  ;;  %v231_v4 = vld [vmem:[%s336_s1 + $0x10] ss:$8 sps:$4 sm:$0xff]   ;;  %v232_v5 = vld [vmem:[%s336_s1 + $0x24] ss:$8 sps:$4 sm:$0xff]   ;;  %v234_v6 = vld [vmem:[%s336_s1 + $0x20] ss:$8 sps:$4 sm:$0xff]  }
   0x3   :  { %124 = vmatpush1.bf16.msra.mxu0 %v228_v2  ;;  %v235_v7 = vld [vmem:[%s336_s1 + $0x34] ss:$8 sps:$4 sm:$0xff]   ;;  %v237_v8 = vld [vmem:[%s336_s1 + $0x30] ss:$8 sps:$4 sm:$0xff]   ;;  %v238_v9 = vld [vmem:[%s336_s1 + $0x44] ss:$8 sps:$4 sm:$0xff]  }
   0x4   :  { %125 = vmatprep.subr.bf16.mxu0 %v229_v3  ;;  %v240_v10 = vld [vmem:[%s336_s1 + $0x40] ss:$8 sps:$4 sm:$0xff]   ;;  %v241_v11 = vld [vmem:[%s336_s1 + $0x54] ss:$8 sps:$4 sm:$0xff]   ;;  %v243_v12 = vld [vmem:[%s336_s1 + $0x50] ss:$8 sps:$4 sm:$0xff]  }
   0x5   :  { %v244_v13 = vld [vmem:[%s336_s1 + $0x64] ss:$8 sps:$4 sm:$0xff]   ;;  %v246_v14 = vld [vmem:[%s336_s1 + $0x60] ss:$8 sps:$4 sm:$0xff]   ;;  %v247_v15 = vld [vmem:[%s336_s1 + $0x74] ss:$8 sps:$4 sm:$0xff]  }
   0x6   :  { %v249_v16 = vld [vmem:[%s336_s1 + $0x70] ss:$8 sps:$4 sm:$0xff]   ;;  %v26_v17 = vld [vmem:[%s337_s0] sm:$0xf]  ;;  %v176_v19 = vshrl.u32 %v175_v18, 7 }
   0x7   :  { %126 = vmatpush1.bf16.msra.mxu0 %v231_v4  ;;  %v173_v21 = vld [vmem:[%s338_s2] sm:$0x3] }
   0x8   :  { %127 = vmatprep.subr.bf16.mxu0 %v232_v5  ;;  %v177_v20 = vsub.s32 0, %v176_v19  ;;  %v181_v22 = vsub.s32 1, %v176_v19  ;;  %v187_v23 = vld [vmem:[%s339_s3] sm:$0xff] }
   0x9   :  { %v188_v26 = vunpack.c.l.bf16 %v187_v23  ;;  %v189_v28 = vunpack.c.h.bf16 %v187_v23 }
   0xa   :  { %v178_v24 = vrot.slane %v173_v21, %v177_v20  ;;  %v182_v25 = vrot.slane %v173_v21, %v181_v22 }
   0xb   :  { %128 = vmatpush1.bf16.msra.mxu0 %v234_v6 }
   0xc   :  { %129 = vmatprep.subr.bf16.mxu0 %v235_v7 }
   0xf   :  { %130 = vmatpush1.bf16.msra.mxu0 %v237_v8 }
  0x10   :  { %131 = vmatprep.subr.bf16.mxu0 %v238_v9 }
  0x13   :  { %132 = vmatpush1.bf16.msra.mxu0 %v240_v10 }
  0x14   :  { %133 = vmatprep.subr.bf16.mxu0 %v241_v11 }
  0x17   :  { %134 = vmatpush1.bf16.msra.mxu0 %v243_v12 }
  0x18   :  { %135 = vmatprep.subr.bf16.mxu0 %v244_v13 }
  0x1b   :  { %136 = vmatpush1.bf16.msra.mxu0 %v246_v14 }
  0x1c   :  { %137 = vmatprep.subr.bf16.mxu0 %v247_v15 }
  0x1f   :  { %138 = vmatpush1.bf16.msra.mxu0 %v249_v16 }
  0x22   :  { %156 = vmatmul.mubr.bf16.vlgmr.msra.gmra.mrb[0].mxu0 %v26_v17 }
  0xf5   :  { %v157_v27 = vpop.f32.mrb[0].mxu0 }
  0xf6   :  { %v185_v29 = vadd.f32 %v178_v24, %v157_v27  ;;  %v159_v30 = vpop.f32.mrb[1].mxu0 }
  0xf7   :  { %v186_v31 = vadd.f32 %v182_v25, %v159_v30  ;;  %v161_v32 = vpop.f32.mrb[2].mxu0 }
  0xf8   :  { %v190_v33 = vadd.f32 %v188_v26, %v185_v29  ;;  %v162_v34 = vpop.f32.mrb[3].mxu0 }
  0xf9   :  { %v191_v35 = vadd.f32 %v189_v28, %v186_v31 }
  0xfa   :  { %v192_v36 = vmax.f32 %v190_v33, 0.0 }
  0xfb   :  { %v193_v37 = vmax.f32 %v191_v35, 0.0 }
  0xfd   :  { %v224_v38 = vpack.c.bf16 %v193_v37, %v192_v36 }
  0xff   :  { %202 = vst [vmem:[%s340_s4] sm:$0xff] %v224_v38 }

// kernel: resnet50_bottom_forward.109
= control target key start
LH: loop header
LB: loop body
LE: loop exit
PB: predicated region body
PF: predicated region fallthrough
CT: control target
= control target key end

     0   :  { %s252_s6 = smov 0   ;;  %s273_s0 = inlined_call_operand.vmem [shape: bf16[2,4,256], index: 0, kind: input, shape index: {}]   ;;  %s274_s1 = inlined_call_operand.vmem [shape: f32[2,1,256], index: 1, kind: output, shape index: {}]  }
   0x1 LB: > { %s213_s7 = sadd.s32 4294967295, %s239_s6   ;;  %p217_p0 = scmp.ge.s32.totalorder %s239_s6, 1  ;;  %s239_s6 = sphi %s252_s6, %s11_s6  }
   0x2   : > { %p87_p1 = scmp.lt.s32.totalorder %s239_s6, 3 }
   0x4   : > { %p88_p2 = pnand %p217_p0, %p87_p1 }
   0x5   : > { %p106_p3 = scmp.lt.s32.totalorder (!%p88_p2), %s213_s7, 1  ;;  %vm120_vm0 = vcmask (!%p88_p2), 1043456   ;;  %v241_v12 = vmov (!%p88_p2), 1966171168   ;;  %v143_v14 = vlaneseq (!%p88_p2) }
   0x6   : > { %91 = sbr.rel (%p88_p2) target bundleno = 43 (0x2b), region = 24  ;;  %v141_v13 = vunpack.c.l.s4 (!%p88_p2), %v241_v12 }
   0x7   : > { %v144_v20 = vshrl.u32 (!%p88_p2), %v143_v14, 7  ;;  %vm157_vm1 = vcmp.lt.s32.totalorder (!%p88_p2), %v143_v14, 256 }
   0x8   : > { %v142_v19 = vunpack.c.0.s8 (!%p88_p2), %v141_v13 }
   0xa   : > { %v145_v24 = vsub.s32 (!%p88_p2), %v142_v19, %v144_v20 }
   0xd   : > { %s276_s7 = smov (!%p106_p3, %s213_s7), 1 }
   0xe   : > { %s223_s8 = sshll.u32 %s276_s7, 2  ;;  %s220_s12 = sshll.u32 %s276_s7, 1 }
   0xf   : > { %s110_s11 = scalar_lea.vmem %s273_s0, %s223_s8  ;;  %s114_s15 = scalar_lea.vmem %s274_s1, %s220_s12 }
  0x10   : > { %v115_v0 = vld [vmem:[%s110_s11] sm:$0xf] }
  0x11   : > { %v116_v1 = vunpack.c.l.bf16 %v115_v0 }
  0x13   : > { %v118_v2 = vcombine.high %v116_v1, %v116_v1  ;;  %v121_v3 = vsel %vm120_vm0, %v116_v1, 0.0 }
  0x14   : > { %v122_v4 = vrot.slane %v121_v3, 4 }
  0x15   : > { %v128_v5 = vsel %vm120_vm0, %v118_v2, 0.0 }
  0x16   : > { %v123_v6 = vadd.f32 %v122_v4, %v121_v3  ;;  %v129_v7 = vrot.slane %v128_v5, 4 }
  0x18   : > { %v124_v8 = vrot.slane %v123_v6, 2  ;;  %v130_v9 = vadd.f32 %v129_v7, %v128_v5 }
  0x1a   : > { %v125_v10 = vadd.f32 %v124_v8, %v123_v6  ;;  %v131_v11 = vrot.slane %v130_v9, 2 }
  0x1c   : > { %v126_v15 = vrot.slane %v125_v10, 1  ;;  %v132_v16 = vadd.f32 %v131_v11, %v130_v9 }
  0x1e   : > { %v127_v17 = vadd.f32 %v126_v15, %v125_v10  ;;  %v133_v18 = vrot.slane %v132_v16, 1 }
  0x20   : > { %v134_v21 = vadd.f32 %v133_v18, %v132_v16  ;;  %v135_v22 = vmul.f32 0.25, %v127_v17 }
  0x22   : > { %v136_v23 = vmul.f32 0.25, %v134_v21 }
  0x24   : > { %v139_v25 = vcombine.low %v135_v22, %v136_v23 }
  0x26   : > { %v146_v26 = vrot.slane %v139_v25, %v145_v24 }
  0x28   : > { %v153_v27 = vrot.slane %v146_v26, %v145_v24 }
  0x2a   : > { %159 = vst.msk [vmem:[%s114_s15] sm:$0x3] %vm157_vm1, %v153_v27 }
  0x2b PF: > { %s11_s6 = sadd.s32 1, %s239_s6  }
  0x2c   : > { %p8_p4 = scmp.ge.s32.totalorder %s11_s6, 4  }
  0x2e   :  { %10 = sbr.rel (!%p8_p4) target bundleno = 1 (0x1), region = 54 }

</bundles_post_ra>
